<compile_context>
chip_gen: v7x
topology: tpu7x:2x2x1
jax: 0.10.0
libtpu: 0.0.40
codegen_flags: <defaults>
</compile_context>

<pallas_src>
import math
import numpy as np
import jax
import jax.numpy as jnp
from jax import lax
from jax.experimental import pallas as pl
from jax.experimental.pallas import tpu as pltpu

LANE = 128   # padded channel width of the fused slab


# ==========================================================================
# Single fused kernel: 3 downsampler branches + concat + spatial & hydra attention
# ==========================================================================
def make_fused_kernel(n_tok, n_batch):
    """n_tok = pixels per batch at the fused resolution, n_batch = B (static)."""

    def kernel(t1_ref, t2_ref, t3_ref, x4_ref,
               w11_ref, b11_ref, w21_ref, b21_ref,
               s12_ref, w12_ref, b12_ref,
               sfin_ref, w13_ref, w22_ref, w3f_ref, bfin_ref,
               wqkvh_ref, bqkvh_ref, w2_ref, wp_ref, bp_ref, b2_ref,
               o_ref):
        f32, bf16 = jnp.float32, jnp.bfloat16

        def mm(a, b):                       # bf16-operand MXU matmul, f32 accumulate
            return jnp.dot(a.astype(bf16), b.astype(bf16), preferred_element_type=f32)

        def silu(z):                        # dropout = identity (eval)
            return z * jax.nn.sigmoid(z)

        # ---- first conv of branch 1 / branch 2 (wrapper-side taps, one matmul each) ----
        y11 = silu(mm(t1_ref[...], w11_ref[...]) + b11_ref[...])       # (B*N1, c0)
        y21 = silu(mm(t2_ref[...], w21_ref[...]) + b21_ref[...])       # (B*N2, c1)

        # ---- chained conv: in-VMEM 3x3/s2 tap gather via constant selection matmul ----
        def conv_chain(y_in, s_ref, w_ref):
            taps = mm(s_ref[...], y_in)                                 # (9*R_out, C_in)
            r_out = taps.shape[0] // 9
            acc = mm(taps[0:r_out], w_ref[0])
            for t in range(1, 9):                                       # static, unrolled
                acc = acc + mm(taps[t * r_out:(t + 1) * r_out], w_ref[t])
            return acc

        y12 = silu(conv_chain(y11, s12_ref, w12_ref) + b12_ref[...])    # (B*N2, c0)

        # ---- final conv of each branch -> disjoint lanes of the (B*N, 128) slab ----
        pre = (conv_chain(y12, sfin_ref, w13_ref) +                     # branch 1 -> lanes [0, c0)
               conv_chain(y21, sfin_ref, w22_ref) +                     # branch 2 -> lanes [c0, c0+c1)
               mm(t3_ref[...], w3f_ref[...]) +                          # branch 3 -> lanes [c0+c1, ..)
               bfin_ref[...])                                            # 3 biases pre-summed
        x = silu(pre) + x4_ref[...]                                      # x4 pre-placed; pad lanes stay 0

        # ---- fused q / k / v / spatial-attn-hidden projection (one matmul) ----
        qkvh = mm(x, wqkvh_ref[...]) + bqkvh_ref[...]                    # (B*N, 4*128)
        cp = x.shape[-1]
        q = qkvh[:, 0 * cp:1 * cp]
        k = qkvh[:, 1 * cp:2 * cp]
        v = qkvh[:, 2 * cp:3 * cp]
        h = qkvh[:, 3 * cp:4 * cp]

        # ---- spatial attention: per-pixel channel MLP -> sigmoid gate ----
        h = silu(h)
        logit = jnp.sum(h * w2_ref[...], axis=-1, keepdims=True) + b2_ref[0, 0]
        sp = x * jax.nn.sigmoid(logit)                                   # lanes [0, Csum)

        # ---- hydra channel attention (linear attention), per-batch token reduction ----
        eps2 = 1e-24                         # (eps=1e-12)^2, clamp BEFORE rsqrt (F.normalize)
        qn = q * lax.rsqrt(jnp.maximum(jnp.sum(q * q, axis=-1, keepdims=True), eps2))
        kn = k * lax.rsqrt(jnp.maximum(jnp.sum(k * k, axis=-1, keepdims=True), eps2))
        kvp = kn * v
        kv_rows = []
        for b in range(n_batch):                                         # static, unrolled
            seg = kvp[b * n_tok:(b + 1) * n_tok]                          # (N, 128) sublane slice
            kv_rows.append(jnp.broadcast_to(jnp.sum(seg, axis=0, keepdims=True), (n_tok, cp)))
        kv = jnp.concatenate(kv_rows, axis=0)                             # (B*N, 128), per-row batch kv
        ch = mm(qn * kv, wp_ref[...]) + bp_ref[...]                       # lanes [Csum, 2*Csum)

        o_ref[...] = (sp + ch).astype(o_ref.dtype)                        # one unmasked 128-lane store

    return kernel


# ==========================================================================
# Wrapper-side glue
# ==========================================================================
def im2col_s2(x_nhwc):
    """9 stride-2 taps of a 3x3/pad-1 window -> (B, N_out, 9C).
    Wrapper-side, used only for tensors that already live in HBM (branch inputs)."""
    B, H, W, C = x_nhwc.shape
    Ho, Wo = H // 2, W // 2
    xp = jnp.pad(x_nhwc, ((0, 0), (1, 1), (1, 1), (0, 0)))
    taps = [xp[:, di:di + 2 * Ho - 1:2, dj:dj + 2 * Wo - 1:2, :]
            for di in range(3) for dj in range(3)]
    return jnp.concatenate(taps, axis=-1).reshape(B, Ho * Wo, 9 * C)


def build_tap_selection(h_in, w_in, batch):
    """Constant 0/1 matrix gathering the 9 stride-2/pad-1 taps of an (h_in, w_in) map whose
    pixels are stored as rows (batch-major).  Shape (9*batch*n_out, batch*n_in); tap t's
    block is kron(I_batch, S_t).  Out-of-range (padding) taps give all-zero rows."""
    h_out, w_out = h_in // 2, w_in // 2
    n_in, n_out = h_in * w_in, h_out * w_out
    eye_b = np.eye(batch, dtype=np.float32)
    blocks = []
    for di in range(3):
        for dj in range(3):
            s = np.zeros((n_out, n_in), np.float32)
            for i in range(h_out):
                r = 2 * i + di - 1
                if 0 <= r < h_in:
                    for j in range(w_out):
                        c = 2 * j + dj - 1
                        if 0 <= c < w_in:
                            s[i * w_out + j, r * w_in + c] = 1.0
            blocks.append(np.kron(eye_b, s))
    return np.concatenate(blocks, axis=0)


# ==========================================================================
# Deterministic parameter construction + trace-time folding
# ==========================================================================
def init_single_conv_params(key, C):
    k1, k2, k3, k4 = jax.random.split(key, 4)
    dw = jax.random.normal(k1, (9, C), jnp.float32) * (1.0 / 3.0)           # depthwise 3x3
    pw = jax.random.normal(k2, (C, C), jnp.float32) * (1.0 / math.sqrt(C))  # pointwise 1x1
    gamma = 1.0 + 0.1 * jax.random.normal(k3, (1, C), jnp.float32)
    beta = 0.1 * jax.random.normal(k4, (1, C), jnp.float32)
    eps = 1e-5
    # BatchNorm (eval) with synthetic running_mean=0 / running_var=1 folded to scale/bias.
    # TODO(synk): for real checkpoints fold scale = gamma/sqrt(var+eps), bias = beta - mean*scale.
    scale = gamma / jnp.sqrt(1.0 + eps)
    bias = beta
    return dw, pw, scale, bias


def init_attention_params(key, C, fc_reduction):
    Cr = max(1, C // fc_reduction)
    keys = jax.random.split(key, 6)
    s = 1.0 / math.sqrt(C)
    w1 = jax.random.normal(keys[0], (C, Cr), jnp.float32) * s
    b1 = jnp.zeros((1, Cr), jnp.float32)
    w2 = jax.random.normal(keys[1], (1, Cr), jnp.float32) * (1.0 / math.sqrt(Cr))
    b2 = jnp.zeros((1, 1), jnp.float32)
    wq = jax.random.normal(keys[2], (C, C), jnp.float32) * s
    bq = jnp.zeros((1, C), jnp.float32)
    wk = jax.random.normal(keys[3], (C, C), jnp.float32) * s
    bk = jnp.zeros((1, C), jnp.float32)
    wv = jax.random.normal(keys[4], (C, C), jnp.float32) * s
    bv = jnp.zeros((1, C), jnp.float32)
    wp = jax.random.normal(keys[5], (C, C), jnp.float32) * s
    bp = jnp.zeros((1, C), jnp.float32)
    return (w1, b1, w2, b2, wq, bq, wk, bk, wv, bv, wp, bp)


def fold_single_conv(params):
    """depthwise(9,C) x pointwise(C,C) x BN-scale -> one (9C, C) weight + (1, C) bias."""
    dw, pw, scale, bias = params
    C = pw.shape[0]
    w = (dw[:, :, None] * pw[None, :, :]).reshape(9 * C, C) * scale
    return w, bias


def per_tap_weights(params, col_off=None, width=None):
    """Folded conv weight as 9 per-tap (C_in, C_out) mats, optionally column-shifted
    into output lanes [col_off, col_off+C) of a `width`-wide slab."""
    w, b = fold_single_conv(params)
    C = b.shape[1]
    w = w.reshape(9, C, C)
    if col_off is None:
        return w, b
    w_s = jnp.zeros((9, C, width), jnp.float32).at[:, :, col_off:col_off + C].set(w)
    b_s = jnp.zeros((1, width), jnp.float32).at[:, col_off:col_off + C].set(b)
    return w_s, b_s


def folded_shifted(params, col_off, width):
    """Folded (9C, C) conv weight embedded at output lanes [col_off, col_off+C)."""
    w, b = fold_single_conv(params)
    K, C = w.shape
    w_s = jnp.zeros((K, width), jnp.float32).at[:, col_off:col_off + C].set(w)
    b_s = jnp.zeros((1, width), jnp.float32).at[:, col_off:col_off + C].set(b)
    return w_s, b_s


def pad_attention_params(attn_params, C, Cp):
    """Embed attention weights into the 128-lane layout; fuse q/k/v/hidden into one
    (Cp, 4Cp) weight; shift the hydra projection to output lanes [C, 2C)."""
    (w1, b1, w2, b2, wq, bq, wk, bk, wv, bv, wp, bp) = attn_params
    Cr = w1.shape[1]

    def embed(w, b):
        Co = w.shape[1]
        wpad = jnp.zeros((Cp, Cp), jnp.float32).at[:C, :Co].set(w)
        bpad = jnp.zeros((1, Cp), jnp.float32).at[:, :Co].set(b)
        return wpad, bpad

    wq_p, bq_p = embed(wq, bq)
    wk_p, bk_p = embed(wk, bk)
    wv_p, bv_p = embed(wv, bv)
    w1_p, b1_p = embed(w1, b1)
    wqkvh = jnp.concatenate([wq_p, wk_p, wv_p, w1_p], axis=1)        # (Cp, 4Cp)
    bqkvh = jnp.concatenate([bq_p, bk_p, bv_p, b1_p], axis=1)        # (1, 4Cp)
    w2_p = jnp.zeros((1, Cp), jnp.float32).at[:, :Cr].set(w2)
    wp_s = jnp.zeros((Cp, Cp), jnp.float32).at[:C, C:2 * C].set(wp)  # channel-attn -> lanes [C, 2C)
    bp_s = jnp.zeros((1, Cp), jnp.float32).at[:, C:2 * C].set(bp)
    return wqkvh, bqkvh, w2_p, b2, wp_s, bp_s


# ==========================================================================
# Module wrapper (fusion_attn_repeat=None path, the PyTorch default)
# ==========================================================================
class HybridAttentiveFusionLite:
    def __init__(self, key, channels=(4, 8, 16, 32), fc_reduction=16):
        self.channels = tuple(channels)
        c0, c1, c2, _ = self.channels
        self.Csum = sum(self.channels)
        self.Cp = LANE
        assert 2 * self.Csum <= self.Cp, "padded lane width must hold [spatial | channel] outputs"

        ks = jax.random.split(key, 7)
        triple = [init_single_conv_params(ks[i], c0) for i in range(3)]
        double = [init_single_conv_params(ks[3 + i], c1) for i in range(2)]
        single = init_single_conv_params(ks[5], c2)
        attn = init_attention_params(ks[6], self.Csum, fc_reduction)

        bf16 = jnp.bfloat16
        # first conv of branches 1 and 2 (plain folded matmul on wrapper-side taps)
        w11, self.b11 = fold_single_conv(triple[0]); self.w11 = w11.astype(bf16)
        w21, self.b21 = fold_single_conv(double[0]); self.w21 = w21.astype(bf16)
        # branch-1 layer 2 (chained in-kernel, un-shifted per-tap weights)
        w12, self.b12 = per_tap_weights(triple[1]); self.w12 = w12.astype(bf16)
        # final conv of each branch, column-shifted into the fused 128-lane layout
        w13, b13 = per_tap_weights(triple[2], col_off=0, width=self.Cp)
        w22, b22 = per_tap_weights(double[1], col_off=c0, width=self.Cp)
        w3f, b3f = folded_shifted(single, col_off=c0 + c1, width=self.Cp)
        self.w13, self.w22, self.w3f = w13.astype(bf16), w22.astype(bf16), w3f.astype(bf16)
        self.bfin = b13 + b22 + b3f                    # single folded (1, 128) final-conv bias

        wqkvh, self.bqkvh, self.w2, self.b2, wp, self.bp = \
            pad_attention_params(attn, self.Csum, self.Cp)
        self.wqkvh, self.wp = wqkvh.astype(bf16), wp.astype(bf16)

        self._sel_cache = {}
        # TODO(synk): fusion_attn_repeat > 0 branch (iterated sa+ca residual) not wired;
        # the PyTorch default (None) path is implemented.

    def __call__(self, x1, x2, x3, x4):
        bf16 = jnp.bfloat16
        c0, c1, c2, c3 = self.channels
        to_nhwc = lambda t: jnp.transpose(t, (0, 2, 3, 1))
        x1, x2, x3, x4 = to_nhwc(x1), to_nhwc(x2), to_nhwc(x3), to_nhwc(x4)

        B, H4, W4, _ = x4.shape
        N = H4 * W4
        H1, W1 = x1.shape[1], x1.shape[2]
        assert (H1, W1) == (8 * H4, 8 * W4)
        assert (x2.shape[1], x2.shape[2]) == (4 * H4, 4 * W4)
        assert (x3.shape[1], x3.shape[2]) == (2 * H4, 2 * W4)

        # wrapper-side im2col only for the HBM-resident branch inputs (bf16 MXU operands)
        t1 = im2col_s2(x1).reshape(B * (H1 // 2) * (W1 // 2), 9 * c0).astype(bf16)
        t2 = im2col_s2(x2).reshape(B * (2 * H4) * (2 * W4), 9 * c1).astype(bf16)
        t3 = im2col_s2(x3).reshape(B * N, 9 * c2).astype(bf16)

        # x4 pre-placed at its concat lanes of the padded 128-lane slab
        off4 = c0 + c1 + c2
        x4p = jnp.pad(x4.reshape(B * N, c3), ((0, 0), (off4, self.Cp - off4 - c3)))

        # constant tap-selection matrices for the in-kernel (VMEM-resident) conv layers
        ck = (B, H4, W4)
        if ck not in self._sel_cache:
            s12 = build_tap_selection(4 * H4, 4 * W4, B)    # branch-1 L2 (4x -> 2x final res)
            sfin = build_tap_selection(2 * H4, 2 * W4, B)   # shared: branch-1 L3 and branch-2 L2
            self._sel_cache[ck] = (jnp.asarray(s12, bf16), jnp.asarray(sfin, bf16))
        s12, sfin = self._sel_cache[ck]

        args = (t1, t2, t3, x4p,
                self.w11, self.b11, self.w21, self.b21,
                s12, self.w12, self.b12,
                sfin, self.w13, self.w22, self.w3f, self.bfin,
                self.wqkvh, self.bqkvh, self.w2, self.wp, self.bp, self.b2)

        def vspec(a):
            nd = a.ndim
            return pl.BlockSpec(a.shape, lambda i, _nd=nd: (0,) * _nd)

        in_specs = [vspec(a) for a in args[:-1]] + \
                   [pl.BlockSpec(memory_space=pltpu.MemorySpace.SMEM)]   # scalar b2 -> SMEM

        # TODO(synk): at production sizes (large B*H*W) tile the row dimension with a grid
        # ("parallel") instead of a single block to respect v7x's 64 MiB VMEM; at the toy
        # sizes here everything fits in a few MiB, so a single grid step avoids per-step
        # launch overhead entirely.
        out = pl.pallas_call(
            make_fused_kernel(N, B),
            out_shape=jax.ShapeDtypeStruct((B * N, self.Cp), jnp.float32),
            grid_spec=pltpu.PrefetchScalarGridSpec(
                num_scalar_prefetch=0,
                grid=(1,),
                in_specs=in_specs,
                out_specs=pl.BlockSpec((B * N, self.Cp), lambda i: (0, 0)),
            ),
            compiler_params=pltpu.CompilerParams(dimension_semantics=("arbitrary",)),
        )(*args)

        C2 = 2 * self.Csum
        out = out[:, :C2].reshape(B, H4, W4, C2)
        return jnp.transpose(out, (0, 3, 1, 2))             # NCHW (B, 2*Csum, H4, W4)


if __name__ == "__main__":
    channels = (4, 8, 16, 32)
    B = 2
    key = jax.random.PRNGKey(0)
    kx, kp = jax.random.split(key)
    k1, k2, k3, k4 = jax.random.split(kx, 4)
    # x1..x4 at decreasing resolution so that after /8, /4, /2, /1 they align at 4x4
    x1 = jax.random.normal(k1, (B, channels[0], 32, 32), jnp.float32)
    x2 = jax.random.normal(k2, (B, channels[1], 16, 16), jnp.float32)
    x3 = jax.random.normal(k3, (B, channels[2], 8, 8), jnp.float32)
    x4 = jax.random.normal(k4, (B, channels[3], 4, 4), jnp.float32)

    model = HybridAttentiveFusionLite(kp, channels=channels, fc_reduction=16)
    out = model(x1, x2, x3, x4)
    out = jax.block_until_ready(out)
    assert out.shape == (B, 2 * sum(channels), 4, 4), out.shape
    assert bool(jnp.all(jnp.isfinite(out)))
    print("KERNEL_OK")
</pallas_src>

<mosaic_0001>
module attributes {stable_mosaic.version = 11 : i64} {
  func.func @kernel(%arg0: i32, %arg1: memref<512x36xbf16, #tpu.memory_space<vmem>>, %arg2: memref<128x72xbf16, #tpu.memory_space<vmem>>, %arg3: memref<32x144xbf16, #tpu.memory_space<vmem>>, %arg4: memref<32x128xf32, #tpu.memory_space<vmem>>, %arg5: memref<36x4xbf16, #tpu.memory_space<vmem>>, %arg6: memref<1x4xf32, #tpu.memory_space<vmem>>, %arg7: memref<72x8xbf16, #tpu.memory_space<vmem>>, %arg8: memref<1x8xf32, #tpu.memory_space<vmem>>, %arg9: memref<1152x512xbf16, #tpu.memory_space<vmem>>, %arg10: memref<9x4x4xbf16, #tpu.memory_space<vmem>>, %arg11: memref<1x4xf32, #tpu.memory_space<vmem>>, %arg12: memref<288x128xbf16, #tpu.memory_space<vmem>>, %arg13: memref<9x4x128xbf16, #tpu.memory_space<vmem>>, %arg14: memref<9x8x128xbf16, #tpu.memory_space<vmem>>, %arg15: memref<144x128xbf16, #tpu.memory_space<vmem>>, %arg16: memref<1x128xf32, #tpu.memory_space<vmem>>, %arg17: memref<128x512xbf16, #tpu.memory_space<vmem>>, %arg18: memref<1x512xf32, #tpu.memory_space<vmem>>, %arg19: memref<1x128xf32, #tpu.memory_space<vmem>>, %arg20: memref<128x128xbf16, #tpu.memory_space<vmem>>, %arg21: memref<1x128xf32, #tpu.memory_space<vmem>>, %arg22: memref<1x1xf32, #tpu.memory_space<smem>>, %arg23: memref<32x128xf32, #tpu.memory_space<vmem>>) attributes {dimension_semantics = [#tpu.dimension_semantics<arbitrary>], iteration_bounds = array<i64: 1>, scalar_prefetch = 0 : i64, scratch_operands = 0 : i64, tpu.core_type = #tpu.core_type<tc>, window_params = [{pipeline_mode = #tpu.pipeline_mode<synchronous>, transform_indices = @transform_0, window_bounds = array<i64: 512, 36>}, {pipeline_mode = #tpu.pipeline_mode<synchronous>, transform_indices = @transform_1, window_bounds = array<i64: 128, 72>}, {pipeline_mode = #tpu.pipeline_mode<synchronous>, transform_indices = @transform_2, window_bounds = array<i64: 32, 144>}, {pipeline_mode = #tpu.pipeline_mode<synchronous>, transform_indices = @transform_3, window_bounds = array<i64: 32, 128>}, {pipeline_mode = #tpu.pipeline_mode<synchronous>, transform_indices = @transform_4, window_bounds = array<i64: 36, 4>}, {pipeline_mode = #tpu.pipeline_mode<synchronous>, transform_indices = @transform_5, window_bounds = array<i64: 1, 4>}, {pipeline_mode = #tpu.pipeline_mode<synchronous>, transform_indices = @transform_6, window_bounds = array<i64: 72, 8>}, {pipeline_mode = #tpu.pipeline_mode<synchronous>, transform_indices = @transform_7, window_bounds = array<i64: 1, 8>}, {pipeline_mode = #tpu.pipeline_mode<synchronous>, transform_indices = @transform_8, window_bounds = array<i64: 1152, 512>}, {pipeline_mode = #tpu.pipeline_mode<synchronous>, transform_indices = @transform_9, window_bounds = array<i64: 9, 4, 4>}, {pipeline_mode = #tpu.pipeline_mode<synchronous>, transform_indices = @transform_10, window_bounds = array<i64: 1, 4>}, {pipeline_mode = #tpu.pipeline_mode<synchronous>, transform_indices = @transform_11, window_bounds = array<i64: 288, 128>}, {pipeline_mode = #tpu.pipeline_mode<synchronous>, transform_indices = @transform_12, window_bounds = array<i64: 9, 4, 128>}, {pipeline_mode = #tpu.pipeline_mode<synchronous>, transform_indices = @transform_13, window_bounds = array<i64: 9, 8, 128>}, {pipeline_mode = #tpu.pipeline_mode<synchronous>, transform_indices = @transform_14, window_bounds = array<i64: 144, 128>}, {pipeline_mode = #tpu.pipeline_mode<synchronous>, transform_indices = @transform_15, window_bounds = array<i64: 1, 128>}, {pipeline_mode = #tpu.pipeline_mode<synchronous>, transform_indices = @transform_16, window_bounds = array<i64: 128, 512>}, {pipeline_mode = #tpu.pipeline_mode<synchronous>, transform_indices = @transform_17, window_bounds = array<i64: 1, 512>}, {pipeline_mode = #tpu.pipeline_mode<synchronous>, transform_indices = @transform_18, window_bounds = array<i64: 1, 128>}, {pipeline_mode = #tpu.pipeline_mode<synchronous>, transform_indices = @transform_19, window_bounds = array<i64: 128, 128>}, {pipeline_mode = #tpu.pipeline_mode<synchronous>, transform_indices = @transform_20, window_bounds = array<i64: 1, 128>}, {transform_indices = @transform_21, window_bounds = array<i64: 1, 1>}, {pipeline_mode = #tpu.pipeline_mode<synchronous>, transform_indices = @transform_22, window_bounds = array<i64: 32, 128>}]} {
    %c0 = arith.constant 0 : index
    %c0_0 = arith.constant 0 : index
    %0 = vector.load %arg1[%c0, %c0_0] : memref<512x36xbf16, #tpu.memory_space<vmem>>, vector<512x36xbf16>
    %c0_1 = arith.constant 0 : index
    %c0_2 = arith.constant 0 : index
    %1 = vector.load %arg5[%c0_1, %c0_2] : memref<36x4xbf16, #tpu.memory_space<vmem>>, vector<36x4xbf16>
    %cst = arith.constant dense<0.000000e+00> : vector<512x4xf32>
    %2 = tpu.matmul %0, %1, %cst {dimension_numbers = #tpu.dot_dimension_numbers<[1], [0], [0], [1], [0, 0, 1, 1], [], []>} : vector<512x36xbf16>, vector<36x4xbf16>, vector<512x4xf32> -> vector<512x4xf32>
    %c0_3 = arith.constant 0 : index
    %c0_4 = arith.constant 0 : index
    %3 = vector.load %arg6[%c0_3, %c0_4] : memref<1x4xf32, #tpu.memory_space<vmem>>, vector<1x4xf32>
    %4 = vector.broadcast %3 : vector<1x4xf32> to vector<512x4xf32>
    %5 = arith.addf %2, %4 : vector<512x4xf32>
    %6 = arith.negf %5 : vector<512x4xf32>
    %7 = math.exp %6 : vector<512x4xf32>
    %cst_5 = arith.constant 1.000000e+00 : f32
    %8 = vector.broadcast %cst_5 : f32 to vector<512x4xf32>
    %9 = arith.addf %8, %7 : vector<512x4xf32>
    %10 = arith.divf %8, %9 : vector<512x4xf32>
    %11 = arith.mulf %5, %10 : vector<512x4xf32>
    %c0_6 = arith.constant 0 : index
    %c0_7 = arith.constant 0 : index
    %12 = vector.load %arg2[%c0_6, %c0_7] : memref<128x72xbf16, #tpu.memory_space<vmem>>, vector<128x72xbf16>
    %c0_8 = arith.constant 0 : index
    %c0_9 = arith.constant 0 : index
    %13 = vector.load %arg7[%c0_8, %c0_9] : memref<72x8xbf16, #tpu.memory_space<vmem>>, vector<72x8xbf16>
    %cst_10 = arith.constant dense<0.000000e+00> : vector<128x8xf32>
    %14 = tpu.matmul %12, %13, %cst_10 {dimension_numbers = #tpu.dot_dimension_numbers<[1], [0], [0], [1], [0, 0, 1, 1], [], []>} : vector<128x72xbf16>, vector<72x8xbf16>, vector<128x8xf32> -> vector<128x8xf32>
    %c0_11 = arith.constant 0 : index
    %c0_12 = arith.constant 0 : index
    %15 = vector.load %arg8[%c0_11, %c0_12] : memref<1x8xf32, #tpu.memory_space<vmem>>, vector<1x8xf32>
    %16 = vector.broadcast %15 : vector<1x8xf32> to vector<128x8xf32>
    %17 = arith.addf %14, %16 : vector<128x8xf32>
    %18 = arith.negf %17 : vector<128x8xf32>
    %19 = math.exp %18 : vector<128x8xf32>
    %cst_13 = arith.constant 1.000000e+00 : f32
    %20 = vector.broadcast %cst_13 : f32 to vector<128x8xf32>
    %21 = arith.addf %20, %19 : vector<128x8xf32>
    %22 = arith.divf %20, %21 : vector<128x8xf32>
    %23 = arith.mulf %17, %22 : vector<128x8xf32>
    %c0_14 = arith.constant 0 : index
    %c0_15 = arith.constant 0 : index
    %24 = vector.load %arg9[%c0_14, %c0_15] : memref<1152x512xbf16, #tpu.memory_space<vmem>>, vector<1152x512xbf16>
    %25 = arith.truncf %11 : vector<512x4xf32> to vector<512x4xbf16>
    %cst_16 = arith.constant dense<0.000000e+00> : vector<1152x4xf32>
    %26 = tpu.matmul %24, %25, %cst_16 {dimension_numbers = #tpu.dot_dimension_numbers<[1], [0], [0], [1], [0, 0, 1, 1], [], []>} : vector<1152x512xbf16>, vector<512x4xbf16>, vector<1152x4xf32> -> vector<1152x4xf32>
    %27 = vector.extract_strided_slice %26 {offsets = [0, 0], sizes = [128, 4], strides = [1, 1]} : vector<1152x4xf32> to vector<128x4xf32>
    %c0_17 = arith.constant 0 : index
    %c0_18 = arith.constant 0 : index
    %c0_19 = arith.constant 0 : index
    %28 = vector.load %arg10[%c0_17, %c0_18, %c0_19] : memref<9x4x4xbf16, #tpu.memory_space<vmem>>, vector<1x4x4xbf16>
    %29 = vector.shape_cast %28 : vector<1x4x4xbf16> to vector<4x4xbf16>
    %30 = arith.truncf %27 : vector<128x4xf32> to vector<128x4xbf16>
    %cst_20 = arith.constant dense<0.000000e+00> : vector<128x4xf32>
    %31 = tpu.matmul %30, %29, %cst_20 {dimension_numbers = #tpu.dot_dimension_numbers<[1], [0], [0], [1], [0, 0, 1, 1], [], []>} : vector<128x4xbf16>, vector<4x4xbf16>, vector<128x4xf32> -> vector<128x4xf32>
    %32 = vector.extract_strided_slice %26 {offsets = [128, 0], sizes = [128, 4], strides = [1, 1]} : vector<1152x4xf32> to vector<128x4xf32>
    %c1 = arith.constant 1 : index
    %c0_21 = arith.constant 0 : index
    %c0_22 = arith.constant 0 : index
    %33 = vector.load %arg10[%c1, %c0_21, %c0_22] : memref<9x4x4xbf16, #tpu.memory_space<vmem>>, vector<1x4x4xbf16>
    %34 = vector.shape_cast %33 : vector<1x4x4xbf16> to vector<4x4xbf16>
    %35 = arith.truncf %32 : vector<128x4xf32> to vector<128x4xbf16>
    %cst_23 = arith.constant dense<0.000000e+00> : vector<128x4xf32>
    %36 = tpu.matmul %35, %34, %cst_23 {dimension_numbers = #tpu.dot_dimension_numbers<[1], [0], [0], [1], [0, 0, 1, 1], [], []>} : vector<128x4xbf16>, vector<4x4xbf16>, vector<128x4xf32> -> vector<128x4xf32>
    %37 = arith.addf %31, %36 : vector<128x4xf32>
    %38 = vector.extract_strided_slice %26 {offsets = [256, 0], sizes = [128, 4], strides = [1, 1]} : vector<1152x4xf32> to vector<128x4xf32>
    %c2 = arith.constant 2 : index
    %c0_24 = arith.constant 0 : index
    %c0_25 = arith.constant 0 : index
    %39 = vector.load %arg10[%c2, %c0_24, %c0_25] : memref<9x4x4xbf16, #tpu.memory_space<vmem>>, vector<1x4x4xbf16>
    %40 = vector.shape_cast %39 : vector<1x4x4xbf16> to vector<4x4xbf16>
    %41 = arith.truncf %38 : vector<128x4xf32> to vector<128x4xbf16>
    %cst_26 = arith.constant dense<0.000000e+00> : vector<128x4xf32>
    %42 = tpu.matmul %41, %40, %cst_26 {dimension_numbers = #tpu.dot_dimension_numbers<[1], [0], [0], [1], [0, 0, 1, 1], [], []>} : vector<128x4xbf16>, vector<4x4xbf16>, vector<128x4xf32> -> vector<128x4xf32>
    %43 = arith.addf %37, %42 : vector<128x4xf32>
    %44 = vector.extract_strided_slice %26 {offsets = [384, 0], sizes = [128, 4], strides = [1, 1]} : vector<1152x4xf32> to vector<128x4xf32>
    %c3 = arith.constant 3 : index
    %c0_27 = arith.constant 0 : index
    %c0_28 = arith.constant 0 : index
    %45 = vector.load %arg10[%c3, %c0_27, %c0_28] : memref<9x4x4xbf16, #tpu.memory_space<vmem>>, vector<1x4x4xbf16>
    %46 = vector.shape_cast %45 : vector<1x4x4xbf16> to vector<4x4xbf16>
    %47 = arith.truncf %44 : vector<128x4xf32> to vector<128x4xbf16>
    %cst_29 = arith.constant dense<0.000000e+00> : vector<128x4xf32>
    %48 = tpu.matmul %47, %46, %cst_29 {dimension_numbers = #tpu.dot_dimension_numbers<[1], [0], [0], [1], [0, 0, 1, 1], [], []>} : vector<128x4xbf16>, vector<4x4xbf16>, vector<128x4xf32> -> vector<128x4xf32>
    %49 = arith.addf %43, %48 : vector<128x4xf32>
    %50 = vector.extract_strided_slice %26 {offsets = [512, 0], sizes = [128, 4], strides = [1, 1]} : vector<1152x4xf32> to vector<128x4xf32>
    %c4 = arith.constant 4 : index
    %c0_30 = arith.constant 0 : index
    %c0_31 = arith.constant 0 : index
    %51 = vector.load %arg10[%c4, %c0_30, %c0_31] : memref<9x4x4xbf16, #tpu.memory_space<vmem>>, vector<1x4x4xbf16>
    %52 = vector.shape_cast %51 : vector<1x4x4xbf16> to vector<4x4xbf16>
    %53 = arith.truncf %50 : vector<128x4xf32> to vector<128x4xbf16>
    %cst_32 = arith.constant dense<0.000000e+00> : vector<128x4xf32>
    %54 = tpu.matmul %53, %52, %cst_32 {dimension_numbers = #tpu.dot_dimension_numbers<[1], [0], [0], [1], [0, 0, 1, 1], [], []>} : vector<128x4xbf16>, vector<4x4xbf16>, vector<128x4xf32> -> vector<128x4xf32>
    %55 = arith.addf %49, %54 : vector<128x4xf32>
    %56 = vector.extract_strided_slice %26 {offsets = [640, 0], sizes = [128, 4], strides = [1, 1]} : vector<1152x4xf32> to vector<128x4xf32>
    %c5 = arith.constant 5 : index
    %c0_33 = arith.constant 0 : index
    %c0_34 = arith.constant 0 : index
    %57 = vector.load %arg10[%c5, %c0_33, %c0_34] : memref<9x4x4xbf16, #tpu.memory_space<vmem>>, vector<1x4x4xbf16>
    %58 = vector.shape_cast %57 : vector<1x4x4xbf16> to vector<4x4xbf16>
    %59 = arith.truncf %56 : vector<128x4xf32> to vector<128x4xbf16>
    %cst_35 = arith.constant dense<0.000000e+00> : vector<128x4xf32>
    %60 = tpu.matmul %59, %58, %cst_35 {dimension_numbers = #tpu.dot_dimension_numbers<[1], [0], [0], [1], [0, 0, 1, 1], [], []>} : vector<128x4xbf16>, vector<4x4xbf16>, vector<128x4xf32> -> vector<128x4xf32>
    %61 = arith.addf %55, %60 : vector<128x4xf32>
    %62 = vector.extract_strided_slice %26 {offsets = [768, 0], sizes = [128, 4], strides = [1, 1]} : vector<1152x4xf32> to vector<128x4xf32>
    %c6 = arith.constant 6 : index
    %c0_36 = arith.constant 0 : index
    %c0_37 = arith.constant 0 : index
    %63 = vector.load %arg10[%c6, %c0_36, %c0_37] : memref<9x4x4xbf16, #tpu.memory_space<vmem>>, vector<1x4x4xbf16>
    %64 = vector.shape_cast %63 : vector<1x4x4xbf16> to vector<4x4xbf16>
    %65 = arith.truncf %62 : vector<128x4xf32> to vector<128x4xbf16>
    %cst_38 = arith.constant dense<0.000000e+00> : vector<128x4xf32>
    %66 = tpu.matmul %65, %64, %cst_38 {dimension_numbers = #tpu.dot_dimension_numbers<[1], [0], [0], [1], [0, 0, 1, 1], [], []>} : vector<128x4xbf16>, vector<4x4xbf16>, vector<128x4xf32> -> vector<128x4xf32>
    %67 = arith.addf %61, %66 : vector<128x4xf32>
    %68 = vector.extract_strided_slice %26 {offsets = [896, 0], sizes = [128, 4], strides = [1, 1]} : vector<1152x4xf32> to vector<128x4xf32>
    %c7 = arith.constant 7 : index
    %c0_39 = arith.constant 0 : index
    %c0_40 = arith.constant 0 : index
    %69 = vector.load %arg10[%c7, %c0_39, %c0_40] : memref<9x4x4xbf16, #tpu.memory_space<vmem>>, vector<1x4x4xbf16>
    %70 = vector.shape_cast %69 : vector<1x4x4xbf16> to vector<4x4xbf16>
    %71 = arith.truncf %68 : vector<128x4xf32> to vector<128x4xbf16>
    %cst_41 = arith.constant dense<0.000000e+00> : vector<128x4xf32>
    %72 = tpu.matmul %71, %70, %cst_41 {dimension_numbers = #tpu.dot_dimension_numbers<[1], [0], [0], [1], [0, 0, 1, 1], [], []>} : vector<128x4xbf16>, vector<4x4xbf16>, vector<128x4xf32> -> vector<128x4xf32>
    %73 = arith.addf %67, %72 : vector<128x4xf32>
    %74 = vector.extract_strided_slice %26 {offsets = [1024, 0], sizes = [128, 4], strides = [1, 1]} : vector<1152x4xf32> to vector<128x4xf32>
    %c8 = arith.constant 8 : index
    %c0_42 = arith.constant 0 : index
    %c0_43 = arith.constant 0 : index
    %75 = vector.load %arg10[%c8, %c0_42, %c0_43] : memref<9x4x4xbf16, #tpu.memory_space<vmem>>, vector<1x4x4xbf16>
    %76 = vector.shape_cast %75 : vector<1x4x4xbf16> to vector<4x4xbf16>
    %77 = arith.truncf %74 : vector<128x4xf32> to vector<128x4xbf16>
    %cst_44 = arith.constant dense<0.000000e+00> : vector<128x4xf32>
    %78 = tpu.matmul %77, %76, %cst_44 {dimension_numbers = #tpu.dot_dimension_numbers<[1], [0], [0], [1], [0, 0, 1, 1], [], []>} : vector<128x4xbf16>, vector<4x4xbf16>, vector<128x4xf32> -> vector<128x4xf32>
    %79 = arith.addf %73, %78 : vector<128x4xf32>
    %c0_45 = arith.constant 0 : index
    %c0_46 = arith.constant 0 : index
    %80 = vector.load %arg11[%c0_45, %c0_46] : memref<1x4xf32, #tpu.memory_space<vmem>>, vector<1x4xf32>
    %81 = vector.broadcast %80 : vector<1x4xf32> to vector<128x4xf32>
    %82 = arith.addf %79, %81 : vector<128x4xf32>
    %83 = arith.negf %82 : vector<128x4xf32>
    %84 = math.exp %83 : vector<128x4xf32>
    %cst_47 = arith.constant 1.000000e+00 : f32
    %85 = vector.broadcast %cst_47 : f32 to vector<128x4xf32>
    %86 = arith.addf %85, %84 : vector<128x4xf32>
    %87 = arith.divf %85, %86 : vector<128x4xf32>
    %88 = arith.mulf %82, %87 : vector<128x4xf32>
    %c0_48 = arith.constant 0 : index
    %c0_49 = arith.constant 0 : index
    %89 = vector.load %arg12[%c0_48, %c0_49] : memref<288x128xbf16, #tpu.memory_space<vmem>>, vector<288x128xbf16>
    %90 = arith.truncf %88 : vector<128x4xf32> to vector<128x4xbf16>
    %cst_50 = arith.constant dense<0.000000e+00> : vector<288x4xf32>
    %91 = tpu.matmul %89, %90, %cst_50 {dimension_numbers = #tpu.dot_dimension_numbers<[1], [0], [0], [1], [0, 0, 1, 1], [], []>} : vector<288x128xbf16>, vector<128x4xbf16>, vector<288x4xf32> -> vector<288x4xf32>
    %92 = vector.extract_strided_slice %91 {offsets = [0, 0], sizes = [32, 4], strides = [1, 1]} : vector<288x4xf32> to vector<32x4xf32>
    %c0_51 = arith.constant 0 : index
    %c0_52 = arith.constant 0 : index
    %c0_53 = arith.constant 0 : index
    %93 = vector.load %arg13[%c0_51, %c0_52, %c0_53] : memref<9x4x128xbf16, #tpu.memory_space<vmem>>, vector<1x4x128xbf16>
    %94 = vector.shape_cast %93 : vector<1x4x128xbf16> to vector<4x128xbf16>
    %95 = arith.truncf %92 : vector<32x4xf32> to vector<32x4xbf16>
    %cst_54 = arith.constant dense<0.000000e+00> : vector<32x128xf32>
    %96 = tpu.matmul %95, %94, %cst_54 {dimension_numbers = #tpu.dot_dimension_numbers<[1], [0], [0], [1], [0, 0, 1, 1], [], []>} : vector<32x4xbf16>, vector<4x128xbf16>, vector<32x128xf32> -> vector<32x128xf32>
    %97 = vector.extract_strided_slice %91 {offsets = [32, 0], sizes = [32, 4], strides = [1, 1]} : vector<288x4xf32> to vector<32x4xf32>
    %c1_55 = arith.constant 1 : index
    %c0_56 = arith.constant 0 : index
    %c0_57 = arith.constant 0 : index
    %98 = vector.load %arg13[%c1_55, %c0_56, %c0_57] : memref<9x4x128xbf16, #tpu.memory_space<vmem>>, vector<1x4x128xbf16>
    %99 = vector.shape_cast %98 : vector<1x4x128xbf16> to vector<4x128xbf16>
    %100 = arith.truncf %97 : vector<32x4xf32> to vector<32x4xbf16>
    %cst_58 = arith.constant dense<0.000000e+00> : vector<32x128xf32>
    %101 = tpu.matmul %100, %99, %cst_58 {dimension_numbers = #tpu.dot_dimension_numbers<[1], [0], [0], [1], [0, 0, 1, 1], [], []>} : vector<32x4xbf16>, vector<4x128xbf16>, vector<32x128xf32> -> vector<32x128xf32>
    %102 = arith.addf %96, %101 : vector<32x128xf32>
    %103 = vector.extract_strided_slice %91 {offsets = [64, 0], sizes = [32, 4], strides = [1, 1]} : vector<288x4xf32> to vector<32x4xf32>
    %c2_59 = arith.constant 2 : index
    %c0_60 = arith.constant 0 : index
    %c0_61 = arith.constant 0 : index
    %104 = vector.load %arg13[%c2_59, %c0_60, %c0_61] : memref<9x4x128xbf16, #tpu.memory_space<vmem>>, vector<1x4x128xbf16>
    %105 = vector.shape_cast %104 : vector<1x4x128xbf16> to vector<4x128xbf16>
    %106 = arith.truncf %103 : vector<32x4xf32> to vector<32x4xbf16>
    %cst_62 = arith.constant dense<0.000000e+00> : vector<32x128xf32>
    %107 = tpu.matmul %106, %105, %cst_62 {dimension_numbers = #tpu.dot_dimension_numbers<[1], [0], [0], [1], [0, 0, 1, 1], [], []>} : vector<32x4xbf16>, vector<4x128xbf16>, vector<32x128xf32> -> vector<32x128xf32>
    %108 = arith.addf %102, %107 : vector<32x128xf32>
    %109 = vector.extract_strided_slice %91 {offsets = [96, 0], sizes = [32, 4], strides = [1, 1]} : vector<288x4xf32> to vector<32x4xf32>
    %c3_63 = arith.constant 3 : index
    %c0_64 = arith.constant 0 : index
    %c0_65 = arith.constant 0 : index
    %110 = vector.load %arg13[%c3_63, %c0_64, %c0_65] : memref<9x4x128xbf16, #tpu.memory_space<vmem>>, vector<1x4x128xbf16>
    %111 = vector.shape_cast %110 : vector<1x4x128xbf16> to vector<4x128xbf16>
    %112 = arith.truncf %109 : vector<32x4xf32> to vector<32x4xbf16>
    %cst_66 = arith.constant dense<0.000000e+00> : vector<32x128xf32>
    %113 = tpu.matmul %112, %111, %cst_66 {dimension_numbers = #tpu.dot_dimension_numbers<[1], [0], [0], [1], [0, 0, 1, 1], [], []>} : vector<32x4xbf16>, vector<4x128xbf16>, vector<32x128xf32> -> vector<32x128xf32>
    %114 = arith.addf %108, %113 : vector<32x128xf32>
    %115 = vector.extract_strided_slice %91 {offsets = [128, 0], sizes = [32, 4], strides = [1, 1]} : vector<288x4xf32> to vector<32x4xf32>
    %c4_67 = arith.constant 4 : index
    %c0_68 = arith.constant 0 : index
    %c0_69 = arith.constant 0 : index
    %116 = vector.load %arg13[%c4_67, %c0_68, %c0_69] : memref<9x4x128xbf16, #tpu.memory_space<vmem>>, vector<1x4x128xbf16>
    %117 = vector.shape_cast %116 : vector<1x4x128xbf16> to vector<4x128xbf16>
    %118 = arith.truncf %115 : vector<32x4xf32> to vector<32x4xbf16>
    %cst_70 = arith.constant dense<0.000000e+00> : vector<32x128xf32>
    %119 = tpu.matmul %118, %117, %cst_70 {dimension_numbers = #tpu.dot_dimension_numbers<[1], [0], [0], [1], [0, 0, 1, 1], [], []>} : vector<32x4xbf16>, vector<4x128xbf16>, vector<32x128xf32> -> vector<32x128xf32>
    %120 = arith.addf %114, %119 : vector<32x128xf32>
    %121 = vector.extract_strided_slice %91 {offsets = [160, 0], sizes = [32, 4], strides = [1, 1]} : vector<288x4xf32> to vector<32x4xf32>
    %c5_71 = arith.constant 5 : index
    %c0_72 = arith.constant 0 : index
    %c0_73 = arith.constant 0 : index
    %122 = vector.load %arg13[%c5_71, %c0_72, %c0_73] : memref<9x4x128xbf16, #tpu.memory_space<vmem>>, vector<1x4x128xbf16>
    %123 = vector.shape_cast %122 : vector<1x4x128xbf16> to vector<4x128xbf16>
    %124 = arith.truncf %121 : vector<32x4xf32> to vector<32x4xbf16>
    %cst_74 = arith.constant dense<0.000000e+00> : vector<32x128xf32>
    %125 = tpu.matmul %124, %123, %cst_74 {dimension_numbers = #tpu.dot_dimension_numbers<[1], [0], [0], [1], [0, 0, 1, 1], [], []>} : vector<32x4xbf16>, vector<4x128xbf16>, vector<32x128xf32> -> vector<32x128xf32>
    %126 = arith.addf %120, %125 : vector<32x128xf32>
    %127 = vector.extract_strided_slice %91 {offsets = [192, 0], sizes = [32, 4], strides = [1, 1]} : vector<288x4xf32> to vector<32x4xf32>
    %c6_75 = arith.constant 6 : index
    %c0_76 = arith.constant 0 : index
    %c0_77 = arith.constant 0 : index
    %128 = vector.load %arg13[%c6_75, %c0_76, %c0_77] : memref<9x4x128xbf16, #tpu.memory_space<vmem>>, vector<1x4x128xbf16>
    %129 = vector.shape_cast %128 : vector<1x4x128xbf16> to vector<4x128xbf16>
    %130 = arith.truncf %127 : vector<32x4xf32> to vector<32x4xbf16>
    %cst_78 = arith.constant dense<0.000000e+00> : vector<32x128xf32>
    %131 = tpu.matmul %130, %129, %cst_78 {dimension_numbers = #tpu.dot_dimension_numbers<[1], [0], [0], [1], [0, 0, 1, 1], [], []>} : vector<32x4xbf16>, vector<4x128xbf16>, vector<32x128xf32> -> vector<32x128xf32>
    %132 = arith.addf %126, %131 : vector<32x128xf32>
    %133 = vector.extract_strided_slice %91 {offsets = [224, 0], sizes = [32, 4], strides = [1, 1]} : vector<288x4xf32> to vector<32x4xf32>
    %c7_79 = arith.constant 7 : index
    %c0_80 = arith.constant 0 : index
    %c0_81 = arith.constant 0 : index
    %134 = vector.load %arg13[%c7_79, %c0_80, %c0_81] : memref<9x4x128xbf16, #tpu.memory_space<vmem>>, vector<1x4x128xbf16>
    %135 = vector.shape_cast %134 : vector<1x4x128xbf16> to vector<4x128xbf16>
    %136 = arith.truncf %133 : vector<32x4xf32> to vector<32x4xbf16>
    %cst_82 = arith.constant dense<0.000000e+00> : vector<32x128xf32>
    %137 = tpu.matmul %136, %135, %cst_82 {dimension_numbers = #tpu.dot_dimension_numbers<[1], [0], [0], [1], [0, 0, 1, 1], [], []>} : vector<32x4xbf16>, vector<4x128xbf16>, vector<32x128xf32> -> vector<32x128xf32>
    %138 = arith.addf %132, %137 : vector<32x128xf32>
    %139 = vector.extract_strided_slice %91 {offsets = [256, 0], sizes = [32, 4], strides = [1, 1]} : vector<288x4xf32> to vector<32x4xf32>
    %c8_83 = arith.constant 8 : index
    %c0_84 = arith.constant 0 : index
    %c0_85 = arith.constant 0 : index
    %140 = vector.load %arg13[%c8_83, %c0_84, %c0_85] : memref<9x4x128xbf16, #tpu.memory_space<vmem>>, vector<1x4x128xbf16>
    %141 = vector.shape_cast %140 : vector<1x4x128xbf16> to vector<4x128xbf16>
    %142 = arith.truncf %139 : vector<32x4xf32> to vector<32x4xbf16>
    %cst_86 = arith.constant dense<0.000000e+00> : vector<32x128xf32>
    %143 = tpu.matmul %142, %141, %cst_86 {dimension_numbers = #tpu.dot_dimension_numbers<[1], [0], [0], [1], [0, 0, 1, 1], [], []>} : vector<32x4xbf16>, vector<4x128xbf16>, vector<32x128xf32> -> vector<32x128xf32>
    %144 = arith.addf %138, %143 : vector<32x128xf32>
    %c0_87 = arith.constant 0 : index
    %c0_88 = arith.constant 0 : index
    %145 = vector.load %arg12[%c0_87, %c0_88] : memref<288x128xbf16, #tpu.memory_space<vmem>>, vector<288x128xbf16>
    %146 = arith.truncf %23 : vector<128x8xf32> to vector<128x8xbf16>
    %cst_89 = arith.constant dense<0.000000e+00> : vector<288x8xf32>
    %147 = tpu.matmul %145, %146, %cst_89 {dimension_numbers = #tpu.dot_dimension_numbers<[1], [0], [0], [1], [0, 0, 1, 1], [], []>} : vector<288x128xbf16>, vector<128x8xbf16>, vector<288x8xf32> -> vector<288x8xf32>
    %148 = vector.extract_strided_slice %147 {offsets = [0, 0], sizes = [32, 8], strides = [1, 1]} : vector<288x8xf32> to vector<32x8xf32>
    %c0_90 = arith.constant 0 : index
    %c0_91 = arith.constant 0 : index
    %c0_92 = arith.constant 0 : index
    %149 = vector.load %arg14[%c0_90, %c0_91, %c0_92] : memref<9x8x128xbf16, #tpu.memory_space<vmem>>, vector<1x8x128xbf16>
    %150 = vector.shape_cast %149 : vector<1x8x128xbf16> to vector<8x128xbf16>
    %151 = arith.truncf %148 : vector<32x8xf32> to vector<32x8xbf16>
    %cst_93 = arith.constant dense<0.000000e+00> : vector<32x128xf32>
    %152 = tpu.matmul %151, %150, %cst_93 {dimension_numbers = #tpu.dot_dimension_numbers<[1], [0], [0], [1], [0, 0, 1, 1], [], []>} : vector<32x8xbf16>, vector<8x128xbf16>, vector<32x128xf32> -> vector<32x128xf32>
    %153 = vector.extract_strided_slice %147 {offsets = [32, 0], sizes = [32, 8], strides = [1, 1]} : vector<288x8xf32> to vector<32x8xf32>
    %c1_94 = arith.constant 1 : index
    %c0_95 = arith.constant 0 : index
    %c0_96 = arith.constant 0 : index
    %154 = vector.load %arg14[%c1_94, %c0_95, %c0_96] : memref<9x8x128xbf16, #tpu.memory_space<vmem>>, vector<1x8x128xbf16>
    %155 = vector.shape_cast %154 : vector<1x8x128xbf16> to vector<8x128xbf16>
    %156 = arith.truncf %153 : vector<32x8xf32> to vector<32x8xbf16>
    %cst_97 = arith.constant dense<0.000000e+00> : vector<32x128xf32>
    %157 = tpu.matmul %156, %155, %cst_97 {dimension_numbers = #tpu.dot_dimension_numbers<[1], [0], [0], [1], [0, 0, 1, 1], [], []>} : vector<32x8xbf16>, vector<8x128xbf16>, vector<32x128xf32> -> vector<32x128xf32>
    %158 = arith.addf %152, %157 : vector<32x128xf32>
    %159 = vector.extract_strided_slice %147 {offsets = [64, 0], sizes = [32, 8], strides = [1, 1]} : vector<288x8xf32> to vector<32x8xf32>
    %c2_98 = arith.constant 2 : index
    %c0_99 = arith.constant 0 : index
    %c0_100 = arith.constant 0 : index
    %160 = vector.load %arg14[%c2_98, %c0_99, %c0_100] : memref<9x8x128xbf16, #tpu.memory_space<vmem>>, vector<1x8x128xbf16>
    %161 = vector.shape_cast %160 : vector<1x8x128xbf16> to vector<8x128xbf16>
    %162 = arith.truncf %159 : vector<32x8xf32> to vector<32x8xbf16>
    %cst_101 = arith.constant dense<0.000000e+00> : vector<32x128xf32>
    %163 = tpu.matmul %162, %161, %cst_101 {dimension_numbers = #tpu.dot_dimension_numbers<[1], [0], [0], [1], [0, 0, 1, 1], [], []>} : vector<32x8xbf16>, vector<8x128xbf16>, vector<32x128xf32> -> vector<32x128xf32>
    %164 = arith.addf %158, %163 : vector<32x128xf32>
    %165 = vector.extract_strided_slice %147 {offsets = [96, 0], sizes = [32, 8], strides = [1, 1]} : vector<288x8xf32> to vector<32x8xf32>
    %c3_102 = arith.constant 3 : index
    %c0_103 = arith.constant 0 : index
    %c0_104 = arith.constant 0 : index
    %166 = vector.load %arg14[%c3_102, %c0_103, %c0_104] : memref<9x8x128xbf16, #tpu.memory_space<vmem>>, vector<1x8x128xbf16>
    %167 = vector.shape_cast %166 : vector<1x8x128xbf16> to vector<8x128xbf16>
    %168 = arith.truncf %165 : vector<32x8xf32> to vector<32x8xbf16>
    %cst_105 = arith.constant dense<0.000000e+00> : vector<32x128xf32>
    %169 = tpu.matmul %168, %167, %cst_105 {dimension_numbers = #tpu.dot_dimension_numbers<[1], [0], [0], [1], [0, 0, 1, 1], [], []>} : vector<32x8xbf16>, vector<8x128xbf16>, vector<32x128xf32> -> vector<32x128xf32>
    %170 = arith.addf %164, %169 : vector<32x128xf32>
    %171 = vector.extract_strided_slice %147 {offsets = [128, 0], sizes = [32, 8], strides = [1, 1]} : vector<288x8xf32> to vector<32x8xf32>
    %c4_106 = arith.constant 4 : index
    %c0_107 = arith.constant 0 : index
    %c0_108 = arith.constant 0 : index
    %172 = vector.load %arg14[%c4_106, %c0_107, %c0_108] : memref<9x8x128xbf16, #tpu.memory_space<vmem>>, vector<1x8x128xbf16>
    %173 = vector.shape_cast %172 : vector<1x8x128xbf16> to vector<8x128xbf16>
    %174 = arith.truncf %171 : vector<32x8xf32> to vector<32x8xbf16>
    %cst_109 = arith.constant dense<0.000000e+00> : vector<32x128xf32>
    %175 = tpu.matmul %174, %173, %cst_109 {dimension_numbers = #tpu.dot_dimension_numbers<[1], [0], [0], [1], [0, 0, 1, 1], [], []>} : vector<32x8xbf16>, vector<8x128xbf16>, vector<32x128xf32> -> vector<32x128xf32>
    %176 = arith.addf %170, %175 : vector<32x128xf32>
    %177 = vector.extract_strided_slice %147 {offsets = [160, 0], sizes = [32, 8], strides = [1, 1]} : vector<288x8xf32> to vector<32x8xf32>
    %c5_110 = arith.constant 5 : index
    %c0_111 = arith.constant 0 : index
    %c0_112 = arith.constant 0 : index
    %178 = vector.load %arg14[%c5_110, %c0_111, %c0_112] : memref<9x8x128xbf16, #tpu.memory_space<vmem>>, vector<1x8x128xbf16>
    %179 = vector.shape_cast %178 : vector<1x8x128xbf16> to vector<8x128xbf16>
    %180 = arith.truncf %177 : vector<32x8xf32> to vector<32x8xbf16>
    %cst_113 = arith.constant dense<0.000000e+00> : vector<32x128xf32>
    %181 = tpu.matmul %180, %179, %cst_113 {dimension_numbers = #tpu.dot_dimension_numbers<[1], [0], [0], [1], [0, 0, 1, 1], [], []>} : vector<32x8xbf16>, vector<8x128xbf16>, vector<32x128xf32> -> vector<32x128xf32>
    %182 = arith.addf %176, %181 : vector<32x128xf32>
    %183 = vector.extract_strided_slice %147 {offsets = [192, 0], sizes = [32, 8], strides = [1, 1]} : vector<288x8xf32> to vector<32x8xf32>
    %c6_114 = arith.constant 6 : index
    %c0_115 = arith.constant 0 : index
    %c0_116 = arith.constant 0 : index
    %184 = vector.load %arg14[%c6_114, %c0_115, %c0_116] : memref<9x8x128xbf16, #tpu.memory_space<vmem>>, vector<1x8x128xbf16>
    %185 = vector.shape_cast %184 : vector<1x8x128xbf16> to vector<8x128xbf16>
    %186 = arith.truncf %183 : vector<32x8xf32> to vector<32x8xbf16>
    %cst_117 = arith.constant dense<0.000000e+00> : vector<32x128xf32>
    %187 = tpu.matmul %186, %185, %cst_117 {dimension_numbers = #tpu.dot_dimension_numbers<[1], [0], [0], [1], [0, 0, 1, 1], [], []>} : vector<32x8xbf16>, vector<8x128xbf16>, vector<32x128xf32> -> vector<32x128xf32>
    %188 = arith.addf %182, %187 : vector<32x128xf32>
    %189 = vector.extract_strided_slice %147 {offsets = [224, 0], sizes = [32, 8], strides = [1, 1]} : vector<288x8xf32> to vector<32x8xf32>
    %c7_118 = arith.constant 7 : index
    %c0_119 = arith.constant 0 : index
    %c0_120 = arith.constant 0 : index
    %190 = vector.load %arg14[%c7_118, %c0_119, %c0_120] : memref<9x8x128xbf16, #tpu.memory_space<vmem>>, vector<1x8x128xbf16>
    %191 = vector.shape_cast %190 : vector<1x8x128xbf16> to vector<8x128xbf16>
    %192 = arith.truncf %189 : vector<32x8xf32> to vector<32x8xbf16>
    %cst_121 = arith.constant dense<0.000000e+00> : vector<32x128xf32>
    %193 = tpu.matmul %192, %191, %cst_121 {dimension_numbers = #tpu.dot_dimension_numbers<[1], [0], [0], [1], [0, 0, 1, 1], [], []>} : vector<32x8xbf16>, vector<8x128xbf16>, vector<32x128xf32> -> vector<32x128xf32>
    %194 = arith.addf %188, %193 : vector<32x128xf32>
    %195 = vector.extract_strided_slice %147 {offsets = [256, 0], sizes = [32, 8], strides = [1, 1]} : vector<288x8xf32> to vector<32x8xf32>
    %c8_122 = arith.constant 8 : index
    %c0_123 = arith.constant 0 : index
    %c0_124 = arith.constant 0 : index
    %196 = vector.load %arg14[%c8_122, %c0_123, %c0_124] : memref<9x8x128xbf16, #tpu.memory_space<vmem>>, vector<1x8x128xbf16>
    %197 = vector.shape_cast %196 : vector<1x8x128xbf16> to vector<8x128xbf16>
    %198 = arith.truncf %195 : vector<32x8xf32> to vector<32x8xbf16>
    %cst_125 = arith.constant dense<0.000000e+00> : vector<32x128xf32>
    %199 = tpu.matmul %198, %197, %cst_125 {dimension_numbers = #tpu.dot_dimension_numbers<[1], [0], [0], [1], [0, 0, 1, 1], [], []>} : vector<32x8xbf16>, vector<8x128xbf16>, vector<32x128xf32> -> vector<32x128xf32>
    %200 = arith.addf %194, %199 : vector<32x128xf32>
    %201 = arith.addf %144, %200 : vector<32x128xf32>
    %c0_126 = arith.constant 0 : index
    %c0_127 = arith.constant 0 : index
    %202 = vector.load %arg3[%c0_126, %c0_127] : memref<32x144xbf16, #tpu.memory_space<vmem>>, vector<32x144xbf16>
    %c0_128 = arith.constant 0 : index
    %c0_129 = arith.constant 0 : index
    %203 = vector.load %arg15[%c0_128, %c0_129] : memref<144x128xbf16, #tpu.memory_space<vmem>>, vector<144x128xbf16>
    %cst_130 = arith.constant dense<0.000000e+00> : vector<32x128xf32>
    %204 = tpu.matmul %202, %203, %cst_130 {dimension_numbers = #tpu.dot_dimension_numbers<[1], [0], [0], [1], [0, 0, 1, 1], [], []>} : vector<32x144xbf16>, vector<144x128xbf16>, vector<32x128xf32> -> vector<32x128xf32>
    %205 = arith.addf %201, %204 : vector<32x128xf32>
    %c0_131 = arith.constant 0 : index
    %c0_132 = arith.constant 0 : index
    %206 = vector.load %arg16[%c0_131, %c0_132] : memref<1x128xf32, #tpu.memory_space<vmem>>, vector<1x128xf32>
    %207 = vector.broadcast %206 : vector<1x128xf32> to vector<32x128xf32>
    %208 = arith.addf %205, %207 : vector<32x128xf32>
    %209 = arith.negf %208 : vector<32x128xf32>
    %210 = math.exp %209 : vector<32x128xf32>
    %cst_133 = arith.constant 1.000000e+00 : f32
    %211 = vector.broadcast %cst_133 : f32 to vector<32x128xf32>
    %212 = arith.addf %211, %210 : vector<32x128xf32>
    %213 = arith.divf %211, %212 : vector<32x128xf32>
    %214 = arith.mulf %208, %213 : vector<32x128xf32>
    %c0_134 = arith.constant 0 : index
    %c0_135 = arith.constant 0 : index
    %215 = vector.load %arg4[%c0_134, %c0_135] : memref<32x128xf32, #tpu.memory_space<vmem>>, vector<32x128xf32>
    %216 = arith.addf %214, %215 : vector<32x128xf32>
    %c0_136 = arith.constant 0 : index
    %c0_137 = arith.constant 0 : index
    %217 = vector.load %arg17[%c0_136, %c0_137] : memref<128x512xbf16, #tpu.memory_space<vmem>>, vector<128x512xbf16>
    %218 = arith.truncf %216 : vector<32x128xf32> to vector<32x128xbf16>
    %cst_138 = arith.constant dense<0.000000e+00> : vector<32x512xf32>
    %219 = tpu.matmul %218, %217, %cst_138 {dimension_numbers = #tpu.dot_dimension_numbers<[1], [0], [0], [1], [0, 0, 1, 1], [], []>} : vector<32x128xbf16>, vector<128x512xbf16>, vector<32x512xf32> -> vector<32x512xf32>
    %c0_139 = arith.constant 0 : index
    %c0_140 = arith.constant 0 : index
    %220 = vector.load %arg18[%c0_139, %c0_140] : memref<1x512xf32, #tpu.memory_space<vmem>>, vector<1x512xf32>
    %221 = vector.broadcast %220 : vector<1x512xf32> to vector<32x512xf32>
    %222 = arith.addf %219, %221 : vector<32x512xf32>
    %223 = vector.extract_strided_slice %222 {offsets = [0, 0], sizes = [32, 128], strides = [1, 1]} : vector<32x512xf32> to vector<32x128xf32>
    %224 = vector.extract_strided_slice %222 {offsets = [0, 128], sizes = [32, 128], strides = [1, 1]} : vector<32x512xf32> to vector<32x128xf32>
    %225 = vector.extract_strided_slice %222 {offsets = [0, 256], sizes = [32, 128], strides = [1, 1]} : vector<32x512xf32> to vector<32x128xf32>
    %226 = vector.extract_strided_slice %222 {offsets = [0, 384], sizes = [32, 128], strides = [1, 1]} : vector<32x512xf32> to vector<32x128xf32>
    %227 = arith.negf %226 : vector<32x128xf32>
    %228 = math.exp %227 : vector<32x128xf32>
    %cst_141 = arith.constant 1.000000e+00 : f32
    %229 = vector.broadcast %cst_141 : f32 to vector<32x128xf32>
    %230 = arith.addf %229, %228 : vector<32x128xf32>
    %231 = arith.divf %229, %230 : vector<32x128xf32>
    %232 = arith.mulf %226, %231 : vector<32x128xf32>
    %c0_142 = arith.constant 0 : index
    %c0_143 = arith.constant 0 : index
    %233 = vector.load %arg19[%c0_142, %c0_143] : memref<1x128xf32, #tpu.memory_space<vmem>>, vector<1x128xf32>
    %234 = vector.broadcast %233 : vector<1x128xf32> to vector<32x128xf32>
    %235 = arith.mulf %232, %234 : vector<32x128xf32>
    %cst_144 = arith.constant dense<0.000000e+00> : vector<32xf32>
    %236 = vector.multi_reduction <add>, %235, %cst_144 [1] : vector<32x128xf32> to vector<32xf32>
    %237 = vector.shape_cast %236 : vector<32xf32> to vector<32x1xf32>
    %c0_145 = arith.constant 0 : index
    %c0_146 = arith.constant 0 : index
    %238 = memref.load %arg22[%c0_145, %c0_146] : memref<1x1xf32, #tpu.memory_space<smem>>
    %239 = vector.broadcast %238 : f32 to vector<32x1xf32>
    %240 = arith.addf %237, %239 : vector<32x1xf32>
    %241 = arith.negf %240 : vector<32x1xf32>
    %242 = math.exp %241 : vector<32x1xf32>
    %cst_147 = arith.constant 1.000000e+00 : f32
    %243 = vector.broadcast %cst_147 : f32 to vector<32x1xf32>
    %244 = arith.addf %243, %242 : vector<32x1xf32>
    %245 = arith.divf %243, %244 : vector<32x1xf32>
    %246 = vector.broadcast %245 : vector<32x1xf32> to vector<32x128xf32>
    %247 = arith.mulf %216, %246 : vector<32x128xf32>
    %248 = arith.mulf %223, %223 : vector<32x128xf32>
    %cst_148 = arith.constant dense<0.000000e+00> : vector<32xf32>
    %249 = vector.multi_reduction <add>, %248, %cst_148 [1] : vector<32x128xf32> to vector<32xf32>
    %250 = vector.shape_cast %249 : vector<32xf32> to vector<32x1xf32>
    %cst_149 = arith.constant 1.000000e-24 : f32
    %251 = vector.broadcast %cst_149 : f32 to vector<32x1xf32>
    %252 = arith.maximumf %250, %251 : vector<32x1xf32>
    %253 = math.rsqrt %252 : vector<32x1xf32>
    %254 = vector.broadcast %253 : vector<32x1xf32> to vector<32x128xf32>
    %255 = arith.mulf %223, %254 : vector<32x128xf32>
    %256 = arith.mulf %224, %224 : vector<32x128xf32>
    %cst_150 = arith.constant dense<0.000000e+00> : vector<32xf32>
    %257 = vector.multi_reduction <add>, %256, %cst_150 [1] : vector<32x128xf32> to vector<32xf32>
    %258 = vector.shape_cast %257 : vector<32xf32> to vector<32x1xf32>
    %cst_151 = arith.constant 1.000000e-24 : f32
    %259 = vector.broadcast %cst_151 : f32 to vector<32x1xf32>
    %260 = arith.maximumf %258, %259 : vector<32x1xf32>
    %261 = math.rsqrt %260 : vector<32x1xf32>
    %262 = vector.broadcast %261 : vector<32x1xf32> to vector<32x128xf32>
    %263 = arith.mulf %224, %262 : vector<32x128xf32>
    %264 = arith.mulf %263, %225 : vector<32x128xf32>
    %265 = vector.extract_strided_slice %264 {offsets = [0, 0], sizes = [16, 128], strides = [1, 1]} : vector<32x128xf32> to vector<16x128xf32>
    %cst_152 = arith.constant dense<0.000000e+00> : vector<128xf32>
    %266 = vector.multi_reduction <add>, %265, %cst_152 [0] : vector<16x128xf32> to vector<128xf32>
    %267 = vector.shape_cast %266 : vector<128xf32> to vector<1x128xf32>
    %268 = vector.shape_cast %267 : vector<1x128xf32> to vector<1x128xf32>
    %269 = vector.broadcast %268 : vector<1x128xf32> to vector<16x128xf32>
    %270 = vector.extract_strided_slice %264 {offsets = [16, 0], sizes = [16, 128], strides = [1, 1]} : vector<32x128xf32> to vector<16x128xf32>
    %cst_153 = arith.constant dense<0.000000e+00> : vector<128xf32>
    %271 = vector.multi_reduction <add>, %270, %cst_153 [0] : vector<16x128xf32> to vector<128xf32>
    %272 = vector.shape_cast %271 : vector<128xf32> to vector<1x128xf32>
    %273 = vector.shape_cast %272 : vector<1x128xf32> to vector<1x128xf32>
    %274 = vector.broadcast %273 : vector<1x128xf32> to vector<16x128xf32>
    %275 = tpu.concatenate %269, %274 in 0 : vector<16x128xf32>, vector<16x128xf32> -> vector<32x128xf32>
    %276 = arith.mulf %255, %275 : vector<32x128xf32>
    %c0_154 = arith.constant 0 : index
    %c0_155 = arith.constant 0 : index
    %277 = vector.load %arg20[%c0_154, %c0_155] : memref<128x128xbf16, #tpu.memory_space<vmem>>, vector<128x128xbf16>
    %278 = arith.truncf %276 : vector<32x128xf32> to vector<32x128xbf16>
    %cst_156 = arith.constant dense<0.000000e+00> : vector<32x128xf32>
    %279 = tpu.matmul %278, %277, %cst_156 {dimension_numbers = #tpu.dot_dimension_numbers<[1], [0], [0], [1], [0, 0, 1, 1], [], []>} : vector<32x128xbf16>, vector<128x128xbf16>, vector<32x128xf32> -> vector<32x128xf32>
    %c0_157 = arith.constant 0 : index
    %c0_158 = arith.constant 0 : index
    %280 = vector.load %arg21[%c0_157, %c0_158] : memref<1x128xf32, #tpu.memory_space<vmem>>, vector<1x128xf32>
    %281 = vector.broadcast %280 : vector<1x128xf32> to vector<32x128xf32>
    %282 = arith.addf %279, %281 : vector<32x128xf32>
    %283 = arith.addf %247, %282 : vector<32x128xf32>
    %c0_159 = arith.constant 0 : index
    %c0_160 = arith.constant 0 : index
    %284 = vector.load %arg23[%c0_159, %c0_160] : memref<32x128xf32, #tpu.memory_space<vmem>>, vector<32x128xf32>
    tpu.vector_store %arg23[%c0_159, %c0_160], %283 {strides = array<i32>} : memref<32x128xf32, #tpu.memory_space<vmem>>, vector<32x128xf32>,
    return
  }
  func.func @transform_0(%arg0: i32) -> (i32, i32) {
    %c0_i32 = arith.constant 0 : i32
    %c0_i32_0 = arith.constant 0 : i32
    %c0_i32_1 = arith.constant 0 : i32
    return %c0_i32, %c0_i32_0 : i32, i32
  }
  func.func @transform_1(%arg0: i32) -> (i32, i32) {
    %c0_i32 = arith.constant 0 : i32
    %c0_i32_0 = arith.constant 0 : i32
    %c0_i32_1 = arith.constant 0 : i32
    return %c0_i32, %c0_i32_0 : i32, i32
  }
  func.func @transform_2(%arg0: i32) -> (i32, i32) {
    %c0_i32 = arith.constant 0 : i32
    %c0_i32_0 = arith.constant 0 : i32
    %c0_i32_1 = arith.constant 0 : i32
    return %c0_i32, %c0_i32_0 : i32, i32
  }
  func.func @transform_3(%arg0: i32) -> (i32, i32) {
    %c0_i32 = arith.constant 0 : i32
    %c0_i32_0 = arith.constant 0 : i32
    %c0_i32_1 = arith.constant 0 : i32
    return %c0_i32, %c0_i32_0 : i32, i32
  }
  func.func @transform_4(%arg0: i32) -> (i32, i32) {
    %c0_i32 = arith.constant 0 : i32
    %c0_i32_0 = arith.constant 0 : i32
    %c0_i32_1 = arith.constant 0 : i32
    return %c0_i32, %c0_i32_0 : i32, i32
  }
  func.func @transform_5(%arg0: i32) -> (i32, i32) {
    %c0_i32 = arith.constant 0 : i32
    %c0_i32_0 = arith.constant 0 : i32
    %c0_i32_1 = arith.constant 0 : i32
    return %c0_i32, %c0_i32_0 : i32, i32
  }
  func.func @transform_6(%arg0: i32) -> (i32, i32) {
    %c0_i32 = arith.constant 0 : i32
    %c0_i32_0 = arith.constant 0 : i32
    %c0_i32_1 = arith.constant 0 : i32
    return %c0_i32, %c0_i32_0 : i32, i32
  }
  func.func @transform_7(%arg0: i32) -> (i32, i32) {
    %c0_i32 = arith.constant 0 : i32
    %c0_i32_0 = arith.constant 0 : i32
    %c0_i32_1 = arith.constant 0 : i32
    return %c0_i32, %c0_i32_0 : i32, i32
  }
  func.func @transform_8(%arg0: i32) -> (i32, i32) {
    %c0_i32 = arith.constant 0 : i32
    %c0_i32_0 = arith.constant 0 : i32
    %c0_i32_1 = arith.constant 0 : i32
    return %c0_i32, %c0_i32_0 : i32, i32
  }
  func.func @transform_9(%arg0: i32) -> (i32, i32, i32) {
    %c0_i32 = arith.constant 0 : i32
    %c0_i32_0 = arith.constant 0 : i32
    %c0_i32_1 = arith.constant 0 : i32
    %c0_i32_2 = arith.constant 0 : i32
    return %c0_i32, %c0_i32_0, %c0_i32_1 : i32, i32, i32
  }
  func.func @transform_10(%arg0: i32) -> (i32, i32) {
    %c0_i32 = arith.constant 0 : i32
    %c0_i32_0 = arith.constant 0 : i32
    %c0_i32_1 = arith.constant 0 : i32
    return %c0_i32, %c0_i32_0 : i32, i32
  }
  func.func @transform_11(%arg0: i32) -> (i32, i32) {
    %c0_i32 = arith.constant 0 : i32
    %c0_i32_0 = arith.constant 0 : i32
    %c0_i32_1 = arith.constant 0 : i32
    return %c0_i32, %c0_i32_0 : i32, i32
  }
  func.func @transform_12(%arg0: i32) -> (i32, i32, i32) {
    %c0_i32 = arith.constant 0 : i32
    %c0_i32_0 = arith.constant 0 : i32
    %c0_i32_1 = arith.constant 0 : i32
    %c0_i32_2 = arith.constant 0 : i32
    return %c0_i32, %c0_i32_0, %c0_i32_1 : i32, i32, i32
  }
  func.func @transform_13(%arg0: i32) -> (i32, i32, i32) {
    %c0_i32 = arith.constant 0 : i32
    %c0_i32_0 = arith.constant 0 : i32
    %c0_i32_1 = arith.constant 0 : i32
    %c0_i32_2 = arith.constant 0 : i32
    return %c0_i32, %c0_i32_0, %c0_i32_1 : i32, i32, i32
  }
  func.func @transform_14(%arg0: i32) -> (i32, i32) {
    %c0_i32 = arith.constant 0 : i32
    %c0_i32_0 = arith.constant 0 : i32
    %c0_i32_1 = arith.constant 0 : i32
    return %c0_i32, %c0_i32_0 : i32, i32
  }
  func.func @transform_15(%arg0: i32) -> (i32, i32) {
    %c0_i32 = arith.constant 0 : i32
    %c0_i32_0 = arith.constant 0 : i32
    %c0_i32_1 = arith.constant 0 : i32
    return %c0_i32, %c0_i32_0 : i32, i32
  }
  func.func @transform_16(%arg0: i32) -> (i32, i32) {
    %c0_i32 = arith.constant 0 : i32
    %c0_i32_0 = arith.constant 0 : i32
    %c0_i32_1 = arith.constant 0 : i32
    return %c0_i32, %c0_i32_0 : i32, i32
  }
  func.func @transform_17(%arg0: i32) -> (i32, i32) {
    %c0_i32 = arith.constant 0 : i32
    %c0_i32_0 = arith.constant 0 : i32
    %c0_i32_1 = arith.constant 0 : i32
    return %c0_i32, %c0_i32_0 : i32, i32
  }
  func.func @transform_18(%arg0: i32) -> (i32, i32) {
    %c0_i32 = arith.constant 0 : i32
    %c0_i32_0 = arith.constant 0 : i32
    %c0_i32_1 = arith.constant 0 : i32
    return %c0_i32, %c0_i32_0 : i32, i32
  }
  func.func @transform_19(%arg0: i32) -> (i32, i32) {
    %c0_i32 = arith.constant 0 : i32
    %c0_i32_0 = arith.constant 0 : i32
    %c0_i32_1 = arith.constant 0 : i32
    return %c0_i32, %c0_i32_0 : i32, i32
  }
  func.func @transform_20(%arg0: i32) -> (i32, i32) {
    %c0_i32 = arith.constant 0 : i32
    %c0_i32_0 = arith.constant 0 : i32
    %c0_i32_1 = arith.constant 0 : i32
    return %c0_i32, %c0_i32_0 : i32, i32
  }
  func.func @transform_21(%arg0: i32) -> (i32, i32) {
    %c0_i32 = arith.constant 0 : i32
    %c0_i32_0 = arith.constant 0 : i32
    %c0_i32_1 = arith.constant 0 : i32
    return %c0_i32, %c0_i32_0 : i32, i32
  }
  func.func @transform_22(%arg0: i32) -> (i32, i32) {
    %c0_i32 = arith.constant 0 : i32
    %c0_i32_0 = arith.constant 0 : i32
    %c0_i32_1 = arith.constant 0 : i32
    return %c0_i32, %c0_i32_0 : i32, i32
  }
}

</mosaic_0001>

<bundles_post_ra>
// kernel: tpu_custom_call.1
= control target key start
LH: loop header
LB: loop body
LE: loop exit
PB: predicated region body
PF: predicated region fallthrough
CT: control target
= control target key end

     0   :  { %s13695_s0 = inlined_call_operand.vmem [shape: bf16[512,36], index: 0, kind: input, shape index: {}]   ;;  %s13696_s1 = inlined_call_operand.vmem [shape: bf16[128,72], index: 1, kind: input, shape index: {}]   ;;  %s13697_s2 = inlined_call_operand.hbm [shape: bf16[32,144], index: 2, kind: input, shape index: {}]   ;;  %s13698_s3 = inlined_call_operand.hbm [shape: f32[32,128], index: 3, kind: input, shape index: {}]   ;;  %s13699_s4 = inlined_call_operand.vmem [shape: bf16[36,4], index: 4, kind: input, shape index: {}]   ;;  %s13700_s5 = inlined_call_operand.hbm [shape: f32[1,4], index: 5, kind: input, shape index: {}]   ;;  %s13701_s6 = inlined_call_operand.vmem [shape: bf16[72,8], index: 6, kind: input, shape index: {}]   ;;  %s13702_s7 = inlined_call_operand.hbm [shape: f32[1,8], index: 7, kind: input, shape index: {}]   ;;  %s13703_s8 = inlined_call_operand.hbm [shape: bf16[1152,512], index: 8, kind: input, shape index: {}]   ;;  %s13704_s9 = inlined_call_operand.vmem [shape: bf16[9,4,4], index: 9, kind: input, shape index: {}]   ;;  %s13705_s10 = inlined_call_operand.hbm [shape: f32[1,4], index: 10, kind: input, shape index: {}]   ;;  %s13706_s11 = inlined_call_operand.hbm [shape: bf16[288,128], index: 11, kind: input, shape index: {}]   ;;  %s13707_s12 = inlined_call_operand.hbm [shape: bf16[9,4,128], index: 12, kind: input, shape index: {}]   ;;  %s13708_s13 = inlined_call_operand.hbm [shape: bf16[9,8,128], index: 13, kind: input, shape index: {}]   ;;  %s13709_s14 = inlined_call_operand.hbm [shape: bf16[144,128], index: 14, kind: input, shape index: {}]   ;;  %s13710_s15 = inlined_call_operand.hbm [shape: f32[1,128], index: 15, kind: input, shape index: {}]   ;;  %s13711_s16 = inlined_call_operand.hbm [shape: bf16[128,512], index: 16, kind: input, shape index: {}]   ;;  %s13712_s17 = inlined_call_operand.hbm [shape: f32[1,512], index: 17, kind: input, shape index: {}]   ;;  %s13713_s18 = inlined_call_operand.hbm [shape: f32[1,128], index: 18, kind: input, shape index: {}]   ;;  %s13714_s19 = inlined_call_operand.hbm [shape: bf16[128,128], index: 19, kind: input, shape index: {}]   ;;  %s13715_s20 = inlined_call_operand.hbm [shape: f32[1,128], index: 20, kind: input, shape index: {}]   ;;  %s13716_s21 = inlined_call_operand.<no memory space> [shape: f32[1,1], index: 21, kind: input, shape index: {}]   ;;  %s13717_s22 = inlined_call_operand.hbm [shape: f32[32,128], index: 22, kind: output, shape index: {}]  }
   0x1   :  { %13737 = sst [smem:[#allocation60_spill]] %s13695_s0 }
   0x2   :  { %13738 = sst [smem:[#allocation61_spill]] %s13696_s1 }
   0x3   :  { %13739 = sst [smem:[#allocation62_spill]] %s13697_s2 }
   0x4   :  { %13740 = sst [smem:[#allocation63_spill]] %s13698_s3 }
   0x5   :  { %13741 = sst [smem:[#allocation64_spill]] %s13699_s4 }
   0x6   :  { %13742 = sst [smem:[#allocation65_spill]] %s13700_s5 }
   0x7   :  { %13743 = sst [smem:[#allocation66_spill]] %s13701_s6 }
   0x8   :  { %28 = vsyncpa [#allocation4], 0 }
   0x9   :  { %29 = vsyncpa [#allocation7], 0 }
   0xa   :  { %30 = vsyncpa [#allocation10], 0 }
   0xb   :  { %31 = vsyncpa [#allocation13], 0 }
   0xc   :  { %32 = vsyncpa [#allocation16], 0 }
   0xd   :  { %33 = vsyncpa [#allocation19], 0 }
   0xe   :  { %34 = vsyncpa [#allocation22], 0 }
   0xf   :  { %35 = vsyncpa [#allocation25], 0 }
  0x10   :  { %36 = vsyncpa [#allocation28], 0 }
  0x11   :  { %37 = vsyncpa [#allocation5], 0  ;;  %s11989_s3 = smov [#allocation6]   ;;  %s11990_s29 = smov [#allocation9]  }
  0x12   :  { %s59_s28 = sshll.u32 %s11989_s3, 4  ;;  %s86_s30 = sshll.u32 %s11990_s29, 4  ;;  %s60_s28 = int_to_ptr.vmem [resolvable:$true] %s59_s28  ;;  %s12130_s30 = int_to_ptr.vmem [resolvable:$true] %s86_s30 }
  0x13   :  { %s13744_s23 = sld [smem:[#allocation63_spill]] }
  0x19   :  { %s11595_s1 = scalar_lea.hbm %s13744_s23, 512 }
  0x1a   :  { %p11596_p0 = scmp.ne.s32.totalorder %s13744_s23, %s11595_s1  ;;  %p11599_p1 = scmp.lt.u32.totalorder %s11595_s1, %s13744_s23 }
  0x1c   :  { %p11601_p2 = pnand %p11599_p1, %p11596_p0 }
  0x1e   :  { %11604 = shalt.err (!%p11601_p2)
}
  0x1f   :  { %s11605_s26 = scalar_lea.vmem %s60_s28, 512  ;;  %p11610_p4 = scmp.lt.s32.totalorder %s60_s28, %s60_s28 }
  0x20   :  { %p11606_p3 = scmp.ne.s32.totalorder %s60_s28, %s11605_s26  ;;  %p11611_p5 = scmp.lt.s32.totalorder %s11605_s26, %s11605_s26 }
  0x22   :  { %p11612_p6 = por %p11611_p5, %p11610_p4 }
  0x24   :  { %p11613_p7 = pnand %p11612_p6, %p11606_p3 }
  0x26   :  { %11616 = shalt.err (!%p11613_p7)
}
  0x27   :  { %s13725_s2 = smov 128   ;;  %s11992_s27 = smov 8  }
  0x28   :  { %65 = dma.hbm_to_vmem [thread:$0]  %s13744_s23, 512, %s60_s28, [#allocation7], %s13725_s2, %s13725_s2, %s11992_s27  }
  0x29   :  { %s11617_s1 = scalar_lea.hbm %s13702_s7, 16 }
  0x2a   :  { %p11618_p8 = scmp.ne.s32.totalorder %s13702_s7, %s11617_s1  ;;  %p11621_p9 = scmp.lt.u32.totalorder %s11617_s1, %s13702_s7 }
  0x2c   :  { %p11623_p10 = pnand %p11621_p9, %p11618_p8 }
  0x2e   :  { %11626 = shalt.err (!%p11623_p10)
}
  0x2f   :  { %s11627_s26 = scalar_lea.vmem %s12130_s30, 16  ;;  %s11631_s28 = scalar_lea.vmem %s12130_s30, 32 }
  0x30   :  { %p11628_p11 = scmp.ne.s32.totalorder %s12130_s30, %s11627_s26  ;;  %p11632_p12 = scmp.lt.s32.totalorder %s12130_s30, %s12130_s30 }
  0x31   :  { %p11633_p13 = scmp.lt.s32.totalorder %s11631_s28, %s11627_s26 }
  0x33   :  { %p11634_p0 = por %p11633_p13, %p11632_p12 }
  0x35   :  { %p11635_p1 = pnand %p11634_p0, %p11628_p11 }
  0x37   :  { %11638 = shalt.err (!%p11635_p1)
}
  0x38   :  { %89 = dma.hbm_to_vmem [thread:$0]  %s13702_s7, 16, %s12130_s30, [#allocation10]  }
  0x39   :  { %s11993_s29 = smov [#allocation12]   ;;  %s11994_s0 = smov [#allocation15]  }
  0x3a   :  { %s110_s4 = sshll.u32 %s11993_s29, 4  ;;  %s131_s1 = sshll.u32 %s11994_s0, 4  ;;  %s111_s4 = int_to_ptr.vmem [resolvable:$true] %s110_s4  ;;  %s12165_s1 = int_to_ptr.vmem [resolvable:$true] %s131_s1 }
  0x3b   :  { %s11639_s6 = scalar_lea.hbm %s13705_s10, 16 }
  0x3c   :  { %p11640_p2 = scmp.ne.s32.totalorder %s13705_s10, %s11639_s6  ;;  %p11643_p3 = scmp.lt.u32.totalorder %s11639_s6, %s13705_s10 }
  0x3e   :  { %p11645_p4 = pnand %p11643_p3, %p11640_p2 }
  0x40   :  { %11648 = shalt.err (!%p11645_p4)
}
  0x41   :  { %s11649_s7 = scalar_lea.vmem %s111_s4, 16  ;;  %s11653_s30 = scalar_lea.vmem %s111_s4, 32 }
  0x42   :  { %p11650_p5 = scmp.ne.s32.totalorder %s111_s4, %s11649_s7  ;;  %p11654_p6 = scmp.lt.s32.totalorder %s111_s4, %s111_s4 }
  0x43   :  { %p11655_p7 = scmp.lt.s32.totalorder %s11653_s30, %s11649_s7 }
  0x45   :  { %p11656_p8 = por %p11655_p7, %p11654_p6 }
  0x47   :  { %p11657_p9 = pnand %p11656_p8, %p11650_p5 }
  0x49   :  { %11660 = shalt.err (!%p11657_p9)
}
  0x4a   :  { %113 = dma.hbm_to_vmem [thread:$0]  %s13705_s10, 16, %s111_s4, [#allocation13]  }
  0x4b   :  { %s11661_s5 = scalar_lea.hbm %s13707_s12, 288 }
  0x4c   :  { %p11662_p10 = scmp.ne.s32.totalorder %s13707_s12, %s11661_s5  ;;  %p11665_p11 = scmp.lt.u32.totalorder %s11661_s5, %s13707_s12 }
  0x4e   :  { %p11667_p12 = pnand %p11665_p11, %p11662_p10 }
  0x50   :  { %11670 = shalt.err (!%p11667_p12)
}
  0x51   :  { %s11671_s26 = scalar_lea.vmem %s12165_s1, 288  ;;  %p11676_p0 = scmp.lt.s32.totalorder %s12165_s1, %s12165_s1 }
  0x52   :  { %p11672_p13 = scmp.ne.s32.totalorder %s12165_s1, %s11671_s26  ;;  %p11677_p1 = scmp.lt.s32.totalorder %s11671_s26, %s11671_s26 }
  0x54   :  { %p11678_p2 = por %p11677_p1, %p11676_p0 }
  0x56   :  { %p11679_p3 = pnand %p11678_p2, %p11672_p13 }
  0x58   :  { %11682 = shalt.err (!%p11679_p3)
}
  0x59   :  { %s11995_s10 = smov 32   ;;  %s11996_s4 = smov 2  }
  0x5a   :  { %137 = dma.hbm_to_vmem [thread:$0]  %s13707_s12, 288, %s12165_s1, [#allocation16], %s11995_s10, %s11995_s10, %s11996_s4  }
  0x5b   :  { %s11997_s30 = smov [#allocation18]   ;;  %s11683_s0 = scalar_lea.hbm %s13709_s14, 1152 }
  0x5c   :  { %s155_s23 = sshll.u32 %s11997_s30, 4  ;;  %p11684_p4 = scmp.ne.s32.totalorder %s13709_s14, %s11683_s0  ;;  %s156_s23 = int_to_ptr.vmem [resolvable:$true] %s155_s23 }
  0x5d   :  { %p11687_p5 = scmp.lt.u32.totalorder %s11683_s0, %s13709_s14 }
  0x5f   :  { %p11689_p6 = pnand %p11687_p5, %p11684_p4 }
  0x61   :  { %11692 = shalt.err (!%p11689_p6)
}
  0x62   :  { %s11693_s25 = scalar_lea.vmem %s156_s23, 1152  ;;  %p11698_p8 = scmp.lt.s32.totalorder %s156_s23, %s156_s23 }
  0x63   :  { %p11694_p7 = scmp.ne.s32.totalorder %s156_s23, %s11693_s25  ;;  %p11699_p9 = scmp.lt.s32.totalorder %s11693_s25, %s11693_s25 }
  0x65   :  { %p11700_p10 = por %p11699_p9, %p11698_p8 }
  0x67   :  { %p11701_p11 = pnand %p11700_p10, %p11694_p7 }
  0x69   :  { %11704 = shalt.err (!%p11701_p11)
}
  0x6a   :  { %s11998_s12 = smov 64   ;;  %s11999_s1 = smov 4  }
  0x6b   :  { %161 = dma.hbm_to_vmem [thread:$0]  %s13709_s14, 1152, %s156_s23, [#allocation19], %s11998_s12, %s11998_s12, %s11999_s1  }
  0x6c   :  { %s12000_s4 = smov [#allocation21]   ;;  %s12001_s7 = smov [#allocation24]  }
  0x6d   :  { %s177_s28 = sshll.u32 %s12000_s4, 4  ;;  %s200_s30 = sshll.u32 %s12001_s7, 4  ;;  %s178_s28 = int_to_ptr.vmem [resolvable:$true] %s177_s28  ;;  %s201_s30 = int_to_ptr.vmem [resolvable:$true] %s200_s30 }
  0x6e   :  { %s11705_s0 = scalar_lea.hbm %s13711_s16, 4096 }
  0x6f   :  { %p11706_p12 = scmp.ne.s32.totalorder %s13711_s16, %s11705_s0  ;;  %p11709_p13 = scmp.lt.u32.totalorder %s11705_s0, %s13711_s16 }
  0x71   :  { %p11711_p0 = pnand %p11709_p13, %p11706_p12 }
  0x73   :  { %11714 = shalt.err (!%p11711_p0)
}
  0x74   :  { %s11715_s14 = scalar_lea.vmem %s178_s28, 4096  ;;  %p11720_p2 = scmp.lt.s32.totalorder %s178_s28, %s178_s28 }
  0x75   :  { %p11716_p1 = scmp.ne.s32.totalorder %s178_s28, %s11715_s14  ;;  %p11721_p3 = scmp.lt.s32.totalorder %s11715_s14, %s11715_s14 }
  0x77   :  { %p11722_p4 = por %p11721_p3, %p11720_p2 }
  0x79   :  { %p11723_p5 = pnand %p11722_p4, %p11716_p1 }
  0x7b   :  { %11726 = shalt.err (!%p11723_p5)
}
  0x7c   :  { %s12002_s23 = smov 256   ;;  %s12003_s25 = smov 16  }
  0x7d   :  { %183 = dma.hbm_to_vmem [thread:$0]  %s13711_s16, 4096, %s178_s28, [#allocation22], %s12002_s23, %s12002_s23, %s12003_s25  }
  0x7e   :  { %s11727_s3 = scalar_lea.hbm %s13713_s18, 16 }
  0x7f   :  { %p11728_p6 = scmp.ne.s32.totalorder %s13713_s18, %s11727_s3  ;;  %p11731_p7 = scmp.lt.u32.totalorder %s11727_s3, %s13713_s18 }
  0x81   :  { %p11733_p8 = pnand %p11731_p7, %p11728_p6 }
  0x83   :  { %11736 = shalt.err (!%p11733_p8)
}
  0x84   :  { %s11737_s24 = scalar_lea.vmem %s201_s30, 16  ;;  %s11741_s6 = scalar_lea.vmem %s201_s30, 32 }
  0x85   :  { %p11738_p9 = scmp.ne.s32.totalorder %s201_s30, %s11737_s24  ;;  %p11742_p10 = scmp.lt.s32.totalorder %s201_s30, %s201_s30 }
  0x86   :  { %p11743_p11 = scmp.lt.s32.totalorder %s11741_s6, %s11737_s24 }
  0x88   :  { %p11744_p12 = por %p11743_p11, %p11742_p10 }
  0x8a   :  { %p11745_p13 = pnand %p11744_p12, %p11738_p9 }
  0x8c   :  { %11748 = shalt.err (!%p11745_p13)
}
  0x8d   :  { %203 = dma.hbm_to_vmem [thread:$0]  %s13713_s18, 16, %s201_s30, [#allocation25]  }
  0x8e   :  { %s12004_s14 = smov [#allocation3]   ;;  %s12005_s10 = smov [#allocation8]  }
  0x8f   :  { %s47_s26 = sshll.u32 %s12004_s14, 4  ;;  %s74_s4 = sshll.u32 %s12005_s10, 4  ;;  %s48_s26 = int_to_ptr.vmem [resolvable:$true] %s47_s26  ;;  %s75_s4 = int_to_ptr.vmem [resolvable:$true] %s74_s4 }
  0x90   :  { %s13745_s29 = sld [smem:[#allocation62_spill]] }
  0x96   :  { %s11749_s0 = scalar_lea.hbm %s13745_s29, 512 }
  0x97   :  { %p11750_p0 = scmp.ne.s32.totalorder %s13745_s29, %s11749_s0  ;;  %p11753_p1 = scmp.lt.u32.totalorder %s11749_s0, %s13745_s29 }
  0x99   :  { %p11755_p2 = pnand %p11753_p1, %p11750_p0 }
  0x9b   :  { %11758 = shalt.err (!%p11755_p2)
}
  0x9c   :  { %s11759_s18 = scalar_lea.vmem %s48_s26, 512  ;;  %p11764_p4 = scmp.lt.s32.totalorder %s48_s26, %s48_s26 }
  0x9d   :  { %p11760_p3 = scmp.ne.s32.totalorder %s48_s26, %s11759_s18  ;;  %p11765_p5 = scmp.lt.s32.totalorder %s11759_s18, %s11759_s18 }
  0x9f   :  { %p11766_p6 = por %p11765_p5, %p11764_p4 }
  0xa1   :  { %p11767_p7 = pnand %p11766_p6, %p11760_p3 }
  0xa3   :  { %11770 = shalt.err (!%p11767_p7)
}
  0xa4   :  { %s13746_s30 = smov 128   ;;  %s13747_s7 = sld [smem:[#allocation65_spill]] }
  0xa5   :  { %53 = dma.hbm_to_vmem [thread:$0]  %s13745_s29, 512, %s48_s26, [#allocation4], %s13746_s30, %s13746_s30, %s11992_s27  }
  0xaa   :  { %s11771_s3 = scalar_lea.hbm %s13747_s7, 16 }
  0xab   :  { %p11772_p8 = scmp.ne.s32.totalorder %s13747_s7, %s11771_s3  ;;  %p11775_p9 = scmp.lt.u32.totalorder %s11771_s3, %s13747_s7 }
  0xad   :  { %p11777_p10 = pnand %p11775_p9, %p11772_p8 }
  0xaf   :  { %11780 = shalt.err (!%p11777_p10)
}
  0xb0   :  { %s11781_s6 = scalar_lea.vmem %s75_s4, 16  ;;  %s11785_s18 = scalar_lea.vmem %s75_s4, 32 }
  0xb1   :  { %p11782_p11 = scmp.ne.s32.totalorder %s75_s4, %s11781_s6  ;;  %p11786_p12 = scmp.lt.s32.totalorder %s75_s4, %s75_s4 }
  0xb2   :  { %p11787_p13 = scmp.lt.s32.totalorder %s11785_s18, %s11781_s6 }
  0xb4   :  { %p11788_p0 = por %p11787_p13, %p11786_p12 }
  0xb6   :  { %p11789_p1 = pnand %p11788_p0, %p11782_p11 }
  0xb8   :  { %11792 = shalt.err (!%p11789_p1)
}
  0xb9   :  { %77 = dma.hbm_to_vmem [thread:$0]  %s13747_s7, 16, %s75_s4, [#allocation7]  }
  0xba   :  { %s12006_s16 = smov [#allocation11]   ;;  %s12007_s14 = smov [#allocation14]  }
  0xbb   :  { %s95_s28 = sshll.u32 %s12006_s16, 4  ;;  %s119_s10 = sshll.u32 %s12007_s14, 4  ;;  %s96_s28 = int_to_ptr.vmem [resolvable:$true] %s95_s28  ;;  %s120_s10 = int_to_ptr.vmem [resolvable:$true] %s119_s10 }
  0xbc   :  { %s11793_s5 = scalar_lea.hbm %s13703_s8, 36864 }
  0xbd   :  { %p11794_p2 = scmp.ne.s32.totalorder %s13703_s8, %s11793_s5  ;;  %p11797_p3 = scmp.lt.u32.totalorder %s11793_s5, %s13703_s8 }
  0xbf   :  { %p11799_p4 = pnand %p11797_p3, %p11794_p2 }
  0xc1   :  { %11802 = shalt.err (!%p11799_p4)
}
  0xc2   :  { %s11803_s4 = scalar_lea.vmem %s96_s28, 36864  ;;  %p11808_p6 = scmp.lt.s32.totalorder %s96_s28, %s96_s28 }
  0xc3   :  { %p11804_p5 = scmp.ne.s32.totalorder %s96_s28, %s11803_s4  ;;  %p11809_p7 = scmp.lt.s32.totalorder %s11803_s4, %s11803_s4 }
  0xc5   :  { %p11810_p8 = por %p11809_p7, %p11808_p6 }
  0xc7   :  { %p11811_p9 = pnand %p11810_p8, %p11804_p5 }
  0xc9   :  { %11814 = shalt.err (!%p11811_p9)
}
  0xca   :  { %101 = dma.hbm_to_vmem [thread:$0]  %s13703_s8, 36864, %s96_s28, [#allocation10], %s12002_s23, %s12002_s23, %s12003_s25  }
  0xcb   :  { %s11815_s14 = scalar_lea.hbm %s13706_s11, 2304 }
  0xcc   :  { %p11816_p10 = scmp.ne.s32.totalorder %s13706_s11, %s11815_s14  ;;  %p11819_p11 = scmp.lt.u32.totalorder %s11815_s14, %s13706_s11 }
  0xce   :  { %p11821_p12 = pnand %p11819_p11, %p11816_p10 }
  0xd0   :  { %11824 = shalt.err (!%p11821_p12)
}
  0xd1   :  { %s11825_s24 = scalar_lea.vmem %s120_s10, 2304  ;;  %p11830_p0 = scmp.lt.s32.totalorder %s120_s10, %s120_s10 }
  0xd2   :  { %p11826_p13 = scmp.ne.s32.totalorder %s120_s10, %s11825_s24  ;;  %p11831_p1 = scmp.lt.s32.totalorder %s11825_s24, %s11825_s24 }
  0xd4   :  { %p11832_p2 = por %p11831_p1, %p11830_p0 }
  0xd6   :  { %p11833_p3 = pnand %p11832_p2, %p11826_p13 }
  0xd8   :  { %11836 = shalt.err (!%p11833_p3)
}
  0xd9   :  { %125 = dma.hbm_to_vmem [thread:$0]  %s13706_s11, 2304, %s120_s10, [#allocation13], %s11998_s12, %s11998_s12, %s11999_s1  }
  0xda   :  { %s12008_s25 = smov [#allocation17]   ;;  %s12009_s6 = smov [#allocation20]  }
  0xdb   :  { %s143_s28 = sshll.u32 %s12008_s25, 4  ;;  %s168_s18 = sshll.u32 %s12009_s6, 4  ;;  %s144_s28 = int_to_ptr.vmem [resolvable:$true] %s143_s28  ;;  %s169_s18 = int_to_ptr.vmem [resolvable:$true] %s168_s18 }
  0xdc   :  { %s11837_s26 = scalar_lea.hbm %s13708_s13, 576 }
  0xdd   :  { %p11838_p4 = scmp.ne.s32.totalorder %s13708_s13, %s11837_s26  ;;  %p11841_p5 = scmp.lt.u32.totalorder %s11837_s26, %s13708_s13 }
  0xdf   :  { %p11843_p6 = pnand %p11841_p5, %p11838_p4 }
  0xe1   :  { %11846 = shalt.err (!%p11843_p6)
}
  0xe2   :  { %s11847_s11 = scalar_lea.vmem %s144_s28, 576  ;;  %p11852_p8 = scmp.lt.s32.totalorder %s144_s28, %s144_s28 }
  0xe3   :  { %p11848_p7 = scmp.ne.s32.totalorder %s144_s28, %s11847_s11  ;;  %p11853_p9 = scmp.lt.s32.totalorder %s11847_s11, %s11847_s11 }
  0xe5   :  { %p11854_p10 = por %p11853_p9, %p11852_p8 }
  0xe7   :  { %p11855_p11 = pnand %p11854_p10, %p11848_p7 }
  0xe9   :  { %11858 = shalt.err (!%p11855_p11)
}
  0xea   :  { %149 = dma.hbm_to_vmem [thread:$0]  %s13708_s13, 576, %s144_s28, [#allocation16], %s11998_s12, %s11998_s12, %s11999_s1  }
  0xeb   :  { %s11859_s24 = scalar_lea.hbm %s13710_s15, 16 }
  0xec   :  { %p11860_p12 = scmp.ne.s32.totalorder %s13710_s15, %s11859_s24  ;;  %p11863_p13 = scmp.lt.u32.totalorder %s11859_s24, %s13710_s15 }
  0xee   :  { %p11865_p0 = pnand %p11863_p13, %p11860_p12 }
  0xf0   :  { %11868 = shalt.err (!%p11865_p0)
}
  0xf1   :  { %s11869_s4 = scalar_lea.vmem %s169_s18, 16  ;;  %s11873_s7 = scalar_lea.vmem %s169_s18, 32 }
  0xf2   :  { %p11870_p1 = scmp.ne.s32.totalorder %s169_s18, %s11869_s4  ;;  %p11874_p2 = scmp.lt.s32.totalorder %s169_s18, %s169_s18 }
  0xf3   :  { %p11875_p3 = scmp.lt.s32.totalorder %s11873_s7, %s11869_s4 }
  0xf5   :  { %p11876_p4 = por %p11875_p3, %p11874_p2 }
  0xf7   :  { %p11877_p5 = pnand %p11876_p4, %p11870_p1 }
  0xf9   :  { %11880 = shalt.err (!%p11877_p5)
}
  0xfa   :  { %171 = dma.hbm_to_vmem [thread:$0]  %s13710_s15, 16, %s169_s18, [#allocation19]  }
  0xfb   :  { %s12010_s26 = smov [#allocation23]   ;;  %s12011_s16 = smov [#allocation26]  }
  0xfc   :  { %s190_s29 = sshll.u32 %s12010_s26, 4  ;;  %s209_s14 = sshll.u32 %s12011_s16, 4  ;;  %s191_s29 = int_to_ptr.vmem [resolvable:$true] %s190_s29  ;;  %s210_s14 = int_to_ptr.vmem [resolvable:$true] %s209_s14 }
  0xfd   :  { %s11881_s10 = scalar_lea.hbm %s13712_s17, 64 }
  0xfe   :  { %p11882_p6 = scmp.ne.s32.totalorder %s13712_s17, %s11881_s10  ;;  %p11885_p7 = scmp.lt.u32.totalorder %s11881_s10, %s13712_s17 }
 0x100   :  { %p11887_p8 = pnand %p11885_p7, %p11882_p6 }
 0x102   :  { %11890 = shalt.err (!%p11887_p8)
}
 0x103   :  { %s11891_s15 = scalar_lea.vmem %s191_s29, 64  ;;  %p11896_p10 = scmp.lt.s32.totalorder %s191_s29, %s191_s29 }
 0x104   :  { %p11892_p9 = scmp.ne.s32.totalorder %s191_s29, %s11891_s15  ;;  %p11897_p11 = scmp.lt.s32.totalorder %s11891_s15, %s11891_s15 }
 0x106   :  { %p11898_p12 = por %p11897_p11, %p11896_p10 }
 0x108   :  { %p11899_p13 = pnand %p11898_p12, %p11892_p9 }
 0x10a   :  { %11902 = shalt.err (!%p11899_p13)
}
 0x10b   :  { %193 = dma.hbm_to_vmem [thread:$0]  %s13712_s17, 64, %s191_s29, [#allocation22]  }
 0x10c   :  { %s11903_s6 = scalar_lea.hbm %s13714_s19, 1024 }
 0x10d   :  { %p11904_p0 = scmp.ne.s32.totalorder %s13714_s19, %s11903_s6  ;;  %p11907_p1 = scmp.lt.u32.totalorder %s11903_s6, %s13714_s19 }
 0x10f   :  { %p11909_p2 = pnand %p11907_p1, %p11904_p0 }
 0x111   :  { %11912 = shalt.err (!%p11909_p2)
}
 0x112   :  { %s11913_s26 = scalar_lea.vmem %s210_s14, 1024  ;;  %p11918_p4 = scmp.lt.s32.totalorder %s210_s14, %s210_s14 }
 0x113   :  { %p11914_p3 = scmp.ne.s32.totalorder %s210_s14, %s11913_s26  ;;  %p11919_p5 = scmp.lt.s32.totalorder %s11913_s26, %s11913_s26 }
 0x115   :  { %p11920_p6 = por %p11919_p5, %p11918_p4 }
 0x117   :  { %p11921_p7 = pnand %p11920_p6, %p11914_p3 }
 0x119   :  { %11924 = shalt.err (!%p11921_p7)
}
 0x11a   :  { %215 = dma.hbm_to_vmem [thread:$0]  %s13714_s19, 1024, %s210_s14, [#allocation25], %s11998_s12, %s11998_s12, %s11999_s1  }
 0x11b   :  { %s12012_s16 = smov [#allocation27]   ;;  %s11925_s0 = scalar_lea.hbm %s13715_s20, 16 }
 0x11c   :  { %s222_s3 = sshll.u32 %s12012_s16, 4  ;;  %p11926_p8 = scmp.ne.s32.totalorder %s13715_s20, %s11925_s0  ;;  %s223_s3 = int_to_ptr.vmem [resolvable:$true] %s222_s3 }
 0x11d   :  { %p11929_p9 = scmp.lt.u32.totalorder %s11925_s0, %s13715_s20 }
 0x11f   :  { %p11931_p10 = pnand %p11929_p9, %p11926_p8 }
 0x121   :  { %11934 = shalt.err (!%p11931_p10)
}
 0x122   :  { %s11935_s18 = scalar_lea.vmem %s223_s3, 16  ;;  %s11939_s19 = scalar_lea.vmem %s223_s3, 32 }
 0x123   :  { %p11936_p11 = scmp.ne.s32.totalorder %s223_s3, %s11935_s18  ;;  %p11940_p12 = scmp.lt.s32.totalorder %s223_s3, %s223_s3 }
 0x124   :  { %p11941_p13 = scmp.lt.s32.totalorder %s11939_s19, %s11935_s18 }
 0x126   :  { %p11942_p0 = por %p11941_p13, %p11940_p12 }
 0x128   :  { %p11943_p1 = pnand %p11942_p0, %p11936_p11 }
 0x12a   :  { %11946 = shalt.err (!%p11943_p1)
}
 0x12b   :  { %225 = dma.hbm_to_vmem [thread:$0]  %s13715_s20, 16, %s223_s3, [#allocation28]  }
 0x12c   :  { %11969 = dma.done.wait [#allocation4], 512  }
 0x12d   :  { %11970 = vsyncadd [#allocation4], 4294966784 }
 0x12e   :  { %11971 = dma.done.wait [#allocation7], 528  }
 0x12f   :  { %11972 = vsyncadd [#allocation7], 4294966768 }
 0x130   :  { %11973 = dma.done.wait [#allocation10], 36880  }
 0x131   :  { %11974 = vsyncadd [#allocation10], 4294930416 }
 0x132   :  { %11975 = dma.done.wait [#allocation13], 2320  }
 0x133   :  { %11976 = vsyncadd [#allocation13], 4294964976 }
 0x134   :  { %11977 = dma.done.wait [#allocation16], 864  }
 0x135   :  { %11978 = vsyncadd [#allocation16], 4294966432 }
 0x136   :  { %11979 = dma.done.wait [#allocation19], 1168  }
 0x137   :  { %11980 = vsyncadd [#allocation19], 4294966128 }
 0x138   :  { %11981 = dma.done.wait [#allocation22], 4160  }
 0x139   :  { %11982 = vsyncadd [#allocation22], 4294963136 }
 0x13a   :  { %11983 = dma.done.wait [#allocation25], 1040  }
 0x13b   :  { %11984 = vsyncadd [#allocation25], 4294966256 }
 0x13c   :  { %11985 = dma.done.wait [#allocation28], 16  }
 0x13d   :  { %11986 = vsyncadd [#allocation28], 4294967280  ;;  %s13748_s8 = sld [smem:[#allocation64_spill]]  ;;  %vm528_vm0 = vcmask 293888   ;;  %s13749_s28 = sld [smem:[#allocation60_spill]]  ;;  %vm625_vm1 = vcmask 1041408  }
 0x13e   :  { %s13750_s12 = sld [smem:[#allocation66_spill]]  ;;  %vm1490_vm2 = vcmask 1043456   ;;  %s13751_s24 = sld [smem:[#allocation61_spill]]  ;;  %vm1465_vm3 = vcmask 588800   ;;  %v13727_v36 = vmov 0   ;;  %vm4700_vm4 = vcmask 31744  }
 0x13f   :  { %v10623_v45 = vld [vmem:[#allocation11 + $0x2c4] ss:$16 sps:$4 sm:$0xff]   ;;  %v12543_v50 = vld [vmem:[#allocation8] ss:$0 sm:$0xff]  ;;  %vm7240_vm5 = vcmask 64512   ;;  %vm7917_vm6 = vcmask 130048  }
 0x143   :  { %v10577_v0 = vld [vmem:[%s13748_s8] sm:$0xff]   ;;  %v10578_v1 = vld [vmem:[%s13748_s8 + $0x8] sm:$0xff]   ;;  %v10579_v2 = vld [vmem:[%s13748_s8 + $0x10] ss:$0 sps:$4 sm:$0x33]  }
 0x144   :  { %9576 = vmatprep.subr.bf16.mxu0 %v10577_v0  ;;  %v10580_v3 = vld [vmem:[%s13749_s28] sm:$0xff]   ;;  %v627_v4 = vsel %vm625_vm1, %v10579_v2, 0  ;;  %v10581_v5 = vld [vmem:[%s13749_s28 + $0x8] sm:$0xff]   ;;  %v10582_v6 = vld [vmem:[%s13749_s28 + $0x10] sm:$0xff]  }
 0x145   :  { %9577 = vmatpush3.bf16.msra.mxu0 %v10577_v0  ;;  %9582 = vmatprep.mubr.msk.bf16.mxu0 %vm528_vm0, %v10580_v3  ;;  %v10583_v7 = vld [vmem:[%s13749_s28 + $0x18] sm:$0xff]   ;;  %v10584_v8 = vld [vmem:[%s13749_s28 + $0x20] sm:$0xff]   ;;  %v10585_v9 = vld [vmem:[%s13749_s28 + $0x28] sm:$0xff]  }
 0x146   :  { %9578 = vmatprep.subr.bf16.mxu0 %v10578_v1  ;;  %v10586_v10 = vld [vmem:[%s13749_s28 + $0x30] sm:$0xff]   ;;  %v10604_v11 = vld [vmem:[%s13750_s12] sm:$0xff]   ;;  %v10605_v12 = vld [vmem:[%s13750_s12 + $0x8] sm:$0xff]  }
 0x147   :  { %9646 = vmatprep.subr.bf16.mxu1 %v10604_v11  ;;  %v10606_v13 = vld [vmem:[%s13750_s12 + $0x10] sm:$0xff]   ;;  %v10587_v14 = vld [vmem:[%s13749_s28 + $0x38] sm:$0xff]   ;;  %v10588_v15 = vld [vmem:[%s13749_s28 + $0x40] sm:$0xff]  }
 0x148   :  { %9647 = vmatpush3.bf16.msra.mxu1 %v10604_v11  ;;  %v10607_v16 = vld [vmem:[%s13750_s12 + $0x18] sm:$0xff]   ;;  %v10589_v17 = vld [vmem:[%s13749_s28 + $0x48] sm:$0xff]   ;;  %v10590_v18 = vld [vmem:[%s13749_s28 + $0x50] sm:$0xff]  }
 0x149   :  { %9579 = vmatpush3.bf16.msra.mxu0 %v10578_v1  ;;  %9648 = vmatprep.subr.bf16.mxu1 %v10605_v12  ;;  %v10591_v19 = vld [vmem:[%s13749_s28 + $0x58] sm:$0xff]   ;;  %v10592_v20 = vld [vmem:[%s13749_s28 + $0x60] sm:$0xff]   ;;  %v10593_v21 = vld [vmem:[%s13749_s28 + $0x68] sm:$0xff]  }
 0x14a   :  { %10522 = vmatprep.subr.msk.bf16.mxu0 %vm625_vm1, %v10579_v2  ;;  %v10594_v22 = vld [vmem:[%s13749_s28 + $0x70] sm:$0xff]   ;;  %v10595_v23 = vld [vmem:[%s13749_s28 + $0x78] sm:$0xff]   ;;  %v10596_v24 = vld [vmem:[%s13749_s28 + $0x80] sm:$0xff]  }
 0x14b   :  { %v10597_v25 = vld [vmem:[%s13749_s28 + $0x88] sm:$0xff]   ;;  %v10598_v26 = vld [vmem:[%s13749_s28 + $0x90] sm:$0xff]   ;;  %v10599_v27 = vld [vmem:[%s13749_s28 + $0x98] sm:$0xff]  }
 0x14c   :  { %9649 = vmatpush3.bf16.msra.mxu1 %v10605_v12  ;;  %v10600_v28 = vld [vmem:[%s13749_s28 + $0xa0] sm:$0xff]   ;;  %v10601_v29 = vld [vmem:[%s13749_s28 + $0xa8] sm:$0xff]   ;;  %v10602_v30 = vld [vmem:[%s13749_s28 + $0xb0] sm:$0xff]  }
 0x14d   :  { %9581 = vmatpush3.bf16.msra.mxu0 %v627_v4  ;;  %9650 = vmatprep.subr.bf16.mxu1 %v10606_v13  ;;  %v10603_v31 = vld [vmem:[%s13749_s28 + $0xb8] sm:$0xff]   ;;  %v10608_v32 = vld [vmem:[%s13750_s12 + $0x20] ss:$0 sps:$4 sm:$0xff]   ;;  %v10610_v35 = vld [vmem:[%s13751_s24 + $0x8] sm:$0xff]  }
 0x14e   :  { %v1492_v33 = vsel %vm1490_vm2, %v10608_v32, 0  ;;  %v10609_v34 = vld [vmem:[%s13751_s24] sm:$0xff]   ;;  %3463 = vmatprep.subr.bf16.mxu0 %v13727_v36  ;;  %v10613_v37 = vld [vmem:[%s13751_s24 + $0x10] sm:$0xff]   ;;  %v10614_v38 = vld [vmem:[%s13751_s24 + $0x18] sm:$0xff]  }
 0x14f   :  { %9656 = vmatprep.mubr.msk.bf16.mxu1 %vm1465_vm3, %v10609_v34  ;;  %v10611_v39 = vld [vmem:[%s13749_s28 + $0xc0] sm:$0xff]   ;;  %v10612_v40 = vld [vmem:[%s13749_s28 + $0xc8] sm:$0xff]   ;;  %v10617_v43 = vld [vmem:[%s13751_s24 + $0x30] sm:$0xff]  }
 0x150   :  { %9583 = vmatmul.mubr.msk.bf16.vlgmr.msra.gmra.mrb[0].mxu0 %vm528_vm0, %v10581_v5  ;;  %9651 = vmatpush3.bf16.msra.mxu1 %v10606_v13  ;;  %v10615_v41 = vld [vmem:[%s13751_s24 + $0x20] sm:$0xff]   ;;  %v10616_v42 = vld [vmem:[%s13751_s24 + $0x28] sm:$0xff]   ;;  %v10618_v44 = vld [vmem:[%s13751_s24 + $0x38] sm:$0xff]  }
 0x151   :  { %9586 = vmatprep.mubr.msk.bf16.mxu0 %vm528_vm0, %v10582_v6  ;;  %9652 = vmatprep.subr.bf16.mxu1 %v10607_v16  ;;  %v10619_v46 = vld [vmem:[%s13749_s28 + $0xd0] sm:$0xff]   ;;  %v10620_v47 = vld [vmem:[%s13749_s28 + $0xd8] sm:$0xff]   ;;  %v10630_v48 = vld [vmem:[%s13749_s28 + $0xe0] sm:$0xff]  }
 0x152   :  { %v10631_v49 = vld [vmem:[%s13749_s28 + $0xe8] sm:$0xff]  }
 0x154   :  { %9653 = vmatpush3.bf16.msra.mxu1 %v10607_v16 }
 0x155   :  { %10523 = vmatprep.subr.msk.bf16.mxu1 %vm1490_vm2, %v10608_v32 }
 0x158   :  { %9587 = vmatmul.mubr.msk.bf16.gmra.mrb[4].mxu0 %vm528_vm0, %v10583_v7  ;;  %9655 = vmatpush3.bf16.msra.mxu1 %v1492_v33 }
 0x159   :  { %9590 = vmatprep.mubr.msk.bf16.mxu0 %vm528_vm0, %v10584_v8  ;;  %10066 = vmatprep.subr.bf16.mxu1 %v13727_v36 }
 0x15b   :  { %9657 = vmatmul.mubr.msk.bf16.vlgmr.msra.gmra.mrb[0].mxu1 %vm1465_vm3, %v10610_v35 }
 0x15c   :  { %9660 = vmatprep.mubr.msk.bf16.mxu1 %vm1465_vm3, %v10613_v37 }
 0x160   :  { %9591 = vmatmul.mubr.msk.bf16.gmra.mrb[8].mxu0 %vm528_vm0, %v10585_v9 }
 0x161   :  { %9594 = vmatprep.mubr.msk.bf16.mxu0 %vm528_vm0, %v10586_v10 }
 0x163   :  { %9661 = vmatmul.mubr.msk.bf16.gmra.mrb[4].mxu1 %vm1465_vm3, %v10614_v38 }
 0x164   :  { %9664 = vmatprep.mubr.msk.bf16.mxu1 %vm1465_vm3, %v10615_v41 }
 0x168   :  { %9595 = vmatmul.mubr.msk.bf16.gmra.mrb[12].mxu0 %vm528_vm0, %v10587_v14 }
 0x169   :  { %9598 = vmatprep.mubr.msk.bf16.mxu0 %vm528_vm0, %v10588_v15 }
 0x16b   :  { %9665 = vmatmul.mubr.msk.bf16.gmra.mrb[8].mxu1 %vm1465_vm3, %v10616_v42 }
 0x16c   :  { %9668 = vmatprep.mubr.msk.bf16.mxu1 %vm1465_vm3, %v10617_v43 }
 0x170   :  { %9599 = vmatmul.mubr.msk.bf16.gmra.mrb[16].mxu0 %vm528_vm0, %v10589_v17 }
 0x171   :  { %9602 = vmatprep.mubr.msk.bf16.mxu0 %vm528_vm0, %v10590_v18 }
 0x173   :  { %9669 = vmatmul.mubr.msk.bf16.gmra.mrb[12].mxu1 %vm1465_vm3, %v10618_v44 }
 0x174   :  { %3671 = vmatprep.mubr.bf16.mxu1 %v10623_v45 }
 0x178   :  { %9603 = vmatmul.mubr.msk.bf16.gmra.mrb[20].mxu0 %vm528_vm0, %v10591_v19 }
 0x179   :  { %9606 = vmatprep.mubr.msk.bf16.mxu0 %vm528_vm0, %v10592_v20 }
 0x180   :  { %9607 = vmatmul.mubr.msk.bf16.gmra.mrb[24].mxu0 %vm528_vm0, %v10593_v21 }
 0x181   :  { %9610 = vmatprep.mubr.msk.bf16.mxu0 %vm528_vm0, %v10594_v22 }
 0x188   :  { %9611 = vmatmul.mubr.msk.bf16.gmra.mrb[28].mxu0 %vm528_vm0, %v10595_v23 }
 0x189   :  { %9614 = vmatprep.mubr.msk.bf16.mxu0 %vm528_vm0, %v10596_v24 }
 0x190   :  { %9615 = vmatmul.mubr.msk.bf16.gmra.mrb[32].mxu0 %vm528_vm0, %v10597_v25 }
 0x191   :  { %9618 = vmatprep.mubr.msk.bf16.mxu0 %vm528_vm0, %v10598_v26 }
 0x198   :  { %9619 = vmatmul.mubr.msk.bf16.gmra.mrb[36].mxu0 %vm528_vm0, %v10599_v27 }
 0x199   :  { %9622 = vmatprep.mubr.msk.bf16.mxu0 %vm528_vm0, %v10600_v28 }
 0x1a0   :  { %9623 = vmatmul.mubr.msk.bf16.gmra.mrb[40].mxu0 %vm528_vm0, %v10601_v29 }
 0x1a1   :  { %9626 = vmatprep.mubr.msk.bf16.mxu0 %vm528_vm0, %v10602_v30 }
 0x1a8   :  { %9627 = vmatmul.mubr.msk.bf16.gmra.mrb[44].mxu0 %vm528_vm0, %v10603_v31 }
 0x1a9   :  { %9630 = vmatprep.mubr.msk.bf16.mxu0 %vm528_vm0, %v10611_v39 }
 0x1b0   :  { %9631 = vmatmul.mubr.msk.bf16.gmra.mrb[48].mxu0 %vm528_vm0, %v10612_v40 }
 0x1b1   :  { %9634 = vmatprep.mubr.msk.bf16.mxu0 %vm528_vm0, %v10619_v46 }
 0x1b8   :  { %9635 = vmatmul.mubr.msk.bf16.gmra.mrb[52].mxu0 %vm528_vm0, %v10620_v47 }
 0x1b9   :  { %9638 = vmatprep.mubr.msk.bf16.mxu0 %vm528_vm0, %v10630_v48 }
 0x1c0   :  { %9639 = vmatmul.mubr.msk.bf16.gmra.mrb[56].mxu0 %vm528_vm0, %v10631_v49 }
 0x223   :  { %v9584_v51 = vpop.f32.mrb[0].mxu0 }
 0x224   :  { %v12546_v52 = vadd.f32 %v9584_v51, %v12543_v50  ;;  %v663_v53 = vpop.f32.mrb[1].mxu0 }
 0x225   :  { %v12549_v54 = vadd.f32 %v12543_v50, %v663_v53  ;;  %v9585_v55 = vpop.f32.mrb[2].mxu0 }
 0x226   :  { %v8722_v56 = vmul.f32 -1.442695, %v12546_v52  ;;  %v12553_v57 = vadd.f32 %v9585_v55, %v12543_v50  ;;  %v666_v58 = vpop.f32.mrb[3].mxu0 }
 0x227   :  { %v8720_v59 = vmul.f32 -1.442695, %v12549_v54  ;;  %v12557_v60 = vadd.f32 %v12543_v50, %v666_v58 }
 0x228   :  { %11146 = vpow2.f32 %v8722_v56  ;;  %v8723_v61 = vmul.f32 -1.442695, %v12553_v57 }
 0x229   :  { %11148 = vpow2.f32 %v8720_v59  ;;  %v8721_v62 = vmul.f32 -1.442695, %v12557_v60 }
 0x22a   :  { %11150 = vpow2.f32 %v8723_v61 }
 0x22b   :  { %11152 = vpow2.f32 %v8721_v62  ;;  %v9588_v63 = vpop.f32.mrb[4].mxu0 }
 0x22c   :  { %v12562_v0 = vadd.f32 %v9588_v63, %v12543_v50  ;;  %v679_v1 = vpop.f32.mrb[5].mxu0 }
 0x22d   :  { %v12565_v2 = vadd.f32 %v12543_v50, %v679_v1  ;;  %v9589_v3 = vpop.f32.mrb[6].mxu0 }
 0x22e   :  { %v8726_v4 = vmul.f32 -1.442695, %v12562_v0  ;;  %v12569_v5 = vadd.f32 %v9589_v3, %v12543_v50  ;;  %v682_v6 = vpop.f32.mrb[7].mxu0 }
 0x22f   :  { %v8724_v7 = vmul.f32 -1.442695, %v12565_v2  ;;  %v12573_v8 = vadd.f32 %v12543_v50, %v682_v6 }
 0x230   :  { %11154 = vpow2.f32 %v8726_v4  ;;  %v8727_v9 = vmul.f32 -1.442695, %v12569_v5 }
 0x231   :  { %11156 = vpow2.f32 %v8724_v7  ;;  %v8725_v10 = vmul.f32 -1.442695, %v12573_v8 }
 0x232   :  { %v11147_v11 = vpop.eup %11146  ;;  %11158 = vpow2.f32 %v8727_v9 }
 0x233   :  { %v11149_v12 = vpop.eup %11148  ;;  %v1112_v13 = vadd.f32 1.0, %v11147_v11  ;;  %11160 = vpow2.f32 %v8725_v10  ;;  %v9592_v14 = vpop.f32.mrb[8].mxu0 }
 0x234   :  { %v11151_v15 = vpop.eup %11150  ;;  %v1110_v16 = vadd.f32 1.0, %v11149_v12  ;;  %v12578_v17 = vadd.f32 %v9592_v14, %v12543_v50  ;;  %v695_v18 = vpop.f32.mrb[9].mxu0 }
 0x235   :  { %v11153_v19 = vpop.eup %11152  ;;  %11162 = vrcp.f32 %v1112_v13  ;;  %v1113_v20 = vadd.f32 1.0, %v11151_v15  ;;  %v12581_v21 = vadd.f32 %v12543_v50, %v695_v18  ;;  %v9593_v22 = vpop.f32.mrb[10].mxu0 }
 0x236   :  { %11164 = vrcp.f32 %v1110_v16  ;;  %v1111_v23 = vadd.f32 1.0, %v11153_v19  ;;  %v8730_v24 = vmul.f32 -1.442695, %v12578_v17  ;;  %v12585_v25 = vadd.f32 %v9593_v22, %v12543_v50  ;;  %v698_v26 = vpop.f32.mrb[11].mxu0 }
 0x237   :  { %11166 = vrcp.f32 %v1113_v20  ;;  %v8728_v27 = vmul.f32 -1.442695, %v12581_v21  ;;  %v12589_v28 = vadd.f32 %v12543_v50, %v698_v26 }
 0x238   :  { %11168 = vrcp.f32 %v1111_v23  ;;  %v8731_v29 = vmul.f32 -1.442695, %v12585_v25 }
 0x239   :  { %11170 = vpow2.f32 %v8730_v24  ;;  %v8729_v30 = vmul.f32 -1.442695, %v12589_v28 }
 0x23a   :  { %v11155_v31 = vpop.eup %11154  ;;  %11172 = vpow2.f32 %v8728_v27 }
 0x23b   :  { %v11157_v32 = vpop.eup %11156  ;;  %v1116_v33 = vadd.f32 1.0, %v11155_v31  ;;  %11174 = vpow2.f32 %v8731_v29  ;;  %v9596_v34 = vpop.f32.mrb[12].mxu0 }
 0x23c   :  { %v11159_v35 = vpop.eup %11158  ;;  %v1114_v37 = vadd.f32 1.0, %v11157_v32  ;;  %11176 = vpow2.f32 %v8729_v30  ;;  %v12594_v38 = vadd.f32 %v9596_v34, %v12543_v50  ;;  %v711_v39 = vpop.f32.mrb[13].mxu0  ;;  %v10650_v30 = vld [vmem:[%s13749_s28 + $0xf0] sm:$0xff]   ;;  %v10651_v34 = vld [vmem:[%s13749_s28 + $0xf8] sm:$0xff]  }
 0x23d   :  { %v11161_v40 = vpop.eup %11160  ;;  %11178 = vrcp.f32 %v1116_v33  ;;  %v1117_v41 = vadd.f32 1.0, %v11159_v35  ;;  %v12597_v42 = vadd.f32 %v12543_v50, %v711_v39  ;;  %v9597_v43 = vpop.f32.mrb[14].mxu0  ;;  %9642 = vmatprep.mubr.msk.bf16.mxu0 %vm528_vm0, %v10650_v30 }
 0x23e   :  { %11180 = vrcp.f32 %v1114_v37  ;;  %v1115_v44 = vadd.f32 1.0, %v11161_v40  ;;  %v8734_v45 = vmul.f32 -1.442695, %v12594_v38  ;;  %v12601_v46 = vadd.f32 %v9597_v43, %v12543_v50  ;;  %v714_v47 = vpop.f32.mrb[15].mxu0  ;;  %9643 = vmatmul.mubr.msk.bf16.gmra.mrb[60].mxu0 %vm528_vm0, %v10651_v34 }
 0x23f   :  { %v11163_v48 = vpop.eup %11162  ;;  %11182 = vrcp.f32 %v1117_v41  ;;  %v8732_v49 = vmul.f32 -1.442695, %v12597_v42  ;;  %v12605_v51 = vadd.f32 %v12543_v50, %v714_v47 }
 0x240   :  { %v11165_v53 = vpop.eup %11164  ;;  %11184 = vrcp.f32 %v1115_v44  ;;  %v8735_v55 = vmul.f32 -1.442695, %v12601_v46  ;;  %v1304_v61 = vmul.f32 %v11163_v48, %v12546_v52 }
 0x241   :  { %v11167_v56 = vpop.eup %11166  ;;  %11186 = vpow2.f32 %v8734_v45  ;;  %v8733_v58 = vmul.f32 -1.442695, %v12605_v51  ;;  %v1302_v1 = vmul.f32 %v11165_v53, %v12549_v54 }
 0x242   :  { %v11169_v59 = vpop.eup %11168  ;;  %v1305_v62 = vmul.f32 %v11167_v56, %v12553_v57  ;;  %11188 = vpow2.f32 %v8732_v49 }
 0x243   :  { %v11171_v63 = vpop.eup %11170  ;;  %v1303_v3 = vmul.f32 %v11169_v59, %v12557_v60  ;;  %11190 = vpow2.f32 %v8735_v55  ;;  %v9600_v4 = vpop.f32.mrb[16].mxu0 }
 0x244   :  { %v11173_v6 = vpop.eup %11172  ;;  %v1120_v7 = vadd.f32 1.0, %v11171_v63  ;;  %11192 = vpow2.f32 %v8733_v58  ;;  %v12614_v9 = vadd.f32 %v9600_v4, %v12543_v50  ;;  %v727_v10 = vpop.f32.mrb[17].mxu0  ;;  %v1992_v11 = vpack.c.bf16 %v1305_v62, %v1304_v61 }
 0x245   :  { %v11175_v12 = vpop.eup %11174  ;;  %v1118_v52 = vadd.f32 1.0, %v11173_v6  ;;  %v12617_v57 = vadd.f32 %v12543_v50, %v727_v10  ;;  %v9601_v13 = vpop.f32.mrb[18].mxu0  ;;  %v1991_v14 = vpack.c.bf16 %v1303_v3, %v1302_v1 }
 0x246   :  { %v11177_v54 = vpop.eup %11176  ;;  %11194 = vrcp.f32 %v1120_v7  ;;  %v1121_v60 = vadd.f32 1.0, %v11175_v12  ;;  %v8738_v15 = vmul.f32 -1.442695, %v12614_v9  ;;  %v12621_v16 = vadd.f32 %v9601_v13, %v12543_v50  ;;  %v730_v18 = vpop.f32.mrb[19].mxu0 }
 0x247   :  { %v11179_v19 = vpop.eup %11178  ;;  %11196 = vrcp.f32 %v1118_v52  ;;  %v1119_v20 = vadd.f32 1.0, %v11177_v54  ;;  %v8736_v22 = vmul.f32 -1.442695, %v12617_v57  ;;  %v12625_v23 = vadd.f32 %v12543_v50, %v730_v18  ;;  %3464 = vmatpush1.bf16.msra.mxu0 %v1991_v14  ;;  %10082 = vmatpush1.bf16.msra.mxu1 %v1991_v14 }
 0x248   :  { %v11181_v24 = vpop.eup %11180  ;;  %11198 = vrcp.f32 %v1121_v60  ;;  %v8739_v26 = vmul.f32 -1.442695, %v12621_v16  ;;  %3465 = vmatprep.subr.bf16.mxu0 %v13727_v36  ;;  %10067 = vmatprep.subr.bf16.mxu1 %v13727_v36  ;;  %v1308_v32 = vmul.f32 %v11179_v19, %v12562_v0 }
 0x249   :  { %v11183_v27 = vpop.eup %11182  ;;  %11200 = vrcp.f32 %v1119_v20  ;;  %v8737_v29 = vmul.f32 -1.442695, %v12625_v23  ;;  %v1306_v37 = vmul.f32 %v11181_v24, %v12565_v2 }
 0x24a   :  { %v11185_v31 = vpop.eup %11184  ;;  %v1309_v33 = vmul.f32 %v11183_v27, %v12569_v5  ;;  %11202 = vpow2.f32 %v8738_v15 }
 0x24b   :  { %v11187_v35 = vpop.eup %11186  ;;  %v1307_v39 = vmul.f32 %v11185_v31, %v12573_v8  ;;  %11204 = vpow2.f32 %v8736_v22  ;;  %v9604_v40 = vpop.f32.mrb[20].mxu0  ;;  %3466 = vmatpush1.bf16.msra.mxu0 %v1992_v11  ;;  %10083 = vmatpush1.bf16.msra.mxu1 %v1992_v11 }
 0x24c   :  { %v11189_v41 = vpop.eup %11188  ;;  %v1124_v43 = vadd.f32 1.0, %v11187_v35  ;;  %11206 = vpow2.f32 %v8739_v26  ;;  %v12642_v0 = vadd.f32 %v9604_v40, %v12543_v50  ;;  %v743_v5 = vpop.f32.mrb[21].mxu0  ;;  %3467 = vmatprep.subr.bf16.mxu0 %v13727_v36  ;;  %10068 = vmatprep.subr.bf16.mxu1 %v13727_v36  ;;  %v1994_v44 = vpack.c.bf16 %v1309_v33, %v1308_v32 }
 0x24d   :  { %v11191_v45 = vpop.eup %11190  ;;  %v1122_v2 = vadd.f32 1.0, %v11189_v41  ;;  %11208 = vpow2.f32 %v8737_v29  ;;  %v12647_v8 = vadd.f32 %v12543_v50, %v743_v5  ;;  %v9605_v47 = vpop.f32.mrb[22].mxu0  ;;  %v1993_v48 = vpack.c.bf16 %v1307_v39, %v1306_v37 }
 0x24e   :  { %v11193_v49 = vpop.eup %11192  ;;  %11210 = vrcp.f32 %v1124_v43  ;;  %v1125_v53 = vadd.f32 1.0, %v11191_v45  ;;  %v8742_v55 = vmul.f32 -1.442695, %v12642_v0  ;;  %v12652_v56 = vadd.f32 %v9605_v47, %v12543_v50  ;;  %v746_v58 = vpop.f32.mrb[23].mxu0 }
 0x24f   :  { %11212 = vrcp.f32 %v1122_v2  ;;  %v1123_v59 = vadd.f32 1.0, %v11193_v49  ;;  %v8740_v61 = vmul.f32 -1.442695, %v12647_v8  ;;  %v12657_v62 = vadd.f32 %v12543_v50, %v746_v58  ;;  %3468 = vmatpush1.bf16.msra.mxu0 %v1993_v48  ;;  %10084 = vmatpush1.bf16.msra.mxu1 %v1993_v48 }
 0x250   :  { %v11195_v63 = vpop.eup %11194  ;;  %11214 = vrcp.f32 %v1125_v53  ;;  %v8743_v1 = vmul.f32 -1.442695, %v12652_v56  ;;  %3469 = vmatprep.subr.bf16.mxu0 %v13727_v36  ;;  %10069 = vmatprep.subr.bf16.mxu1 %v13727_v36 }
 0x251   :  { %v11197_v3 = vpop.eup %11196  ;;  %11216 = vrcp.f32 %v1123_v59  ;;  %v8741_v4 = vmul.f32 -1.442695, %v12657_v62  ;;  %v1312_v10 = vmul.f32 %v11195_v63, %v12578_v17 }
 0x252   :  { %v11199_v6 = vpop.eup %11198  ;;  %11218 = vpow2.f32 %v8742_v55  ;;  %v1310_v13 = vmul.f32 %v11197_v3, %v12581_v21 }
 0x253   :  { %v11201_v7 = vpop.eup %11200  ;;  %v1313_v11 = vmul.f32 %v11199_v6, %v12585_v25  ;;  %11220 = vpow2.f32 %v8740_v61  ;;  %v9608_v12 = vpop.f32.mrb[24].mxu0  ;;  %3470 = vmatpush1.bf16.msra.mxu0 %v1994_v44  ;;  %10085 = vmatpush1.bf16.msra.mxu1 %v1994_v44 }
 0x254   :  { %v11203_v52 = vpop.eup %11202  ;;  %v1311_v14 = vmul.f32 %v11201_v7, %v12589_v28  ;;  %11222 = vpow2.f32 %v8743_v1  ;;  %v12668_v54 = vadd.f32 %v9608_v12, %v12543_v50  ;;  %v759_v60 = vpop.f32.mrb[25].mxu0  ;;  %3471 = vmatprep.subr.bf16.mxu0 %v13727_v36  ;;  %10070 = vmatprep.subr.bf16.mxu1 %v13727_v36 }
 0x255   :  { %v11205_v17 = vpop.eup %11204  ;;  %v1128_v25 = vadd.f32 1.0, %v11203_v52  ;;  %11224 = vpow2.f32 %v8741_v4  ;;  %v12673_v15 = vadd.f32 %v12543_v50, %v759_v60  ;;  %v9609_v18 = vpop.f32.mrb[26].mxu0  ;;  %v1996_v19 = vpack.c.bf16 %v1313_v11, %v1312_v10 }
 0x256   :  { %v11207_v21 = vpop.eup %11206  ;;  %v1126_v20 = vadd.f32 1.0, %v11205_v17  ;;  %v12676_v28 = vadd.f32 %v9609_v18, %v12543_v50  ;;  %v762_v22 = vpop.f32.mrb[27].mxu0  ;;  %v1995_v24 = vpack.c.bf16 %v1311_v14, %v1310_v13  ;;  %v8746_v29 = vmul.f32 -1.442695, %v12668_v54 }
 0x257   :  { %v11209_v26 = vpop.eup %11208  ;;  %11226 = vrcp.f32 %v1128_v25  ;;  %v1129_v27 = vadd.f32 1.0, %v11207_v21  ;;  %v12680_v30 = vadd.f32 %v12543_v50, %v762_v22  ;;  %v8744_v33 = vmul.f32 -1.442695, %v12673_v15 }
 0x258   :  { %v11211_v31 = vpop.eup %11210  ;;  %11228 = vrcp.f32 %v1126_v20  ;;  %v1127_v32 = vadd.f32 1.0, %v11209_v26  ;;  %3472 = vmatpush1.bf16.msra.mxu0 %v1995_v24  ;;  %10086 = vmatpush1.bf16.msra.mxu1 %v1995_v24  ;;  %v8747_v35 = vmul.f32 -1.442695, %v12676_v28 }
 0x259   :  { %v11213_v34 = vpop.eup %11212  ;;  %11230 = vrcp.f32 %v1129_v27  ;;  %3473 = vmatprep.subr.bf16.mxu0 %v13727_v36  ;;  %10071 = vmatprep.subr.bf16.mxu1 %v13727_v36  ;;  %v8745_v39 = vmul.f32 -1.442695, %v12680_v30  ;;  %v1316_v41 = vmul.f32 %v11211_v31, %v12594_v38 }
 0x25a   :  { %v11215_v37 = vpop.eup %11214  ;;  %11232 = vrcp.f32 %v1127_v32  ;;  %v1314_v55 = vmul.f32 %v11213_v34, %v12597_v42 }
 0x25b   :  { %v11217_v40 = vpop.eup %11216  ;;  %v1317_v43 = vmul.f32 %v11215_v37, %v12601_v46  ;;  %11234 = vpow2.f32 %v8746_v29  ;;  %v9612_v5 = vpop.f32.mrb[28].mxu0 }
 0x25c   :  { %v11219_v44 = vpop.eup %11218  ;;  %v1315_v45 = vmul.f32 %v11217_v40, %v12605_v51  ;;  %11236 = vpow2.f32 %v8744_v33  ;;  %v12691_v2 = vadd.f32 %v9612_v5, %v12543_v50  ;;  %3474 = vmatpush1.bf16.msra.mxu0 %v1996_v19  ;;  %10087 = vmatpush1.bf16.msra.mxu1 %v1996_v19  ;;  %v775_v47 = vpop.f32.mrb[29].mxu0 }
 0x25d   :  { %v11221_v48 = vpop.eup %11220  ;;  %v1132_v49 = vadd.f32 1.0, %v11219_v44  ;;  %11238 = vpow2.f32 %v8747_v35  ;;  %v12694_v53 = vadd.f32 %v12543_v50, %v775_v47  ;;  %v9613_v38 = vpop.f32.mrb[30].mxu0  ;;  %3475 = vmatprep.subr.bf16.mxu0 %v13727_v36  ;;  %10072 = vmatprep.subr.bf16.mxu1 %v13727_v36  ;;  %v1998_v46 = vpack.c.bf16 %v1317_v43, %v1316_v41 }
 0x25e   :  { %v11223_v51 = vpop.eup %11222  ;;  %v1130_v58 = vadd.f32 1.0, %v11221_v48  ;;  %11240 = vpow2.f32 %v8745_v39  ;;  %v12700_v59 = vadd.f32 %v9613_v38, %v12543_v50  ;;  %v778_v61 = vpop.f32.mrb[31].mxu0  ;;  %v8750_v3 = vmul.f32 -1.442695, %v12691_v2 }
 0x25f   :  { %v11225_v63 = vpop.eup %11224  ;;  %11242 = vrcp.f32 %v1132_v49  ;;  %v1133_v1 = vadd.f32 1.0, %v11223_v51  ;;  %v12704_v4 = vadd.f32 %v12543_v50, %v778_v61  ;;  %v8748_v7 = vmul.f32 -1.442695, %v12694_v53 }
 0x260   :  { %11244 = vrcp.f32 %v1130_v58  ;;  %v1131_v6 = vadd.f32 1.0, %v11225_v63  ;;  %v1997_v10 = vpack.c.bf16 %v1315_v45, %v1314_v55  ;;  %v8751_v11 = vmul.f32 -1.442695, %v12700_v59 }
 0x261   :  { %v11227_v42 = vpop.eup %11226  ;;  %11246 = vrcp.f32 %v1133_v1  ;;  %v8749_v52 = vmul.f32 -1.442695, %v12704_v4 }
 0x262   :  { %v11229_v12 = vpop.eup %11228  ;;  %11248 = vrcp.f32 %v1131_v6  ;;  %3476 = vmatpush1.bf16.msra.mxu0 %v1997_v10  ;;  %10088 = vmatpush1.bf16.msra.mxu1 %v1997_v10  ;;  %v1320_v17 = vmul.f32 %v11227_v42, %v12614_v9 }
 0x263   :  { %v11231_v13 = vpop.eup %11230  ;;  %11250 = vpow2.f32 %v8750_v3  ;;  %3477 = vmatprep.subr.bf16.mxu0 %v13727_v36  ;;  %10073 = vmatprep.subr.bf16.mxu1 %v13727_v36  ;;  %v9616_v14 = vpop.f32.mrb[32].mxu0  ;;  %v1318_v20 = vmul.f32 %v11229_v12, %v12617_v57 }
 0x264   :  { %v11233_v60 = vpop.eup %11232  ;;  %v1321_v25 = vmul.f32 %v11231_v13, %v12621_v16  ;;  %11252 = vpow2.f32 %v8748_v7  ;;  %v12714_v18 = vadd.f32 %v9616_v14, %v12543_v50  ;;  %v791_v19 = vpop.f32.mrb[33].mxu0 }
 0x265   :  { %v11235_v21 = vpop.eup %11234  ;;  %v1319_v22 = vmul.f32 %v11233_v60, %v12625_v23  ;;  %11254 = vpow2.f32 %v8751_v11  ;;  %v12719_v24 = vadd.f32 %v12543_v50, %v791_v19  ;;  %v9617_v26 = vpop.f32.mrb[34].mxu0 }
 0x266   :  { %v11237_v27 = vpop.eup %11236  ;;  %v2000_v29 = vpack.c.bf16 %v1321_v25, %v1320_v17  ;;  %v1136_v9 = vadd.f32 1.0, %v11235_v21  ;;  %11256 = vpow2.f32 %v8749_v52  ;;  %3478 = vmatpush1.bf16.msra.mxu0 %v1998_v46  ;;  %10089 = vmatpush1.bf16.msra.mxu1 %v1998_v46  ;;  %v794_v16 = vpop.f32.mrb[35].mxu0  ;;  %v12722_v34 = vadd.f32 %v9617_v26, %v12543_v50 }
 0x267   :  { %v11239_v31 = vpop.eup %11238  ;;  %v1999_v32 = vpack.c.bf16 %v1319_v22, %v1318_v20  ;;  %v1134_v33 = vadd.f32 1.0, %v11237_v27  ;;  %3479 = vmatprep.subr.bf16.mxu0 %v13727_v36  ;;  %10074 = vmatprep.subr.bf16.mxu1 %v13727_v36  ;;  %v8754_v35 = vmul.f32 -1.442695, %v12714_v18  ;;  %v12728_v37 = vadd.f32 %v12543_v50, %v794_v16 }
 0x268   :  { %v11241_v57 = vpop.eup %11240  ;;  %11258 = vrcp.f32 %v1136_v9  ;;  %v1137_v23 = vadd.f32 1.0, %v11239_v31  ;;  %v8752_v41 = vmul.f32 -1.442695, %v12719_v24  ;;  %v8755_v5 = vmul.f32 -1.442695, %v12722_v34 }
 0x269   :  { %v11243_v39 = vpop.eup %11242  ;;  %11260 = vrcp.f32 %v1134_v33  ;;  %v1135_v40 = vadd.f32 1.0, %v11241_v57  ;;  %v8753_v45 = vmul.f32 -1.442695, %v12728_v37 }
 0x26a   :  { %v11245_v43 = vpop.eup %11244  ;;  %11262 = vrcp.f32 %v1137_v23  ;;  %3480 = vmatpush1.bf16.msra.mxu0 %v1999_v32  ;;  %10090 = vmatpush1.bf16.msra.mxu1 %v1999_v32  ;;  %v1324_v49 = vmul.f32 %v11243_v39, %v12642_v0 }
 0x26b   :  { %v11247_v44 = vpop.eup %11246  ;;  %11264 = vrcp.f32 %v1135_v40  ;;  %3481 = vmatprep.subr.bf16.mxu0 %v13727_v36  ;;  %10075 = vmatprep.subr.bf16.mxu1 %v13727_v36  ;;  %v9620_v47 = vpop.f32.mrb[36].mxu0  ;;  %v1322_v58 = vmul.f32 %v11245_v43, %v12647_v8 }
 0x26c   :  { %v11249_v48 = vpop.eup %11248  ;;  %v1325_v38 = vmul.f32 %v11247_v44, %v12652_v56  ;;  %11266 = vpow2.f32 %v8754_v35  ;;  %v12738_v46 = vadd.f32 %v9620_v47, %v12543_v50  ;;  %v807_v51 = vpop.f32.mrb[37].mxu0 }
 0x26d   :  { %v11251_v55 = vpop.eup %11250  ;;  %v1323_v61 = vmul.f32 %v11249_v48, %v12657_v62  ;;  %11268 = vpow2.f32 %v8752_v41  ;;  %v12743_v63 = vadd.f32 %v12543_v50, %v807_v51  ;;  %v9621_v1 = vpop.f32.mrb[38].mxu0 }
 0x26e   :  { %v11253_v3 = vpop.eup %11252  ;;  %v2002_v6 = vpack.c.bf16 %v1325_v38, %v1324_v49  ;;  %v1140_v0 = vadd.f32 1.0, %v11251_v55  ;;  %11270 = vpow2.f32 %v8755_v5  ;;  %3482 = vmatpush1.bf16.msra.mxu0 %v2000_v29  ;;  %10091 = vmatpush1.bf16.msra.mxu1 %v2000_v29  ;;  %v810_v56 = vpop.f32.mrb[39].mxu0  ;;  %v8758_v8 = vmul.f32 -1.442695, %v12738_v46 }
 0x26f   :  { %v11255_v7 = vpop.eup %11254  ;;  %v2001_v10 = vpack.c.bf16 %v1323_v61, %v1322_v58  ;;  %v1138_v42 = vadd.f32 1.0, %v11253_v3  ;;  %11272 = vpow2.f32 %v8753_v45  ;;  %3483 = vmatprep.subr.bf16.mxu0 %v13727_v36  ;;  %10076 = vmatprep.subr.bf16.mxu1 %v13727_v36  ;;  %v12749_v12 = vadd.f32 %v9621_v1, %v12543_v50 }
 0x270   :  { %v11257_v62 = vpop.eup %11256  ;;  %11274 = vrcp.f32 %v1140_v0  ;;  %v1141_v11 = vadd.f32 1.0, %v11255_v7  ;;  %v12752_v52 = vadd.f32 %v12543_v50, %v810_v56  ;;  %v8756_v14 = vmul.f32 -1.442695, %v12743_v63 }
 0x271   :  { %11276 = vrcp.f32 %v1138_v42  ;;  %v1139_v13 = vadd.f32 1.0, %v11257_v62  ;;  %v8759_v17 = vmul.f32 -1.442695, %v12749_v12 }
 0x272   :  { %v11259_v60 = vpop.eup %11258  ;;  %11278 = vrcp.f32 %v1141_v11  ;;  %3484 = vmatpush1.bf16.msra.mxu0 %v2001_v10  ;;  %10092 = vmatpush1.bf16.msra.mxu1 %v2001_v10  ;;  %v8757_v19 = vmul.f32 -1.442695, %v12752_v52  ;;  %v9658_v10 = vpop.f32.mrb[0].mxu1 }
 0x273   :  { %v11261_v25 = vpop.eup %11260  ;;  %11280 = vrcp.f32 %v1139_v13  ;;  %3485 = vmatprep.subr.bf16.mxu0 %v13727_v36  ;;  %10077 = vmatprep.subr.bf16.mxu1 %v13727_v36  ;;  %v9624_v21 = vpop.f32.mrb[40].mxu0  ;;  %v1328_v22 = vmul.f32 %v11259_v60, %v12668_v54 }
 0x274   :  { %v11263_v20 = vpop.eup %11262  ;;  %11282 = vpow2.f32 %v8758_v8  ;;  %v12761_v26 = vadd.f32 %v9624_v21, %v12543_v50  ;;  %v823_v27 = vpop.f32.mrb[41].mxu0  ;;  %v1326_v9 = vmul.f32 %v11261_v25, %v12673_v15 }
 0x275   :  { %v11265_v29 = vpop.eup %11264  ;;  %v1329_v16 = vmul.f32 %v11263_v20, %v12676_v28  ;;  %11284 = vpow2.f32 %v8756_v14  ;;  %v12766_v31 = vadd.f32 %v12543_v50, %v823_v27  ;;  %v9625_v32 = vpop.f32.mrb[42].mxu0 }
 0x276   :  { %v11267_v33 = vpop.eup %11266  ;;  %v1327_v57 = vmul.f32 %v11265_v29, %v12680_v30  ;;  %3486 = vmatpush1.bf16.msra.mxu0 %v2002_v6  ;;  %10093 = vmatpush1.bf16.msra.mxu1 %v2002_v6  ;;  %11286 = vpow2.f32 %v8759_v17  ;;  %v8762_v54 = vmul.f32 -1.442695, %v12761_v26  ;;  %v12771_v23 = vadd.f32 %v9625_v32, %v12543_v50  ;;  %v826_v35 = vpop.f32.mrb[43].mxu0 }
 0x277   :  { %v11269_v15 = vpop.eup %11268  ;;  %v2004_v39 = vpack.c.bf16 %v1329_v16, %v1328_v22  ;;  %v1144_v28 = vadd.f32 1.0, %v11267_v33  ;;  %3487 = vmatprep.subr.bf16.mxu0 %v13727_v36  ;;  %10078 = vmatprep.subr.bf16.mxu1 %v13727_v36  ;;  %11288 = vpow2.f32 %v8757_v19  ;;  %v8760_v44 = vmul.f32 -1.442695, %v12766_v31 }
 0x278   :  { %v11271_v40 = vpop.eup %11270  ;;  %v2003_v41 = vpack.c.bf16 %v1327_v57, %v1326_v9  ;;  %v1142_v30 = vadd.f32 1.0, %v11269_v15  ;;  %11290 = vpow2.f32 %v8762_v54  ;;  %v12777_v45 = vadd.f32 %v12543_v50, %v826_v35 }
 0x279   :  { %v11273_v43 = vpop.eup %11272  ;;  %11292 = vrcp.f32 %v1144_v28  ;;  %v1145_v5 = vadd.f32 1.0, %v11271_v40  ;;  %v8763_v49 = vmul.f32 -1.442695, %v12771_v23 }
 0x27a   :  { %v11275_v47 = vpop.eup %11274  ;;  %11294 = vrcp.f32 %v1142_v30  ;;  %v1143_v48 = vadd.f32 1.0, %v11273_v43  ;;  %3488 = vmatpush1.bf16.msra.mxu0 %v2003_v41  ;;  %10094 = vmatpush1.bf16.msra.mxu1 %v2003_v41  ;;  %v8761_v51 = vmul.f32 -1.442695, %v12777_v45  ;;  %v10621_v41 = vld [vmem:[#allocation11 + $0x2c0] ss:$16 sps:$4 sm:$0xff]  }
 0x27b   :  { %v11277_v38 = vpop.eup %11276  ;;  %11296 = vrcp.f32 %v1145_v5  ;;  %3489 = vmatprep.subr.bf16.mxu0 %v13727_v36  ;;  %10079 = vmatprep.subr.bf16.mxu1 %v13727_v36  ;;  %v9628_v55 = vpop.f32.mrb[44].mxu0  ;;  %v1332_v6 = vmul.f32 %v11275_v47, %v12691_v2  ;;  %v12794_v2 = vld [vmem:[#allocation9] ss:$0 sm:$0xff] }
 0x27c   :  { %v11279_v58 = vpop.eup %11278  ;;  %11298 = vrcp.f32 %v1143_v48  ;;  %v12784_v61 = vadd.f32 %v9628_v55, %v12543_v50  ;;  %v839_v1 = vpop.f32.mrb[45].mxu0  ;;  %v1330_v0 = vmul.f32 %v11277_v38, %v12694_v53  ;;  %v12805_v27 = vadd.f32 %v9658_v10, %v12794_v2 }
 0x27d   :  { %v11281_v3 = vpop.eup %11280  ;;  %v1333_v56 = vmul.f32 %v11279_v58, %v12700_v59  ;;  %11300 = vpow2.f32 %v8760_v44  ;;  %v9629_v7 = vpop.f32.mrb[46].mxu0  ;;  %v12792_v11 = vadd.f32 %v12543_v50, %v839_v1  ;;  %v10624_v44 = vld [vmem:[#allocation11 + $0x2e4] ss:$16 sps:$4 sm:$0xff]  }
 0x27e   :  { %v11283_v42 = vpop.eup %11282  ;;  %v1331_v8 = vmul.f32 %v11281_v3, %v12704_v4  ;;  %3490 = vmatpush1.bf16.msra.mxu0 %v2004_v39  ;;  %10095 = vmatpush1.bf16.msra.mxu1 %v2004_v39  ;;  %11302 = vpow2.f32 %v8763_v49  ;;  %v8766_v62 = vmul.f32 -1.442695, %v12784_v61  ;;  %v842_v13 = vpop.f32.mrb[47].mxu0  ;;  %v12799_v4 = vadd.f32 %v9629_v7, %v12543_v50 }
 0x27f   :  { %v1528_v53 = vpop.f32.mrb[1].mxu1  ;;  %v11285_v14 = vpop.eup %11284  ;;  %v2006_v59 = vpack.c.bf16 %v1333_v56, %v1332_v6  ;;  %v1148_v60 = vadd.f32 1.0, %v11283_v42  ;;  %3491 = vmatprep.subr.bf16.mxu0 %v13727_v36  ;;  %10080 = vmatprep.subr.bf16.mxu1 %v13727_v36  ;;  %11304 = vpow2.f32 %v8761_v51  ;;  %v12802_v22 = vadd.f32 %v12543_v50, %v842_v13 }
 0x280   :  { %v11287_v17 = vpop.eup %11286  ;;  %v2005_v25 = vpack.c.bf16 %v1331_v8, %v1330_v0  ;;  %v1146_v19 = vadd.f32 1.0, %v11285_v14  ;;  %11306 = vpow2.f32 %v8766_v62  ;;  %v9659_v29 = vpop.f32.mrb[2].mxu1  ;;  %v8764_v32 = vmul.f32 -1.442695, %v12792_v11 }
 0x281   :  { %v11289_v21 = vpop.eup %11288  ;;  %11308 = vrcp.f32 %v1148_v60  ;;  %v1149_v20 = vadd.f32 1.0, %v11287_v17  ;;  %v1531_v33 = vpop.f32.mrb[3].mxu1  ;;  %v8767_v54 = vmul.f32 -1.442695, %v12799_v4  ;;  %v8765_v39 = vmul.f32 -1.442695, %v12802_v22 }
 0x282   :  { %v11291_v9 = vpop.eup %11290  ;;  %11310 = vrcp.f32 %v1146_v19  ;;  %v1147_v16 = vadd.f32 1.0, %v11289_v21  ;;  %3492 = vmatpush1.bf16.msra.mxu0 %v2005_v25  ;;  %10096 = vmatpush1.bf16.msra.mxu1 %v2005_v25  ;;  %v8808_v30 = vmul.f32 -1.442695, %v12805_v27  ;;  %v12817_v47 = vadd.f32 %v12794_v2, %v1528_v53  ;;  %v10626_v53 = vld [vmem:[#allocation11 + $0x2e0] ss:$16 sps:$4 sm:$0xff]  }
 0x283   :  { %v11293_v57 = vpop.eup %11292  ;;  %11312 = vrcp.f32 %v1149_v20  ;;  %3493 = vmatprep.subr.bf16.mxu0 %v13727_v36  ;;  %10081 = vmatprep.subr.bf16.mxu1 %v13727_v36  ;;  %v1152_v50 = vadd.f32 1.0, %v11291_v9  ;;  %v10627_v60 = vld [vmem:[#allocation11 + $0x304] ss:$16 sps:$4 sm:$0xff]  }
 0x284   :  { %v11295_v35 = vpop.eup %11294  ;;  %v1336_v15 = vmul.f32 %v11293_v57, %v12714_v18  ;;  %11314 = vrcp.f32 %v1147_v16  ;;  %v8806_v6 = vmul.f32 -1.442695, %v12817_v47 }
 0x285   :  { %v11297_v28 = vpop.eup %11296  ;;  %v1334_v40 = vmul.f32 %v11295_v35, %v12719_v24  ;;  %11316 = vrcp.f32 %v1152_v50  ;;  %v12822_v24 = vadd.f32 %v9659_v29, %v12794_v2  ;;  %v10629_v50 = vld [vmem:[#allocation11 + $0x300] ss:$16 sps:$4 sm:$0xff]  }
 0x286   :  { %v11299_v43 = vpop.eup %11298  ;;  %v1337_v5 = vmul.f32 %v11297_v28, %v12722_v34  ;;  %3494 = vmatpush1.bf16.msra.mxu0 %v2006_v59  ;;  %10097 = vmatpush1.bf16.msra.mxu1 %v2006_v59  ;;  %11318 = vpow2.f32 %v8764_v32  ;;  %v12825_v34 = vadd.f32 %v12794_v2, %v1531_v33 }
 0x287   :  { %v11301_v18 = vpop.eup %11300  ;;  %v1335_v48 = vmul.f32 %v11299_v43, %v12728_v37  ;;  %4072 = vmatprep.subr.bf16.mxu1 %v13727_v36  ;;  %11320 = vpow2.f32 %v8767_v54  ;;  %v8809_v7 = vmul.f32 -1.442695, %v12822_v24 }
 0x288   :  { %v11303_v49 = vpop.eup %11302  ;;  %v2008_v38 = vpack.c.bf16 %v1337_v5, %v1336_v15  ;;  %v1150_v51 = vadd.f32 1.0, %v11301_v18  ;;  %11322 = vpow2.f32 %v8765_v39  ;;  %v8807_v8 = vmul.f32 -1.442695, %v12825_v34  ;;  %v10632_v15 = vld [vmem:[#allocation11 + $0x324] ss:$16 sps:$4 sm:$0xff]  }
 0x289   :  { %v11305_v55 = vpop.eup %11304  ;;  %v2007_v58 = vpack.c.bf16 %v1335_v48, %v1334_v40  ;;  %3672 = vmatmul.mubr.bf16.vlgmr.msra.gmra.mrb[16].mxu1 %v10621_v41  ;;  %v1153_v1 = vadd.f32 1.0, %v11303_v49  ;;  %11324 = vpow2.f32 %v8808_v30 }
 0x28a   :  { %v11307_v3 = vpop.eup %11306  ;;  %3679 = vmatprep.mubr.bf16.mxu1 %v10624_v44  ;;  %11326 = vrcp.f32 %v1150_v51  ;;  %v1151_v37 = vadd.f32 1.0, %v11305_v55 }
 0x28b   :  { %v11309_v0 = vpop.eup %11308  ;;  %4073 = vmatpush1.bf16.msra.mxu1 %v2007_v58  ;;  %11328 = vrcp.f32 %v1153_v1  ;;  %v1156_v56 = vadd.f32 1.0, %v11307_v3 }
 0x28c   :  { %v11311_v10 = vpop.eup %11310  ;;  %v1340_v42 = vmul.f32 %v11309_v0, %v12738_v46  ;;  %4074 = vmatprep.subr.bf16.mxu1 %v13727_v36  ;;  %11330 = vrcp.f32 %v1151_v37  ;;  %v10637_v0 = vld [vmem:[#allocation11 + $0x340] ss:$16 sps:$4 sm:$0xff]  }
 0x28d   :  { %v11313_v62 = vpop.eup %11312  ;;  %v1338_v13 = vmul.f32 %v11311_v10, %v12743_v63  ;;  %11332 = vrcp.f32 %v1156_v56  ;;  %v9662_v10 = vpop.f32.mrb[4].mxu1 }
 0x28e   :  { %v11315_v14 = vpop.eup %11314  ;;  %v1341_v59 = vmul.f32 %v11313_v62, %v12749_v12  ;;  %11334 = vpow2.f32 %v8806_v6  ;;  %v1544_v62 = vpop.f32.mrb[5].mxu1 }
 0x28f   :  { %v11317_v17 = vpop.eup %11316  ;;  %v1339_v25 = vmul.f32 %v11315_v14, %v12752_v52  ;;  %4075 = vmatpush1.bf16.msra.mxu1 %v2008_v38  ;;  %11336 = vpow2.f32 %v8809_v7  ;;  %v10635_v38 = vld [vmem:[#allocation11 + $0x344] ss:$16 sps:$4 sm:$0xff]  }
 0x290   :  { %v11319_v46 = vpop.eup %11318  ;;  %v2010_v19 = vpack.c.bf16 %v1341_v59, %v1340_v42  ;;  %4076 = vmatprep.subr.bf16.mxu1 %v13727_v36  ;;  %11338 = vpow2.f32 %v8807_v8  ;;  %v1344_v52 = vmul.f32 %v11317_v17, %v12761_v26  ;;  %v10638_v7 = vld [vmem:[#allocation11 + $0x364] ss:$16 sps:$4 sm:$0xff]   ;;  %v12853_v8 = vadd.f32 %v9662_v10, %v12794_v2 }
 0x291   :  { %v11321_v21 = vpop.eup %11320  ;;  %v2009_v20 = vpack.c.bf16 %v1339_v25, %v1338_v13  ;;  %3680 = vmatmul.mubr.bf16.gmra.mrb[20].mxu1 %v10626_v53  ;;  %v1154_v63 = vadd.f32 1.0, %v11319_v46  ;;  %v12857_v53 = vadd.f32 %v12794_v2, %v1544_v62  ;;  %v12872_v46 = vld [vmem:[#allocation8] ss:$0 sm:$0xff] }
 0x292   :  { %v11323_v29 = vpop.eup %11322  ;;  %3687 = vmatprep.mubr.bf16.mxu1 %v10627_v60  ;;  %v1157_v9 = vadd.f32 1.0, %v11321_v21  ;;  %v8812_v14 = vmul.f32 -1.442695, %v12853_v8  ;;  %v9632_v60 = vpop.f32.mrb[48].mxu0 }
 0x293   :  { %v11325_v12 = vpop.eup %11324  ;;  %4077 = vmatpush1.bf16.msra.mxu1 %v2009_v20  ;;  %11340 = vrcp.f32 %v1154_v63  ;;  %v1155_v16 = vadd.f32 1.0, %v11323_v29  ;;  %v855_v21 = vpop.f32.mrb[49].mxu0 }
 0x294   :  { %v11327_v32 = vpop.eup %11326  ;;  %4078 = vmatprep.subr.bf16.mxu1 %v13727_v36  ;;  %11342 = vrcp.f32 %v1157_v9  ;;  %v1641_v33 = vadd.f32 1.0, %v11325_v12  ;;  %v12879_v63 = vadd.f32 %v12872_v46, %v855_v21  ;;  %v9633_v29 = vpop.f32.mrb[50].mxu0  ;;  %v10640_v12 = vld [vmem:[#allocation11 + $0x360] ss:$16 sps:$4 sm:$0xff]  }
 0x295   :  { %v11329_v57 = vpop.eup %11328  ;;  %v1342_v54 = vmul.f32 %v11327_v32, %v12766_v31  ;;  %11344 = vrcp.f32 %v1155_v16  ;;  %v12884_v32 = vadd.f32 %v12872_v46, %v9633_v29 }
 0x296   :  { %v11331_v35 = vpop.eup %11330  ;;  %v1345_v39 = vmul.f32 %v11329_v57, %v12771_v23  ;;  %11346 = vrcp.f32 %v1641_v33  ;;  %v10641_v33 = vld [vmem:[#allocation11 + $0x384] ss:$16 sps:$4 sm:$0xff]   ;;  %v8768_v57 = vmul.f32 -1.442695, %v12879_v63 }
 0x297   :  { %v11333_v28 = vpop.eup %11332  ;;  %4079 = vmatpush1.bf16.msra.mxu1 %v2010_v19  ;;  %v1343_v40 = vmul.f32 %v11331_v35, %v12777_v45  ;;  %v10634_v45 = vld [vmem:[#allocation11 + $0x320] ss:$16 sps:$4 sm:$0xff]   ;;  %v12875_v19 = vadd.f32 %v12872_v46, %v9632_v60 }
 0x298   :  { %v11335_v41 = vpop.eup %11334  ;;  %v2012_v30 = vpack.c.bf16 %v1345_v39, %v1344_v52  ;;  %4080 = vmatprep.subr.bf16.mxu1 %v13727_v36  ;;  %v1348_v48 = vmul.f32 %v11333_v28, %v12784_v61  ;;  %v858_v52 = vpop.f32.mrb[51].mxu0 }
 0x299   :  { %v11337_v26 = vpop.eup %11336  ;;  %3688 = vmatmul.mubr.bf16.gmra.mrb[24].mxu1 %v10629_v50  ;;  %v2011_v43 = vpack.c.bf16 %v1343_v40, %v1342_v54  ;;  %v1639_v5 = vadd.f32 1.0, %v11335_v41  ;;  %v8770_v16 = vmul.f32 -1.442695, %v12875_v19  ;;  %v12888_v50 = vadd.f32 %v12872_v46, %v858_v52 }
 0x29a   :  { %v11339_v44 = vpop.eup %11338  ;;  %3695 = vmatprep.mubr.bf16.mxu1 %v10632_v15  ;;  %v1642_v31 = vadd.f32 1.0, %v11337_v26  ;;  %v8771_v54 = vmul.f32 -1.442695, %v12884_v32 }
 0x29b   :  { %4081 = vmatpush1.bf16.msra.mxu1 %v2011_v43  ;;  %11348 = vrcp.f32 %v1639_v5  ;;  %v1640_v18 = vadd.f32 1.0, %v11339_v44  ;;  %v8769_v15 = vmul.f32 -1.442695, %v12888_v50 }
 0x29c   :  { %4082 = vmatprep.subr.bf16.mxu1 %v13727_v36  ;;  %11350 = vrcp.f32 %v1642_v31 }
 0x29d   :  { %v11341_v23 = vpop.eup %11340  ;;  %11352 = vrcp.f32 %v1640_v18 }
 0x29e   :  { %v11343_v49 = vpop.eup %11342  ;;  %v1346_v51 = vmul.f32 %v11341_v23, %v12792_v11  ;;  %11354 = vpow2.f32 %v8812_v14  ;;  %v10643_v23 = vld [vmem:[#allocation11 + $0x380] ss:$16 sps:$4 sm:$0xff]  }
 0x29f   :  { %v11345_v55 = vpop.eup %11344  ;;  %4083 = vmatpush1.bf16.msra.mxu1 %v2012_v30  ;;  %v1349_v58 = vmul.f32 %v11343_v49, %v12799_v4  ;;  %v10644_v49 = vld [vmem:[#allocation11 + $0x3a4] ss:$16 sps:$4 sm:$0xff]  }
 0x2a0   :  { %v1347_v1 = vmul.f32 %v11345_v55, %v12802_v22  ;;  %4084 = vmatprep.subr.bf16.mxu1 %v13727_v36  ;;  %v11347_v37 = vpop.eup %11346 }
 0x2a1   :  { %3696 = vmatmul.mubr.bf16.gmra.mrb[28].mxu1 %v10634_v45  ;;  %v2014_v3 = vpack.c.bf16 %v1349_v58, %v1348_v48  ;;  %v1689_v56 = vmul.f32 %v11347_v37, %v12805_v27  ;;  %v9663_v27 = vpop.f32.mrb[6].mxu1 }
 0x2a2   :  { %3703 = vmatprep.mubr.bf16.mxu1 %v10635_v38  ;;  %v2013_v6 = vpack.c.bf16 %v1347_v1, %v1346_v51  ;;  %v1547_v59 = vpop.f32.mrb[7].mxu1 }
 0x2a3   :  { %v12868_v17 = vadd.f32 %v12794_v2, %v1547_v59  ;;  %v9666_v35 = vpop.f32.mrb[8].mxu1 }
 0x2a4   :  { %4085 = vmatpush1.bf16.msra.mxu1 %v2013_v6  ;;  %v12893_v39 = vadd.f32 %v9666_v35, %v12794_v2  ;;  %v1560_v28 = vpop.f32.mrb[9].mxu1 }
 0x2a5   :  { %v11349_v61 = vpop.eup %11348  ;;  %4086 = vmatprep.subr.bf16.mxu1 %v13727_v36  ;;  %v8811_v9 = vmul.f32 -1.442695, %v12868_v17  ;;  %v12896_v40 = vadd.f32 %v12794_v2, %v1560_v28  ;;  %v9667_v41 = vpop.f32.mrb[10].mxu1 }
 0x2a6   :  { %v11351_v11 = vpop.eup %11350  ;;  %v1687_v4 = vmul.f32 %v11349_v61, %v12817_v47  ;;  %v12861_v47 = vadd.f32 %v9663_v27, %v12794_v2  ;;  %v8816_v30 = vmul.f32 -1.442695, %v12893_v39  ;;  %v12900_v26 = vadd.f32 %v9667_v41, %v12794_v2  ;;  %v1563_v43 = vpop.f32.mrb[11].mxu1  ;;  %v10646_v27 = vld [vmem:[#allocation11 + $0x3a0] ss:$16 sps:$4 sm:$0xff]  }
 0x2a7   :  { %v11353_v22 = vpop.eup %11352  ;;  %v1690_v42 = vmul.f32 %v11351_v11, %v12822_v24  ;;  %v8814_v5 = vmul.f32 -1.442695, %v12896_v40  ;;  %v12904_v44 = vadd.f32 %v12794_v2, %v1563_v43  ;;  %v9670_v58 = vpop.f32.mrb[12].mxu1  ;;  %v10649_v43 = vld [vmem:[#allocation11 + $0x3c0] ss:$16 sps:$4 sm:$0xff]  }
 0x2a8   :  { %v1688_v13 = vmul.f32 %v11353_v22, %v12825_v34  ;;  %4087 = vmatpush1.bf16.msra.mxu1 %v2014_v3  ;;  %v8810_v34 = vmul.f32 -1.442695, %v12857_v53  ;;  %v8813_v20 = vmul.f32 -1.442695, %v12861_v47  ;;  %v8817_v31 = vmul.f32 -1.442695, %v12900_v26  ;;  %v11355_v18 = vpop.eup %11354 }
 0x2a9   :  { %3704 = vmatmul.mubr.bf16.gmra.mrb[32].mxu1 %v10637_v0  ;;  %4088 = vmatprep.subr.bf16.mxu1 %v13727_v36  ;;  %v12864_v24 = vpack.c.bf16 %v1690_v42, %v1689_v56  ;;  %v8815_v45 = vmul.f32 -1.442695, %v12904_v44  ;;  %v1645_v38 = vadd.f32 1.0, %v11355_v18  ;;  %v12909_v37 = vadd.f32 %v9670_v58, %v12794_v2  ;;  %v1576_v6 = vpop.f32.mrb[13].mxu1 }
 0x2aa   :  { %3711 = vmatprep.mubr.bf16.mxu1 %v10638_v7  ;;  %v12870_v25 = vpack.c.bf16 %v1688_v13, %v1687_v4  ;;  %11356 = vpow2.f32 %v8810_v34  ;;  %v9671_v56 = vpop.f32.mrb[14].mxu1  ;;  %v12913_v59 = vadd.f32 %v12794_v2, %v1576_v6  ;;  %v10647_v34 = vld [vmem:[#allocation11 + $0x3c4] ss:$16 sps:$4 sm:$0xff]  }
 0x2ab   :  { %13752 = vst [vmem:[#allocation40_spill] sm:$0xff] %v12864_v24  ;;  %11358 = vpow2.f32 %v8813_v20  ;;  %v1579_v4 = vpop.f32.mrb[15].mxu1  ;;  %v8820_v13 = vmul.f32 -1.442695, %v12909_v37  ;;  %v12916_v21 = vadd.f32 %v9671_v56, %v12794_v2  ;;  %v10927_v24 = vld [vmem:[#allocation11 + $0x388] ss:$16 sps:$4 sm:$0xff]  }
 0x2ac   :  { %13753 = vst [vmem:[#allocation41_spill] sm:$0xff] %v12870_v25  ;;  %11360 = vpow2.f32 %v8811_v9  ;;  %v12919_v9 = vadd.f32 %v12794_v2, %v1579_v4  ;;  %v10655_v4 = vld [vmem:[#allocation11 + $0x404] ss:$16 sps:$4 sm:$0xff]  }
 0x2ad   :  { %11362 = vpow2.f32 %v8770_v16 }
 0x2ae   :  { %11364 = vpow2.f32 %v8768_v57  ;;  %v8818_v57 = vmul.f32 -1.442695, %v12913_v59  ;;  %v8819_v2 = vmul.f32 -1.442695, %v12919_v9 }
 0x2af   :  { %11366 = vpow2.f32 %v8771_v54 }
 0x2b0   :  { %11368 = vpow2.f32 %v8769_v15  ;;  %v8821_v15 = vmul.f32 -1.442695, %v12916_v21 }
 0x2b1   :  { %3712 = vmatmul.mubr.bf16.gmra.mrb[36].mxu1 %v10640_v12  ;;  %11370 = vpow2.f32 %v8816_v30 }
 0x2b2   :  { %3719 = vmatprep.mubr.bf16.mxu1 %v10641_v33  ;;  %11372 = vpow2.f32 %v8814_v5 }
 0x2b3   :  { %11374 = vpow2.f32 %v8817_v31  ;;  %v10652_v31 = vld [vmem:[#allocation11 + $0x3e4] ss:$16 sps:$4 sm:$0xff]  }
 0x2b4   :  { %v11357_v48 = vpop.eup %11356  ;;  %11376 = vpow2.f32 %v8815_v45 }
 0x2b5   :  { %v11359_v51 = vpop.eup %11358  ;;  %v1643_v55 = vadd.f32 1.0, %v11357_v48  ;;  %11378 = vrcp.f32 %v1645_v38 }
 0x2b6   :  { %v11361_v1 = vpop.eup %11360  ;;  %v1646_v3 = vadd.f32 1.0, %v11359_v51 }
 0x2b7   :  { %v11363_v61 = vpop.eup %11362  ;;  %11380 = vrcp.f32 %v1643_v55  ;;  %v1644_v0 = vadd.f32 1.0, %v11361_v1 }
 0x2b8   :  { %v11365_v11 = vpop.eup %11364  ;;  %v1160_v7 = vadd.f32 1.0, %v11363_v61  ;;  %11382 = vrcp.f32 %v1646_v3 }
 0x2b9   :  { %3720 = vmatmul.mubr.bf16.gmra.mrb[40].mxu1 %v10643_v23  ;;  %v11367_v10 = vpop.eup %11366  ;;  %v1158_v22 = vadd.f32 1.0, %v11365_v11  ;;  %11384 = vrcp.f32 %v1644_v0 }
 0x2ba   :  { %3727 = vmatprep.mubr.bf16.mxu1 %v10644_v49  ;;  %v11369_v42 = vpop.eup %11368  ;;  %11386 = vrcp.f32 %v1160_v7  ;;  %v1161_v62 = vadd.f32 1.0, %v11367_v10  ;;  %v10654_v7 = vld [vmem:[#allocation11 + $0x3e0] ss:$16 sps:$4 sm:$0xff]  }
 0x2bb   :  { %11388 = vrcp.f32 %v1158_v22  ;;  %v1159_v14 = vadd.f32 1.0, %v11369_v42  ;;  %v11371_v60 = vpop.eup %11370 }
 0x2bc   :  { %11390 = vrcp.f32 %v1161_v62  ;;  %v11373_v20 = vpop.eup %11372  ;;  %v1649_v29 = vadd.f32 1.0, %v11371_v60  ;;  %v10657_v60 = vld [vmem:[#allocation11 + $0x400] ss:$16 sps:$4 sm:$0xff]  }
 0x2bd   :  { %11392 = vrcp.f32 %v1159_v14  ;;  %v11375_v12 = vpop.eup %11374  ;;  %v1647_v16 = vadd.f32 1.0, %v11373_v20 }
 0x2be   :  { %11394 = vpow2.f32 %v8820_v13  ;;  %v11377_v52 = vpop.eup %11376  ;;  %v1650_v33 = vadd.f32 1.0, %v11375_v12  ;;  %v10660_v12 = vld [vmem:[#allocation11 + $0x420] ss:$16 sps:$4 sm:$0xff]  }
 0x2bf   :  { %11396 = vrcp.f32 %v1649_v29  ;;  %v11379_v54 = vpop.eup %11378  ;;  %v1648_v35 = vadd.f32 1.0, %v11377_v52 }
 0x2c0   :  { %11398 = vrcp.f32 %v1647_v16  ;;  %v1693_v51 = vmul.f32 %v11379_v54, %v12853_v8 }
 0x2c1   :  { %3728 = vmatmul.mubr.bf16.gmra.mrb[44].mxu1 %v10646_v27  ;;  %v11381_v28 = vpop.eup %11380  ;;  %11400 = vrcp.f32 %v1650_v33  ;;  %v10661_v33 = vld [vmem:[#allocation11 + $0x444] ss:$16 sps:$4 sm:$0xff]  }
 0x2c2   :  { %3735 = vmatprep.mubr.bf16.mxu1 %v10647_v34  ;;  %v11383_v41 = vpop.eup %11382  ;;  %11402 = vrcp.f32 %v1648_v35  ;;  %v1691_v1 = vmul.f32 %v11381_v28, %v12857_v53  ;;  %v10658_v34 = vld [vmem:[#allocation11 + $0x424] ss:$16 sps:$4 sm:$0xff]   ;;  %v9636_v35 = vpop.f32.mrb[52].mxu0 }
 0x2c3   :  { %v11385_v30 = vpop.eup %11384  ;;  %11404 = vpow2.f32 %v8818_v57  ;;  %v1694_v3 = vmul.f32 %v11383_v41, %v12861_v47  ;;  %v871_v28 = vpop.f32.mrb[53].mxu0 }
 0x2c4   :  { %v11387_v5 = vpop.eup %11386  ;;  %11406 = vpow2.f32 %v8821_v15  ;;  %v880_v15 = vadd.f32 %v12872_v46, %v9636_v35  ;;  %v872_v41 = vadd.f32 %v12872_v46, %v871_v28 }
 0x2c5   :  { %v11389_v18 = vpop.eup %11388  ;;  %v1352_v23 = vmul.f32 %v11387_v5, %v12875_v19  ;;  %11408 = vpow2.f32 %v8819_v2  ;;  %v1692_v19 = vmul.f32 %v11385_v30, %v12868_v17  ;;  %v12934_v10 = vpack.c.bf16 %v1694_v3, %v1693_v51 }
 0x2c6   :  { %v11391_v45 = vpop.eup %11390  ;;  %v1350_v48 = vmul.f32 %v11389_v18, %v12879_v63  ;;  %v10663_v18 = vld [vmem:[#allocation11 + $0x440] ss:$16 sps:$4 sm:$0xff]  }
 0x2c7   :  { %v11393_v49 = vpop.eup %11392  ;;  %v1353_v38 = vmul.f32 %v11391_v45, %v12884_v32  ;;  %v12932_v8 = vpack.c.bf16 %v1692_v19, %v1691_v1  ;;  %13755 = vst [vmem:[#allocation43_spill] sm:$0xff] %v12934_v10  ;;  %v10664_v45 = vld [vmem:[#allocation11 + $0x464] ss:$16 sps:$4 sm:$0xff]  }
 0x2c8   :  { %v11395_v55 = vpop.eup %11394  ;;  %v1351_v58 = vmul.f32 %v11393_v49, %v12888_v50 }
 0x2c9   :  { %3736 = vmatmul.mubr.bf16.gmra.mrb[48].mxu1 %v10649_v43  ;;  %v11397_v6 = vpop.eup %11396  ;;  %v2016_v61 = vpack.c.bf16 %v1353_v38, %v1352_v23  ;;  %v1653_v0 = vadd.f32 1.0, %v11395_v55  ;;  %13754 = vst [vmem:[#allocation42_spill] sm:$0xff] %v12932_v8  ;;  %v10667_v38 = vld [vmem:[#allocation11 + $0x484] ss:$16 sps:$4 sm:$0xff]  }
 0x2ca   :  { %3743 = vmatprep.mubr.bf16.mxu1 %v10652_v31  ;;  %v11399_v63 = vpop.eup %11398  ;;  %v2015_v56 = vpack.c.bf16 %v1351_v58, %v1350_v48  ;;  %v1697_v22 = vmul.f32 %v11397_v6, %v12893_v39  ;;  %v10666_v48 = vld [vmem:[#allocation11 + $0x460] ss:$16 sps:$4 sm:$0xff]  }
 0x2cb   :  { %v11401_v11 = vpop.eup %11400  ;;  %11410 = vrcp.f32 %v1653_v0  ;;  %v1695_v42 = vmul.f32 %v11399_v63, %v12896_v40 }
 0x2cc   :  { %v11403_v32 = vpop.eup %11402  ;;  %4089 = vmatpush1.bf16.msra.mxu1 %v2015_v56  ;;  %v1698_v13 = vmul.f32 %v11401_v11, %v12900_v26 }
 0x2cd   :  { %v11405_v50 = vpop.eup %11404  ;;  %4090 = vmatprep.subr.bf16.mxu1 %v13727_v36  ;;  %v1696_v27 = vmul.f32 %v11403_v32, %v12904_v44 }
 0x2ce   :  { %v11407_v53 = vpop.eup %11406  ;;  %v1651_v47 = vadd.f32 1.0, %v11405_v50  ;;  %v12944_v39 = vpack.c.bf16 %v1698_v13, %v1697_v22  ;;  %v10670_v22 = vld [vmem:[#allocation11 + $0x4a4] ss:$16 sps:$4 sm:$0xff]  }
 0x2cf   :  { %v11409_v17 = vpop.eup %11408  ;;  %v1654_v62 = vadd.f32 1.0, %v11407_v53  ;;  %v12942_v20 = vpack.c.bf16 %v1696_v27, %v1695_v42 }
 0x2d0   :  { %4091 = vmatpush1.bf16.msra.mxu1 %v2016_v61  ;;  %11412 = vrcp.f32 %v1651_v47  ;;  %v1652_v14 = vadd.f32 1.0, %v11409_v17  ;;  %13757 = vst [vmem:[#allocation45_spill] sm:$0xff] %v12944_v39  ;;  %v10669_v47 = vld [vmem:[#allocation11 + $0x480] ss:$16 sps:$4 sm:$0xff]  }
 0x2d1   :  { %3744 = vmatmul.mubr.bf16.gmra.mrb[52].mxu1 %v10654_v7  ;;  %11414 = vrcp.f32 %v1654_v62  ;;  %4092 = vmatprep.subr.bf16.mxu1 %v13727_v36  ;;  %13756 = vst [vmem:[#allocation44_spill] sm:$0xff] %v12942_v20  ;;  %v10925_v20 = vld [vmem:[#allocation11 + $0x38c] ss:$16 sps:$4 sm:$0xff]  }
 0x2d2   :  { %3751 = vmatprep.mubr.bf16.mxu1 %v10655_v4  ;;  %11416 = vrcp.f32 %v1652_v14 }
 0x2d5   :  { %v11411_v40 = vpop.eup %11410 }
 0x2d6   :  { %v1701_v26 = vmul.f32 %v11411_v40, %v12909_v37  ;;  %v9637_v37 = vpop.f32.mrb[54].mxu0 }
 0x2d7   :  { %v883_v43 = vadd.f32 %v12872_v46, %v9637_v37  ;;  %v874_v5 = vpop.f32.mrb[55].mxu0 }
 0x2d8   :  { %v9640_v58 = vpop.f32.mrb[56].mxu0 }
 0x2d9   :  { %3752 = vmatmul.mubr.bf16.gmra.mrb[56].mxu1 %v10657_v60  ;;  %v8775_v31 = vmul.f32 -1.442695, %v883_v43  ;;  %v12959_v19 = vadd.f32 %v12872_v46, %v9640_v58  ;;  %v887_v0 = vpop.f32.mrb[57].mxu0  ;;  %v10672_v60 = vld [vmem:[#allocation11 + $0x4a0] ss:$16 sps:$4 sm:$0xff]  }
 0x2da   :  { %3759 = vmatprep.mubr.bf16.mxu1 %v10658_v34  ;;  %v11413_v29 = vpop.eup %11412  ;;  %v888_v11 = vadd.f32 %v12872_v46, %v887_v0  ;;  %v9641_v7 = vpop.f32.mrb[58].mxu0  ;;  %v10682_v58 = vld [vmem:[#allocation11 + $0x524] ss:$16 sps:$4 sm:$0xff]  }
 0x2db   :  { %v11415_v44 = vpop.eup %11414  ;;  %v1699_v16 = vmul.f32 %v11413_v29, %v12913_v59  ;;  %v8774_v59 = vmul.f32 -1.442695, %v880_v15  ;;  %v8778_v56 = vmul.f32 -1.442695, %v12959_v19  ;;  %v899_v32 = vadd.f32 %v12872_v46, %v9641_v7  ;;  %v890_v4 = vpop.f32.mrb[59].mxu0 }
 0x2dc   :  { %v11417_v52 = vpop.eup %11416  ;;  %v1702_v57 = vmul.f32 %v11415_v44, %v12916_v21  ;;  %v8772_v21 = vmul.f32 -1.442695, %v872_v41  ;;  %v8776_v50 = vmul.f32 -1.442695, %v888_v11  ;;  %v891_v53 = vadd.f32 %v12872_v46, %v890_v4  ;;  %v10673_v29 = vld [vmem:[#allocation11 + $0x4c4] ss:$16 sps:$4 sm:$0xff]  }
 0x2dd   :  { %v1700_v54 = vmul.f32 %v11417_v52, %v12919_v9  ;;  %v875_v9 = vadd.f32 %v12872_v46, %v874_v5  ;;  %11418 = vpow2.f32 %v8774_v59  ;;  %v8779_v17 = vmul.f32 -1.442695, %v899_v32  ;;  %v10676_v59 = vld [vmem:[#allocation11 + $0x4e4] ss:$16 sps:$4 sm:$0xff]  }
 0x2de   :  { %v12951_v2 = vpack.c.bf16 %v1702_v57, %v1701_v26  ;;  %11420 = vpow2.f32 %v8772_v21  ;;  %v8777_v42 = vmul.f32 -1.442695, %v891_v53  ;;  %v10678_v21 = vld [vmem:[#allocation11 + $0x4e0] ss:$16 sps:$4 sm:$0xff]  }
 0x2df   :  { %v12954_v30 = vpack.c.bf16 %v1700_v54, %v1699_v16  ;;  %v8773_v23 = vmul.f32 -1.442695, %v875_v9  ;;  %11422 = vpow2.f32 %v8775_v31 }
 0x2e0   :  { %13758 = vst [vmem:[#allocation46_spill] sm:$0xff] %v12951_v2  ;;  %v10922_v2 = vld [vmem:[#allocation11 + $0x36c] ss:$16 sps:$4 sm:$0xff]  }
 0x2e1   :  { %3760 = vmatmul.mubr.bf16.gmra.mrb[60].mxu1 %v10660_v12  ;;  %13759 = vst [vmem:[#allocation47_spill] sm:$0xff] %v12954_v30  ;;  %11424 = vpow2.f32 %v8773_v23 }
 0x2e2   :  { %3767 = vmatprep.mubr.bf16.mxu1 %v10661_v33 }
 0x2e7   :  { %v11419_v49 = vpop.eup %11418 }
 0x2e8   :  { %v11421_v51 = vpop.eup %11420  ;;  %v1164_v55 = vadd.f32 1.0, %v11419_v49 }
 0x2e9   :  { %3768 = vmatmul.mubr.bf16.gmra.mrb[64].mxu1 %v10663_v18  ;;  %v11423_v1 = vpop.eup %11422  ;;  %v1162_v3 = vadd.f32 1.0, %v11421_v51  ;;  %v10679_v18 = vld [vmem:[#allocation11 + $0x504] ss:$16 sps:$4 sm:$0xff]  }
 0x2ea   :  { %3775 = vmatprep.mubr.bf16.mxu1 %v10664_v45  ;;  %11426 = vrcp.f32 %v1164_v55  ;;  %v1165_v61 = vadd.f32 1.0, %v11423_v1  ;;  %v10681_v55 = vld [vmem:[#allocation11 + $0x500] ss:$16 sps:$4 sm:$0xff]  }
 0x2eb   :  { %v11425_v6 = vpop.eup %11424  ;;  %11428 = vrcp.f32 %v1162_v3  ;;  %v10684_v1 = vld [vmem:[#allocation11 + $0x520] ss:$16 sps:$4 sm:$0xff]   ;;  %v10685_v3 = vld [vmem:[#allocation11 + $0x544] ss:$16 sps:$4 sm:$0xff]  }
 0x2ec   :  { %v1163_v63 = vadd.f32 1.0, %v11425_v6  ;;  %11430 = vrcp.f32 %v1165_v61 }
 0x2ee   :  { %11432 = vrcp.f32 %v1163_v63 }
 0x2ef   :  { %11434 = vpow2.f32 %v8778_v56 }
 0x2f0   :  { %11436 = vpow2.f32 %v8776_v50 }
 0x2f1   :  { %3776 = vmatmul.mubr.bf16.gmra.mrb[68].mxu1 %v10666_v48  ;;  %11438 = vpow2.f32 %v8779_v17 }
 0x2f2   :  { %3783 = vmatprep.mubr.bf16.mxu1 %v10667_v38  ;;  %11440 = vpow2.f32 %v8777_v42  ;;  %v10691_v42 = vld [vmem:[#allocation11 + $0x584] ss:$16 sps:$4 sm:$0xff]  }
 0x2f4   :  { %v11427_v62 = vpop.eup %11426 }
 0x2f5   :  { %v11429_v13 = vpop.eup %11428  ;;  %v1356_v27 = vmul.f32 %v11427_v62, %v880_v15 }
 0x2f6   :  { %v11431_v14 = vpop.eup %11430  ;;  %v1354_v34 = vmul.f32 %v11429_v13, %v872_v41  ;;  %v10675_v41 = vld [vmem:[#allocation11 + $0x4c0] ss:$16 sps:$4 sm:$0xff]  }
 0x2f7   :  { %v1357_v26 = vmul.f32 %v11431_v14, %v883_v43 }
 0x2f8   :  { %v11433_v40 = vpop.eup %11432 }
 0x2f9   :  { %3784 = vmatmul.mubr.bf16.gmra.mrb[72].mxu1 %v10669_v47  ;;  %v11435_v44 = vpop.eup %11434  ;;  %v1355_v12 = vmul.f32 %v11433_v40, %v875_v9  ;;  %v2018_v52 = vpack.c.bf16 %v1357_v26, %v1356_v27  ;;  %v10694_v26 = vld [vmem:[#allocation11 + $0x5a4] ss:$16 sps:$4 sm:$0xff]  }
 0x2fa   :  { %3791 = vmatprep.mubr.bf16.mxu1 %v10670_v22  ;;  %v11437_v16 = vpop.eup %11436  ;;  %v1168_v33 = vadd.f32 1.0, %v11435_v44  ;;  %v10690_v22 = vld [vmem:[#allocation11 + $0x560] ss:$16 sps:$4 sm:$0xff]  }
 0x2fb   :  { %v11439_v57 = vpop.eup %11438  ;;  %v2017_v54 = vpack.c.bf16 %v1355_v12, %v1354_v34  ;;  %v1166_v35 = vadd.f32 1.0, %v11437_v16  ;;  %v10696_v12 = vld [vmem:[#allocation11 + $0x5a0] ss:$16 sps:$4 sm:$0xff]  }
 0x2fc   :  { %v11441_v28 = vpop.eup %11440  ;;  %11442 = vrcp.f32 %v1168_v33  ;;  %v1169_v37 = vadd.f32 1.0, %v11439_v57 }
 0x2fd   :  { %4093 = vmatpush1.bf16.msra.mxu1 %v2017_v54  ;;  %11444 = vrcp.f32 %v1166_v35  ;;  %v1167_v15 = vadd.f32 1.0, %v11441_v28 }
 0x2fe   :  { %4094 = vmatprep.subr.bf16.mxu1 %v13727_v36  ;;  %11446 = vrcp.f32 %v1169_v37 }
 0x2ff   :  { %11448 = vrcp.f32 %v1167_v15 }
 0x301   :  { %3792 = vmatmul.mubr.bf16.gmra.mrb[76].mxu1 %v10672_v60 }
 0x302   :  { %3799 = vmatprep.mubr.bf16.mxu1 %v10673_v29  ;;  %4095 = vmatpush1.bf16.msra.mxu1 %v2018_v52  ;;  %v10693_v29 = vld [vmem:[#allocation11 + $0x580] ss:$16 sps:$4 sm:$0xff]   ;;  %v10697_v52 = vld [vmem:[#allocation11 + $0x5c4] ss:$16 sps:$4 sm:$0xff]  }
 0x303   :  { %4096 = vmatprep.subr.bf16.mxu1 %v13727_v36 }
 0x306   :  { %v11443_v43 = vpop.eup %11442 }
 0x307   :  { %v11445_v5 = vpop.eup %11444  ;;  %v1360_v9 = vmul.f32 %v11443_v43, %v12959_v19  ;;  %v10700_v43 = vld [vmem:[#allocation11 + $0x5e4] ss:$16 sps:$4 sm:$0xff]  }
 0x308   :  { %v11447_v31 = vpop.eup %11446  ;;  %v1358_v23 = vmul.f32 %v11445_v5, %v888_v11  ;;  %v10702_v5 = vld [vmem:[#allocation11 + $0x5e0] ss:$16 sps:$4 sm:$0xff]  }
 0x309   :  { %3800 = vmatmul.mubr.bf16.gmra.mrb[80].mxu1 %v10675_v41  ;;  %v11449_v45 = vpop.eup %11448  ;;  %v1361_v48 = vmul.f32 %v11447_v31, %v899_v32  ;;  %v10687_v32 = vld [vmem:[#allocation11 + $0x540] ss:$16 sps:$4 sm:$0xff]   ;;  %v10706_v31 = vld [vmem:[#allocation11 + $0x624] ss:$16 sps:$4 sm:$0xff]  }
 0x30a   :  { %3807 = vmatprep.mubr.bf16.mxu1 %v10676_v59  ;;  %v1359_v49 = vmul.f32 %v11449_v45, %v891_v53  ;;  %v10688_v53 = vld [vmem:[#allocation11 + $0x564] ss:$16 sps:$4 sm:$0xff]   ;;  %v10699_v59 = vld [vmem:[#allocation11 + $0x5c0] ss:$16 sps:$4 sm:$0xff]  }
 0x30b   :  { %v2020_v38 = vpack.c.bf16 %v1361_v48, %v1360_v9  ;;  %v10705_v9 = vld [vmem:[#allocation11 + $0x600] ss:$16 sps:$4 sm:$0xff]   ;;  %v10712_v48 = vld [vmem:[#allocation11 + $0x664] ss:$16 sps:$4 sm:$0xff]  }
 0x30c   :  { %v2019_v51 = vpack.c.bf16 %v1359_v49, %v1358_v23  ;;  %v10709_v23 = vld [vmem:[#allocation11 + $0x644] ss:$16 sps:$4 sm:$0xff]   ;;  %v10711_v45 = vld [vmem:[#allocation11 + $0x640] ss:$16 sps:$4 sm:$0xff]  }
 0x30d   :  { %v10714_v49 = vld [vmem:[#allocation11 + $0x660] ss:$16 sps:$4 sm:$0xff]  }
 0x30e   :  { %4097 = vmatpush1.bf16.msra.mxu1 %v2019_v51  ;;  %v10717_v51 = vld [vmem:[#allocation11 + $0x680] ss:$16 sps:$4 sm:$0xff]  }
 0x30f   :  { %4098 = vmatprep.subr.bf16.mxu1 %v13727_v36 }
 0x311   :  { %3808 = vmatmul.mubr.bf16.gmra.mrb[84].mxu1 %v10678_v21  ;;  %v9644_v19 = vpop.f32.mrb[60].mxu0  ;;  %v10703_v21 = vld [vmem:[#allocation11 + $0x604] ss:$16 sps:$4 sm:$0xff]  }
 0x312   :  { %3815 = vmatprep.mubr.bf16.mxu1 %v10679_v18  ;;  %4099 = vmatpush1.bf16.msra.mxu1 %v2020_v38  ;;  %v912_v6 = vadd.f32 %v12872_v46, %v9644_v19  ;;  %v903_v61 = vpop.f32.mrb[61].mxu0  ;;  %v10708_v18 = vld [vmem:[#allocation11 + $0x620] ss:$16 sps:$4 sm:$0xff]   ;;  %v10715_v38 = vld [vmem:[#allocation11 + $0x684] ss:$16 sps:$4 sm:$0xff]  }
 0x313   :  { %4100 = vmatprep.subr.bf16.mxu1 %v13727_v36  ;;  %v904_v0 = vadd.f32 %v12872_v46, %v903_v61  ;;  %v9645_v63 = vpop.f32.mrb[62].mxu0  ;;  %v10724_v19 = vld [vmem:[#allocation11 + $0x6e4] ss:$16 sps:$4 sm:$0xff]  }
 0x314   :  { %v8782_v56 = vmul.f32 -1.442695, %v912_v6  ;;  %v915_v11 = vadd.f32 %v12872_v46, %v9645_v63  ;;  %v906_v7 = vpop.f32.mrb[63].mxu0  ;;  %v10727_v61 = vld [vmem:[#allocation11 + $0x704] ss:$16 sps:$4 sm:$0xff]  }
 0x315   :  { %v8780_v4 = vmul.f32 -1.442695, %v904_v0  ;;  %v907_v50 = vadd.f32 %v12872_v46, %v906_v7  ;;  %v10777_v63 = vld [vmem:[#allocation11 + $0x4] ss:$16 sps:$4 sm:$0xff]  }
 0x316   :  { %11450 = vpow2.f32 %v8782_v56  ;;  %v8783_v47 = vmul.f32 -1.442695, %v915_v11  ;;  %3495 = vmatprep.mubr.bf16.mxu0 %v10777_v63  ;;  %v10729_v56 = vld [vmem:[#allocation11 + $0x700] ss:$16 sps:$4 sm:$0xff]   ;;  %v10781_v7 = vld [vmem:[#allocation11 + $0x24] ss:$16 sps:$4 sm:$0xff]  }
 0x317   :  { %11452 = vpow2.f32 %v8780_v4  ;;  %v8781_v17 = vmul.f32 -1.442695, %v907_v50  ;;  %v10732_v4 = vld [vmem:[#allocation11 + $0x720] ss:$16 sps:$4 sm:$0xff]  }
 0x318   :  { %11454 = vpow2.f32 %v8783_v47  ;;  %v10791_v47 = vld [vmem:[#allocation11 + $0x40] ss:$16 sps:$4 sm:$0xff]  }
 0x319   :  { %3816 = vmatmul.mubr.bf16.gmra.mrb[88].mxu1 %v10681_v55  ;;  %11456 = vpow2.f32 %v8781_v17  ;;  %v10718_v55 = vld [vmem:[#allocation11 + $0x6a4] ss:$16 sps:$4 sm:$0xff]   ;;  %v10735_v17 = vld [vmem:[#allocation11 + $0x740] ss:$16 sps:$4 sm:$0xff]  }
 0x31a   :  { %3823 = vmatprep.mubr.bf16.mxu1 %v10682_v58  ;;  %v10720_v58 = vld [vmem:[#allocation11 + $0x6a0] ss:$16 sps:$4 sm:$0xff]  }
 0x31b   :  { %v10771_v63 = vld [vmem:[#allocation11 + $0x8c0] ss:$16 sps:$4 sm:$0xff]  }
 0x320   :  { %v11451_v62 = vpop.eup %11450 }
 0x321   :  { %3824 = vmatmul.mubr.bf16.gmra.mrb[92].mxu1 %v10684_v1  ;;  %v11453_v13 = vpop.eup %11452  ;;  %v1172_v27 = vadd.f32 1.0, %v11451_v62  ;;  %v10721_v1 = vld [vmem:[#allocation11 + $0x6c4] ss:$16 sps:$4 sm:$0xff]   ;;  %v10797_v62 = vld [vmem:[#allocation11 + $0x60] ss:$16 sps:$4 sm:$0xff]  }
 0x322   :  { %3831 = vmatprep.mubr.bf16.mxu1 %v10685_v3  ;;  %v11455_v14 = vpop.eup %11454  ;;  %v1170_v60 = vadd.f32 1.0, %v11453_v13  ;;  %v10723_v3 = vld [vmem:[#allocation11 + $0x6c0] ss:$16 sps:$4 sm:$0xff]  }
 0x323   :  { %v11457_v34 = vpop.eup %11456  ;;  %11458 = vrcp.f32 %v1172_v27  ;;  %v1173_v46 = vadd.f32 1.0, %v11455_v14  ;;  %v10738_v13 = vld [vmem:[#allocation11 + $0x760] ss:$16 sps:$4 sm:$0xff]   ;;  %v10739_v27 = vld [vmem:[#allocation11 + $0x784] ss:$16 sps:$4 sm:$0xff]  }
 0x324   :  { %11460 = vrcp.f32 %v1170_v60  ;;  %v1171_v40 = vadd.f32 1.0, %v11457_v34  ;;  %v10799_v14 = vld [vmem:[#allocation11 + $0x84] ss:$16 sps:$4 sm:$0xff]   ;;  %v10803_v60 = vld [vmem:[#allocation11 + $0x80] ss:$16 sps:$4 sm:$0xff]  }
 0x325   :  { %11462 = vrcp.f32 %v1173_v46  ;;  %v10741_v34 = vld [vmem:[#allocation11 + $0x780] ss:$16 sps:$4 sm:$0xff]   ;;  %v10742_v46 = vld [vmem:[#allocation11 + $0x7a4] ss:$16 sps:$4 sm:$0xff]  }
 0x326   :  { %11464 = vrcp.f32 %v1171_v40  ;;  %v10805_v40 = vld [vmem:[#allocation11 + $0xa4] ss:$16 sps:$4 sm:$0xff]  }
 0x329   :  { %3832 = vmatmul.mubr.bf16.gmra.mrb[96].mxu1 %v10687_v32  ;;  %v10785_v32 = vld [vmem:[#allocation11 + $0x20] ss:$16 sps:$4 sm:$0xff]  }
 0x32a   :  { %3839 = vmatprep.mubr.bf16.mxu1 %v10688_v53  ;;  %v10787_v53 = vld [vmem:[#allocation11 + $0x44] ss:$16 sps:$4 sm:$0xff]  }
 0x32d   :  { %v11459_v44 = vpop.eup %11458 }
 0x32e   :  { %v11461_v16 = vpop.eup %11460  ;;  %v1364_v33 = vmul.f32 %v11459_v44, %v912_v6  ;;  %v10726_v6 = vld [vmem:[#allocation11 + $0x6e0] ss:$16 sps:$4 sm:$0xff]   ;;  %v10745_v44 = vld [vmem:[#allocation11 + $0x7c4] ss:$16 sps:$4 sm:$0xff]  }
 0x32f   :  { %v11463_v57 = vpop.eup %11462  ;;  %v1362_v54 = vmul.f32 %v11461_v16, %v904_v0  ;;  %v10775_v0 = vld [vmem:[#allocation11] ss:$16 sps:$4 sm:$0xff]  }
 0x330   :  { %v11465_v35 = vpop.eup %11464  ;;  %v1365_v28 = vmul.f32 %v11463_v57, %v915_v11  ;;  %3496 = vmatmul.mubr.bf16.vlgmr.msra.gmra.mrb[64].mxu0 %v10775_v0  ;;  %v10730_v11 = vld [vmem:[#allocation11 + $0x724] ss:$16 sps:$4 sm:$0xff]   ;;  %v10815_v16 = vld [vmem:[#allocation11 + $0xc0] ss:$16 sps:$4 sm:$0xff]  }
 0x331   :  { %3840 = vmatmul.mubr.bf16.gmra.mrb[100].mxu1 %v10690_v22  ;;  %v1363_v37 = vmul.f32 %v11465_v35, %v907_v50  ;;  %3503 = vmatprep.mubr.bf16.mxu0 %v10781_v7  ;;  %v10733_v50 = vld [vmem:[#allocation11 + $0x744] ss:$16 sps:$4 sm:$0xff]   ;;  %v10750_v35 = vld [vmem:[#allocation11 + $0x7e0] ss:$16 sps:$4 sm:$0xff]  }
 0x332   :  { %3847 = vmatprep.mubr.bf16.mxu1 %v10691_v42  ;;  %v2022_v15 = vpack.c.bf16 %v1365_v28, %v1364_v33  ;;  %v10736_v22 = vld [vmem:[#allocation11 + $0x764] ss:$16 sps:$4 sm:$0xff]   ;;  %v10864_v7 = vld [vmem:[#allocation11 + $0x1c0] ss:$16 sps:$4 sm:$0xff]  }
 0x333   :  { %v2021_v41 = vpack.c.bf16 %v1363_v37, %v1362_v54  ;;  %v10793_v42 = vld [vmem:[#allocation11 + $0x64] ss:$16 sps:$4 sm:$0xff]   ;;  %v10821_v54 = vld [vmem:[#allocation11 + $0xe0] ss:$16 sps:$4 sm:$0xff]  }
 0x334   :  { %v10748_v33 = vld [vmem:[#allocation11 + $0x7e4] ss:$16 sps:$4 sm:$0xff]  }
 0x335   :  { %4101 = vmatpush1.bf16.msra.mxu1 %v2021_v41  ;;  %v10817_v57 = vld [vmem:[#allocation11 + $0xe4] ss:$16 sps:$4 sm:$0xff]   ;;  %v10753_v41 = vld [vmem:[#allocation11 + $0x800] ss:$16 sps:$4 sm:$0xff]  }
 0x336   :  { %4102 = vmatprep.subr.bf16.mxu1 %v13727_v36  ;;  %v10751_v28 = vld [vmem:[#allocation11 + $0x804] ss:$16 sps:$4 sm:$0xff]  }
 0x337   :  { %v10823_v37 = vld [vmem:[#allocation11 + $0x104] ss:$16 sps:$4 sm:$0xff]  }
 0x338   :  { %3504 = vmatmul.mubr.bf16.gmra.mrb[68].mxu0 %v10785_v32  ;;  %v10769_v0 = vld [vmem:[#allocation11 + $0x8c4] ss:$16 sps:$4 sm:$0xff]   ;;  %v10774_v32 = vld [vmem:[#allocation11 + $0x8e0] ss:$16 sps:$4 sm:$0xff]  }
 0x339   :  { %3848 = vmatmul.mubr.bf16.gmra.mrb[104].mxu1 %v10693_v29  ;;  %3511 = vmatprep.mubr.bf16.mxu0 %v10787_v53  ;;  %v10809_v29 = vld [vmem:[#allocation11 + $0xa0] ss:$16 sps:$4 sm:$0xff]  }
 0x33a   :  { %3855 = vmatprep.mubr.bf16.mxu1 %v10694_v26  ;;  %4103 = vmatpush1.bf16.msra.mxu1 %v2022_v15  ;;  %v10744_v26 = vld [vmem:[#allocation11 + $0x7a0] ss:$16 sps:$4 sm:$0xff]  }
 0x33b   :  { %v10827_v15 = vld [vmem:[#allocation11 + $0x100] ss:$16 sps:$4 sm:$0xff]  }
 0x33c   :  { %v10870_v53 = vld [vmem:[#allocation11 + $0x1e0] ss:$16 sps:$4 sm:$0xff]  }
 0x340   :  { %3512 = vmatmul.mubr.bf16.gmra.mrb[72].mxu0 %v10791_v47  ;;  %v10778_v47 = vld [vmem:[#allocation11 + $0x8] ss:$16 sps:$4 sm:$0xff]  }
 0x341   :  { %3856 = vmatmul.mubr.bf16.gmra.mrb[108].mxu1 %v10696_v12  ;;  %3519 = vmatprep.mubr.bf16.mxu0 %v10793_v42  ;;  %v10811_v12 = vld [vmem:[#allocation11 + $0xc4] ss:$16 sps:$4 sm:$0xff]   ;;  %v10876_v42 = vld [vmem:[#allocation11 + $0x200] ss:$16 sps:$4 sm:$0xff]  }
 0x342   :  { %3863 = vmatprep.mubr.bf16.mxu1 %v10697_v52  ;;  %v10747_v52 = vld [vmem:[#allocation11 + $0x7c0] ss:$16 sps:$4 sm:$0xff]  }
 0x348   :  { %3520 = vmatmul.mubr.bf16.gmra.mrb[76].mxu0 %v10797_v62  ;;  %v10786_v62 = vld [vmem:[#allocation11 + $0x28] ss:$16 sps:$4 sm:$0xff]  }
 0x349   :  { %3864 = vmatmul.mubr.bf16.gmra.mrb[112].mxu1 %v10699_v59  ;;  %3527 = vmatprep.mubr.bf16.mxu0 %v10799_v14  ;;  %v10754_v59 = vld [vmem:[#allocation11 + $0x824] ss:$16 sps:$4 sm:$0xff]   ;;  %v10882_v14 = vld [vmem:[#allocation11 + $0x220] ss:$16 sps:$4 sm:$0xff]  }
 0x34a   :  { %3871 = vmatprep.mubr.bf16.mxu1 %v10700_v43  ;;  %v10829_v43 = vld [vmem:[#allocation11 + $0x124] ss:$16 sps:$4 sm:$0xff]  }
 0x350   :  { %3528 = vmatmul.mubr.bf16.gmra.mrb[80].mxu0 %v10803_v60  ;;  %v10792_v60 = vld [vmem:[#allocation11 + $0x48] ss:$16 sps:$4 sm:$0xff]  }
 0x351   :  { %3872 = vmatmul.mubr.bf16.gmra.mrb[116].mxu1 %v10702_v5  ;;  %3535 = vmatprep.mubr.bf16.mxu0 %v10805_v40  ;;  %v10833_v5 = vld [vmem:[#allocation11 + $0x120] ss:$16 sps:$4 sm:$0xff]  }
 0x352   :  { %3879 = vmatprep.mubr.bf16.mxu1 %v10703_v21  ;;  %v10756_v21 = vld [vmem:[#allocation11 + $0x820] ss:$16 sps:$4 sm:$0xff]  }
 0x353   :  { %v10888_v40 = vld [vmem:[#allocation11 + $0x240] ss:$16 sps:$4 sm:$0xff]  }
 0x358   :  { %3536 = vmatmul.mubr.bf16.gmra.mrb[84].mxu0 %v10809_v29  ;;  %v10798_v29 = vld [vmem:[#allocation11 + $0x68] ss:$16 sps:$4 sm:$0xff]  }
 0x359   :  { %3880 = vmatmul.mubr.bf16.gmra.mrb[120].mxu1 %v10705_v9  ;;  %3543 = vmatprep.mubr.bf16.mxu0 %v10811_v12  ;;  %v10757_v9 = vld [vmem:[#allocation11 + $0x844] ss:$16 sps:$4 sm:$0xff]   ;;  %v10894_v12 = vld [vmem:[#allocation11 + $0x260] ss:$16 sps:$4 sm:$0xff]  }
 0x35a   :  { %3887 = vmatprep.mubr.bf16.mxu1 %v10706_v31  ;;  %v10835_v31 = vld [vmem:[#allocation11 + $0x144] ss:$16 sps:$4 sm:$0xff]  }
 0x360   :  { %3544 = vmatmul.mubr.bf16.gmra.mrb[88].mxu0 %v10815_v16  ;;  %v10804_v16 = vld [vmem:[#allocation11 + $0x88] ss:$16 sps:$4 sm:$0xff]  }
 0x361   :  { %3888 = vmatmul.mubr.bf16.gmra.mrb[124].mxu1 %v10708_v18  ;;  %3551 = vmatprep.mubr.bf16.mxu0 %v10817_v57  ;;  %v10840_v18 = vld [vmem:[#allocation11 + $0x140] ss:$16 sps:$4 sm:$0xff]  }
 0x362   :  { %3895 = vmatprep.mubr.bf16.mxu1 %v10709_v23  ;;  %v10759_v23 = vld [vmem:[#allocation11 + $0x840] ss:$16 sps:$4 sm:$0xff]  }
 0x363   :  { %v10900_v57 = vld [vmem:[#allocation11 + $0x280] ss:$16 sps:$4 sm:$0xff]  }
 0x368   :  { %3552 = vmatmul.mubr.bf16.gmra.mrb[92].mxu0 %v10821_v54  ;;  %v10810_v54 = vld [vmem:[#allocation11 + $0xa8] ss:$16 sps:$4 sm:$0xff]  }
 0x369   :  { %3896 = vmatmul.mubr.bf16.gmra.mrb[128].mxu1 %v10711_v45  ;;  %3559 = vmatprep.mubr.bf16.mxu0 %v10823_v37  ;;  %v10760_v45 = vld [vmem:[#allocation11 + $0x864] ss:$16 sps:$4 sm:$0xff]   ;;  %v10906_v37 = vld [vmem:[#allocation11 + $0x2a0] ss:$16 sps:$4 sm:$0xff]  }
 0x36a   :  { %3903 = vmatprep.mubr.bf16.mxu1 %v10712_v48  ;;  %v10841_v48 = vld [vmem:[#allocation11 + $0x164] ss:$16 sps:$4 sm:$0xff]  }
 0x370   :  { %3560 = vmatmul.mubr.bf16.gmra.mrb[96].mxu0 %v10827_v15  ;;  %v10816_v15 = vld [vmem:[#allocation11 + $0xc8] ss:$16 sps:$4 sm:$0xff]  }
 0x371   :  { %3904 = vmatmul.mubr.bf16.gmra.mrb[132].mxu1 %v10714_v49  ;;  %3567 = vmatprep.mubr.bf16.mxu0 %v10829_v43  ;;  %v10846_v49 = vld [vmem:[#allocation11 + $0x160] ss:$16 sps:$4 sm:$0xff]   ;;  %v10825_v43 = vld [vmem:[#allocation11 + $0x10c] ss:$16 sps:$4 sm:$0xff]  }
 0x372   :  { %3911 = vmatprep.mubr.bf16.mxu1 %v10715_v38  ;;  %v10762_v38 = vld [vmem:[#allocation11 + $0x860] ss:$16 sps:$4 sm:$0xff]  }
 0x378   :  { %3568 = vmatmul.mubr.bf16.gmra.mrb[100].mxu0 %v10833_v5  ;;  %v10828_v5 = vld [vmem:[#allocation11 + $0x108] ss:$16 sps:$4 sm:$0xff]  }
 0x379   :  { %3912 = vmatmul.mubr.bf16.gmra.mrb[136].mxu1 %v10717_v51  ;;  %3575 = vmatprep.mubr.bf16.mxu0 %v10835_v31  ;;  %v10763_v51 = vld [vmem:[#allocation11 + $0x884] ss:$16 sps:$4 sm:$0xff]   ;;  %v10839_v31 = vld [vmem:[#allocation11 + $0x14c] ss:$16 sps:$4 sm:$0xff]  }
 0x37a   :  { %3919 = vmatprep.mubr.bf16.mxu1 %v10718_v55  ;;  %v10847_v55 = vld [vmem:[#allocation11 + $0x184] ss:$16 sps:$4 sm:$0xff]  }
 0x380   :  { %3576 = vmatmul.mubr.bf16.gmra.mrb[104].mxu0 %v10840_v18  ;;  %v10837_v18 = vld [vmem:[#allocation11 + $0x148] ss:$16 sps:$4 sm:$0xff]  }
 0x381   :  { %3920 = vmatmul.mubr.bf16.gmra.mrb[140].mxu1 %v10720_v58  ;;  %3583 = vmatprep.mubr.bf16.mxu0 %v10841_v48  ;;  %v10852_v58 = vld [vmem:[#allocation11 + $0x180] ss:$16 sps:$4 sm:$0xff]  }
 0x382   :  { %3927 = vmatprep.mubr.bf16.mxu1 %v10721_v1  ;;  %v10765_v1 = vld [vmem:[#allocation11 + $0x880] ss:$16 sps:$4 sm:$0xff]  }
 0x388   :  { %3584 = vmatmul.mubr.bf16.gmra.mrb[108].mxu0 %v10846_v49  ;;  %v10843_v49 = vld [vmem:[#allocation11 + $0x168] ss:$16 sps:$4 sm:$0xff]  }
 0x389   :  { %3928 = vmatmul.mubr.bf16.gmra.mrb[144].mxu1 %v10723_v3  ;;  %3591 = vmatprep.mubr.bf16.mxu0 %v10847_v55  ;;  %v10766_v3 = vld [vmem:[#allocation11 + $0x8a4] ss:$16 sps:$4 sm:$0xff]  }
 0x38a   :  { %3935 = vmatprep.mubr.bf16.mxu1 %v10724_v19  ;;  %v10853_v19 = vld [vmem:[#allocation11 + $0x1a4] ss:$16 sps:$4 sm:$0xff]  }
 0x390   :  { %3592 = vmatmul.mubr.bf16.gmra.mrb[112].mxu0 %v10852_v58 }
 0x391   :  { %3936 = vmatmul.mubr.bf16.gmra.mrb[148].mxu1 %v10726_v6  ;;  %v10858_v6 = vld [vmem:[#allocation11 + $0x1a0] ss:$16 sps:$4 sm:$0xff]   ;;  %3599 = vmatprep.mubr.bf16.mxu0 %v10853_v19 }
 0x392   :  { %3943 = vmatprep.mubr.bf16.mxu1 %v10727_v61  ;;  %v10768_v61 = vld [vmem:[#allocation11 + $0x8a0] ss:$16 sps:$4 sm:$0xff]  }
 0x398   :  { %3600 = vmatmul.mubr.bf16.gmra.mrb[116].mxu0 %v10858_v6  ;;  %v10857_v6 = vld [vmem:[#allocation11 + $0x1ac] ss:$16 sps:$4 sm:$0xff]  }
 0x399   :  { %3944 = vmatmul.mubr.bf16.gmra.mrb[152].mxu1 %v10729_v56  ;;  %v10772_v56 = vld [vmem:[#allocation11 + $0x8e4] ss:$16 sps:$4 sm:$0xff]  }
 0x39a   :  { %3951 = vmatprep.mubr.bf16.mxu1 %v10730_v11  ;;  %v10859_v11 = vld [vmem:[#allocation11 + $0x1c4] ss:$16 sps:$4 sm:$0xff]  }
 0x39b   :  { %3607 = vmatprep.mubr.bf16.mxu0 %v10859_v11 }
 0x3a0   :  { %3608 = vmatmul.mubr.bf16.gmra.mrb[120].mxu0 %v10864_v7  ;;  %v10863_v7 = vld [vmem:[#allocation11 + $0x1cc] ss:$16 sps:$4 sm:$0xff]  }
 0x3a1   :  { %3952 = vmatmul.mubr.bf16.gmra.mrb[156].mxu1 %v10732_v4  ;;  %v10780_v4 = vld [vmem:[#allocation11 + $0xc] ss:$16 sps:$4 sm:$0xff]  }
 0x3a2   :  { %3959 = vmatprep.mubr.bf16.mxu1 %v10733_v50  ;;  %v10865_v50 = vld [vmem:[#allocation11 + $0x1e4] ss:$16 sps:$4 sm:$0xff]  }
 0x3a3   :  { %3615 = vmatprep.mubr.bf16.mxu0 %v10865_v50 }
 0x3a8   :  { %3616 = vmatmul.mubr.bf16.gmra.mrb[124].mxu0 %v10870_v53 }
 0x3a9   :  { %3960 = vmatmul.mubr.bf16.gmra.mrb[160].mxu1 %v10735_v17  ;;  %v10783_v17 = vld [vmem:[#allocation11 + $0x2c] ss:$16 sps:$4 sm:$0xff]  }
 0x3aa   :  { %3967 = vmatprep.mubr.bf16.mxu1 %v10736_v22  ;;  %v10871_v22 = vld [vmem:[#allocation11 + $0x204] ss:$16 sps:$4 sm:$0xff]  }
 0x3ab   :  { %3623 = vmatprep.mubr.bf16.mxu0 %v10871_v22 }
 0x3b0   :  { %3624 = vmatmul.mubr.bf16.gmra.mrb[128].mxu0 %v10876_v42 }
 0x3b1   :  { %3968 = vmatmul.mubr.bf16.gmra.mrb[164].mxu1 %v10738_v13  ;;  %v10789_v13 = vld [vmem:[#allocation11 + $0x4c] ss:$16 sps:$4 sm:$0xff]  }
 0x3b2   :  { %3975 = vmatprep.mubr.bf16.mxu1 %v10739_v27  ;;  %v10877_v27 = vld [vmem:[#allocation11 + $0x224] ss:$16 sps:$4 sm:$0xff]  }
 0x3b3   :  { %3631 = vmatprep.mubr.bf16.mxu0 %v10877_v27 }
 0x3b8   :  { %3632 = vmatmul.mubr.bf16.gmra.mrb[132].mxu0 %v10882_v14 }
 0x3b9   :  { %3976 = vmatmul.mubr.bf16.gmra.mrb[168].mxu1 %v10741_v34  ;;  %v10795_v34 = vld [vmem:[#allocation11 + $0x6c] ss:$16 sps:$4 sm:$0xff]  }
 0x3ba   :  { %3983 = vmatprep.mubr.bf16.mxu1 %v10742_v46  ;;  %v10883_v46 = vld [vmem:[#allocation11 + $0x244] ss:$16 sps:$4 sm:$0xff]  }
 0x3bb   :  { %3639 = vmatprep.mubr.bf16.mxu0 %v10883_v46 }
 0x3c0   :  { %3640 = vmatmul.mubr.bf16.gmra.mrb[136].mxu0 %v10888_v40  ;;  %v10867_v40 = vld [vmem:[#allocation11 + $0x1e8] ss:$16 sps:$4 sm:$0xff]  }
 0x3c1   :  { %3984 = vmatmul.mubr.bf16.gmra.mrb[172].mxu1 %v10744_v26  ;;  %v10801_v26 = vld [vmem:[#allocation11 + $0x8c] ss:$16 sps:$4 sm:$0xff]  }
 0x3c2   :  { %3991 = vmatprep.mubr.bf16.mxu1 %v10745_v44  ;;  %v10889_v44 = vld [vmem:[#allocation11 + $0x264] ss:$16 sps:$4 sm:$0xff]  }
 0x3c3   :  { %3647 = vmatprep.mubr.bf16.mxu0 %v10889_v44  ;;  %v10875_v44 = vld [vmem:[#allocation11 + $0x20c] ss:$16 sps:$4 sm:$0xff]  }
 0x3c8   :  { %3648 = vmatmul.mubr.bf16.gmra.mrb[140].mxu0 %v10894_v12 }
 0x3c9   :  { %3992 = vmatmul.mubr.bf16.gmra.mrb[176].mxu1 %v10747_v52  ;;  %v10807_v52 = vld [vmem:[#allocation11 + $0xac] ss:$16 sps:$4 sm:$0xff]  }
 0x3ca   :  { %3999 = vmatprep.mubr.bf16.mxu1 %v10748_v33  ;;  %v10895_v33 = vld [vmem:[#allocation11 + $0x284] ss:$16 sps:$4 sm:$0xff]  }
 0x3cb   :  { %3655 = vmatprep.mubr.bf16.mxu0 %v10895_v33 }
 0x3d0   :  { %3656 = vmatmul.mubr.bf16.gmra.mrb[144].mxu0 %v10900_v57 }
 0x3d1   :  { %4000 = vmatmul.mubr.bf16.gmra.mrb[180].mxu1 %v10750_v35  ;;  %v10813_v35 = vld [vmem:[#allocation11 + $0xcc] ss:$16 sps:$4 sm:$0xff]  }
 0x3d2   :  { %4007 = vmatprep.mubr.bf16.mxu1 %v10751_v28  ;;  %v10901_v28 = vld [vmem:[#allocation11 + $0x2a4] ss:$16 sps:$4 sm:$0xff]  }
 0x3d3   :  { %3663 = vmatprep.mubr.bf16.mxu0 %v10901_v28 }
 0x3d8   :  { %3664 = vmatmul.mubr.bf16.gmra.mrb[148].mxu0 %v10906_v37 }
 0x3d9   :  { %4008 = vmatmul.mubr.bf16.gmra.mrb[184].mxu1 %v10753_v41  ;;  %v10819_v41 = vld [vmem:[#allocation11 + $0xec] ss:$16 sps:$4 sm:$0xff]  }
 0x3da   :  { %4015 = vmatprep.mubr.bf16.mxu1 %v10754_v59  ;;  %v10822_v59 = vld [vmem:[#allocation11 + $0xe8] ss:$16 sps:$4 sm:$0xff]  }
 0x3e1   :  { %4016 = vmatmul.mubr.bf16.gmra.mrb[188].mxu1 %v10756_v21  ;;  %v10831_v21 = vld [vmem:[#allocation11 + $0x12c] ss:$16 sps:$4 sm:$0xff]  }
 0x3e2   :  { %4023 = vmatprep.mubr.bf16.mxu1 %v10757_v9  ;;  %v10834_v9 = vld [vmem:[#allocation11 + $0x128] ss:$16 sps:$4 sm:$0xff]  }
 0x3e9   :  { %4024 = vmatmul.mubr.bf16.gmra.mrb[192].mxu1 %v10759_v23  ;;  %v10845_v23 = vld [vmem:[#allocation11 + $0x16c] ss:$16 sps:$4 sm:$0xff]  }
 0x3ea   :  { %4031 = vmatprep.mubr.bf16.mxu1 %v10760_v45 }
 0x3f1   :  { %4032 = vmatmul.mubr.bf16.gmra.mrb[196].mxu1 %v10762_v38 }
 0x3f2   :  { %4039 = vmatprep.mubr.bf16.mxu1 %v10763_v51  ;;  %v10851_v51 = vld [vmem:[#allocation11 + $0x18c] ss:$16 sps:$4 sm:$0xff]  }
 0x3f9   :  { %4040 = vmatmul.mubr.bf16.gmra.mrb[200].mxu1 %v10765_v1 }
 0x3fa   :  { %4047 = vmatprep.mubr.bf16.mxu1 %v10766_v3  ;;  %v10849_v3 = vld [vmem:[#allocation11 + $0x188] ss:$16 sps:$4 sm:$0xff]  }
 0x401   :  { %4048 = vmatmul.mubr.bf16.gmra.mrb[204].mxu1 %v10768_v61 }
 0x402   :  { %4055 = vmatprep.mubr.bf16.mxu1 %v10769_v0 }
 0x403   :  { %v12975_v45 = vpop.f32.mrb[64].mxu0 }
 0x404   :  { %v3499_v48 = vpop.f32.mrb[65].mxu0 }
 0x405   :  { %v12977_v38 = vpop.f32.mrb[66].mxu0  ;;  %v10887_v48 = vld [vmem:[#allocation11 + $0x24c] ss:$16 sps:$4 sm:$0xff]  }
 0x406   :  { %v3502_v55 = vpop.f32.mrb[67].mxu0 }
 0x409   :  { %4056 = vmatmul.mubr.bf16.gmra.mrb[208].mxu1 %v10771_v63 }
 0x40a   :  { %4063 = vmatprep.mubr.bf16.mxu1 %v10772_v56  ;;  %v10855_v56 = vld [vmem:[#allocation11 + $0x1a8] ss:$16 sps:$4 sm:$0xff]  }
 0x40b   :  { %v12979_v58 = vpop.f32.mrb[68].mxu0 }
 0x40c   :  { %v3507_v1 = vpop.f32.mrb[69].mxu0 }
 0x40d   :  { %v12981_v19 = vpop.f32.mrb[70].mxu0 }
 0x40e   :  { %v3510_v61 = vpop.f32.mrb[71].mxu0 }
 0x40f   :  { %v10885_v61 = vld [vmem:[#allocation11 + $0x248] ss:$16 sps:$4 sm:$0xff]  }
 0x411   :  { %4064 = vmatmul.mubr.bf16.gmra.mrb[212].mxu1 %v10774_v32 }
 0x412   :  { %4104 = vmatprep.mubr.bf16.mxu1 %v10780_v4 }
 0x413   :  { %v12983_v0 = vpop.f32.mrb[72].mxu0 }
 0x414   :  { %v3515_v63 = vpop.f32.mrb[73].mxu0 }
 0x415   :  { %v12985_v11 = vpop.f32.mrb[74].mxu0 }
 0x416   :  { %v3518_v32 = vpop.f32.mrb[75].mxu0 }
 0x419   :  { %4105 = vmatmul.mubr.bf16.vlgmr.msra.gmra.mrb[216].mxu1 %v10778_v47 }
 0x41a   :  { %4112 = vmatprep.mubr.bf16.mxu1 %v10783_v17  ;;  %v10861_v17 = vld [vmem:[#allocation11 + $0x1c8] ss:$16 sps:$4 sm:$0xff]  }
 0x41b   :  { %v12987_v4 = vpop.f32.mrb[76].mxu0 }
 0x41c   :  { %v3523_v50 = vpop.f32.mrb[77].mxu0 }
 0x41d   :  { %v12991_v22 = vpop.f32.mrb[78].mxu0 }
 0x421   :  { %4113 = vmatmul.mubr.bf16.gmra.mrb[220].mxu1 %v10786_v62  ;;  %v10869_v62 = vld [vmem:[#allocation11 + $0x1ec] ss:$16 sps:$4 sm:$0xff]  }
 0x422   :  { %4120 = vmatprep.mubr.bf16.mxu1 %v10789_v13  ;;  %v3526_v13 = vpop.f32.mrb[79].mxu0 }
 0x423   :  { %v12995_v14 = vpop.f32.mrb[80].mxu0 }
 0x429   :  { %4121 = vmatmul.mubr.bf16.gmra.mrb[224].mxu1 %v10792_v60  ;;  %v3531_v60 = vpop.f32.mrb[81].mxu0 }
 0x42a   :  { %4128 = vmatprep.mubr.bf16.mxu1 %v10795_v34 }
 0x431   :  { %4129 = vmatmul.mubr.bf16.gmra.mrb[228].mxu1 %v10798_v29  ;;  %v12999_v29 = vpop.f32.mrb[82].mxu0 }
 0x432   :  { %4136 = vmatprep.mubr.bf16.mxu1 %v10801_v26  ;;  %v3534_v12 = vpop.f32.mrb[83].mxu0 }
 0x439   :  { %4137 = vmatmul.mubr.bf16.gmra.mrb[232].mxu1 %v10804_v16 }
 0x43a   :  { %4144 = vmatprep.mubr.bf16.mxu1 %v10807_v52  ;;  %v13003_v52 = vpop.f32.mrb[84].mxu0 }
 0x43b   :  { %v3539_v33 = vpop.f32.mrb[85].mxu0 }
 0x43c   :  { %v13007_v28 = vpop.f32.mrb[86].mxu0 }
 0x441   :  { %4145 = vmatmul.mubr.bf16.gmra.mrb[236].mxu1 %v10810_v54 }
 0x442   :  { %4152 = vmatprep.mubr.bf16.mxu1 %v10813_v35  ;;  %v10873_v35 = vld [vmem:[#allocation11 + $0x208] ss:$16 sps:$4 sm:$0xff]  }
 0x449   :  { %4153 = vmatmul.mubr.bf16.gmra.mrb[240].mxu1 %v10816_v15  ;;  %v10881_v15 = vld [vmem:[#allocation11 + $0x22c] ss:$16 sps:$4 sm:$0xff]  }
 0x44a   :  { %4160 = vmatprep.mubr.bf16.mxu1 %v10819_v41  ;;  %v3542_v41 = vpop.f32.mrb[87].mxu0 }
 0x451   :  { %4161 = vmatmul.mubr.bf16.gmra.mrb[244].mxu1 %v10822_v59 }
 0x452   :  { %4168 = vmatprep.mubr.bf16.mxu1 %v10825_v43  ;;  %v13011_v43 = vpop.f32.mrb[88].mxu0 }
 0x459   :  { %4169 = vmatmul.mubr.bf16.gmra.mrb[248].mxu1 %v10828_v5  ;;  %v3547_v5 = vpop.f32.mrb[89].mxu0 }
 0x45a   :  { %4176 = vmatprep.mubr.bf16.mxu1 %v10831_v21  ;;  %v10905_v5 = vld [vmem:[#allocation11 + $0x2ac] ss:$16 sps:$4 sm:$0xff]  }
 0x461   :  { %4177 = vmatmul.mubr.bf16.gmra.mrb[252].mxu1 %v10834_v9 }
 0x462   :  { %4184 = vmatprep.mubr.bf16.mxu1 %v10839_v31  ;;  %v10879_v31 = vld [vmem:[#allocation11 + $0x228] ss:$16 sps:$4 sm:$0xff]  }
 0x469   :  { %4185 = vmatmul.mubr.bf16.gmra.mrb[0].mxu1 %v10837_v18  ;;  %v13015_v18 = vpop.f32.mrb[90].mxu0 }
 0x46a   :  { %4192 = vmatprep.mubr.bf16.mxu1 %v10845_v23 }
 0x471   :  { %4193 = vmatmul.mubr.bf16.gmra.mrb[4].mxu1 %v10843_v49  ;;  %v3550_v49 = vpop.f32.mrb[91].mxu0 }
 0x472   :  { %4200 = vmatprep.mubr.bf16.mxu1 %v10851_v51  ;;  %v13019_v55 = vpop.f32.mrb[92].mxu0 }
 0x473   :  { %v3555_v1 = vpop.f32.mrb[93].mxu0 }
 0x474   :  { %v13023_v63 = vpop.f32.mrb[94].mxu0 }
 0x475   :  { %v3558_v32 = vpop.f32.mrb[95].mxu0 }
 0x479   :  { %4201 = vmatmul.mubr.bf16.gmra.mrb[8].mxu1 %v10849_v3 }
 0x47a   :  { %4208 = vmatprep.mubr.bf16.mxu1 %v10857_v6 }
 0x481   :  { %4209 = vmatmul.mubr.bf16.gmra.mrb[12].mxu1 %v10855_v56 }
 0x482   :  { %4216 = vmatprep.mubr.bf16.mxu1 %v10863_v7  ;;  %v10893_v7 = vld [vmem:[#allocation11 + $0x26c] ss:$16 sps:$4 sm:$0xff]  }
 0x484   :  { %v12989_v53 = vpop.f32.mrb[164].mxu1 }
 0x485   :  { %v3971_v47 = vpop.f32.mrb[165].mxu1 }
 0x486   :  { %v12993_v42 = vpop.f32.mrb[166].mxu1  ;;  %v13027_v47 = vpop.f32.mrb[96].mxu0 }
 0x487   :  { %v3974_v27 = vpop.f32.mrb[167].mxu1 }
 0x488   :  { %v10891_v27 = vld [vmem:[#allocation11 + $0x268] ss:$16 sps:$4 sm:$0xff]  }
 0x489   :  { %4217 = vmatmul.mubr.bf16.gmra.mrb[164].mxu1 %v10861_v17  ;;  %v3563_v17 = vpop.f32.mrb[97].mxu0 }
 0x48a   :  { %4224 = vmatprep.mubr.bf16.mxu1 %v10869_v62  ;;  %v13031_v60 = vpop.f32.mrb[98].mxu0  ;;  %v10907_v17 = vld [vmem:[#allocation11 + $0x2cc] ss:$16 sps:$4 sm:$0xff]  }
 0x48c   :  { %v12997_v34 = vpop.f32.mrb[168].mxu1 }
 0x48d   :  { %v3979_v46 = vpop.f32.mrb[169].mxu1 }
 0x48e   :  { %v13001_v26 = vpop.f32.mrb[170].mxu1 }
 0x48f   :  { %v3982_v16 = vpop.f32.mrb[171].mxu1 }
 0x491   :  { %4225 = vmatmul.mubr.bf16.gmra.mrb[168].mxu1 %v10867_v40  ;;  %v10899_v40 = vld [vmem:[#allocation11 + $0x28c] ss:$16 sps:$4 sm:$0xff]  }
 0x492   :  { %4232 = vmatprep.mubr.bf16.mxu1 %v10875_v44  ;;  %v3566_v44 = vpop.f32.mrb[99].mxu0 }
 0x493   :  { %v13035_v16 = vpop.f32.mrb[100].mxu0 }
 0x494   :  { %v13005_v57 = vpop.f32.mrb[172].mxu1 }
 0x495   :  { %13760 = vst [vmem:[#allocation48_spill] sm:$0xff] %v13005_v57  ;;  %v3987_v54 = vpop.f32.mrb[173].mxu1 }
 0x496   :  { %v13009_v37 = vpop.f32.mrb[174].mxu1  ;;  %v3571_v54 = vpop.f32.mrb[101].mxu0 }
 0x497   :  { %13761 = vst [vmem:[#allocation49_spill] sm:$0xff] %v13009_v37  ;;  %v3990_v59 = vpop.f32.mrb[175].mxu1  ;;  %v13039_v41 = vpop.f32.mrb[102].mxu0 }
 0x499   :  { %4233 = vmatmul.mubr.bf16.gmra.mrb[172].mxu1 %v10873_v35 }
 0x49a   :  { %4240 = vmatprep.mubr.bf16.mxu1 %v10881_v15  ;;  %v10897_v15 = vld [vmem:[#allocation11 + $0x288] ss:$16 sps:$4 sm:$0xff]  }
 0x49c   :  { %v13013_v21 = vpop.f32.mrb[176].mxu1 }
 0x49d   :  { %13762 = vst [vmem:[#allocation50_spill] sm:$0xff] %v13013_v21  ;;  %v3995_v9 = vpop.f32.mrb[177].mxu1  ;;  %v10940_v21 = vld [vmem:[#allocation11 + $0x42c] ss:$16 sps:$4 sm:$0xff]  }
 0x49e   :  { %v13017_v23 = vpop.f32.mrb[178].mxu1  ;;  %v9110_v9 = vld [vmem:[%s13704_s9 + $0x2] sm:$0x3] }
 0x49f   :  { %13763 = vst [vmem:[#allocation51_spill] sm:$0xff] %v13017_v23  ;;  %v3998_v51 = vpop.f32.mrb[179].mxu1  ;;  %10524 = vmatprep.subr.msk.bf16.mxu0 %vm625_vm1, %v9110_v9  ;;  %v4726_v49 = vsel %vm625_vm1, %v9110_v9, 0 }
 0x4a0   :  { %9673 = vmatpush3.bf16.msra.mxu0 %v4726_v49  ;;  %v10913_v49 = vld [vmem:[#allocation11 + $0x30c] ss:$16 sps:$4 sm:$0xff]  }
 0x4a1   :  { %4241 = vmatmul.mubr.bf16.gmra.mrb[176].mxu1 %v10879_v31  ;;  %v3574_v31 = vpop.f32.mrb[103].mxu0 }
 0x4a2   :  { %4248 = vmatprep.mubr.bf16.mxu1 %v10887_v48  ;;  %v13048_v51 = vpop.f32.mrb[104].mxu0  ;;  %v10912_v31 = vld [vmem:[#allocation11 + $0x2e8] ss:$16 sps:$4 sm:$0xff]  }
 0x4a4   :  { %v13021_v3 = vpop.f32.mrb[180].mxu1 }
 0x4a5   :  { %13764 = vst [vmem:[#allocation52_spill] sm:$0xff] %v13021_v3  ;;  %v4003_v6 = vpop.f32.mrb[181].mxu1  ;;  %v10937_v3 = vld [vmem:[#allocation11 + $0x40c] ss:$16 sps:$4 sm:$0xff]  }
 0x4a6   :  { %v13025_v56 = vpop.f32.mrb[182].mxu1  ;;  %v3579_v6 = vpop.f32.mrb[105].mxu0 }
 0x4a7   :  { %13765 = vst [vmem:[#allocation53_spill] sm:$0xff] %v13025_v56  ;;  %v4006_v50 = vpop.f32.mrb[183].mxu1  ;;  %v13052_v32 = vpop.f32.mrb[106].mxu0 }
 0x4a9   :  { %4249 = vmatmul.mubr.bf16.gmra.mrb[180].mxu1 %v10885_v61 }
 0x4aa   :  { %4256 = vmatprep.mubr.bf16.mxu1 %v10893_v7  ;;  %v10903_v7 = vld [vmem:[#allocation11 + $0x2a8] ss:$16 sps:$4 sm:$0xff]  }
 0x4ac   :  { %v13029_v62 = vpop.f32.mrb[184].mxu1 }
 0x4ad   :  { %13766 = vst [vmem:[#allocation54_spill] sm:$0xff] %v13029_v62  ;;  %v4011_v13 = vpop.f32.mrb[185].mxu1  ;;  %v10934_v62 = vld [vmem:[#allocation11 + $0x3ec] ss:$16 sps:$4 sm:$0xff]  }
 0x4ae   :  { %v13033_v46 = vpop.f32.mrb[186].mxu1  ;;  %v3582_v13 = vpop.f32.mrb[107].mxu0 }
 0x4af   :  { %13767 = vst [vmem:[#allocation55_spill] sm:$0xff] %v13033_v46  ;;  %v4014_v12 = vpop.f32.mrb[187].mxu1 }
 0x4b0   :  { %v10909_v12 = vld [vmem:[#allocation11 + $0x2c8] ss:$16 sps:$4 sm:$0xff]  }
 0x4b1   :  { %4257 = vmatmul.mubr.bf16.gmra.mrb[184].mxu1 %v10891_v27 }
 0x4b2   :  { %4264 = vmatprep.mubr.bf16.mxu1 %v10899_v40  ;;  %v13056_v40 = vpop.f32.mrb[108].mxu0 }
 0x4b3   :  { %v3587_v44 = vpop.f32.mrb[109].mxu0 }
 0x4b4   :  { %v13037_v33 = vpop.f32.mrb[188].mxu1  ;;  %v13058_v54 = vpop.f32.mrb[110].mxu0 }
 0x4b5   :  { %13768 = vst [vmem:[#allocation56_spill] sm:$0xff] %v13037_v33  ;;  %v4019_v35 = vpop.f32.mrb[189].mxu1  ;;  %v10931_v33 = vld [vmem:[#allocation11 + $0x3cc] ss:$16 sps:$4 sm:$0xff]  }
 0x4b6   :  { %v13041_v59 = vpop.f32.mrb[190].mxu1  ;;  %v10910_v35 = vld [vmem:[#allocation11 + $0x2ec] ss:$16 sps:$4 sm:$0xff]  }
 0x4b7   :  { %13769 = vst [vmem:[#allocation57_spill] sm:$0xff] %v13041_v59  ;;  %v4022_v48 = vpop.f32.mrb[191].mxu1 }
 0x4b9   :  { %4265 = vmatmul.mubr.bf16.gmra.mrb[188].mxu1 %v10897_v15  ;;  %v3590_v15 = vpop.f32.mrb[111].mxu0 }
 0x4ba   :  { %4272 = vmatprep.mubr.bf16.mxu1 %v10905_v5  ;;  %v13060_v5 = vpop.f32.mrb[112].mxu0 }
 0x4bb   :  { %v3595_v9 = vpop.f32.mrb[113].mxu0 }
 0x4bc   :  { %v13050_v1 = vpop.f32.mrb[192].mxu1  ;;  %v13062_v48 = vpop.f32.mrb[114].mxu0  ;;  %v10919_v9 = vld [vmem:[#allocation11 + $0x34c] ss:$16 sps:$4 sm:$0xff]  }
 0x4bd   :  { %13770 = vst [vmem:[#allocation58_spill] sm:$0xff] %v13050_v1  ;;  %v4027_v61 = vpop.f32.mrb[193].mxu1  ;;  %v3598_v6 = vpop.f32.mrb[115].mxu0 }
 0x4be   :  { %v13054_v50 = vpop.f32.mrb[194].mxu1  ;;  %v13064_v61 = vpop.f32.mrb[116].mxu0 }
 0x4bf   :  { %13771 = vst [vmem:[#allocation59_spill] sm:$0xff] %v13054_v50  ;;  %v4030_v27 = vpop.f32.mrb[195].mxu1 }
 0x4c0   :  { %v10916_v27 = vld [vmem:[#allocation11 + $0x32c] ss:$16 sps:$4 sm:$0xff]  }
 0x4c1   :  { %4273 = vmatmul.mubr.bf16.gmra.mrb[192].mxu1 %v10903_v7  ;;  %v3603_v7 = vpop.f32.mrb[117].mxu0 }
 0x4c2   :  { %4280 = vmatprep.mubr.bf16.mxu1 %v10907_v17  ;;  %v10915_v17 = vld [vmem:[#allocation11 + $0x308] ss:$16 sps:$4 sm:$0xff]   ;;  %v13066_v13 = vpop.f32.mrb[118].mxu0 }
 0x4c3   :  { %v3606_v44 = vpop.f32.mrb[119].mxu0 }
 0x4c9   :  { %4281 = vmatmul.mubr.bf16.gmra.mrb[16].mxu1 %v10909_v12  ;;  %v13068_v12 = vpop.f32.mrb[120].mxu0 }
 0x4ca   :  { %4288 = vmatprep.mubr.bf16.mxu1 %v10910_v35  ;;  %v10918_v35 = vld [vmem:[#allocation11 + $0x328] ss:$16 sps:$4 sm:$0xff]   ;;  %v3611_v15 = vpop.f32.mrb[121].mxu0 }
 0x4cb   :  { %v13070_v36 = vpop.f32.mrb[122].mxu0 }
 0x4cc   :  { %v3614_v6 = vpop.f32.mrb[123].mxu0 }
 0x4cd   :  { %v10924_v6 = vld [vmem:[#allocation11 + $0x368] ss:$16 sps:$4 sm:$0xff]  }
 0x4d1   :  { %4289 = vmatmul.mubr.bf16.gmra.mrb[20].mxu1 %v10912_v31  ;;  %v13072_v31 = vpop.f32.mrb[124].mxu0 }
 0x4d2   :  { %4296 = vmatprep.mubr.bf16.mxu1 %v10913_v49  ;;  %v10921_v49 = vld [vmem:[#allocation11 + $0x348] ss:$16 sps:$4 sm:$0xff]   ;;  %v3619_v7 = vpop.f32.mrb[125].mxu0 }
 0x4d3   :  { %v13074_v30 = vpop.f32.mrb[126].mxu0  ;;  %v13086_v7 = vld [vmem:[%s13704_s9] sm:$0x3] }
 0x4d4   :  { %v3622_v44 = vpop.f32.mrb[127].mxu0  ;;  %10525 = vmatprep.subr.msk.bf16.mxu0 %vm625_vm1, %v13086_v7 }
 0x4d9   :  { %4297 = vmatmul.mubr.bf16.gmra.mrb[24].mxu1 %v10915_v17 }
 0x4da   :  { %4304 = vmatprep.mubr.bf16.mxu1 %v10916_v27  ;;  %v13076_v27 = vpop.f32.mrb[128].mxu0 }
 0x4e1   :  { %4305 = vmatmul.mubr.bf16.gmra.mrb[28].mxu1 %v10918_v35  ;;  %v3627_v35 = vpop.f32.mrb[129].mxu0 }
 0x4e2   :  { %4312 = vmatprep.mubr.bf16.mxu1 %v10919_v9  ;;  %v13081_v10 = vpop.f32.mrb[130].mxu0 }
 0x4e9   :  { %4313 = vmatmul.mubr.bf16.gmra.mrb[32].mxu1 %v10921_v49 }
 0x4ea   :  { %4320 = vmatprep.mubr.bf16.mxu1 %v10922_v2 }
 0x4ec   :  { %v4106_v17 = vpop.f32.mrb[216].mxu1 }
 0x4ed   :  { %v13079_v15 = vadd.f32 %v4106_v17, %v12975_v45  ;;  %v4108_v39 = vpop.f32.mrb[217].mxu1  ;;  %v3630_v45 = vpop.f32.mrb[131].mxu0 }
 0x4ee   :  { %v4109_v9 = vpop.f32.mrb[218].mxu1  ;;  %v13095_v17 = vpop.f32.mrb[132].mxu0 }
 0x4ef   :  { %v13089_v2 = vadd.f32 %v4109_v9, %v12977_v38  ;;  %v4111_v49 = vpop.f32.mrb[219].mxu1  ;;  %v3635_v38 = vpop.f32.mrb[133].mxu0 }
 0x4f0   :  { %v10928_v49 = vld [vmem:[#allocation11 + $0x3ac] ss:$16 sps:$4 sm:$0xff]   ;;  %v13100_v25 = vpop.f32.mrb[134].mxu0  ;;  %v10930_v38 = vld [vmem:[#allocation11 + $0x3a8] ss:$16 sps:$4 sm:$0xff]  }
 0x4f1   :  { %4321 = vmatmul.mubr.bf16.gmra.mrb[36].mxu1 %v10924_v6  ;;  %v3638_v39 = vpop.f32.mrb[135].mxu0 }
 0x4f2   :  { %4328 = vmatprep.mubr.bf16.mxu1 %v10925_v20 }
 0x4f4   :  { %v4114_v44 = vpop.f32.mrb[220].mxu1 }
 0x4f5   :  { %v13098_v35 = vadd.f32 %v4114_v44, %v12979_v58  ;;  %v4116_v8 = vpop.f32.mrb[221].mxu1  ;;  %v13107_v58 = vpop.f32.mrb[136].mxu0 }
 0x4f6   :  { %v4117_v9 = vpop.f32.mrb[222].mxu1  ;;  %v3643_v1 = vpop.f32.mrb[137].mxu0 }
 0x4f7   :  { %v13103_v45 = vadd.f32 %v4117_v9, %v12981_v19  ;;  %v4119_v50 = vpop.f32.mrb[223].mxu1  ;;  %v13112_v19 = vpop.f32.mrb[138].mxu0 }
 0x4f8   :  { %v3646_v9 = vpop.f32.mrb[139].mxu0 }
 0x4f9   :  { %4329 = vmatmul.mubr.bf16.gmra.mrb[40].mxu1 %v10927_v24 }
 0x4fa   :  { %4336 = vmatprep.mubr.bf16.mxu1 %v10928_v49 }
 0x4fc   :  { %v4122_v6 = vpop.f32.mrb[224].mxu1 }
 0x4fd   :  { %v13110_v8 = vadd.f32 %v4122_v6, %v12983_v0  ;;  %v4124_v44 = vpop.f32.mrb[225].mxu1  ;;  %v13119_v0 = vpop.f32.mrb[140].mxu0 }
 0x4fe   :  { %v4125_v59 = vpop.f32.mrb[226].mxu1  ;;  %v10933_v44 = vld [vmem:[#allocation11 + $0x3c8] ss:$16 sps:$4 sm:$0xff]   ;;  %v3651_v20 = vpop.f32.mrb[141].mxu0 }
 0x4ff   :  { %v13115_v50 = vadd.f32 %v4125_v59, %v12985_v11  ;;  %v4127_v39 = vpop.f32.mrb[227].mxu1  ;;  %v13124_v11 = vpop.f32.mrb[142].mxu0 }
 0x500   :  { %v3654_v9 = vpop.f32.mrb[143].mxu0 }
 0x501   :  { %4337 = vmatmul.mubr.bf16.gmra.mrb[44].mxu1 %v10930_v38 }
 0x502   :  { %4344 = vmatprep.mubr.bf16.mxu1 %v10931_v33 }
 0x504   :  { %v4130_v49 = vpop.f32.mrb[228].mxu1 }
 0x505   :  { %v13122_v6 = vadd.f32 %v4130_v49, %v12987_v4  ;;  %v4132_v1 = vpop.f32.mrb[229].mxu1  ;;  %v13131_v4 = vpop.f32.mrb[144].mxu0 }
 0x506   :  { %v4133_v46 = vpop.f32.mrb[230].mxu1  ;;  %v10936_v1 = vld [vmem:[#allocation11 + $0x3e8] ss:$16 sps:$4 sm:$0xff]   ;;  %v3659_v24 = vpop.f32.mrb[145].mxu0 }
 0x507   :  { %v13127_v59 = vadd.f32 %v4133_v46, %v12991_v22  ;;  %v4135_v39 = vpop.f32.mrb[231].mxu1  ;;  %v13136_v22 = vpop.f32.mrb[146].mxu0 }
 0x508   :  { %v3662_v9 = vpop.f32.mrb[147].mxu0 }
 0x509   :  { %4345 = vmatmul.mubr.bf16.gmra.mrb[48].mxu1 %v10933_v44 }
 0x50a   :  { %4352 = vmatprep.mubr.bf16.mxu1 %v10934_v62  ;;  %v10943_v62 = vld [vmem:[#allocation11 + $0x44c] ss:$16 sps:$4 sm:$0xff]  }
 0x50c   :  { %v4138_v38 = vpop.f32.mrb[232].mxu1 }
 0x50d   :  { %v13134_v49 = vadd.f32 %v4138_v38, %v12995_v14  ;;  %v4140_v20 = vpop.f32.mrb[233].mxu1  ;;  %v13143_v14 = vpop.f32.mrb[148].mxu0 }
 0x50e   :  { %v4141_v56 = vpop.f32.mrb[234].mxu1  ;;  %v10939_v20 = vld [vmem:[#allocation11 + $0x408] ss:$16 sps:$4 sm:$0xff]   ;;  %v3667_v33 = vpop.f32.mrb[149].mxu0 }
 0x50f   :  { %v13139_v46 = vadd.f32 %v4141_v56, %v12999_v29  ;;  %v4143_v39 = vpop.f32.mrb[235].mxu1  ;;  %v13148_v29 = vpop.f32.mrb[150].mxu0  ;;  %v10942_v33 = vld [vmem:[#allocation11 + $0x428] ss:$16 sps:$4 sm:$0xff]  }
 0x510   :  { %v3670_v9 = vpop.f32.mrb[151].mxu0 }
 0x511   :  { %4353 = vmatmul.mubr.bf16.gmra.mrb[52].mxu1 %v10936_v1 }
 0x512   :  { %4360 = vmatprep.mubr.bf16.mxu1 %v10937_v3 }
 0x514   :  { %v4146_v44 = vpop.f32.mrb[236].mxu1 }
 0x515   :  { %v13146_v38 = vadd.f32 %v4146_v44, %v13003_v52  ;;  %v4148_v24 = vpop.f32.mrb[237].mxu1 }
 0x516   :  { %v4149_v23 = vpop.f32.mrb[238].mxu1 }
 0x517   :  { %v13151_v56 = vadd.f32 %v4149_v23, %v13007_v28  ;;  %v4151_v39 = vpop.f32.mrb[239].mxu1 }
 0x519   :  { %4361 = vmatmul.mubr.bf16.gmra.mrb[56].mxu1 %v10939_v20 }
 0x51a   :  { %4368 = vmatprep.mubr.bf16.mxu1 %v10940_v21 }
 0x51c   :  { %v4154_v1 = vpop.f32.mrb[240].mxu1 }
 0x51d   :  { %v13156_v52 = vadd.f32 %v4154_v1, %v13011_v43  ;;  %v4156_v44 = vpop.f32.mrb[241].mxu1  ;;  %v10945_v43 = vld [vmem:[#allocation11 + $0x448] ss:$16 sps:$4 sm:$0xff]   ;;  %v10946_v1 = vld [vmem:[#allocation11 + $0x46c] ss:$16 sps:$4 sm:$0xff]  }
 0x51e   :  { %v4157_v24 = vpop.f32.mrb[242].mxu1 }
 0x51f   :  { %v13159_v37 = vadd.f32 %v4157_v24, %v13015_v18  ;;  %v4159_v28 = vpop.f32.mrb[243].mxu1 }
 0x520   :  { %v10948_v28 = vld [vmem:[#allocation11 + $0x468] ss:$16 sps:$4 sm:$0xff]  }
 0x521   :  { %4369 = vmatmul.mubr.bf16.gmra.mrb[60].mxu1 %v10942_v33 }
 0x522   :  { %4376 = vmatprep.mubr.bf16.mxu1 %v10943_v62 }
 0x524   :  { %v4162_v39 = vpop.f32.mrb[244].mxu1 }
 0x525   :  { %v13164_v21 = vadd.f32 %v4162_v39, %v13019_v55  ;;  %v4164_v20 = vpop.f32.mrb[245].mxu1  ;;  %v10949_v39 = vld [vmem:[#allocation11 + $0x48c] ss:$16 sps:$4 sm:$0xff]  }
 0x526   :  { %v4165_v9 = vpop.f32.mrb[246].mxu1 }
 0x527   :  { %v13167_v44 = vadd.f32 %v4165_v9, %v13023_v63  ;;  %v4167_v3 = vpop.f32.mrb[247].mxu1  ;;  %v10951_v9 = vld [vmem:[#allocation11 + $0x488] ss:$16 sps:$4 sm:$0xff]  }
 0x529   :  { %4377 = vmatmul.mubr.bf16.gmra.mrb[64].mxu1 %v10945_v43 }
 0x52a   :  { %4384 = vmatprep.mubr.bf16.mxu1 %v10946_v1 }
 0x52c   :  { %v4170_v24 = vpop.f32.mrb[248].mxu1 }
 0x52d   :  { %v4171_v62 = vadd.f32 %v4170_v24, %v13027_v47  ;;  %v4172_v33 = vpop.f32.mrb[249].mxu1  ;;  %v10952_v47 = vld [vmem:[#allocation11 + $0x4ac] ss:$16 sps:$4 sm:$0xff]  }
 0x52e   :  { %v4173_v55 = vpop.f32.mrb[250].mxu1 }
 0x52f   :  { %v4174_v20 = vadd.f32 %v4173_v55, %v13031_v60  ;;  %v4175_v23 = vpop.f32.mrb[251].mxu1  ;;  %v4850_v60 = vsel %vm625_vm1, %v13086_v7, 0  ;;  %v10955_v55 = vld [vmem:[#allocation11 + $0x4cc] ss:$16 sps:$4 sm:$0xff]  }
 0x531   :  { %v4692_v57 = vpack.c.bf16 %v4174_v20, %v4171_v62  ;;  %4385 = vmatmul.mubr.bf16.gmra.mrb[68].mxu1 %v10948_v28 }
 0x532   :  { %4392 = vmatprep.mubr.bf16.mxu1 %v10949_v39 }
 0x533   :  { %9674 = vmatprep.mubr.msk.bf16.mxu0 %vm4700_vm4, %v4692_v57  ;;  %v13181_v57 = vld [vmem:[%s13704_s9 + $0x4] sm:$0x3] }
 0x534   :  { %v4178_v63 = vpop.f32.mrb[252].mxu1 }
 0x535   :  { %v4179_v3 = vadd.f32 %v4178_v63, %v13035_v16  ;;  %v4180_v43 = vpop.f32.mrb[253].mxu1 }
 0x536   :  { %v4181_v1 = vpop.f32.mrb[254].mxu1 }
 0x537   :  { %v4182_v24 = vadd.f32 %v4181_v1, %v13039_v41  ;;  %v4183_v33 = vpop.f32.mrb[255].mxu1  ;;  %v10954_v41 = vld [vmem:[#allocation11 + $0x4a8] ss:$16 sps:$4 sm:$0xff]  }
 0x539   :  { %v4693_v18 = vpack.c.bf16 %v4182_v24, %v4179_v3  ;;  %4393 = vmatmul.mubr.bf16.gmra.mrb[72].mxu1 %v10951_v9  ;;  %v10958_v9 = vld [vmem:[#allocation11 + $0x4ec] ss:$16 sps:$4 sm:$0xff]  }
 0x53a   :  { %4400 = vmatprep.mubr.bf16.mxu1 %v10952_v47 }
 0x53b   :  { %9675 = vmatmul.mubr.msk.bf16.vlgmr.msra.gmra.mrb[152].mxu0 %vm4700_vm4, %v4693_v18 }
 0x53c   :  { %v4186_v16 = vpop.f32.mrb[0].mxu1  ;;  %9691 = vmatpush3.bf16.msra.mxu0 %v4850_v60 }
 0x53d   :  { %v4187_v23 = vadd.f32 %v4186_v16, %v13048_v51  ;;  %v4188_v62 = vpop.f32.mrb[1].mxu1  ;;  %10526 = vmatprep.subr.msk.bf16.mxu0 %vm625_vm1, %v13181_v57  ;;  %v10957_v51 = vld [vmem:[#allocation11 + $0x4c8] ss:$16 sps:$4 sm:$0xff]  }
 0x53e   :  { %v4189_v28 = vpop.f32.mrb[2].mxu1  ;;  %v10960_v16 = vld [vmem:[#allocation11 + $0x4e8] ss:$16 sps:$4 sm:$0xff]   ;;  %v10961_v62 = vld [vmem:[#allocation11 + $0x50c] ss:$16 sps:$4 sm:$0xff]  }
 0x53f   :  { %v4190_v7 = vadd.f32 %v4189_v28, %v13052_v32  ;;  %v4191_v39 = vpop.f32.mrb[3].mxu1 }
 0x540   :  { %v10963_v39 = vld [vmem:[#allocation11 + $0x508] ss:$16 sps:$4 sm:$0xff]  }
 0x541   :  { %v4694_v20 = vpack.c.bf16 %v4190_v7, %v4187_v23  ;;  %4401 = vmatmul.mubr.bf16.gmra.mrb[76].mxu1 %v10954_v41 }
 0x542   :  { %4408 = vmatprep.mubr.bf16.mxu1 %v10955_v55 }
 0x543   :  { %9678 = vmatprep.mubr.msk.bf16.mxu0 %vm4700_vm4, %v4694_v20 }
 0x544   :  { %v4194_v18 = vpop.f32.mrb[4].mxu1 }
 0x545   :  { %v4195_v63 = vadd.f32 %v4194_v18, %v13056_v40  ;;  %v4196_v3 = vpop.f32.mrb[5].mxu1  ;;  %v10964_v18 = vld [vmem:[#allocation11 + $0x52c] ss:$16 sps:$4 sm:$0xff]  }
 0x546   :  { %v4197_v43 = vpop.f32.mrb[6].mxu1 }
 0x547   :  { %v4198_v1 = vadd.f32 %v4197_v43, %v13058_v54  ;;  %v4199_v47 = vpop.f32.mrb[7].mxu1 }
 0x548   :  { %v10967_v47 = vld [vmem:[#allocation11 + $0x54c] ss:$16 sps:$4 sm:$0xff]  }
 0x549   :  { %v4695_v24 = vpack.c.bf16 %v4198_v1, %v4195_v63  ;;  %4409 = vmatmul.mubr.bf16.gmra.mrb[80].mxu1 %v10957_v51 }
 0x54a   :  { %4416 = vmatprep.mubr.bf16.mxu1 %v10958_v9  ;;  %v10966_v9 = vld [vmem:[#allocation11 + $0x528] ss:$16 sps:$4 sm:$0xff]  }
 0x54b   :  { %9679 = vmatmul.mubr.msk.bf16.gmra.mrb[156].mxu0 %vm4700_vm4, %v4695_v24 }
 0x54c   :  { %v4202_v32 = vpop.f32.mrb[8].mxu1 }
 0x54d   :  { %v4203_v33 = vadd.f32 %v4202_v32, %v13060_v5  ;;  %v4204_v60 = vpop.f32.mrb[9].mxu1 }
 0x54e   :  { %v4205_v23 = vpop.f32.mrb[10].mxu1 }
 0x54f   :  { %v4206_v40 = vadd.f32 %v4205_v23, %v13062_v48  ;;  %v4207_v41 = vpop.f32.mrb[11].mxu1 }
 0x551   :  { %v4696_v28 = vpack.c.bf16 %v4206_v40, %v4203_v33  ;;  %4417 = vmatmul.mubr.bf16.gmra.mrb[84].mxu1 %v10960_v16  ;;  %v10969_v16 = vld [vmem:[#allocation11 + $0x548] ss:$16 sps:$4 sm:$0xff]  }
 0x552   :  { %4424 = vmatprep.mubr.bf16.mxu1 %v10961_v62  ;;  %v10970_v62 = vld [vmem:[#allocation11 + $0x56c] ss:$16 sps:$4 sm:$0xff]  }
 0x553   :  { %9682 = vmatprep.mubr.msk.bf16.mxu0 %vm4700_vm4, %v4696_v28  ;;  %v13772_v28 = vpack.c.bf16 %v13089_v2, %v13079_v15  ;;  %v9136_v15 = vld [vmem:[%s13704_s9 + $0x6] sm:$0x3] }
 0x554   :  { %v4210_v54 = vpop.f32.mrb[12].mxu1 }
 0x555   :  { %v4211_v55 = vadd.f32 %v4210_v54, %v13064_v61  ;;  %v4212_v7 = vpop.f32.mrb[13].mxu1 }
 0x556   :  { %v4213_v20 = vpop.f32.mrb[14].mxu1 }
 0x557   :  { %v4214_v5 = vadd.f32 %v4213_v20, %v13066_v13  ;;  %v4215_v63 = vpop.f32.mrb[15].mxu1 }
 0x559   :  { %v4697_v3 = vpack.c.bf16 %v4214_v5, %v4211_v55  ;;  %4425 = vmatmul.mubr.bf16.gmra.mrb[88].mxu1 %v10963_v39  ;;  %v10972_v55 = vld [vmem:[#allocation11 + $0x568] ss:$16 sps:$4 sm:$0xff]   ;;  %v10973_v39 = vld [vmem:[#allocation11 + $0x58c] ss:$16 sps:$4 sm:$0xff]   ;;  %v4984_v5 = vsel %vm625_vm1, %v13181_v57, 0 }
 0x55a   :  { %4432 = vmatprep.mubr.bf16.mxu1 %v10964_v18 }
 0x55b   :  { %9683 = vmatmul.mubr.msk.bf16.gmra.mrb[160].mxu0 %vm4700_vm4, %v4697_v3  ;;  %v10975_v3 = vld [vmem:[#allocation11 + $0x588] ss:$16 sps:$4 sm:$0xff]  }
 0x55c   :  { %v4218_v48 = vpop.f32.mrb[164].mxu1 }
 0x55d   :  { %v4219_v51 = vadd.f32 %v4218_v48, %v13068_v12  ;;  %v4220_v43 = vpop.f32.mrb[165].mxu1 }
 0x55e   :  { %v4221_v1 = vpop.f32.mrb[166].mxu1 }
 0x55f   :  { %v4222_v61 = vadd.f32 %v4221_v1, %v13070_v36  ;;  %v4223_v24 = vpop.f32.mrb[167].mxu1 }
 0x561   :  { %v4698_v32 = vpack.c.bf16 %v4222_v61, %v4219_v51  ;;  %4433 = vmatmul.mubr.bf16.gmra.mrb[92].mxu1 %v10966_v9  ;;  %v10976_v51 = vld [vmem:[#allocation11 + $0x5ac] ss:$16 sps:$4 sm:$0xff]  }
 0x562   :  { %4440 = vmatprep.mubr.bf16.mxu1 %v10967_v47  ;;  %v10978_v47 = vld [vmem:[#allocation11 + $0x5a8] ss:$16 sps:$4 sm:$0xff]   ;;  %v10979_v61 = vld [vmem:[#allocation11 + $0x5cc] ss:$16 sps:$4 sm:$0xff]  }
 0x563   :  { %9686 = vmatprep.mubr.msk.bf16.mxu0 %vm4700_vm4, %v4698_v32 }
 0x564   :  { %v4226_v13 = vpop.f32.mrb[168].mxu1 }
 0x565   :  { %v4227_v33 = vadd.f32 %v4226_v13, %v13072_v31  ;;  %v4228_v60 = vpop.f32.mrb[169].mxu1 }
 0x566   :  { %v4229_v23 = vpop.f32.mrb[170].mxu1  ;;  %v10982_v60 = vld [vmem:[#allocation11 + $0x5ec] ss:$16 sps:$4 sm:$0xff]  }
 0x567   :  { %v4230_v12 = vadd.f32 %v4229_v23, %v13074_v30  ;;  %v4231_v40 = vpop.f32.mrb[171].mxu1 }
 0x568   :  { %v10985_v40 = vld [vmem:[#allocation11 + $0x60c] ss:$16 sps:$4 sm:$0xff]  }
 0x569   :  { %v4699_v41 = vpack.c.bf16 %v4230_v12, %v4227_v33  ;;  %4441 = vmatmul.mubr.bf16.gmra.mrb[96].mxu1 %v10969_v16  ;;  %v10981_v33 = vld [vmem:[#allocation11 + $0x5c8] ss:$16 sps:$4 sm:$0xff]  }
 0x56a   :  { %4448 = vmatprep.mubr.bf16.mxu1 %v10970_v62 }
 0x56b   :  { %9687 = vmatmul.mubr.msk.bf16.gmra.mrb[164].mxu0 %vm4700_vm4, %v4699_v41 }
 0x56c   :  { %v4234_v36 = vpop.f32.mrb[172].mxu1  ;;  %9692 = vmatprep.mubr.msk.bf16.mxu0 %vm4700_vm4, %v13772_v28  ;;  %v5134_v28 = vsel %vm625_vm1, %v9136_v15, 0 }
 0x56d   :  { %v4235_v31 = vadd.f32 %v4234_v36, %v13076_v27  ;;  %v4236_v54 = vpop.f32.mrb[173].mxu1  ;;  %v13773_v27 = vpack.c.bf16 %v13103_v45, %v13098_v35 }
 0x56e   :  { %v4237_v7 = vpop.f32.mrb[174].mxu1 }
 0x56f   :  { %v4238_v30 = vadd.f32 %v4237_v7, %v13081_v10  ;;  %v4239_v20 = vpop.f32.mrb[175].mxu1  ;;  %v13774_v10 = vpack.c.bf16 %v13115_v50, %v13110_v8  ;;  %v13775_v8 = vpack.c.bf16 %v13127_v59, %v13122_v6  ;;  %v13777_v6 = vpack.c.bf16 %v13151_v56, %v13146_v38 }
 0x570   :  { %v13779_v38 = vpack.c.bf16 %v13167_v44, %v13164_v21  ;;  %v9145_v21 = vld [vmem:[%s13704_s9 + $0x8] sm:$0x3] }
 0x571   :  { %v4951_v18 = vpack.c.bf16 %v4238_v30, %v4235_v31  ;;  %4449 = vmatmul.mubr.bf16.gmra.mrb[100].mxu1 %v10972_v55  ;;  %v10988_v55 = vld [vmem:[#allocation11 + $0x62c] ss:$16 sps:$4 sm:$0xff]  }
 0x572   :  { %4456 = vmatprep.mubr.bf16.mxu1 %v10973_v39 }
 0x573   :  { %9693 = vmatmul.mubr.msk.bf16.vlgmr.msra.gmra.mrb[152].mxu0 %vm4700_vm4, %v13773_v27 }
 0x574   :  { %v4242_v2 = vpop.f32.mrb[176].mxu1  ;;  %9696 = vmatprep.mubr.msk.bf16.mxu0 %vm4700_vm4, %v13774_v10  ;;  %9709 = vmatpush3.bf16.msra.mxu0 %v4984_v5  ;;  %v10990_v5 = vld [vmem:[#allocation11 + $0x628] ss:$16 sps:$4 sm:$0xff]  }
 0x575   :  { %v4243_v63 = vadd.f32 %v4242_v2, %v13095_v17  ;;  %v4244_v57 = vpop.f32.mrb[177].mxu1  ;;  %10527 = vmatprep.subr.msk.bf16.mxu0 %vm625_vm1, %v9136_v15  ;;  %v13776_v17 = vpack.c.bf16 %v13139_v46, %v13134_v49  ;;  %v13778_v49 = vpack.c.bf16 %v13159_v37, %v13156_v52  ;;  %v10984_v52 = vld [vmem:[#allocation11 + $0x5e8] ss:$16 sps:$4 sm:$0xff]   ;;  %v10991_v15 = vld [vmem:[#allocation11 + $0x64c] ss:$16 sps:$4 sm:$0xff]  }
 0x576   :  { %v4245_v48 = vpop.f32.mrb[178].mxu1 }
 0x577   :  { %v4246_v43 = vadd.f32 %v4245_v48, %v13100_v25  ;;  %v4247_v35 = vpop.f32.mrb[179].mxu1 }
 0x579   :  { %v4952_v45 = vpack.c.bf16 %v4246_v43, %v4243_v63  ;;  %4457 = vmatmul.mubr.bf16.gmra.mrb[104].mxu1 %v10975_v3  ;;  %v10993_v63 = vld [vmem:[#allocation11 + $0x648] ss:$16 sps:$4 sm:$0xff]   ;;  %v10994_v3 = vld [vmem:[#allocation11 + $0x66c] ss:$16 sps:$4 sm:$0xff]  }
 0x57a   :  { %4464 = vmatprep.mubr.bf16.mxu1 %v10976_v51 }
 0x57b   :  { %9697 = vmatmul.mubr.msk.bf16.gmra.mrb[156].mxu0 %vm4700_vm4, %v13775_v8 }
 0x57c   :  { %v4250_v50 = vpop.f32.mrb[180].mxu1  ;;  %9700 = vmatprep.mubr.msk.bf16.mxu0 %vm4700_vm4, %v13776_v17 }
 0x57d   :  { %v4251_v9 = vadd.f32 %v4250_v50, %v13107_v58  ;;  %v4252_v1 = vpop.f32.mrb[181].mxu1  ;;  %v10997_v50 = vld [vmem:[#allocation11 + $0x68c] ss:$16 sps:$4 sm:$0xff]  }
 0x57e   :  { %v4253_v25 = vpop.f32.mrb[182].mxu1 }
 0x57f   :  { %v4254_v24 = vadd.f32 %v4253_v25, %v13112_v19  ;;  %v4255_v32 = vpop.f32.mrb[183].mxu1  ;;  %v10999_v25 = vld [vmem:[#allocation11 + $0x688] ss:$16 sps:$4 sm:$0xff]  }
 0x581   :  { %v4953_v13 = vpack.c.bf16 %v4254_v24, %v4251_v9  ;;  %4465 = vmatmul.mubr.bf16.gmra.mrb[108].mxu1 %v10978_v47  ;;  %v11000_v24 = vld [vmem:[#allocation11 + $0x6ac] ss:$16 sps:$4 sm:$0xff]  }
 0x582   :  { %4472 = vmatprep.mubr.bf16.mxu1 %v10979_v61 }
 0x583   :  { %9701 = vmatmul.mubr.msk.bf16.gmra.mrb[160].mxu0 %vm4700_vm4, %v13777_v6  ;;  %v5284_v6 = vsel %vm625_vm1, %v9145_v21, 0 }
 0x584   :  { %v4258_v59 = vpop.f32.mrb[184].mxu1  ;;  %9704 = vmatprep.mubr.msk.bf16.mxu0 %vm4700_vm4, %v13778_v49 }
 0x585   :  { %v4259_v58 = vadd.f32 %v4258_v59, %v13119_v0  ;;  %v4260_v46 = vpop.f32.mrb[185].mxu1  ;;  %v13272_v59 = vld [vmem:[%s13704_s9 + $0xa] sm:$0x3] }
 0x586   :  { %v4261_v19 = vpop.f32.mrb[186].mxu1  ;;  %v11002_v46 = vld [vmem:[#allocation11 + $0x6a8] ss:$16 sps:$4 sm:$0xff]  }
 0x587   :  { %v4262_v16 = vadd.f32 %v4261_v19, %v13124_v11  ;;  %v4263_v23 = vpop.f32.mrb[187].mxu1  ;;  %v11003_v19 = vld [vmem:[#allocation11 + $0x6cc] ss:$16 sps:$4 sm:$0xff]  }
 0x589   :  { %v4954_v62 = vpack.c.bf16 %v4262_v16, %v4259_v58  ;;  %4473 = vmatmul.mubr.bf16.gmra.mrb[112].mxu1 %v10981_v33 }
 0x58a   :  { %4480 = vmatprep.mubr.bf16.mxu1 %v10982_v60 }
 0x58b   :  { %9705 = vmatmul.mubr.msk.bf16.gmra.mrb[164].mxu0 %vm4700_vm4, %v13779_v38  ;;  %v11005_v38 = vld [vmem:[#allocation11 + $0x6c8] ss:$16 sps:$4 sm:$0xff]  }
 0x58c   :  { %v4266_v37 = vpop.f32.mrb[188].mxu1  ;;  %9710 = vmatprep.mubr.msk.bf16.mxu0 %vm4700_vm4, %v4951_v18 }
 0x58d   :  { %v4267_v0 = vadd.f32 %v4266_v37, %v13131_v4  ;;  %v4268_v56 = vpop.f32.mrb[189].mxu1 }
 0x58e   :  { %v4269_v12 = vpop.f32.mrb[190].mxu1 }
 0x58f   :  { %v4270_v11 = vadd.f32 %v4269_v12, %v13136_v22  ;;  %v4271_v41 = vpop.f32.mrb[191].mxu1  ;;  %v10987_v22 = vld [vmem:[#allocation11 + $0x608] ss:$16 sps:$4 sm:$0xff]  }
 0x591   :  { %v4955_v36 = vpack.c.bf16 %v4270_v11, %v4267_v0  ;;  %4481 = vmatmul.mubr.bf16.gmra.mrb[116].mxu1 %v10984_v52  ;;  %v11006_v0 = vld [vmem:[#allocation11 + $0x6ec] ss:$16 sps:$4 sm:$0xff]   ;;  %v11008_v11 = vld [vmem:[#allocation11 + $0x6e8] ss:$16 sps:$4 sm:$0xff]  }
 0x592   :  { %4488 = vmatprep.mubr.bf16.mxu1 %v10985_v40 }
 0x593   :  { %9711 = vmatmul.mubr.msk.bf16.vlgmr.msra.gmra.mrb[152].mxu0 %vm4700_vm4, %v4952_v45  ;;  %v10996_v45 = vld [vmem:[#allocation11 + $0x668] ss:$16 sps:$4 sm:$0xff]  }
 0x594   :  { %v4274_v44 = vpop.f32.mrb[192].mxu1  ;;  %9714 = vmatprep.mubr.msk.bf16.mxu0 %vm4700_vm4, %v4953_v13  ;;  %9727 = vmatpush3.bf16.msra.mxu0 %v5134_v28 }
 0x595   :  { %v4275_v4 = vadd.f32 %v4274_v44, %v13143_v14  ;;  %v4276_v31 = vpop.f32.mrb[193].mxu1  ;;  %10528 = vmatprep.subr.msk.bf16.mxu0 %vm625_vm1, %v9145_v21 }
 0x596   :  { %v4277_v54 = vpop.f32.mrb[194].mxu1  ;;  %v11011_v31 = vld [vmem:[#allocation11 + $0x708] ss:$16 sps:$4 sm:$0xff]  }
 0x597   :  { %v4278_v7 = vadd.f32 %v4277_v54, %v13148_v29  ;;  %v4279_v39 = vpop.f32.mrb[195].mxu1  ;;  %v11012_v54 = vld [vmem:[#allocation11 + $0x72c] ss:$16 sps:$4 sm:$0xff]  }
 0x599   :  { %v4956_v30 = vpack.c.bf16 %v4278_v7, %v4275_v4  ;;  %4489 = vmatmul.mubr.bf16.gmra.mrb[120].mxu1 %v10987_v22 }
 0x59a   :  { %4496 = vmatprep.mubr.bf16.mxu1 %v10988_v55 }
 0x59b   :  { %9715 = vmatmul.mubr.msk.bf16.gmra.mrb[156].mxu0 %vm4700_vm4, %v4954_v62 }
 0x59c   :  { %v4282_v20 = vpop.f32.mrb[16].mxu1  ;;  %9718 = vmatprep.mubr.msk.bf16.mxu0 %vm4700_vm4, %v4955_v36  ;;  %v11009_v36 = vld [vmem:[#allocation11 + $0x70c] ss:$16 sps:$4 sm:$0xff]  }
 0x59d   :  { %v4284_v18 = vpop.f32.mrb[17].mxu1 }
 0x59e   :  { %v4285_v14 = vpop.f32.mrb[18].mxu1 }
 0x59f   :  { %v4957_v27 = vpack.c.bf16 %v4285_v14, %v4282_v20  ;;  %v4287_v2 = vpop.f32.mrb[19].mxu1  ;;  %v11014_v20 = vld [vmem:[#allocation11 + $0x728] ss:$16 sps:$4 sm:$0xff]  }
 0x5a1   :  { %4497 = vmatmul.mubr.bf16.gmra.mrb[124].mxu1 %v10990_v5  ;;  %v11015_v5 = vld [vmem:[#allocation11 + $0x74c] ss:$16 sps:$4 sm:$0xff]  }
 0x5a2   :  { %4504 = vmatprep.mubr.bf16.mxu1 %v10991_v15 }
 0x5a3   :  { %9719 = vmatmul.mubr.msk.bf16.gmra.mrb[160].mxu0 %vm4700_vm4, %v4956_v30 }
 0x5a4   :  { %v4290_v29 = vpop.f32.mrb[20].mxu1  ;;  %9722 = vmatprep.mubr.msk.bf16.mxu0 %vm4700_vm4, %v4957_v27 }
 0x5a5   :  { %v4292_v10 = vpop.f32.mrb[21].mxu1 }
 0x5a6   :  { %v4293_v57 = vpop.f32.mrb[22].mxu1 }
 0x5a7   :  { %v4958_v48 = vpack.c.bf16 %v4293_v57, %v4290_v29  ;;  %v4295_v51 = vpop.f32.mrb[23].mxu1  ;;  %v11017_v29 = vld [vmem:[#allocation11 + $0x748] ss:$16 sps:$4 sm:$0xff]  }
 0x5a9   :  { %4505 = vmatmul.mubr.bf16.gmra.mrb[128].mxu1 %v10993_v63  ;;  %v11020_v63 = vld [vmem:[#allocation11 + $0x76c] ss:$16 sps:$4 sm:$0xff]  }
 0x5aa   :  { %4512 = vmatprep.mubr.bf16.mxu1 %v10994_v3 }
 0x5ab   :  { %9723 = vmatmul.mubr.msk.bf16.gmra.mrb[164].mxu0 %vm4700_vm4, %v4958_v48 }
 0x5ac   :  { %v4298_v43 = vpop.f32.mrb[24].mxu1 }
 0x5ad   :  { %v4300_v35 = vpop.f32.mrb[25].mxu1 }
 0x5ae   :  { %v4301_v8 = vpop.f32.mrb[26].mxu1 }
 0x5af   :  { %v5101_v17 = vpack.c.bf16 %v4301_v8, %v4298_v43  ;;  %v4303_v9 = vpop.f32.mrb[27].mxu1  ;;  %v11018_v43 = vld [vmem:[#allocation11 + $0x768] ss:$16 sps:$4 sm:$0xff]  }
 0x5b1   :  { %4513 = vmatmul.mubr.bf16.gmra.mrb[132].mxu1 %v10996_v45  ;;  %9728 = vmatprep.mubr.msk.bf16.mxu0 %vm4700_vm4, %v5101_v17  ;;  %v11023_v45 = vld [vmem:[#allocation11 + $0x78c] ss:$16 sps:$4 sm:$0xff]  }
 0x5b2   :  { %4520 = vmatprep.mubr.bf16.mxu1 %v10997_v50 }
 0x5b4   :  { %v4306_v1 = vpop.f32.mrb[28].mxu1 }
 0x5b5   :  { %v4308_v47 = vpop.f32.mrb[29].mxu1 }
 0x5b6   :  { %v4309_v61 = vpop.f32.mrb[30].mxu1 }
 0x5b7   :  { %v5102_v32 = vpack.c.bf16 %v4309_v61, %v4306_v1  ;;  %v4311_v13 = vpop.f32.mrb[31].mxu1  ;;  %v11021_v1 = vld [vmem:[#allocation11 + $0x788] ss:$16 sps:$4 sm:$0xff]  }
 0x5b8   :  { %v13289_v13 = vld [vmem:[%s13704_s9 + $0xc] sm:$0x3] }
 0x5b9   :  { %4521 = vmatmul.mubr.bf16.gmra.mrb[136].mxu1 %v10999_v25  ;;  %9729 = vmatmul.mubr.msk.bf16.vlgmr.msra.gmra.mrb[152].mxu0 %vm4700_vm4, %v5102_v32  ;;  %v11026_v25 = vld [vmem:[#allocation11 + $0x7ac] ss:$16 sps:$4 sm:$0xff]   ;;  %v5434_v32 = vsel %vm625_vm1, %v13272_v59, 0 }
 0x5ba   :  { %4528 = vmatprep.mubr.bf16.mxu1 %v11000_v24  ;;  %9745 = vmatpush3.bf16.msra.mxu0 %v5284_v6 }
 0x5bb   :  { %10529 = vmatprep.subr.msk.bf16.mxu0 %vm625_vm1, %v13272_v59 }
 0x5bc   :  { %v4314_v49 = vpop.f32.mrb[32].mxu1 }
 0x5bd   :  { %v4316_v58 = vpop.f32.mrb[33].mxu1 }
 0x5be   :  { %v4317_v33 = vpop.f32.mrb[34].mxu1  ;;  %v11024_v58 = vld [vmem:[#allocation11 + $0x7a8] ss:$16 sps:$4 sm:$0xff]  }
 0x5bf   :  { %v5103_v60 = vpack.c.bf16 %v4317_v33, %v4314_v49  ;;  %v4319_v16 = vpop.f32.mrb[35].mxu1  ;;  %v11029_v33 = vld [vmem:[#allocation11 + $0x7cc] ss:$16 sps:$4 sm:$0xff]  }
 0x5c1   :  { %4529 = vmatmul.mubr.bf16.gmra.mrb[140].mxu1 %v11002_v46  ;;  %9732 = vmatprep.mubr.msk.bf16.mxu0 %vm4700_vm4, %v5103_v60 }
 0x5c2   :  { %4536 = vmatprep.mubr.bf16.mxu1 %v11003_v19 }
 0x5c4   :  { %v4322_v23 = vpop.f32.mrb[36].mxu1 }
 0x5c5   :  { %v4324_v62 = vpop.f32.mrb[37].mxu1 }
 0x5c6   :  { %v4325_v37 = vpop.f32.mrb[38].mxu1 }
 0x5c7   :  { %v5104_v56 = vpack.c.bf16 %v4325_v37, %v4322_v23  ;;  %v4327_v52 = vpop.f32.mrb[39].mxu1  ;;  %v11027_v23 = vld [vmem:[#allocation11 + $0x7c8] ss:$16 sps:$4 sm:$0xff]  }
 0x5c9   :  { %4537 = vmatmul.mubr.bf16.gmra.mrb[144].mxu1 %v11005_v38  ;;  %9733 = vmatmul.mubr.msk.bf16.gmra.mrb[156].mxu0 %vm4700_vm4, %v5104_v56  ;;  %v11032_v38 = vld [vmem:[#allocation11 + $0x7ec] ss:$16 sps:$4 sm:$0xff]  }
 0x5ca   :  { %4544 = vmatprep.mubr.bf16.mxu1 %v11006_v0 }
 0x5cc   :  { %v4330_v12 = vpop.f32.mrb[40].mxu1 }
 0x5cd   :  { %v4332_v40 = vpop.f32.mrb[41].mxu1 }
 0x5ce   :  { %v4333_v41 = vpop.f32.mrb[42].mxu1 }
 0x5cf   :  { %v5105_v28 = vpack.c.bf16 %v4333_v41, %v4330_v12  ;;  %v4335_v21 = vpop.f32.mrb[43].mxu1  ;;  %v11030_v12 = vld [vmem:[#allocation11 + $0x7e8] ss:$16 sps:$4 sm:$0xff]  }
 0x5d1   :  { %4545 = vmatmul.mubr.bf16.gmra.mrb[148].mxu1 %v11008_v11  ;;  %9736 = vmatprep.mubr.msk.bf16.mxu0 %vm4700_vm4, %v5105_v28  ;;  %v11035_v11 = vld [vmem:[#allocation11 + $0x80c] ss:$16 sps:$4 sm:$0xff]  }
 0x5d2   :  { %4552 = vmatprep.mubr.bf16.mxu1 %v11009_v36 }
 0x5d4   :  { %v4338_v44 = vpop.f32.mrb[44].mxu1 }
 0x5d5   :  { %v4340_v4 = vpop.f32.mrb[45].mxu1 }
 0x5d6   :  { %v4341_v22 = vpop.f32.mrb[46].mxu1 }
 0x5d7   :  { %v5106_v55 = vpack.c.bf16 %v4341_v22, %v4338_v44  ;;  %v4343_v7 = vpop.f32.mrb[47].mxu1  ;;  %v11033_v44 = vld [vmem:[#allocation11 + $0x808] ss:$16 sps:$4 sm:$0xff]  }
 0x5d9   :  { %4553 = vmatmul.mubr.bf16.gmra.mrb[152].mxu1 %v11011_v31  ;;  %9737 = vmatmul.mubr.msk.bf16.gmra.mrb[160].mxu0 %vm4700_vm4, %v5106_v55  ;;  %v11038_v31 = vld [vmem:[#allocation11 + $0x82c] ss:$16 sps:$4 sm:$0xff]  }
 0x5da   :  { %4560 = vmatprep.mubr.bf16.mxu1 %v11012_v54 }
 0x5dc   :  { %v4346_v39 = vpop.f32.mrb[48].mxu1 }
 0x5dd   :  { %v4348_v30 = vpop.f32.mrb[49].mxu1 }
 0x5de   :  { %v4349_v18 = vpop.f32.mrb[50].mxu1 }
 0x5df   :  { %v5107_v14 = vpack.c.bf16 %v4349_v18, %v4346_v39  ;;  %v4351_v15 = vpop.f32.mrb[51].mxu1  ;;  %v11036_v39 = vld [vmem:[#allocation11 + $0x828] ss:$16 sps:$4 sm:$0xff]  }
 0x5e1   :  { %4561 = vmatmul.mubr.bf16.gmra.mrb[156].mxu1 %v11014_v20  ;;  %9740 = vmatprep.mubr.msk.bf16.mxu0 %vm4700_vm4, %v5107_v14  ;;  %v11041_v20 = vld [vmem:[#allocation11 + $0x84c] ss:$16 sps:$4 sm:$0xff]  }
 0x5e2   :  { %4568 = vmatprep.mubr.bf16.mxu1 %v11015_v5 }
 0x5e4   :  { %v4354_v27 = vpop.f32.mrb[52].mxu1 }
 0x5e5   :  { %v4356_v2 = vpop.f32.mrb[53].mxu1 }
 0x5e6   :  { %v4357_v10 = vpop.f32.mrb[54].mxu1 }
 0x5e7   :  { %v5108_v57 = vpack.c.bf16 %v4357_v10, %v4354_v27  ;;  %v4359_v3 = vpop.f32.mrb[55].mxu1  ;;  %v11039_v27 = vld [vmem:[#allocation11 + $0x848] ss:$16 sps:$4 sm:$0xff]  }
 0x5e9   :  { %4569 = vmatmul.mubr.bf16.gmra.mrb[160].mxu1 %v11017_v29  ;;  %9741 = vmatmul.mubr.msk.bf16.gmra.mrb[164].mxu0 %vm4700_vm4, %v5108_v57  ;;  %v11042_v29 = vld [vmem:[#allocation11 + $0x86c] ss:$16 sps:$4 sm:$0xff]  }
 0x5ea   :  { %4576 = vmatprep.mubr.bf16.mxu1 %v11020_v63 }
 0x5ec   :  { %v4362_v48 = vpop.f32.mrb[56].mxu1 }
 0x5ed   :  { %v4364_v51 = vpop.f32.mrb[57].mxu1 }
 0x5ee   :  { %v4365_v35 = vpop.f32.mrb[58].mxu1 }
 0x5ef   :  { %v5251_v8 = vpack.c.bf16 %v4365_v35, %v4362_v48  ;;  %v4367_v50 = vpop.f32.mrb[59].mxu1  ;;  %v11044_v48 = vld [vmem:[#allocation11 + $0x868] ss:$16 sps:$4 sm:$0xff]  }
 0x5f1   :  { %4577 = vmatmul.mubr.bf16.gmra.mrb[216].mxu1 %v11018_v43  ;;  %9746 = vmatprep.mubr.msk.bf16.mxu0 %vm4700_vm4, %v5251_v8  ;;  %v11045_v43 = vld [vmem:[#allocation11 + $0x88c] ss:$16 sps:$4 sm:$0xff]  }
 0x5f2   :  { %4584 = vmatprep.mubr.bf16.mxu1 %v11023_v45 }
 0x5f4   :  { %v4370_v17 = vpop.f32.mrb[60].mxu1 }
 0x5f5   :  { %v4372_v9 = vpop.f32.mrb[61].mxu1 }
 0x5f6   :  { %v4373_v47 = vpop.f32.mrb[62].mxu1 }
 0x5f7   :  { %v5252_v61 = vpack.c.bf16 %v4373_v47, %v4370_v17  ;;  %v4375_v24 = vpop.f32.mrb[63].mxu1  ;;  %v11047_v17 = vld [vmem:[#allocation11 + $0x888] ss:$16 sps:$4 sm:$0xff]  }
 0x5f8   :  { %v13306_v24 = vld [vmem:[%s13704_s9 + $0xe] sm:$0x3] }
 0x5f9   :  { %4585 = vmatmul.mubr.bf16.gmra.mrb[220].mxu1 %v11021_v1  ;;  %9747 = vmatmul.mubr.msk.bf16.vlgmr.msra.gmra.mrb[152].mxu0 %vm4700_vm4, %v5252_v61  ;;  %v11048_v1 = vld [vmem:[#allocation11 + $0x8ac] ss:$16 sps:$4 sm:$0xff]   ;;  %v5584_v61 = vsel %vm625_vm1, %v13289_v13, 0 }
 0x5fa   :  { %4592 = vmatprep.mubr.bf16.mxu1 %v11026_v25  ;;  %9763 = vmatpush3.bf16.msra.mxu0 %v5434_v32 }
 0x5fb   :  { %10530 = vmatprep.subr.msk.bf16.mxu0 %vm625_vm1, %v13289_v13 }
 0x5fc   :  { %v4378_v6 = vpop.f32.mrb[64].mxu1 }
 0x5fd   :  { %v4380_v49 = vpop.f32.mrb[65].mxu1 }
 0x5fe   :  { %v4381_v46 = vpop.f32.mrb[66].mxu1  ;;  %v11050_v49 = vld [vmem:[#allocation11 + $0x8a8] ss:$16 sps:$4 sm:$0xff]  }
 0x5ff   :  { %v5253_v19 = vpack.c.bf16 %v4381_v46, %v4378_v6  ;;  %v4383_v59 = vpop.f32.mrb[67].mxu1  ;;  %v11051_v46 = vld [vmem:[#allocation11 + $0x8cc] ss:$16 sps:$4 sm:$0xff]  }
 0x601   :  { %4593 = vmatmul.mubr.bf16.gmra.mrb[224].mxu1 %v11024_v58  ;;  %9750 = vmatprep.mubr.msk.bf16.mxu0 %vm4700_vm4, %v5253_v19 }
 0x602   :  { %4600 = vmatprep.mubr.bf16.mxu1 %v11029_v33 }
 0x604   :  { %v4386_v60 = vpop.f32.mrb[68].mxu1 }
 0x605   :  { %v4388_v16 = vpop.f32.mrb[69].mxu1 }
 0x606   :  { %v4389_v62 = vpop.f32.mrb[70].mxu1 }
 0x607   :  { %v5254_v37 = vpack.c.bf16 %v4389_v62, %v4386_v60  ;;  %v4391_v0 = vpop.f32.mrb[71].mxu1  ;;  %v11053_v60 = vld [vmem:[#allocation11 + $0x8c8] ss:$16 sps:$4 sm:$0xff]  }
 0x609   :  { %4601 = vmatmul.mubr.bf16.gmra.mrb[228].mxu1 %v11027_v23  ;;  %9751 = vmatmul.mubr.msk.bf16.gmra.mrb[156].mxu0 %vm4700_vm4, %v5254_v37  ;;  %v11054_v23 = vld [vmem:[#allocation11 + $0x8ec] ss:$16 sps:$4 sm:$0xff]  }
 0x60a   :  { %4608 = vmatprep.mubr.bf16.mxu1 %v11032_v38 }
 0x60c   :  { %v4394_v56 = vpop.f32.mrb[72].mxu1 }
 0x60d   :  { %v4396_v52 = vpop.f32.mrb[73].mxu1 }
 0x60e   :  { %v4397_v40 = vpop.f32.mrb[74].mxu1 }
 0x60f   :  { %v5255_v41 = vpack.c.bf16 %v4397_v40, %v4394_v56  ;;  %v4399_v36 = vpop.f32.mrb[75].mxu1  ;;  %v11056_v56 = vld [vmem:[#allocation11 + $0x8e8] ss:$16 sps:$4 sm:$0xff]  }
 0x611   :  { %4609 = vmatmul.mubr.bf16.gmra.mrb[232].mxu1 %v11030_v12  ;;  %9754 = vmatprep.mubr.msk.bf16.mxu0 %vm4700_vm4, %v5255_v41 }
 0x612   :  { %4616 = vmatprep.mubr.bf16.mxu1 %v11035_v11 }
 0x614   :  { %v4402_v28 = vpop.f32.mrb[76].mxu1 }
 0x615   :  { %v4404_v21 = vpop.f32.mrb[77].mxu1 }
 0x616   :  { %v4405_v4 = vpop.f32.mrb[78].mxu1 }
 0x617   :  { %v5256_v22 = vpack.c.bf16 %v4405_v4, %v4402_v28  ;;  %v4407_v54 = vpop.f32.mrb[79].mxu1 }
 0x619   :  { %4617 = vmatmul.mubr.bf16.gmra.mrb[236].mxu1 %v11033_v44  ;;  %9755 = vmatmul.mubr.msk.bf16.gmra.mrb[160].mxu0 %vm4700_vm4, %v5256_v22 }
 0x61a   :  { %4624 = vmatprep.mubr.bf16.mxu1 %v11038_v31 }
 0x61c   :  { %v4410_v55 = vpop.f32.mrb[80].mxu1 }
 0x61d   :  { %v4412_v7 = vpop.f32.mrb[81].mxu1 }
 0x61e   :  { %v4413_v30 = vpop.f32.mrb[82].mxu1 }
 0x61f   :  { %v5257_v18 = vpack.c.bf16 %v4413_v30, %v4410_v55  ;;  %v4415_v5 = vpop.f32.mrb[83].mxu1 }
 0x621   :  { %4625 = vmatmul.mubr.bf16.gmra.mrb[240].mxu1 %v11036_v39  ;;  %9758 = vmatprep.mubr.msk.bf16.mxu0 %vm4700_vm4, %v5257_v18 }
 0x622   :  { %4632 = vmatprep.mubr.bf16.mxu1 %v11041_v20 }
 0x624   :  { %v4418_v14 = vpop.f32.mrb[84].mxu1 }
 0x625   :  { %v4420_v15 = vpop.f32.mrb[85].mxu1 }
 0x626   :  { %v4421_v2 = vpop.f32.mrb[86].mxu1 }
 0x627   :  { %v5258_v10 = vpack.c.bf16 %v4421_v2, %v4418_v14  ;;  %v4423_v63 = vpop.f32.mrb[87].mxu1 }
 0x629   :  { %4633 = vmatmul.mubr.bf16.gmra.mrb[244].mxu1 %v11039_v27  ;;  %9759 = vmatmul.mubr.msk.bf16.gmra.mrb[164].mxu0 %vm4700_vm4, %v5258_v10 }
 0x62a   :  { %4640 = vmatprep.mubr.bf16.mxu1 %v11042_v29 }
 0x62c   :  { %v4426_v57 = vpop.f32.mrb[88].mxu1 }
 0x62d   :  { %v4428_v3 = vpop.f32.mrb[89].mxu1 }
 0x62e   :  { %v4429_v51 = vpop.f32.mrb[90].mxu1  ;;  %v5734_v3 = vsel %vm625_vm1, %v13306_v24, 0 }
 0x62f   :  { %v5401_v35 = vpack.c.bf16 %v4429_v51, %v4426_v57  ;;  %v4431_v45 = vpop.f32.mrb[91].mxu1 }
 0x631   :  { %4641 = vmatmul.mubr.bf16.gmra.mrb[196].mxu1 %v11044_v48  ;;  %9764 = vmatprep.mubr.msk.bf16.mxu0 %vm4700_vm4, %v5401_v35  ;;  %v9181_v48 = vld [vmem:[%s13704_s9 + $0x10] sm:$0x3] }
 0x632   :  { %4648 = vmatprep.mubr.bf16.mxu1 %v11045_v43 }
 0x634   :  { %v4434_v8 = vpop.f32.mrb[92].mxu1 }
 0x635   :  { %v4436_v50 = vpop.f32.mrb[93].mxu1 }
 0x636   :  { %v4437_v9 = vpop.f32.mrb[94].mxu1 }
 0x637   :  { %v5402_v47 = vpack.c.bf16 %v4437_v9, %v4434_v8  ;;  %v4439_v25 = vpop.f32.mrb[95].mxu1 }
 0x639   :  { %4649 = vmatmul.mubr.bf16.gmra.mrb[200].mxu1 %v11047_v17  ;;  %9765 = vmatmul.mubr.msk.bf16.vlgmr.msra.gmra.mrb[152].mxu0 %vm4700_vm4, %v5402_v47 }
 0x63a   :  { %4656 = vmatprep.mubr.bf16.mxu1 %v11048_v1  ;;  %9781 = vmatpush3.bf16.msra.mxu0 %v5584_v61 }
 0x63b   :  { %10531 = vmatprep.subr.msk.bf16.mxu0 %vm625_vm1, %v13306_v24 }
 0x63c   :  { %v4442_v32 = vpop.f32.mrb[96].mxu1 }
 0x63d   :  { %v4444_v6 = vpop.f32.mrb[97].mxu1 }
 0x63e   :  { %v4445_v58 = vpop.f32.mrb[98].mxu1 }
 0x63f   :  { %v5403_v33 = vpack.c.bf16 %v4445_v58, %v4442_v32  ;;  %v4447_v13 = vpop.f32.mrb[99].mxu1 }
 0x641   :  { %4657 = vmatmul.mubr.bf16.gmra.mrb[204].mxu1 %v11050_v49  ;;  %9768 = vmatprep.mubr.msk.bf16.mxu0 %vm4700_vm4, %v5403_v33 }
 0x642   :  { %4664 = vmatprep.mubr.bf16.mxu1 %v11051_v46 }
 0x644   :  { %v4450_v19 = vpop.f32.mrb[100].mxu1 }
 0x645   :  { %v4452_v59 = vpop.f32.mrb[101].mxu1 }
 0x646   :  { %v4453_v16 = vpop.f32.mrb[102].mxu1 }
 0x647   :  { %v5404_v62 = vpack.c.bf16 %v4453_v16, %v4450_v19  ;;  %v4455_v38 = vpop.f32.mrb[103].mxu1 }
 0x649   :  { %4665 = vmatmul.mubr.bf16.gmra.mrb[208].mxu1 %v11053_v60  ;;  %9769 = vmatmul.mubr.msk.bf16.gmra.mrb[156].mxu0 %vm4700_vm4, %v5404_v62 }
 0x64a   :  { %4672 = vmatprep.mubr.bf16.mxu1 %v11054_v23 }
 0x64c   :  { %v4458_v37 = vpop.f32.mrb[104].mxu1 }
 0x64d   :  { %v4460_v0 = vpop.f32.mrb[105].mxu1 }
 0x64e   :  { %v4461_v52 = vpop.f32.mrb[106].mxu1 }
 0x64f   :  { %v5405_v12 = vpack.c.bf16 %v4461_v52, %v4458_v37  ;;  %v4463_v40 = vpop.f32.mrb[107].mxu1 }
 0x651   :  { %4673 = vmatmul.mubr.bf16.gmra.mrb[212].mxu1 %v11056_v56  ;;  %9772 = vmatprep.mubr.msk.bf16.mxu0 %vm4700_vm4, %v5405_v12 }
 0x654   :  { %v4466_v11 = vpop.f32.mrb[108].mxu1 }
 0x655   :  { %v4468_v41 = vpop.f32.mrb[109].mxu1 }
 0x656   :  { %v4469_v36 = vpop.f32.mrb[110].mxu1 }
 0x657   :  { %v5406_v28 = vpack.c.bf16 %v4469_v36, %v4466_v11  ;;  %v4471_v21 = vpop.f32.mrb[111].mxu1 }
 0x659   :  { %9773 = vmatmul.mubr.msk.bf16.gmra.mrb[160].mxu0 %vm4700_vm4, %v5406_v28 }
 0x65c   :  { %v4474_v44 = vpop.f32.mrb[112].mxu1 }
 0x65d   :  { %v4476_v4 = vpop.f32.mrb[113].mxu1 }
 0x65e   :  { %v4477_v31 = vpop.f32.mrb[114].mxu1 }
 0x65f   :  { %v5407_v22 = vpack.c.bf16 %v4477_v31, %v4474_v44  ;;  %v4479_v54 = vpop.f32.mrb[115].mxu1  ;;  %v5884_v31 = vsel %vm625_vm1, %v9181_v48, 0 }
 0x661   :  { %9776 = vmatprep.mubr.msk.bf16.mxu0 %vm4700_vm4, %v5407_v22 }
 0x664   :  { %v4482_v55 = vpop.f32.mrb[116].mxu1 }
 0x665   :  { %v4484_v7 = vpop.f32.mrb[117].mxu1 }
 0x666   :  { %v4485_v39 = vpop.f32.mrb[118].mxu1 }
 0x667   :  { %v5408_v30 = vpack.c.bf16 %v4485_v39, %v4482_v55  ;;  %v4487_v20 = vpop.f32.mrb[119].mxu1 }
 0x669   :  { %9777 = vmatmul.mubr.msk.bf16.gmra.mrb[164].mxu0 %vm4700_vm4, %v5408_v30 }
 0x66c   :  { %v4490_v18 = vpop.f32.mrb[120].mxu1 }
 0x66d   :  { %v4492_v5 = vpop.f32.mrb[121].mxu1 }
 0x66e   :  { %v4493_v14 = vpop.f32.mrb[122].mxu1 }
 0x66f   :  { %v5551_v15 = vpack.c.bf16 %v4493_v14, %v4490_v18  ;;  %v4495_v27 = vpop.f32.mrb[123].mxu1 }
 0x671   :  { %9782 = vmatprep.mubr.msk.bf16.mxu0 %vm4700_vm4, %v5551_v15 }
 0x674   :  { %v4498_v2 = vpop.f32.mrb[124].mxu1 }
 0x675   :  { %v4500_v29 = vpop.f32.mrb[125].mxu1 }
 0x676   :  { %v4501_v10 = vpop.f32.mrb[126].mxu1 }
 0x677   :  { %v5552_v63 = vpack.c.bf16 %v4501_v10, %v4498_v2  ;;  %v4503_v57 = vpop.f32.mrb[127].mxu1 }
 0x679   :  { %9783 = vmatmul.mubr.msk.bf16.vlgmr.msra.gmra.mrb[152].mxu0 %vm4700_vm4, %v5552_v63 }
 0x67a   :  { %9799 = vmatpush3.bf16.msra.mxu0 %v5734_v3 }
 0x67b   :  { %10532 = vmatprep.subr.msk.bf16.mxu0 %vm625_vm1, %v9181_v48 }
 0x67c   :  { %v4506_v51 = vpop.f32.mrb[128].mxu1 }
 0x67d   :  { %v4508_v43 = vpop.f32.mrb[129].mxu1 }
 0x67e   :  { %v4509_v35 = vpop.f32.mrb[130].mxu1 }
 0x67f   :  { %v5553_v45 = vpack.c.bf16 %v4509_v35, %v4506_v51  ;;  %v4511_v8 = vpop.f32.mrb[131].mxu1  ;;  %v13780_v51 = vld [vmem:[#allocation48_spill] sm:$0xff] }
 0x681   :  { %9786 = vmatprep.mubr.msk.bf16.mxu0 %vm4700_vm4, %v5553_v45  ;;  %v13781_v45 = vld [vmem:[#allocation49_spill] sm:$0xff] }
 0x684   :  { %v4514_v50 = vpop.f32.mrb[132].mxu1 }
 0x685   :  { %v4516_v17 = vpop.f32.mrb[133].mxu1 }
 0x686   :  { %v4517_v9 = vpop.f32.mrb[134].mxu1 }
 0x687   :  { %v5554_v1 = vpack.c.bf16 %v4517_v9, %v4514_v50  ;;  %v4519_v47 = vpop.f32.mrb[135].mxu1  ;;  %v13782_v9 = vld [vmem:[#allocation50_spill] sm:$0xff] }
 0x689   :  { %9787 = vmatmul.mubr.msk.bf16.gmra.mrb[156].mxu0 %vm4700_vm4, %v5554_v1 }
 0x68c   :  { %v4522_v25 = vpop.f32.mrb[136].mxu1 }
 0x68d   :  { %v4524_v61 = vpop.f32.mrb[137].mxu1 }
 0x68e   :  { %v4525_v24 = vpop.f32.mrb[138].mxu1 }
 0x68f   :  { %v5555_v32 = vpack.c.bf16 %v4525_v24, %v4522_v25  ;;  %v4527_v6 = vpop.f32.mrb[139].mxu1  ;;  %v13783_v25 = vld [vmem:[#allocation51_spill] sm:$0xff] }
 0x691   :  { %9790 = vmatprep.mubr.msk.bf16.mxu0 %vm4700_vm4, %v5555_v32 }
 0x694   :  { %v4530_v49 = vpop.f32.mrb[140].mxu1 }
 0x695   :  { %v4532_v58 = vpop.f32.mrb[141].mxu1 }
 0x696   :  { %v4533_v46 = vpop.f32.mrb[142].mxu1 }
 0x697   :  { %v5556_v33 = vpack.c.bf16 %v4533_v46, %v4530_v49  ;;  %v4535_v13 = vpop.f32.mrb[143].mxu1  ;;  %v13784_v49 = vld [vmem:[#allocation52_spill] sm:$0xff] }
 0x698   :  { %v13785_v13 = vld [vmem:[#allocation53_spill] sm:$0xff] }
 0x699   :  { %9791 = vmatmul.mubr.msk.bf16.gmra.mrb[160].mxu0 %vm4700_vm4, %v5556_v33 }
 0x69c   :  { %v4538_v19 = vpop.f32.mrb[144].mxu1 }
 0x69d   :  { %v4540_v59 = vpop.f32.mrb[145].mxu1 }
 0x69e   :  { %v4541_v60 = vpop.f32.mrb[146].mxu1 }
 0x69f   :  { %v5557_v16 = vpack.c.bf16 %v4541_v60, %v4538_v19  ;;  %v4543_v23 = vpop.f32.mrb[147].mxu1 }
 0x6a0   :  { %v13786_v23 = vld [vmem:[#allocation54_spill] sm:$0xff] }
 0x6a1   :  { %9794 = vmatprep.mubr.msk.bf16.mxu0 %vm4700_vm4, %v5557_v16 }
 0x6a4   :  { %v4546_v62 = vpop.f32.mrb[148].mxu1 }
 0x6a5   :  { %v4548_v38 = vpop.f32.mrb[149].mxu1 }
 0x6a6   :  { %v4549_v37 = vpop.f32.mrb[150].mxu1 }
 0x6a7   :  { %v5558_v0 = vpack.c.bf16 %v4549_v37, %v4546_v62  ;;  %v4551_v56 = vpop.f32.mrb[151].mxu1 }
 0x6a9   :  { %9795 = vmatmul.mubr.msk.bf16.gmra.mrb[164].mxu0 %vm4700_vm4, %v5558_v0  ;;  %v13787_v0 = vld [vmem:[#allocation55_spill] sm:$0xff] }
 0x6ac   :  { %v4554_v52 = vpop.f32.mrb[152].mxu1 }
 0x6ad   :  { %v4556_v12 = vpop.f32.mrb[153].mxu1 }
 0x6ae   :  { %v4557_v40 = vpop.f32.mrb[154].mxu1 }
 0x6af   :  { %v5701_v11 = vpack.c.bf16 %v4557_v40, %v4554_v52  ;;  %v4559_v41 = vpop.f32.mrb[155].mxu1 }
 0x6b1   :  { %9800 = vmatprep.mubr.msk.bf16.mxu0 %vm4700_vm4, %v5701_v11  ;;  %v13788_v11 = vld [vmem:[#allocation56_spill] sm:$0xff] }
 0x6b4   :  { %v4562_v36 = vpop.f32.mrb[156].mxu1 }
 0x6b5   :  { %v4564_v28 = vpop.f32.mrb[157].mxu1 }
 0x6b6   :  { %v4565_v21 = vpop.f32.mrb[158].mxu1 }
 0x6b7   :  { %v5702_v44 = vpack.c.bf16 %v4565_v21, %v4562_v36  ;;  %v4567_v4 = vpop.f32.mrb[159].mxu1  ;;  %v13789_v21 = vld [vmem:[#allocation57_spill] sm:$0xff] }
 0x6b9   :  { %9801 = vmatmul.mubr.msk.bf16.vlgmr.msra.gmra.mrb[152].mxu0 %vm4700_vm4, %v5702_v44 }
 0x6ba   :  { %9817 = vmatpush3.bf16.msra.mxu0 %v5884_v31 }
 0x6bc   :  { %v4570_v22 = vpop.f32.mrb[160].mxu1 }
 0x6bd   :  { %v4572_v54 = vpop.f32.mrb[161].mxu1 }
 0x6be   :  { %v4573_v55 = vpop.f32.mrb[162].mxu1  ;;  %v13790_v54 = vld [vmem:[#allocation58_spill] sm:$0xff] }
 0x6bf   :  { %v5703_v7 = vpack.c.bf16 %v4573_v55, %v4570_v22  ;;  %v4575_v39 = vpop.f32.mrb[163].mxu1 }
 0x6c1   :  { %9804 = vmatprep.mubr.msk.bf16.mxu0 %vm4700_vm4, %v5703_v7 }
 0x6c4   :  { %v4578_v30 = vpop.f32.mrb[216].mxu1 }
 0x6c5   :  { %v4579_v20 = vadd.f32 %v4578_v30, %v12989_v53  ;;  %v4580_v18 = vpop.f32.mrb[217].mxu1  ;;  %v13791_v30 = vld [vmem:[#allocation59_spill] sm:$0xff] }
 0x6c6   :  { %v4581_v5 = vpop.f32.mrb[218].mxu1 }
 0x6c7   :  { %v4582_v14 = vadd.f32 %v4581_v5, %v12993_v42  ;;  %v4583_v15 = vpop.f32.mrb[219].mxu1 }
 0x6c9   :  { %v5704_v27 = vpack.c.bf16 %v4582_v14, %v4579_v20 }
 0x6cb   :  { %9805 = vmatmul.mubr.msk.bf16.gmra.mrb[156].mxu0 %vm4700_vm4, %v5704_v27 }
 0x6cc   :  { %v4586_v2 = vpop.f32.mrb[220].mxu1 }
 0x6cd   :  { %v4587_v29 = vadd.f32 %v4586_v2, %v12997_v34  ;;  %v4588_v10 = vpop.f32.mrb[221].mxu1 }
 0x6ce   :  { %v4589_v63 = vpop.f32.mrb[222].mxu1 }
 0x6cf   :  { %v4590_v57 = vadd.f32 %v4589_v63, %v13001_v26  ;;  %v4591_v3 = vpop.f32.mrb[223].mxu1 }
 0x6d1   :  { %v5705_v48 = vpack.c.bf16 %v4590_v57, %v4587_v29 }
 0x6d3   :  { %9808 = vmatprep.mubr.msk.bf16.mxu0 %vm4700_vm4, %v5705_v48 }
 0x6d4   :  { %v4594_v53 = vpop.f32.mrb[224].mxu1 }
 0x6d5   :  { %v4595_v43 = vadd.f32 %v4594_v53, %v13780_v51  ;;  %v4596_v35 = vpop.f32.mrb[225].mxu1 }
 0x6d6   :  { %v4597_v42 = vpop.f32.mrb[226].mxu1 }
 0x6d7   :  { %v4598_v8 = vadd.f32 %v4597_v42, %v13781_v45  ;;  %v4599_v50 = vpop.f32.mrb[227].mxu1 }
 0x6d9   :  { %v5706_v17 = vpack.c.bf16 %v4598_v8, %v4595_v43 }
 0x6db   :  { %9809 = vmatmul.mubr.msk.bf16.gmra.mrb[160].mxu0 %vm4700_vm4, %v5706_v17 }
 0x6dc   :  { %v4602_v34 = vpop.f32.mrb[228].mxu1 }
 0x6dd   :  { %v4603_v1 = vadd.f32 %v4602_v34, %v13782_v9  ;;  %v4604_v47 = vpop.f32.mrb[229].mxu1 }
 0x6de   :  { %v4605_v26 = vpop.f32.mrb[230].mxu1 }
 0x6df   :  { %v4606_v61 = vadd.f32 %v4605_v26, %v13783_v25  ;;  %v4607_v24 = vpop.f32.mrb[231].mxu1 }
 0x6e0   :  { %v13367_v24 = vld [vmem:[#allocation12] ss:$0 sm:$0xff] }
 0x6e1   :  { %v5707_v32 = vpack.c.bf16 %v4606_v61, %v4603_v1  ;;  %v13364_v61 = vld [vmem:[#allocation14] sm:$0xff]  }
 0x6e3   :  { %9812 = vmatprep.mubr.msk.bf16.mxu0 %vm4700_vm4, %v5707_v32 }
 0x6e4   :  { %v4610_v6 = vpop.f32.mrb[232].mxu1 }
 0x6e5   :  { %v4611_v58 = vadd.f32 %v4610_v6, %v13784_v49  ;;  %v4612_v46 = vpop.f32.mrb[233].mxu1 }
 0x6e6   :  { %v4613_v33 = vpop.f32.mrb[234].mxu1 }
 0x6e7   :  { %v4614_v19 = vadd.f32 %v4613_v33, %v13785_v13  ;;  %v4615_v59 = vpop.f32.mrb[235].mxu1 }
 0x6e9   :  { %v5708_v60 = vpack.c.bf16 %v4614_v19, %v4611_v58 }
 0x6eb   :  { %9813 = vmatmul.mubr.msk.bf16.gmra.mrb[164].mxu0 %vm4700_vm4, %v5708_v60 }
 0x6ec   :  { %v4618_v16 = vpop.f32.mrb[236].mxu1 }
 0x6ed   :  { %v4619_v62 = vadd.f32 %v4618_v16, %v13786_v23  ;;  %v4620_v38 = vpop.f32.mrb[237].mxu1 }
 0x6ee   :  { %v4621_v37 = vpop.f32.mrb[238].mxu1 }
 0x6ef   :  { %v4622_v56 = vadd.f32 %v4621_v37, %v13787_v0  ;;  %v4623_v52 = vpop.f32.mrb[239].mxu1 }
 0x6f1   :  { %v5851_v12 = vpack.c.bf16 %v4622_v56, %v4619_v62 }
 0x6f3   :  { %9818 = vmatprep.mubr.msk.bf16.mxu0 %vm4700_vm4, %v5851_v12 }
 0x6f4   :  { %v4626_v40 = vpop.f32.mrb[240].mxu1 }
 0x6f5   :  { %v4627_v41 = vadd.f32 %v4626_v40, %v13788_v11  ;;  %v4628_v36 = vpop.f32.mrb[241].mxu1 }
 0x6f6   :  { %v4629_v28 = vpop.f32.mrb[242].mxu1 }
 0x6f7   :  { %v4630_v44 = vadd.f32 %v4629_v28, %v13789_v21  ;;  %v4631_v4 = vpop.f32.mrb[243].mxu1 }
 0x6f9   :  { %v5852_v31 = vpack.c.bf16 %v4630_v44, %v4627_v41 }
 0x6fb   :  { %9819 = vmatmul.mubr.msk.bf16.vlgmr.msra.gmra.mrb[152].mxu0 %vm4700_vm4, %v5852_v31 }
 0x6fc   :  { %v4634_v22 = vpop.f32.mrb[244].mxu1 }
 0x6fd   :  { %v4635_v55 = vadd.f32 %v4634_v22, %v13790_v54  ;;  %v4636_v7 = vpop.f32.mrb[245].mxu1 }
 0x6fe   :  { %v4637_v39 = vpop.f32.mrb[246].mxu1 }
 0x6ff   :  { %v4638_v20 = vadd.f32 %v4637_v39, %v13791_v30  ;;  %v4639_v18 = vpop.f32.mrb[247].mxu1 }
 0x701   :  { %v5853_v5 = vpack.c.bf16 %v4638_v20, %v4635_v55 }
 0x703   :  { %9822 = vmatprep.mubr.msk.bf16.mxu0 %vm4700_vm4, %v5853_v5 }
 0x704   :  { %v4642_v14 = vpop.f32.mrb[196].mxu1 }
 0x705   :  { %v4644_v15 = vpop.f32.mrb[197].mxu1 }
 0x706   :  { %v4645_v27 = vpop.f32.mrb[198].mxu1 }
 0x707   :  { %v5854_v2 = vpack.c.bf16 %v4645_v27, %v4642_v14  ;;  %v4647_v29 = vpop.f32.mrb[199].mxu1 }
 0x709   :  { %9823 = vmatmul.mubr.msk.bf16.gmra.mrb[156].mxu0 %vm4700_vm4, %v5854_v2 }
 0x70c   :  { %v4650_v10 = vpop.f32.mrb[200].mxu1 }
 0x70d   :  { %v4652_v63 = vpop.f32.mrb[201].mxu1 }
 0x70e   :  { %v4653_v57 = vpop.f32.mrb[202].mxu1 }
 0x70f   :  { %v5855_v3 = vpack.c.bf16 %v4653_v57, %v4650_v10  ;;  %v4655_v48 = vpop.f32.mrb[203].mxu1 }
 0x711   :  { %9826 = vmatprep.mubr.msk.bf16.mxu0 %vm4700_vm4, %v5855_v3 }
 0x714   :  { %v4658_v53 = vpop.f32.mrb[204].mxu1 }
 0x715   :  { %v4660_v51 = vpop.f32.mrb[205].mxu1 }
 0x716   :  { %v4661_v43 = vpop.f32.mrb[206].mxu1 }
 0x717   :  { %v5856_v35 = vpack.c.bf16 %v4661_v43, %v4658_v53  ;;  %v4663_v42 = vpop.f32.mrb[207].mxu1 }
 0x719   :  { %9827 = vmatmul.mubr.msk.bf16.gmra.mrb[160].mxu0 %vm4700_vm4, %v5856_v35 }
 0x71c   :  { %v4666_v45 = vpop.f32.mrb[208].mxu1 }
 0x71d   :  { %v4668_v8 = vpop.f32.mrb[209].mxu1 }
 0x71e   :  { %v4669_v50 = vpop.f32.mrb[210].mxu1 }
 0x71f   :  { %v5857_v17 = vpack.c.bf16 %v4669_v50, %v4666_v45  ;;  %v4671_v34 = vpop.f32.mrb[211].mxu1 }
 0x721   :  { %9830 = vmatprep.mubr.msk.bf16.mxu0 %vm4700_vm4, %v5857_v17 }
 0x724   :  { %v4674_v9 = vpop.f32.mrb[212].mxu1 }
 0x725   :  { %v4676_v1 = vpop.f32.mrb[213].mxu1 }
 0x726   :  { %v4677_v47 = vpop.f32.mrb[214].mxu1 }
 0x727   :  { %v5858_v26 = vpack.c.bf16 %v4677_v47, %v4674_v9  ;;  %v4679_v25 = vpop.f32.mrb[215].mxu1 }
 0x729   :  { %9831 = vmatmul.mubr.msk.bf16.gmra.mrb[164].mxu0 %vm4700_vm4, %v5858_v26 }
 0x72a   :  { %9850 = vmatprep.mubr.bf16.mxu0 %v13364_v61 }
 0x7ce   :  { %v9820_v32 = vpop.f32.mrb[152].mxu0 }
 0x7cf   :  { %v6008_v6 = vadd.f32 %v9820_v32, %v13367_v24  ;;  %v5920_v49 = vpop.f32.mrb[153].mxu0 }
 0x7d0   :  { %v6006_v58 = vadd.f32 %v13367_v24, %v5920_v49  ;;  %v9821_v46 = vpop.f32.mrb[154].mxu0 }
 0x7d1   :  { %v9193_v33 = vmul.f32 -1.442695, %v6008_v6  ;;  %v6009_v13 = vadd.f32 %v9821_v46, %v13367_v24  ;;  %v5923_v19 = vpop.f32.mrb[155].mxu0 }
 0x7d2   :  { %v9191_v59 = vmul.f32 -1.442695, %v6006_v58  ;;  %v6007_v60 = vadd.f32 %v13367_v24, %v5923_v19 }
 0x7d3   :  { %11466 = vpow2.f32 %v9193_v33  ;;  %v9194_v16 = vmul.f32 -1.442695, %v6009_v13 }
 0x7d4   :  { %11468 = vpow2.f32 %v9191_v59  ;;  %v9192_v23 = vmul.f32 -1.442695, %v6007_v60 }
 0x7d5   :  { %11470 = vpow2.f32 %v9194_v16 }
 0x7d6   :  { %11472 = vpow2.f32 %v9192_v23 }
 0x7dc   :  { %v9824_v62 = vpop.f32.mrb[156].mxu0 }
 0x7dd   :  { %v11467_v38 = vpop.eup %11466  ;;  %v13374_v37 = vadd.f32 %v9824_v62, %v13367_v24  ;;  %v5936_v0 = vpop.f32.mrb[157].mxu0 }
 0x7de   :  { %v11469_v56 = vpop.eup %11468  ;;  %v6072_v52 = vadd.f32 1.0, %v11467_v38  ;;  %v13377_v12 = vadd.f32 %v13367_v24, %v5936_v0  ;;  %v9825_v40 = vpop.f32.mrb[158].mxu0 }
 0x7df   :  { %v11471_v11 = vpop.eup %11470  ;;  %v6070_v41 = vadd.f32 1.0, %v11469_v56  ;;  %v13380_v36 = vadd.f32 %v9825_v40, %v13367_v24  ;;  %v5939_v28 = vpop.f32.mrb[159].mxu0  ;;  %v9197_v4 = vmul.f32 -1.442695, %v13374_v37 }
 0x7e0   :  { %v11473_v21 = vpop.eup %11472  ;;  %11474 = vrcp.f32 %v6072_v52  ;;  %v6073_v44 = vadd.f32 1.0, %v11471_v11  ;;  %v13384_v31 = vadd.f32 %v13367_v24, %v5939_v28  ;;  %v9195_v54 = vmul.f32 -1.442695, %v13377_v12 }
 0x7e1   :  { %11476 = vrcp.f32 %v6070_v41  ;;  %v6071_v22 = vadd.f32 1.0, %v11473_v21  ;;  %v9198_v55 = vmul.f32 -1.442695, %v13380_v36 }
 0x7e2   :  { %11478 = vrcp.f32 %v6073_v44  ;;  %v9196_v7 = vmul.f32 -1.442695, %v13384_v31 }
 0x7e3   :  { %11480 = vrcp.f32 %v6071_v22 }
 0x7e4   :  { %11482 = vpow2.f32 %v9197_v4 }
 0x7e5   :  { %11484 = vpow2.f32 %v9195_v54 }
 0x7e6   :  { %11486 = vpow2.f32 %v9198_v55 }
 0x7e7   :  { %11488 = vpow2.f32 %v9196_v7 }
 0x7ea   :  { %v11475_v39 = vpop.eup %11474 }
 0x7eb   :  { %v11477_v30 = vpop.eup %11476  ;;  %v6120_v14 = vmul.f32 %v11475_v39, %v6008_v6 }
 0x7ec   :  { %v11479_v20 = vpop.eup %11478  ;;  %v9828_v18 = vpop.f32.mrb[160].mxu0  ;;  %v6118_v10 = vmul.f32 %v11477_v30, %v6006_v58 }
 0x7ed   :  { %v11481_v5 = vpop.eup %11480  ;;  %v6121_v15 = vmul.f32 %v11479_v20, %v6009_v13  ;;  %v13390_v27 = vadd.f32 %v9828_v18, %v13367_v24  ;;  %v5952_v2 = vpop.f32.mrb[161].mxu0 }
 0x7ee   :  { %v11483_v29 = vpop.eup %11482  ;;  %v6119_v63 = vmul.f32 %v11481_v5, %v6007_v60  ;;  %v13393_v57 = vadd.f32 %v13367_v24, %v5952_v2  ;;  %v9829_v3 = vpop.f32.mrb[162].mxu0 }
 0x7ef   :  { %v11485_v48 = vpop.eup %11484  ;;  %v6076_v53 = vadd.f32 1.0, %v11483_v29  ;;  %v13396_v51 = vadd.f32 %v9829_v3, %v13367_v24  ;;  %v5955_v43 = vpop.f32.mrb[163].mxu0  ;;  %v6171_v35 = vpack.c.bf16 %v6121_v15, %v6120_v14  ;;  %v9201_v9 = vmul.f32 -1.442695, %v13390_v27 }
 0x7f0   :  { %v11487_v42 = vpop.eup %11486  ;;  %v6074_v45 = vadd.f32 1.0, %v11485_v48  ;;  %v13399_v8 = vadd.f32 %v13367_v24, %v5955_v43  ;;  %v6170_v50 = vpack.c.bf16 %v6119_v63, %v6118_v10  ;;  %v9199_v47 = vmul.f32 -1.442695, %v13393_v57 }
 0x7f1   :  { %v11489_v17 = vpop.eup %11488  ;;  %11490 = vrcp.f32 %v6076_v53  ;;  %v6077_v34 = vadd.f32 1.0, %v11487_v42  ;;  %v9202_v26 = vmul.f32 -1.442695, %v13396_v51 }
 0x7f2   :  { %11492 = vrcp.f32 %v6074_v45  ;;  %v6075_v1 = vadd.f32 1.0, %v11489_v17  ;;  %9834 = vmatprep.subr.bf16.mxu0 %v6170_v50  ;;  %v9200_v25 = vmul.f32 -1.442695, %v13399_v8 }
 0x7f3   :  { %11494 = vrcp.f32 %v6077_v34  ;;  %9835 = vmatpush3.bf16.msra.mxu0 %v6170_v50 }
 0x7f4   :  { %11496 = vrcp.f32 %v6075_v1  ;;  %9836 = vmatprep.subr.bf16.mxu0 %v6171_v35  ;;  %v13425_v1 = vld [vmem:[#allocation14 + $0x8] sm:$0xff]  }
 0x7f5   :  { %11498 = vpow2.f32 %v9201_v9  ;;  %v6467_v9 = vld [vmem:[#allocation15 + $0x2] sm:$0x3] }
 0x7f6   :  { %11500 = vpow2.f32 %v9199_v47  ;;  %v13427_v47 = vld [vmem:[#allocation14 + $0x10] sm:$0xff]  }
 0x7f7   :  { %11502 = vpow2.f32 %v9202_v26  ;;  %9837 = vmatpush3.bf16.msra.mxu0 %v6171_v35  ;;  %v6477_v26 = vsel %vm625_vm1, %v6467_v9, 0 }
 0x7f8   :  { %11504 = vpow2.f32 %v9200_v25  ;;  %v13433_v25 = vld [vmem:[#allocation14 + $0x18] sm:$0xff]  }
 0x7fb   :  { %v11491_v32 = vpop.eup %11490 }
 0x7fc   :  { %v11493_v6 = vpop.eup %11492  ;;  %v9832_v49 = vpop.f32.mrb[164].mxu0  ;;  %v6124_v19 = vmul.f32 %v11491_v32, %v13374_v37  ;;  %v13435_v32 = vld [vmem:[#allocation14 + $0x20] sm:$0xff]  }
 0x7fd   :  { %v11495_v58 = vpop.eup %11494  ;;  %v13406_v46 = vadd.f32 %v9832_v49, %v13367_v24  ;;  %v5968_v33 = vpop.f32.mrb[165].mxu0  ;;  %v6122_v62 = vmul.f32 %v11493_v6, %v13377_v12  ;;  %v13439_v6 = vld [vmem:[#allocation14 + $0x28] sm:$0xff]   ;;  %v13441_v49 = vld [vmem:[#allocation14 + $0x30] sm:$0xff]  }
 0x7fe   :  { %v11497_v13 = vpop.eup %11496  ;;  %v6125_v59 = vmul.f32 %v11495_v58, %v13380_v36  ;;  %v13411_v60 = vadd.f32 %v13367_v24, %v5968_v33  ;;  %v9833_v16 = vpop.f32.mrb[166].mxu0  ;;  %v13445_v58 = vld [vmem:[#allocation14 + $0x38] sm:$0xff]   ;;  %v13451_v33 = vld [vmem:[#allocation14 + $0x48] sm:$0xff]  }
 0x7ff   :  { %v11499_v23 = vpop.eup %11498  ;;  %v6123_v38 = vmul.f32 %v11497_v13, %v13384_v31  ;;  %v9205_v0 = vmul.f32 -1.442695, %v13406_v46  ;;  %v6021_v56 = vadd.f32 %v9833_v16, %v13367_v24  ;;  %v5971_v52 = vpop.f32.mrb[167].mxu0  ;;  %v13453_v13 = vld [vmem:[#allocation14 + $0x50] sm:$0xff]  }
 0x800   :  { %v11501_v40 = vpop.eup %11500  ;;  %v6080_v11 = vadd.f32 1.0, %v11499_v23  ;;  %v6019_v37 = vadd.f32 %v13367_v24, %v5971_v52  ;;  %v6173_v41 = vpack.c.bf16 %v6125_v59, %v6124_v19  ;;  %v9203_v12 = vmul.f32 -1.442695, %v13411_v60  ;;  %v13457_v19 = vld [vmem:[#allocation14 + $0x58] sm:$0xff]   ;;  %v13459_v59 = vld [vmem:[#allocation14 + $0x60] sm:$0xff]   ;;  %v13465_v16 = vld [vmem:[#allocation14 + $0x70] sm:$0xff]  }
 0x801   :  { %v11503_v36 = vpop.eup %11502  ;;  %v6078_v28 = vadd.f32 1.0, %v11501_v40  ;;  %11506 = vpow2.f32 %v9205_v0  ;;  %v6172_v21 = vpack.c.bf16 %v6123_v38, %v6122_v62  ;;  %v9206_v22 = vmul.f32 -1.442695, %v6021_v56  ;;  %v13469_v23 = vld [vmem:[#allocation14 + $0x78] sm:$0xff]   ;;  %v13471_v62 = vld [vmem:[#allocation14 + $0x80] sm:$0xff]   ;;  %v13475_v38 = vld [vmem:[#allocation14 + $0x88] sm:$0xff]  }
 0x802   :  { %v11505_v44 = vpop.eup %11504  ;;  %11508 = vrcp.f32 %v6080_v11  ;;  %v6081_v4 = vadd.f32 1.0, %v11503_v36  ;;  %v9204_v54 = vmul.f32 -1.442695, %v6019_v37  ;;  %v6463_v0 = vld [vmem:[#allocation15] sm:$0x3] }
 0x803   :  { %11510 = vrcp.f32 %v6078_v28  ;;  %v6079_v31 = vadd.f32 1.0, %v11505_v44  ;;  %9838 = vmatprep.subr.bf16.mxu0 %v6172_v21 }
 0x804   :  { %11512 = vrcp.f32 %v6081_v4  ;;  %9839 = vmatpush3.bf16.msra.mxu0 %v6172_v21 }
 0x805   :  { %11514 = vrcp.f32 %v6079_v31  ;;  %9840 = vmatprep.subr.bf16.mxu0 %v6173_v41  ;;  %v6535_v31 = vsel %vm625_vm1, %v6463_v0, 0 }
 0x806   :  { %11516 = vpow2.f32 %v9203_v12 }
 0x807   :  { %11518 = vpow2.f32 %v9206_v22  ;;  %v6587_v22 = vld [vmem:[#allocation15 + $0x4] sm:$0x3] }
 0x808   :  { %11520 = vpow2.f32 %v9204_v54  ;;  %9841 = vmatpush3.bf16.msra.mxu0 %v6173_v41 }
 0x80b   :  { %v11507_v24 = vpop.eup %11506 }
 0x80c   :  { %v11509_v55 = vpop.eup %11508  ;;  %v6084_v30 = vadd.f32 1.0, %v11507_v24 }
 0x80d   :  { %v11511_v7 = vpop.eup %11510  ;;  %v6128_v18 = vmul.f32 %v11509_v55, %v13390_v27 }
 0x80e   :  { %v11513_v39 = vpop.eup %11512  ;;  %v6126_v15 = vmul.f32 %v11511_v7, %v13393_v57  ;;  %11522 = vrcp.f32 %v6084_v30 }
 0x80f   :  { %v11515_v20 = vpop.eup %11514  ;;  %v6129_v5 = vmul.f32 %v11513_v39, %v13396_v51 }
 0x810   :  { %v11517_v14 = vpop.eup %11516  ;;  %v6127_v2 = vmul.f32 %v11515_v20, %v13399_v8 }
 0x811   :  { %v11519_v29 = vpop.eup %11518  ;;  %v6082_v10 = vadd.f32 1.0, %v11517_v14  ;;  %v6175_v63 = vpack.c.bf16 %v6129_v5, %v6128_v18  ;;  %v6597_v18 = vsel %vm625_vm1, %v6587_v22, 0  ;;  %v6653_v14 = vld [vmem:[#allocation15 + $0x6] sm:$0x3] }
 0x812   :  { %v11521_v3 = vpop.eup %11520  ;;  %v6085_v48 = vadd.f32 1.0, %v11519_v29  ;;  %v6174_v53 = vpack.c.bf16 %v6127_v2, %v6126_v15 }
 0x813   :  { %11524 = vrcp.f32 %v6082_v10  ;;  %v6083_v43 = vadd.f32 1.0, %v11521_v3 }
 0x814   :  { %11526 = vrcp.f32 %v6085_v48  ;;  %9842 = vmatprep.subr.bf16.mxu0 %v6174_v53 }
 0x815   :  { %11528 = vrcp.f32 %v6083_v43  ;;  %9843 = vmatpush3.bf16.msra.mxu0 %v6174_v53 }
 0x816   :  { %9844 = vmatprep.subr.bf16.mxu0 %v6175_v63 }
 0x818   :  { %v11523_v27 = vpop.eup %11522 }
 0x819   :  { %9845 = vmatpush3.bf16.msra.mxu0 %v6175_v63  ;;  %v6132_v42 = vmul.f32 %v11523_v27, %v13406_v46  ;;  %v13447_v46 = vld [vmem:[#allocation14 + $0x40] sm:$0xff]  }
 0x81d   :  { %v11525_v51 = vpop.eup %11524 }
 0x81e   :  { %v11527_v57 = vpop.eup %11526  ;;  %v6130_v8 = vmul.f32 %v11525_v51, %v13411_v60  ;;  %v13463_v60 = vld [vmem:[#allocation14 + $0x68] sm:$0xff]   ;;  %v6663_v51 = vsel %vm625_vm1, %v6653_v14, 0 }
 0x81f   :  { %v11529_v35 = vpop.eup %11528  ;;  %v6133_v45 = vmul.f32 %v11527_v57, %v6021_v56  ;;  %v6719_v57 = vld [vmem:[#allocation15 + $0x8] sm:$0x3] }
 0x820   :  { %v6131_v50 = vmul.f32 %v11529_v35, %v6019_v37 }
 0x821   :  { %v6177_v17 = vpack.c.bf16 %v6133_v45, %v6132_v42 }
 0x822   :  { %v6176_v34 = vpack.c.bf16 %v6131_v50, %v6130_v8 }
 0x824   :  { %9846 = vmatprep.subr.bf16.mxu0 %v6176_v34 }
 0x825   :  { %9847 = vmatpush3.bf16.msra.mxu0 %v6176_v34 }
 0x826   :  { %9848 = vmatprep.subr.bf16.mxu0 %v6177_v17 }
 0x829   :  { %9849 = vmatpush3.bf16.msra.mxu0 %v6177_v17 }
 0x82a   :  { %10533 = vmatprep.subr.msk.bf16.mxu0 %vm625_vm1, %v6467_v9  ;;  %v6729_v9 = vsel %vm625_vm1, %v6719_v57, 0 }
 0x82c   :  { %9851 = vmatmul.mubr.bf16.vlgmr.msra.gmra.mrb[168].mxu0 %v13425_v1 }
 0x82d   :  { %9854 = vmatprep.mubr.bf16.mxu0 %v13427_v47  ;;  %9887 = vmatpush3.bf16.msra.mxu0 %v6477_v26 }
 0x82e   :  { %10534 = vmatprep.subr.msk.bf16.mxu0 %vm625_vm1, %v6463_v0  ;;  %v6785_v0 = vld [vmem:[#allocation15 + $0xa] sm:$0x3] }
 0x834   :  { %9855 = vmatmul.mubr.bf16.gmra.mrb[172].mxu0 %v13433_v25 }
 0x835   :  { %9858 = vmatprep.mubr.bf16.mxu0 %v13435_v32 }
 0x83c   :  { %9859 = vmatmul.mubr.bf16.gmra.mrb[176].mxu0 %v13439_v6 }
 0x83d   :  { %9862 = vmatprep.mubr.bf16.mxu0 %v13441_v49 }
 0x844   :  { %9863 = vmatmul.mubr.bf16.gmra.mrb[180].mxu0 %v13445_v58 }
 0x845   :  { %9866 = vmatprep.mubr.bf16.mxu0 %v13447_v46 }
 0x84c   :  { %9867 = vmatmul.mubr.bf16.gmra.mrb[184].mxu0 %v13451_v33 }
 0x84d   :  { %9870 = vmatprep.mubr.bf16.mxu0 %v13453_v13 }
 0x854   :  { %9871 = vmatmul.mubr.bf16.gmra.mrb[188].mxu0 %v13457_v19 }
 0x855   :  { %9874 = vmatprep.mubr.bf16.mxu0 %v13459_v59 }
 0x85c   :  { %9875 = vmatmul.mubr.bf16.gmra.mrb[192].mxu0 %v13463_v60 }
 0x85d   :  { %9878 = vmatprep.mubr.bf16.mxu0 %v13465_v16 }
 0x864   :  { %9879 = vmatmul.mubr.bf16.gmra.mrb[196].mxu0 %v13469_v23 }
 0x865   :  { %9882 = vmatprep.mubr.bf16.mxu0 %v13471_v62 }
 0x86c   :  { %9883 = vmatmul.mubr.bf16.gmra.mrb[200].mxu0 %v13475_v38 }
 0x8ff   :  { %v9852_v56 = vpop.f32.mrb[168].mxu0 }
 0x900   :  { %v6320_v52 = vpop.f32.mrb[169].mxu0 }
 0x901   :  { %v9853_v40 = vpop.f32.mrb[170].mxu0 }
 0x902   :  { %v6465_v11 = vpack.c.bf16 %v9853_v40, %v9852_v56  ;;  %v6323_v37 = vpop.f32.mrb[171].mxu0 }
 0x903   :  { %v6464_v41 = vpack.c.bf16 %v6323_v37, %v6320_v52 }
 0x907   :  { %v9856_v36 = vpop.f32.mrb[172].mxu0 }
 0x908   :  { %v6336_v28 = vpop.f32.mrb[173].mxu0 }
 0x909   :  { %v9857_v21 = vpop.f32.mrb[174].mxu0 }
 0x90a   :  { %v6469_v44 = vpack.c.bf16 %v9857_v21, %v9856_v36  ;;  %v6339_v4 = vpop.f32.mrb[175].mxu0 }
 0x90b   :  { %v6468_v12 = vpack.c.bf16 %v6339_v4, %v6336_v28  ;;  %v6795_v4 = vsel %vm625_vm1, %v6785_v0, 0 }
 0x90d   :  { %9888 = vmatprep.mubr.msk.bf16.mxu0 %vm4700_vm4, %v6468_v12  ;;  %v6851_v12 = vld [vmem:[#allocation15 + $0xc] sm:$0x3] }
 0x90e   :  { %9889 = vmatmul.mubr.msk.bf16.vlgmr.msra.gmra.mrb[204].mxu0 %vm4700_vm4, %v6469_v44 }
 0x90f   :  { %9893 = vmatpush3.bf16.msra.mxu0 %v6535_v31  ;;  %9894 = vmatprep.mubr.msk.bf16.mxu0 %vm4700_vm4, %v6464_v41  ;;  %v9860_v54 = vpop.f32.mrb[176].mxu0 }
 0x910   :  { %10535 = vmatprep.subr.msk.bf16.mxu0 %vm625_vm1, %v6587_v22  ;;  %v6352_v24 = vpop.f32.mrb[177].mxu0 }
 0x911   :  { %v9861_v55 = vpop.f32.mrb[178].mxu0 }
 0x912   :  { %v6589_v7 = vpack.c.bf16 %v9861_v55, %v9860_v54  ;;  %v6355_v39 = vpop.f32.mrb[179].mxu0 }
 0x913   :  { %v6588_v30 = vpack.c.bf16 %v6355_v39, %v6352_v24  ;;  %v6861_v39 = vsel %vm625_vm1, %v6851_v12, 0 }
 0x917   :  { %v9864_v20 = vpop.f32.mrb[180].mxu0 }
 0x918   :  { %v6368_v5 = vpop.f32.mrb[181].mxu0 }
 0x919   :  { %v9865_v15 = vpop.f32.mrb[182].mxu0 }
 0x91a   :  { %9895 = vmatmul.mubr.msk.bf16.vlgmr.msra.gmra.mrb[204].mxu0 %vm4700_vm4, %v6465_v11  ;;  %v6655_v2 = vpack.c.bf16 %v9865_v15, %v9864_v20  ;;  %v6371_v29 = vpop.f32.mrb[183].mxu0  ;;  %v13793_v15 = vld [vmem:[#allocation40_spill] sm:$0xff] }
 0x91b   :  { %9899 = vmatpush3.bf16.msra.mxu0 %v6597_v18  ;;  %9900 = vmatprep.mubr.msk.bf16.mxu0 %vm4700_vm4, %v6588_v30  ;;  %v6654_v10 = vpack.c.bf16 %v6371_v29, %v6368_v5  ;;  %v6917_v30 = vld [vmem:[#allocation15 + $0xe] sm:$0x3]  ;;  %v6983_v18 = vld [vmem:[#allocation15 + $0x10] sm:$0x3]  ;;  %v13795_v29 = vld [vmem:[#allocation43_spill] sm:$0xff] }
 0x91c   :  { %10536 = vmatprep.subr.msk.bf16.mxu0 %vm625_vm1, %v6653_v14  ;;  %v6927_v20 = vsel %vm625_vm1, %v6917_v30, 0  ;;  %v6993_v5 = vsel %vm625_vm1, %v6983_v18, 0  ;;  %v13792_v14 = vld [vmem:[#allocation41_spill] sm:$0xff] }
 0x91f   :  { %v9868_v63 = vpop.f32.mrb[184].mxu0 }
 0x920   :  { %v6384_v3 = vpop.f32.mrb[185].mxu0 }
 0x921   :  { %v9869_v48 = vpop.f32.mrb[186].mxu0 }
 0x922   :  { %v6721_v53 = vpack.c.bf16 %v9869_v48, %v9868_v63  ;;  %v6387_v43 = vpop.f32.mrb[187].mxu0  ;;  %v13797_v63 = vld [vmem:[#allocation45_spill] sm:$0xff] }
 0x923   :  { %v6720_v27 = vpack.c.bf16 %v6387_v43, %v6384_v3  ;;  %v13799_v3 = vld [vmem:[#allocation46_spill] sm:$0xff] }
 0x924   :  { %v7237_v48 = vld [vmem:[#allocation17 + $0x4] sm:$0xf] }
 0x926   :  { %9901 = vmatmul.mubr.msk.bf16.vlgmr.msra.gmra.mrb[204].mxu0 %vm4700_vm4, %v6589_v7 }
 0x927   :  { %9905 = vmatpush3.bf16.msra.mxu0 %v6663_v51  ;;  %9906 = vmatprep.mubr.msk.bf16.mxu0 %vm4700_vm4, %v6654_v10  ;;  %v9872_v35 = vpop.f32.mrb[188].mxu0  ;;  %v13796_v10 = vld [vmem:[#allocation44_spill] sm:$0xff] }
 0x928   :  { %10537 = vmatprep.subr.msk.bf16.mxu0 %vm625_vm1, %v6719_v57  ;;  %v6400_v42 = vpop.f32.mrb[189].mxu0 }
 0x929   :  { %v9873_v45 = vpop.f32.mrb[190].mxu0 }
 0x92a   :  { %v6787_v8 = vpack.c.bf16 %v9873_v45, %v9872_v35  ;;  %v6403_v50 = vpop.f32.mrb[191].mxu0 }
 0x92b   :  { %v6786_v17 = vpack.c.bf16 %v6403_v50, %v6400_v42 }
 0x92f   :  { %v9876_v34 = vpop.f32.mrb[192].mxu0 }
 0x930   :  { %v6416_v26 = vpop.f32.mrb[193].mxu0 }
 0x931   :  { %v9877_v56 = vpop.f32.mrb[194].mxu0 }
 0x932   :  { %9907 = vmatmul.mubr.msk.bf16.vlgmr.msra.gmra.mrb[204].mxu0 %vm4700_vm4, %v6655_v2  ;;  %v6853_v52 = vpack.c.bf16 %v9877_v56, %v9876_v34  ;;  %v6419_v40 = vpop.f32.mrb[195].mxu0  ;;  %v13794_v2 = vld [vmem:[#allocation42_spill] sm:$0xff] }
 0x933   :  { %9911 = vmatpush3.bf16.msra.mxu0 %v6729_v9  ;;  %9912 = vmatprep.mubr.msk.bf16.mxu0 %vm4700_vm4, %v6720_v27  ;;  %v6852_v11 = vpack.c.bf16 %v6419_v40, %v6416_v26 }
 0x934   :  { %10538 = vmatprep.subr.msk.bf16.mxu0 %vm625_vm1, %v6785_v0 }
 0x937   :  { %v9880_v37 = vpop.f32.mrb[196].mxu0 }
 0x938   :  { %v6432_v41 = vpop.f32.mrb[197].mxu0 }
 0x939   :  { %v9881_v36 = vpop.f32.mrb[198].mxu0 }
 0x93a   :  { %v6919_v28 = vpack.c.bf16 %v9881_v36, %v9880_v37  ;;  %v6435_v21 = vpop.f32.mrb[199].mxu0 }
 0x93b   :  { %v6918_v44 = vpack.c.bf16 %v6435_v21, %v6432_v41  ;;  %v7490_v41 = vld [vmem:[#allocation17 + $0x10] sm:$0xf] }
 0x93e   :  { %9913 = vmatmul.mubr.msk.bf16.vlgmr.msra.gmra.mrb[204].mxu0 %vm4700_vm4, %v6721_v53  ;;  %v7248_v53 = vsel %vm1490_vm2, %v7237_v48, 0 }
 0x93f   :  { %9917 = vmatpush3.bf16.msra.mxu0 %v6795_v4  ;;  %9918 = vmatprep.mubr.msk.bf16.mxu0 %vm4700_vm4, %v6786_v17  ;;  %v9884_v31 = vpop.f32.mrb[200].mxu0 }
 0x940   :  { %10539 = vmatprep.subr.msk.bf16.mxu0 %vm625_vm1, %v6851_v12  ;;  %v6448_v22 = vpop.f32.mrb[201].mxu0 }
 0x941   :  { %v9885_v54 = vpop.f32.mrb[202].mxu0 }
 0x942   :  { %v6985_v24 = vpack.c.bf16 %v9885_v54, %v9884_v31  ;;  %v6451_v55 = vpop.f32.mrb[203].mxu0 }
 0x943   :  { %v6984_v7 = vpack.c.bf16 %v6451_v55, %v6448_v22  ;;  %v7500_v22 = vsel %vm1490_vm2, %v7490_v41, 0 }
 0x94a   :  { %9919 = vmatmul.mubr.msk.bf16.vlgmr.msra.gmra.mrb[204].mxu0 %vm4700_vm4, %v6787_v8  ;;  %v7424_v8 = vld [vmem:[#allocation17 + $0xc] sm:$0xf] }
 0x94b   :  { %9923 = vmatpush3.bf16.msra.mxu0 %v6861_v39  ;;  %9924 = vmatprep.mubr.msk.bf16.mxu0 %vm4700_vm4, %v6852_v11  ;;  %v7434_v37 = vsel %vm1490_vm2, %v7424_v8, 0 }
 0x94c   :  { %10540 = vmatprep.subr.msk.bf16.mxu0 %vm625_vm1, %v6917_v30 }
 0x956   :  { %9925 = vmatmul.mubr.msk.bf16.vlgmr.msra.gmra.mrb[204].mxu0 %vm4700_vm4, %v6853_v52 }
 0x957   :  { %9929 = vmatpush3.bf16.msra.mxu0 %v6927_v20  ;;  %9930 = vmatprep.mubr.msk.bf16.mxu0 %vm4700_vm4, %v6918_v44 }
 0x958   :  { %10541 = vmatprep.subr.msk.bf16.mxu0 %vm625_vm1, %v6983_v18 }
 0x962   :  { %9931 = vmatmul.mubr.msk.bf16.vlgmr.msra.gmra.mrb[204].mxu0 %vm4700_vm4, %v6919_v28 }
 0x963   :  { %9935 = vmatpush3.bf16.msra.mxu0 %v6993_v5  ;;  %9936 = vmatprep.mubr.msk.bf16.mxu0 %vm4700_vm4, %v6984_v7 }
 0x964   :  { %9940 = vmatprep.subr.bf16.mxu0 %v13792_v14 }
 0x96e   :  { %9937 = vmatmul.mubr.msk.bf16.vlgmr.msra.gmra.mrb[204].mxu0 %vm4700_vm4, %v6985_v24  ;;  %v7556_v24 = vld [vmem:[#allocation17 + $0x14] sm:$0xf] }
 0x96f   :  { %9941 = vmatpush3.bf16.msra.mxu0 %v13792_v14  ;;  %9956 = vmatprep.mubr.bf16.mxu0 %v13364_v61  ;;  %v13798_v61 = vld [vmem:[#allocation47_spill] sm:$0xff] }
 0x970   :  { %9942 = vmatprep.subr.bf16.mxu0 %v13793_v15 }
 0x973   :  { %9943 = vmatpush3.bf16.msra.mxu0 %v13793_v15 }
 0x974   :  { %9944 = vmatprep.subr.bf16.mxu0 %v13794_v2 }
 0x977   :  { %9945 = vmatpush3.bf16.msra.mxu0 %v13794_v2 }
 0x978   :  { %9946 = vmatprep.subr.bf16.mxu0 %v13795_v29 }
 0x97b   :  { %9947 = vmatpush3.bf16.msra.mxu0 %v13795_v29  ;;  %v7566_v29 = vsel %vm1490_vm2, %v7556_v24, 0 }
 0x97c   :  { %9948 = vmatprep.subr.bf16.mxu0 %v13796_v10 }
 0x97f   :  { %9949 = vmatpush3.bf16.msra.mxu0 %v13796_v10  ;;  %v7622_v10 = vld [vmem:[#allocation17 + $0x18] sm:$0xf] }
 0x980   :  { %9950 = vmatprep.subr.bf16.mxu0 %v13797_v63 }
 0x983   :  { %9951 = vmatpush3.bf16.msra.mxu0 %v13797_v63 }
 0x984   :  { %9952 = vmatprep.subr.bf16.mxu0 %v13798_v61 }
 0x987   :  { %9953 = vmatpush3.bf16.msra.mxu0 %v13798_v61 }
 0x988   :  { %9954 = vmatprep.subr.bf16.mxu0 %v13799_v3 }
 0x98b   :  { %9955 = vmatpush3.bf16.msra.mxu0 %v13799_v3 }
 0x98c   :  { %10542 = vmatprep.subr.msk.bf16.mxu0 %vm1490_vm2, %v7237_v48 }
 0x98e   :  { %9957 = vmatmul.mubr.bf16.vlgmr.msra.gmra.mrb[208].mxu0 %v13425_v1  ;;  %v7233_v1 = vld [vmem:[#allocation17] sm:$0xf] }
 0x98f   :  { %9960 = vmatprep.mubr.bf16.mxu0 %v13427_v47  ;;  %9993 = vmatpush3.bf16.msra.mxu0 %v7248_v53 }
 0x990   :  { %10543 = vmatprep.subr.msk.bf16.mxu0 %vm1490_vm2, %v7233_v1 }
 0x996   :  { %9961 = vmatmul.mubr.bf16.gmra.mrb[212].mxu0 %v13433_v25 }
 0x997   :  { %9964 = vmatprep.mubr.bf16.mxu0 %v13435_v32 }
 0x99e   :  { %9965 = vmatmul.mubr.bf16.gmra.mrb[216].mxu0 %v13439_v6 }
 0x99f   :  { %9968 = vmatprep.mubr.bf16.mxu0 %v13441_v49 }
 0x9a6   :  { %9969 = vmatmul.mubr.bf16.gmra.mrb[220].mxu0 %v13445_v58 }
 0x9a7   :  { %9972 = vmatprep.mubr.bf16.mxu0 %v13447_v46 }
 0x9ae   :  { %9973 = vmatmul.mubr.bf16.gmra.mrb[224].mxu0 %v13451_v33 }
 0x9af   :  { %9976 = vmatprep.mubr.bf16.mxu0 %v13453_v13 }
 0x9b6   :  { %9977 = vmatmul.mubr.bf16.gmra.mrb[228].mxu0 %v13457_v19 }
 0x9b7   :  { %9980 = vmatprep.mubr.bf16.mxu0 %v13459_v59 }
 0x9be   :  { %9981 = vmatmul.mubr.bf16.gmra.mrb[232].mxu0 %v13463_v60 }
 0x9bf   :  { %9984 = vmatprep.mubr.bf16.mxu0 %v13465_v16  ;;  %v7306_v16 = vsel %vm1490_vm2, %v7233_v1, 0 }
 0x9c6   :  { %9985 = vmatmul.mubr.bf16.gmra.mrb[236].mxu0 %v13469_v23  ;;  %v7358_v23 = vld [vmem:[#allocation17 + $0x8] sm:$0xf] }
 0x9c7   :  { %9988 = vmatprep.mubr.bf16.mxu0 %v13471_v62  ;;  %v7368_v42 = vsel %vm1490_vm2, %v7358_v23, 0 }
 0x9ce   :  { %9989 = vmatmul.mubr.bf16.gmra.mrb[240].mxu0 %v13475_v38 }
 0xa61   :  { %v9958_v47 = vpop.f32.mrb[208].mxu0 }
 0xa62   :  { %v7090_v25 = vpop.f32.mrb[209].mxu0 }
 0xa63   :  { %v9959_v32 = vpop.f32.mrb[210].mxu0 }
 0xa64   :  { %v7235_v6 = vpack.c.bf16 %v9959_v32, %v9958_v47  ;;  %v7093_v49 = vpop.f32.mrb[211].mxu0  ;;  %v7632_v47 = vsel %vm1490_vm2, %v7622_v10, 0 }
 0xa65   :  { %v7234_v58 = vpack.c.bf16 %v7093_v49, %v7090_v25  ;;  %v7688_v25 = vld [vmem:[#allocation17 + $0x1c] sm:$0xf] }
 0xa66   :  { %v7698_v32 = vsel %vm1490_vm2, %v7688_v25, 0 }
 0xa69   :  { %v9962_v46 = vpop.f32.mrb[212].mxu0 }
 0xa6a   :  { %v7106_v33 = vpop.f32.mrb[213].mxu0 }
 0xa6b   :  { %v9963_v13 = vpop.f32.mrb[214].mxu0 }
 0xa6c   :  { %v7239_v19 = vpack.c.bf16 %v9963_v13, %v9962_v46  ;;  %v7109_v59 = vpop.f32.mrb[215].mxu0  ;;  %v11075_v46 = vld [vmem:[#allocation18] sm:$0xff]   ;;  %v11076_v13 = vld [vmem:[#allocation18 + $0x8] sm:$0xff]  }
 0xa6d   :  { %v7238_v60 = vpack.c.bf16 %v7109_v59, %v7106_v33  ;;  %v11084_v33 = vld [vmem:[#allocation3 + $0x4] ss:$8 sps:$4 sm:$0xff]  }
 0xa6e   :  { %v11078_v59 = vld [vmem:[#allocation18 + $0x18] sm:$0xff]  }
 0xa6f   :  { %9994 = vmatprep.mubr.msk.bf16.mxu0 %vm7240_vm5, %v7238_v60  ;;  %v11079_v60 = vld [vmem:[#allocation18 + $0x20] sm:$0xff]  }
 0xa70   :  { %9995 = vmatmul.mubr.msk.bf16.vlgmr.msra.gmra.mrb[204].mxu0 %vm7240_vm5, %v7239_v19  ;;  %v11077_v19 = vld [vmem:[#allocation18 + $0x10] sm:$0xff]  }
 0xa71   :  { %9999 = vmatpush3.bf16.msra.mxu0 %v7306_v16  ;;  %10000 = vmatprep.mubr.msk.bf16.mxu0 %vm7240_vm5, %v7234_v58  ;;  %v9966_v62 = vpop.f32.mrb[216].mxu0  ;;  %v13800_v58 = vmov 0   ;;  %v11080_v16 = vld [vmem:[#allocation18 + $0x28] sm:$0xff]  }
 0xa72   :  { %10544 = vmatprep.subr.msk.bf16.mxu0 %vm1490_vm2, %v7358_v23  ;;  %v7122_v38 = vpop.f32.mrb[217].mxu0  ;;  %v11081_v23 = vld [vmem:[#allocation18 + $0x30] sm:$0xff]  }
 0xa73   :  { %v9967_v43 = vpop.f32.mrb[218].mxu0 }
 0xa74   :  { %v7360_v27 = vpack.c.bf16 %v9967_v43, %v9966_v62  ;;  %v7125_v51 = vpop.f32.mrb[219].mxu0  ;;  %v11082_v62 = vld [vmem:[#allocation18 + $0x38] sm:$0xff]  }
 0xa75   :  { %v7359_v57 = vpack.c.bf16 %v7125_v51, %v7122_v38  ;;  %v11083_v38 = vld [vmem:[#allocation18 + $0x40] sm:$0xff]   ;;  %v11086_v43 = vld [vmem:[#allocation3] ss:$8 sps:$4 sm:$0xff]  }
 0xa76   :  { %v11089_v51 = vld [vmem:[#allocation3 + $0x10] ss:$8 sps:$4 sm:$0xff]  }
 0xa79   :  { %v9970_v35 = vpop.f32.mrb[220].mxu0 }
 0xa7a   :  { %v7138_v45 = vpop.f32.mrb[221].mxu0 }
 0xa7b   :  { %v9971_v50 = vpop.f32.mrb[222].mxu0 }
 0xa7c   :  { %10001 = vmatmul.mubr.msk.bf16.vlgmr.msra.gmra.mrb[204].mxu0 %vm7240_vm5, %v7235_v6  ;;  %v7426_v17 = vpack.c.bf16 %v9971_v50, %v9970_v35  ;;  %v7141_v34 = vpop.f32.mrb[223].mxu0  ;;  %v7754_v6 = vld [vmem:[#allocation17 + $0x20] sm:$0xf] }
 0xa7d   :  { %10005 = vmatpush3.bf16.msra.mxu0 %v7368_v42  ;;  %10006 = vmatprep.mubr.msk.bf16.mxu0 %vm7240_vm5, %v7359_v57  ;;  %v7425_v9 = vpack.c.bf16 %v7141_v34, %v7138_v45  ;;  %v7764_v49 = vsel %vm1490_vm2, %v7754_v6, 0  ;;  %v11092_v57 = vld [vmem:[#allocation21 + $0x4] ss:$16 sps:$4 sm:$0xff]   ;;  %v11090_v35 = vld [vmem:[#allocation21] ss:$16 sps:$4 sm:$0xff]  }
 0xa7e   :  { %10545 = vmatprep.subr.msk.bf16.mxu0 %vm1490_vm2, %v7424_v8  ;;  %v11095_v42 = vld [vmem:[#allocation21 + $0x24] ss:$16 sps:$4 sm:$0xff]   ;;  %v11093_v45 = vld [vmem:[#allocation21 + $0x20] ss:$16 sps:$4 sm:$0xff]  }
 0xa7f   :  { %v11098_v8 = vld [vmem:[#allocation21 + $0x44] ss:$16 sps:$4 sm:$0xff]   ;;  %v11096_v50 = vld [vmem:[#allocation21 + $0x40] ss:$16 sps:$4 sm:$0xff]  }
 0xa80   :  { %v11099_v34 = vld [vmem:[#allocation21 + $0x60] ss:$16 sps:$4 sm:$0xff]  }
 0xa81   :  { %v9974_v26 = vpop.f32.mrb[224].mxu0 }
 0xa82   :  { %v7154_v0 = vpop.f32.mrb[225].mxu0 }
 0xa83   :  { %v9975_v56 = vpop.f32.mrb[226].mxu0 }
 0xa84   :  { %v7492_v52 = vpack.c.bf16 %v9975_v56, %v9974_v26  ;;  %v7157_v40 = vpop.f32.mrb[227].mxu0  ;;  %v11102_v26 = vld [vmem:[#allocation21 + $0x80] ss:$16 sps:$4 sm:$0xff]  }
 0xa85   :  { %v7491_v11 = vpack.c.bf16 %v7157_v40, %v7154_v0  ;;  %v11107_v0 = vld [vmem:[#allocation21 + $0xa4] ss:$16 sps:$4 sm:$0xff]   ;;  %v11105_v56 = vld [vmem:[#allocation21 + $0xa0] ss:$16 sps:$4 sm:$0xff]  }
 0xa86   :  { %v11108_v40 = vld [vmem:[#allocation21 + $0xc0] ss:$16 sps:$4 sm:$0xff]  }
 0xa88   :  { %10007 = vmatmul.mubr.msk.bf16.vlgmr.msra.gmra.mrb[204].mxu0 %vm7240_vm5, %v7360_v27  ;;  %v11087_v27 = vld [vmem:[#allocation3 + $0x14] ss:$8 sps:$4 sm:$0xff]  }
 0xa89   :  { %10011 = vmatpush3.bf16.msra.mxu0 %v7434_v37  ;;  %10012 = vmatprep.mubr.msk.bf16.mxu0 %vm7240_vm5, %v7425_v9  ;;  %v9978_v36 = vpop.f32.mrb[228].mxu0  ;;  %v11104_v9 = vld [vmem:[#allocation21 + $0x84] ss:$16 sps:$4 sm:$0xff]   ;;  %v11111_v37 = vld [vmem:[#allocation21 + $0xe0] ss:$16 sps:$4 sm:$0xff]  }
 0xa8a   :  { %10546 = vmatprep.subr.msk.bf16.mxu0 %vm1490_vm2, %v7490_v41  ;;  %v7170_v28 = vpop.f32.mrb[229].mxu0  ;;  %v11116_v41 = vld [vmem:[#allocation21 + $0xc] ss:$16 sps:$4 sm:$0xff]  }
 0xa8b   :  { %v9979_v21 = vpop.f32.mrb[230].mxu0 }
 0xa8c   :  { %v7558_v44 = vpack.c.bf16 %v9979_v21, %v9978_v36  ;;  %v7173_v4 = vpop.f32.mrb[231].mxu0 }
 0xa8d   :  { %v7557_v12 = vpack.c.bf16 %v7173_v4, %v7170_v28 }
 0xa91   :  { %v9982_v31 = vpop.f32.mrb[232].mxu0 }
 0xa92   :  { %v7186_v54 = vpop.f32.mrb[233].mxu0 }
 0xa93   :  { %v9983_v55 = vpop.f32.mrb[234].mxu0 }
 0xa94   :  { %10013 = vmatmul.mubr.msk.bf16.vlgmr.msra.gmra.mrb[204].mxu0 %vm7240_vm5, %v7426_v17  ;;  %v7624_v7 = vpack.c.bf16 %v9983_v55, %v9982_v31  ;;  %v7189_v39 = vpop.f32.mrb[235].mxu0  ;;  %v11101_v17 = vld [vmem:[#allocation21 + $0x64] ss:$16 sps:$4 sm:$0xff]  }
 0xa95   :  { %10017 = vmatpush3.bf16.msra.mxu0 %v7500_v22  ;;  %10018 = vmatprep.mubr.msk.bf16.mxu0 %vm7240_vm5, %v7491_v11  ;;  %v7623_v30 = vpack.c.bf16 %v7189_v39, %v7186_v54  ;;  %v11113_v11 = vld [vmem:[#allocation21 + $0xe4] ss:$16 sps:$4 sm:$0xff]  }
 0xa96   :  { %10547 = vmatprep.subr.msk.bf16.mxu0 %vm1490_vm2, %v7556_v24 }
 0xa99   :  { %v9986_v20 = vpop.f32.mrb[236].mxu0 }
 0xa9a   :  { %v7202_v18 = vpop.f32.mrb[237].mxu0 }
 0xa9b   :  { %v9987_v5 = vpop.f32.mrb[238].mxu0 }
 0xa9c   :  { %v7690_v14 = vpack.c.bf16 %v9987_v5, %v9986_v20  ;;  %v7205_v15 = vpop.f32.mrb[239].mxu0 }
 0xa9d   :  { %v7689_v2 = vpack.c.bf16 %v7205_v15, %v7202_v18 }
 0xaa0   :  { %10019 = vmatmul.mubr.msk.bf16.vlgmr.msra.gmra.mrb[204].mxu0 %vm7240_vm5, %v7492_v52  ;;  %v11110_v52 = vld [vmem:[#allocation21 + $0xc4] ss:$16 sps:$4 sm:$0xff]  }
 0xaa1   :  { %10023 = vmatpush3.bf16.msra.mxu0 %v7566_v29  ;;  %10024 = vmatprep.mubr.msk.bf16.mxu0 %vm7240_vm5, %v7557_v12  ;;  %v9990_v63 = vpop.f32.mrb[240].mxu0  ;;  %v9276_v12 = vld [vmem:[#allocation20] ss:$0 sm:$0xff] }
 0xaa2   :  { %10548 = vmatprep.subr.msk.bf16.mxu0 %vm1490_vm2, %v7622_v10  ;;  %v7218_v61 = vpop.f32.mrb[241].mxu0 }
 0xaa3   :  { %v9991_v3 = vpop.f32.mrb[242].mxu0 }
 0xaa4   :  { %v7756_v48 = vpack.c.bf16 %v9991_v3, %v9990_v63  ;;  %v7221_v53 = vpop.f32.mrb[243].mxu0 }
 0xaa5   :  { %v7755_v1 = vpack.c.bf16 %v7221_v53, %v7218_v61 }
 0xaac   :  { %10025 = vmatmul.mubr.msk.bf16.vlgmr.msra.gmra.mrb[204].mxu0 %vm7240_vm5, %v7558_v44 }
 0xaad   :  { %10029 = vmatpush3.bf16.msra.mxu0 %v7632_v47  ;;  %10030 = vmatprep.mubr.msk.bf16.mxu0 %vm7240_vm5, %v7623_v30 }
 0xaae   :  { %10549 = vmatprep.subr.msk.bf16.mxu0 %vm1490_vm2, %v7688_v25 }
 0xab8   :  { %10031 = vmatmul.mubr.msk.bf16.vlgmr.msra.gmra.mrb[204].mxu0 %vm7240_vm5, %v7624_v7 }
 0xab9   :  { %10035 = vmatpush3.bf16.msra.mxu0 %v7698_v32  ;;  %10036 = vmatprep.mubr.msk.bf16.mxu0 %vm7240_vm5, %v7689_v2 }
 0xaba   :  { %10550 = vmatprep.subr.msk.bf16.mxu0 %vm1490_vm2, %v7754_v6 }
 0xac4   :  { %10037 = vmatmul.mubr.msk.bf16.vlgmr.msra.gmra.mrb[204].mxu0 %vm7240_vm5, %v7690_v14 }
 0xac5   :  { %10041 = vmatpush3.bf16.msra.mxu0 %v7764_v49  ;;  %10042 = vmatprep.mubr.msk.bf16.mxu0 %vm7240_vm5, %v7755_v1 }
 0xac6   :  { %7924 = vmatprep.subr.bf16.mxu0 %v13800_v58 }
 0xad0   :  { %10043 = vmatmul.mubr.msk.bf16.vlgmr.msra.gmra.mrb[204].mxu0 %vm7240_vm5, %v7756_v48 }
 0xad1   :  { %7925 = vmatpush1.bf16.msra.mxu0 %v11075_v46  ;;  %9274 = vmatprep.mubr.msk.bf16.mxu0 %vm7917_vm6, %v11084_v33 }
 0xad2   :  { %7926 = vmatprep.subr.bf16.mxu0 %v13800_v58 }
 0xad5   :  { %7927 = vmatpush1.bf16.msra.mxu0 %v11076_v13 }
 0xad6   :  { %7928 = vmatprep.subr.bf16.mxu0 %v13800_v58 }
 0xad9   :  { %7929 = vmatpush1.bf16.msra.mxu0 %v11077_v19  ;;  %v8016_v19 = vld [vmem:[#allocation6] sm:$0xff] }
 0xada   :  { %7930 = vmatprep.subr.bf16.mxu0 %v13800_v58 }
 0xadd   :  { %7931 = vmatpush1.bf16.msra.mxu0 %v11078_v59  ;;  %v8017_v59 = vld [vmem:[#allocation6 + $0x8] sm:$0xff] }
 0xade   :  { %7932 = vmatprep.subr.bf16.mxu0 %v13800_v58 }
 0xae1   :  { %7933 = vmatpush1.bf16.msra.mxu0 %v11079_v60 }
 0xae2   :  { %7934 = vmatprep.subr.bf16.mxu0 %v13800_v58 }
 0xae5   :  { %7935 = vmatpush1.bf16.msra.mxu0 %v11080_v16 }
 0xae6   :  { %7936 = vmatprep.subr.bf16.mxu0 %v13800_v58 }
 0xae9   :  { %7937 = vmatpush1.bf16.msra.mxu0 %v11081_v23 }
 0xaea   :  { %7938 = vmatprep.subr.bf16.mxu0 %v13800_v58 }
 0xaed   :  { %7939 = vmatpush1.bf16.msra.mxu0 %v11082_v62  ;;  %v11114_v62 = vld [vmem:[#allocation21 + $0x8] ss:$16 sps:$4 sm:$0xff]  }
 0xaee   :  { %7940 = vmatprep.subr.bf16.mxu0 %v13800_v58 }
 0xaf1   :  { %7941 = vmatpush1.bf16.msra.mxu0 %v11083_v38 }
 0xaf2   :  { %8240 = vmatprep.subr.bf16.mxu0 %v11092_v57 }
 0xaf4   :  { %7957 = vmatmul.mubr.bf16.vlgmr.msra.gmra.mrb[244].mxu0 %v11086_v43  ;;  %v11119_v43 = vld [vmem:[#allocation21 + $0x2c] ss:$16 sps:$4 sm:$0xff]  }
 0xaf5   :  { %9275 = vmatprep.mubr.msk.bf16.mxu0 %vm7917_vm6, %v11087_v27  ;;  %8241 = vmatpush1.bf16.msra.mxu0 %v11090_v35  ;;  %v8018_v35 = vld [vmem:[#allocation6 + $0x10] sm:$0xff] }
 0xaf6   :  { %8242 = vmatprep.subr.bf16.mxu0 %v11095_v42  ;;  %v8019_v42 = vld [vmem:[#allocation6 + $0x18] sm:$0xff] }
 0xaf9   :  { %8243 = vmatpush1.bf16.msra.mxu0 %v11093_v45  ;;  %v11117_v45 = vld [vmem:[#allocation21 + $0x28] ss:$16 sps:$4 sm:$0xff]  }
 0xafa   :  { %8244 = vmatprep.subr.bf16.mxu0 %v11098_v8 }
 0xafc   :  { %7965 = vmatmul.mubr.bf16.gmra.mrb[248].mxu0 %v11089_v51 }
 0xafd   :  { %8272 = vmatprep.mubr.bf16.mxu0 %v13800_v58  ;;  %8245 = vmatpush1.bf16.msra.mxu0 %v11096_v50  ;;  %v11122_v50 = vld [vmem:[#allocation21 + $0x4c] ss:$16 sps:$4 sm:$0xff]  }
 0xafe   :  { %8246 = vmatprep.subr.bf16.mxu0 %v11101_v17 }
 0xb01   :  { %8247 = vmatpush1.bf16.msra.mxu0 %v11099_v34 }
 0xb02   :  { %8248 = vmatprep.subr.bf16.mxu0 %v11104_v9  ;;  %v11120_v9 = vld [vmem:[#allocation21 + $0x48] ss:$16 sps:$4 sm:$0xff]  }
 0xb05   :  { %8249 = vmatpush1.bf16.msra.mxu0 %v11102_v26 }
 0xb06   :  { %8250 = vmatprep.subr.bf16.mxu0 %v11107_v0  ;;  %v11125_v0 = vld [vmem:[#allocation21 + $0x6c] ss:$16 sps:$4 sm:$0xff]  }
 0xb09   :  { %8251 = vmatpush1.bf16.msra.mxu0 %v11105_v56  ;;  %v11123_v56 = vld [vmem:[#allocation21 + $0x68] ss:$16 sps:$4 sm:$0xff]  }
 0xb0a   :  { %8252 = vmatprep.subr.bf16.mxu0 %v11110_v52  ;;  %v11128_v52 = vld [vmem:[#allocation21 + $0x8c] ss:$16 sps:$4 sm:$0xff]  }
 0xb0d   :  { %8253 = vmatpush1.bf16.msra.mxu0 %v11108_v40  ;;  %v11126_v40 = vld [vmem:[#allocation21 + $0x88] ss:$16 sps:$4 sm:$0xff]  }
 0xb0e   :  { %8254 = vmatprep.subr.bf16.mxu0 %v11113_v11  ;;  %v11131_v11 = vld [vmem:[#allocation21 + $0xac] ss:$16 sps:$4 sm:$0xff]  }
 0xb11   :  { %8255 = vmatpush1.bf16.msra.mxu0 %v11111_v37  ;;  %v11129_v37 = vld [vmem:[#allocation21 + $0xa8] ss:$16 sps:$4 sm:$0xff]  }
 0xb12   :  { %8293 = vmatprep.subr.bf16.mxu0 %v11116_v41  ;;  %v11134_v41 = vld [vmem:[#allocation21 + $0xcc] ss:$16 sps:$4 sm:$0xff]  }
 0xba3   :  { %v10044_v36 = vpop.f32.mrb[204].mxu0 }
 0xba4   :  { %v7800_v28 = vpop.f32.mrb[205].mxu0 }
 0xba5   :  { %v10045_v21 = vpop.f32.mrb[206].mxu0 }
 0xba6   :  { %v7803_v44 = vpop.f32.mrb[207].mxu0 }
 0xbc7   :  { %v7958_v4 = vpop.f32.mrb[244].mxu0 }
 0xbc8   :  { %v7973_v31 = vadd.f32 %v7958_v4, %v7800_v28  ;;  %v7960_v22 = vpop.f32.mrb[245].mxu0  ;;  %v11137_v28 = vld [vmem:[#allocation21 + $0xec] ss:$16 sps:$4 sm:$0xff]  }
 0xbc9   :  { %v7961_v54 = vpop.f32.mrb[246].mxu0 }
 0xbca   :  { %v7984_v24 = vadd.f32 %v9276_v12, %v7973_v31  ;;  %v7974_v55 = vadd.f32 %v7961_v54, %v7803_v44  ;;  %v7963_v7 = vpop.f32.mrb[247].mxu0  ;;  %v8060_v44 = vlaneseq  ;;  %v13612_v31 = vld [vmem:[#allocation23] sm:$0xf] }
 0xbcc   :  { %v9277_v39 = vmul.f32 -1.442695, %v7984_v24  ;;  %v7985_v30 = vadd.f32 %v9276_v12, %v7974_v55  ;;  %v13609_v4 = vshrl.u32 %v8060_v44, 7 }
 0xbce   :  { %11530 = vpow2.f32 %v9277_v39  ;;  %v9278_v20 = vmul.f32 -1.442695, %v7985_v30  ;;  %v8062_v54 = vsub.s32 0, %v13609_v4 }
 0xbcf   :  { %v7966_v18 = vpop.f32.mrb[248].mxu0 }
 0xbd0   :  { %11532 = vpow2.f32 %v9278_v20  ;;  %v7975_v5 = vadd.f32 %v10044_v36, %v7966_v18  ;;  %v7968_v14 = vpop.f32.mrb[249].mxu0  ;;  %v11132_v36 = vld [vmem:[#allocation21 + $0xc8] ss:$16 sps:$4 sm:$0xff]  }
 0xbd1   :  { %v7969_v15 = vpop.f32.mrb[250].mxu0 }
 0xbd2   :  { %v7986_v2 = vadd.f32 %v9276_v12, %v7975_v5  ;;  %v7976_v29 = vadd.f32 %v10045_v21, %v7969_v15  ;;  %v7971_v10 = vpop.f32.mrb[251].mxu0  ;;  %v11135_v21 = vld [vmem:[#allocation21 + $0xe8] ss:$16 sps:$4 sm:$0xff]  }
 0xbd4   :  { %v9279_v63 = vmul.f32 -1.442695, %v7986_v2  ;;  %v7987_v61 = vadd.f32 %v9276_v12, %v7976_v29  ;;  %v8066_v12 = vsub.s32 1, %v13609_v4 }
 0xbd6   :  { %11534 = vpow2.f32 %v9279_v63  ;;  %v9280_v3 = vmul.f32 -1.442695, %v7987_v61  ;;  %v8067_v22 = vrot.slane %v13612_v31, %v8066_v12 }
 0xbd8   :  { %v11531_v48 = vpop.eup %11530  ;;  %11536 = vpow2.f32 %v9280_v3 }
 0xbd9   :  { %v8000_v53 = vadd.f32 1.0, %v11531_v48 }
 0xbda   :  { %v11533_v1 = vpop.eup %11532 }
 0xbdb   :  { %11538 = vrcp.f32 %v8000_v53  ;;  %v8001_v47 = vadd.f32 1.0, %v11533_v1 }
 0xbdd   :  { %11540 = vrcp.f32 %v8001_v47 }
 0xbe0   :  { %v11535_v25 = vpop.eup %11534 }
 0xbe1   :  { %v8002_v32 = vadd.f32 1.0, %v11535_v25 }
 0xbe2   :  { %v11537_v6 = vpop.eup %11536 }
 0xbe3   :  { %11542 = vrcp.f32 %v8002_v32  ;;  %v8003_v49 = vadd.f32 1.0, %v11537_v6 }
 0xbe5   :  { %v11539_v46 = vpop.eup %11538  ;;  %11544 = vrcp.f32 %v8003_v49 }
 0xbe6   :  { %v8012_v33 = vmul.f32 %v11539_v46, %v7984_v24  ;;  %v8074_v46 = vsub.s32 3, %v13609_v4 }
 0xbe7   :  { %v11541_v13 = vpop.eup %11540 }
 0xbe8   :  { %v8013_v60 = vmul.f32 %v11541_v13, %v7985_v30  ;;  %v13594_v16 = vadd.f32 %v8016_v19, %v8012_v33  ;;  %v8075_v33 = vrot.slane %v13612_v31, %v8074_v46 }
 0xbea   :  { %v13596_v23 = vadd.f32 %v8017_v59, %v8013_v60 }
 0xbec   :  { %v8056_v38 = vpack.c.bf16 %v13596_v23, %v13594_v16 }
 0xbed   :  { %v11543_v27 = vpop.eup %11542 }
 0xbee   :  { %v8014_v51 = vmul.f32 %v11543_v27, %v7986_v2  ;;  %8273 = vmatmul.mubr.bf16.vlgmr.msra.gmra.mrb[252].mxu0 %v8056_v38 }
 0xbef   :  { %v11545_v57 = vpop.eup %11544  ;;  %8294 = vmatpush1.bf16.msra.mxu0 %v11114_v62  ;;  %8282 = vmatprep.mubr.bf16.mxu0 %v13800_v58  ;;  %v11138_v62 = vld [vmem:[#allocation26] sm:$0xff]  }
 0xbf0   :  { %v8015_v8 = vmul.f32 %v11545_v57, %v7987_v61  ;;  %8295 = vmatprep.subr.bf16.mxu0 %v11119_v43  ;;  %v13601_v17 = vadd.f32 %v8018_v35, %v8014_v51  ;;  %v11139_v57 = vld [vmem:[#allocation26 + $0x8] sm:$0xff]  }
 0xbf2   :  { %v13603_v34 = vadd.f32 %v8019_v42, %v8015_v8 }
 0xbf3   :  { %8296 = vmatpush1.bf16.msra.mxu0 %v11117_v45 }
 0xbf4   :  { %v8057_v26 = vpack.c.bf16 %v13603_v34, %v13601_v17  ;;  %8297 = vmatprep.subr.bf16.mxu0 %v11122_v50  ;;  %v11140_v50 = vld [vmem:[#allocation26 + $0x10] sm:$0xff]  }
 0xbf6   :  { %8283 = vmatmul.mubr.bf16.gmra.mrb[0].mxu0 %v8057_v26 }
 0xbf7   :  { %8298 = vmatpush1.bf16.msra.mxu0 %v11120_v9  ;;  %8325 = vmatprep.mubr.bf16.mxu0 %v13800_v58 }
 0xbf8   :  { %8299 = vmatprep.subr.bf16.mxu0 %v11125_v0 }
 0xbfb   :  { %8300 = vmatpush1.bf16.msra.mxu0 %v11123_v56 }
 0xbfc   :  { %8301 = vmatprep.subr.bf16.mxu0 %v11128_v52  ;;  %v11141_v52 = vld [vmem:[#allocation26 + $0x18] sm:$0xff]  }
 0xbff   :  { %8302 = vmatpush1.bf16.msra.mxu0 %v11126_v40 }
 0xc00   :  { %8303 = vmatprep.subr.bf16.mxu0 %v11131_v11 }
 0xc03   :  { %8304 = vmatpush1.bf16.msra.mxu0 %v11129_v37 }
 0xc04   :  { %8305 = vmatprep.subr.bf16.mxu0 %v11134_v41  ;;  %v11142_v41 = vld [vmem:[#allocation26 + $0x20] sm:$0xff]  }
 0xc07   :  { %8306 = vmatpush1.bf16.msra.mxu0 %v11132_v36 }
 0xc08   :  { %8307 = vmatprep.subr.bf16.mxu0 %v11137_v28  ;;  %v11143_v28 = vld [vmem:[#allocation26 + $0x28] sm:$0xff]  }
 0xc0b   :  { %8308 = vmatpush1.bf16.msra.mxu0 %v11135_v21 }
 0xc0c   :  { %10046 = vmatprep.subr.bf16.mxu0 %v11138_v62 }
 0xc0e   :  { %8326 = vmatmul.mubr.bf16.vlgmr.msra.gmra.mrb[4].mxu0 %v8056_v38 }
 0xc0f   :  { %8335 = vmatprep.mubr.bf16.mxu0 %v13800_v58  ;;  %v8063_v58 = vrot.slane %v13612_v31, %v8062_v54  ;;  %10047 = vmatpush3.bf16.msra.mxu0 %v11138_v62 }
 0xc10   :  { %10048 = vmatprep.subr.bf16.mxu0 %v11139_v57 }
 0xc13   :  { %10049 = vmatpush3.bf16.msra.mxu0 %v11139_v57 }
 0xc14   :  { %10050 = vmatprep.subr.bf16.mxu0 %v11140_v50 }
 0xc16   :  { %8336 = vmatmul.mubr.bf16.gmra.mrb[8].mxu0 %v8057_v26 }
 0xc17   :  { %10051 = vmatpush3.bf16.msra.mxu0 %v11140_v50 }
 0xc18   :  { %10052 = vmatprep.subr.bf16.mxu0 %v11141_v52 }
 0xc1b   :  { %10053 = vmatpush3.bf16.msra.mxu0 %v11141_v52 }
 0xc1c   :  { %10054 = vmatprep.subr.bf16.mxu0 %v11142_v41 }
 0xc1f   :  { %10055 = vmatpush3.bf16.msra.mxu0 %v11142_v41 }
 0xc20   :  { %10056 = vmatprep.subr.bf16.mxu0 %v11143_v28 }
 0xc23   :  { %10057 = vmatpush3.bf16.msra.mxu0 %v11143_v28 }
 0xcc1   :  { %v8274_v24 = vpop.f32.mrb[252].mxu0 }
 0xcc2   :  { %v8276_v55 = vpop.f32.mrb[253].mxu0  ;;  %v13623_v5 = vadd.f32 %v8274_v24, %v8063_v58 }
 0xcc3   :  { %v13616_v7 = vadd.f32 %v8276_v55, %v8067_v22  ;;  %v8278_v39 = vpop.f32.mrb[254].mxu0  ;;  %v9317_v55 = vld [vmem:[#allocation24] ss:$0 sm:$0xff] }
 0xcc4   :  { %v8280_v30 = vpop.f32.mrb[255].mxu0  ;;  %v8427_v53 = vmul.f32 %v13623_v5, %v13623_v5  ;;  %v13637_v1 = vadd.f32 %v8278_v39, %v8063_v58 }
 0xcc5   :  { %v13619_v20 = vadd.f32 %v8280_v30, %v8067_v22  ;;  %v8451_v18 = vmul.f32 %v13616_v7, %v13616_v7  ;;  %v11145_v30 = vld [vmem:[#allocation26 + $0x38] sm:$0xff]  }
 0xcc6   :  { %v8428_v6 = vmul.f32 %v13637_v1, %v13637_v1 }
 0xcc7   :  { %8455 = vadd.xlane.f32.xlu0 %v8451_v18  ;;  %v8452_v15 = vmul.f32 %v13619_v20, %v13619_v20 }
 0xcc9   :  { %v8284_v14 = vpop.f32.mrb[0].mxu0 }
 0xcca   :  { %v8286_v2 = vpop.f32.mrb[1].mxu0  ;;  %v13629_v61 = vadd.f32 %v8284_v14, %v8063_v58 }
 0xccb   :  { %v13627_v29 = vadd.f32 %v8286_v2, %v8067_v22  ;;  %v8288_v10 = vpop.f32.mrb[2].mxu0  ;;  %8457 = vadd.xlane.f32.xlu0 %v8452_v15 }
 0xccc   :  { %v8290_v63 = vpop.f32.mrb[3].mxu0  ;;  %v8429_v25 = vmul.f32 %v13629_v61, %v13629_v61  ;;  %v13643_v32 = vadd.f32 %v8288_v10, %v8063_v58 }
 0xccd   :  { %v13631_v3 = vadd.f32 %v8290_v63, %v8067_v22  ;;  %v8453_v48 = vmul.f32 %v13627_v29, %v13627_v29  ;;  %v11144_v22 = vld [vmem:[#allocation26 + $0x30] sm:$0xff]  }
 0xcce   :  { %v8430_v49 = vmul.f32 %v13643_v32, %v13643_v32  ;;  %10058 = vmatprep.subr.bf16.mxu0 %v11144_v22 }
 0xccf   :  { %8459 = vadd.xlane.f32.xlu1 %v8453_v48  ;;  %8431 = vadd.xlane.f32.xlu0 %v8427_v53  ;;  %v8454_v47 = vmul.f32 %v13631_v3, %v13631_v3 }
 0xcd0   :  { %10059 = vmatpush3.bf16.msra.mxu0 %v11144_v22 }
 0xcd1   :  { %10060 = vmatprep.subr.bf16.mxu0 %v11145_v30 }
 0xcd3   :  { %8461 = vadd.xlane.f32.xlu1 %v8454_v47  ;;  %8435 = vadd.xlane.f32.xlu0 %v8429_v25 }
 0xcd4   :  { %10061 = vmatpush3.bf16.msra.mxu0 %v11145_v30 }
 0xcd7   :  { %8433 = vadd.xlane.f32.xlu1 %v8428_v6 }
 0xcdb   :  { %8437 = vadd.xlane.f32.xlu1 %v8430_v49 }
 0xce1   :  { %v13651_v13 = vpop.f32.mrb[4].mxu0 }
 0xce2   :  { %v8329_v19 = vpop.f32.mrb[5].mxu0 }
 0xce3   :  { %v8330_v59 = vadd.f32 %v8329_v19, %v8075_v33  ;;  %v13653_v60 = vpop.f32.mrb[6].mxu0 }
 0xce4   :  { %v8333_v38 = vpop.f32.mrb[7].mxu0 }
 0xce5   :  { %v9313_v43 = vmul.f32 -1.442695, %v8330_v59  ;;  %v8334_v27 = vadd.f32 %v8333_v38, %v8075_v33 }
 0xce7   :  { %11546 = vpow2.f32 %v9313_v43  ;;  %v9314_v51 = vmul.f32 -1.442695, %v8334_v27 }
 0xce9   :  { %11548 = vpow2.f32 %v9314_v51  ;;  %v13655_v35 = vpop.f32.mrb[8].mxu0 }
 0xcea   :  { %v8339_v42 = vpop.f32.mrb[9].mxu0 }
 0xceb   :  { %v8340_v45 = vadd.f32 %v8339_v42, %v8075_v33  ;;  %v13657_v8 = vpop.f32.mrb[10].mxu0 }
 0xcec   :  { %v8343_v9 = vpop.f32.mrb[11].mxu0 }
 0xced   :  { %v9315_v26 = vmul.f32 -1.442695, %v8340_v45  ;;  %v8344_v0 = vadd.f32 %v8343_v9, %v8075_v33 }
 0xcef   :  { %11550 = vpow2.f32 %v9315_v26  ;;  %v9316_v56 = vmul.f32 -1.442695, %v8344_v0 }
 0xcf1   :  { %v11547_v40 = vpop.eup %11546  ;;  %11552 = vpow2.f32 %v9316_v56 }
 0xcf2   :  { %v8358_v11 = vadd.f32 1.0, %v11547_v40 }
 0xcf3   :  { %v11549_v37 = vpop.eup %11548 }
 0xcf4   :  { %11554 = vrcp.f32 %v8358_v11  ;;  %v8359_v36 = vadd.f32 1.0, %v11549_v37 }
 0xcf6   :  { %11556 = vrcp.f32 %v8359_v36 }
 0xcf9   :  { %v11551_v21 = vpop.eup %11550 }
 0xcfa   :  { %v8360_v44 = vadd.f32 1.0, %v11551_v21 }
 0xcfb   :  { %v11553_v12 = vpop.eup %11552 }
 0xcfc   :  { %11558 = vrcp.f32 %v8360_v44  ;;  %v8361_v54 = vadd.f32 1.0, %v11553_v12 }
 0xcfe   :  { %v11555_v24 = vpop.eup %11554  ;;  %11560 = vrcp.f32 %v8361_v54 }
 0xcff   :  { %v8370_v39 = vmul.f32 %v11555_v24, %v8330_v59  ;;  %v8070_v59 = vsub.s32 2, %v13609_v4 }
 0xd00   :  { %v11557_v58 = vpop.eup %11556 }
 0xd01   :  { %v8371_v18 = vmul.f32 %v11557_v58, %v8334_v27  ;;  %v8381_v14 = vmul.f32 %v9317_v55, %v8370_v39  ;;  %v8071_v51 = vrot.slane %v13612_v31, %v8070_v59 }
 0xd03   :  { %8385 = vadd.xlane.f32.xlu0 %v8381_v14  ;;  %v8382_v15 = vmul.f32 %v9317_v55, %v8371_v18  ;;  %v8328_v26 = vadd.f32 %v13651_v13, %v8071_v51  ;;  %v8338_v13 = vadd.f32 %v13655_v35, %v8071_v51 }
 0xd05   :  { %8387 = vadd.xlane.f32.xlu1 %v8382_v15 }
 0xd06   :  { %v11559_v2 = vpop.eup %11558 }
 0xd07   :  { %v8372_v10 = vmul.f32 %v11559_v2, %v8340_v45 }
 0xd08   :  { %v11561_v63 = vpop.eup %11560 }
 0xd09   :  { %v8373_v48 = vmul.f32 %v11561_v63, %v8344_v0  ;;  %v8383_v53 = vmul.f32 %v9317_v55, %v8372_v10  ;;  %v8332_v0 = vadd.f32 %v13653_v60, %v8071_v51  ;;  %v8342_v60 = vadd.f32 %v13657_v8, %v8071_v51 }
 0xd0b   :  { %8389 = vadd.xlane.f32.xlu0 %v8383_v53  ;;  %v8384_v47 = vmul.f32 %v9317_v55, %v8373_v48 }
 0xd0d   :  { %8391 = vadd.xlane.f32.xlu1 %v8384_v47 }
 0xd54   :  { %v8456_v25 = vpop.xlane.xlu0 %8455 }
 0xd55   :  { %v8463_v6 = vmax.f32 %v8456_v25, 1e-24 }
 0xd57   :  { %11562 = vrsqrt.f32 %v8463_v6 }
 0xd58   :  { %v8458_v49 = vpop.xlane.xlu0 %8457 }
 0xd59   :  { %v8464_v46 = vmax.f32 %v8458_v49, 1e-24 }
 0xd5b   :  { %11564 = vrsqrt.f32 %v8464_v46 }
 0xd5c   :  { %v8460_v33 = vpop.xlane.xlu1 %8459  ;;  %v8432_v43 = vpop.xlane.xlu0 %8431 }
 0xd5d   :  { %v8465_v19 = vmax.f32 %v8460_v33, 1e-24  ;;  %v8439_v42 = vmax.f32 %v8432_v43, 1e-24 }
 0xd5f   :  { %11566 = vrsqrt.f32 %v8465_v19 }
 0xd60   :  { %v8462_v62 = vpop.xlane.xlu1 %8461  ;;  %v8436_v11 = vpop.xlane.xlu0 %8435 }
 0xd61   :  { %v11563_v38 = vpop.eup %11562  ;;  %v8466_v27 = vmax.f32 %v8462_v62, 1e-24  ;;  %v8441_v41 = vmax.f32 %v8436_v11, 1e-24  ;;  %v8394_v62 = vstv %s13716_s21  ;;  %s12014_s21 = smov [#allocation29]  }
 0xd62   :  { %v8471_v57 = vmul.f32 %v11563_v38, %v13616_v7  ;;  %s8632_s2 = sshll.u32 %s12014_s21, 4  ;;  %s8633_s2 = int_to_ptr.vmem [resolvable:$true] %s8632_s2 }
 0xd63   :  { %11568 = vrsqrt.f32 %v8466_v27  ;;  %s11947_s24 = scalar_lea.vmem %s8633_s2, 512  ;;  %p11952_p3 = scmp.lt.s32.totalorder %s8633_s2, %s8633_s2 }
 0xd64   :  { %v8434_v45 = vpop.xlane.xlu1 %8433  ;;  %v8475_v56 = vmul.f32 %v8471_v57, %v8328_v26  ;;  %11570 = vrsqrt.f32 %v8439_v42  ;;  %p11948_p2 = scmp.ne.s32.totalorder %s8633_s2, %s11947_s24  ;;  %p11953_p4 = scmp.lt.s32.totalorder %s11947_s24, %s11947_s24 }
 0xd65   :  { %v11565_v50 = vpop.eup %11564  ;;  %v8440_v9 = vmax.f32 %v8434_v45, 1e-24 }
 0xd66   :  { %v8472_v4 = vmul.f32 %v11565_v50, %v13619_v20  ;;  %p11954_p5 = por %p11953_p4, %p11952_p3 }
 0xd67   :  { %11572 = vrsqrt.f32 %v8440_v9 }
 0xd68   :  { %v8476_v52 = vmul.f32 %v8472_v4, %v8332_v0  ;;  %v8438_v31 = vpop.xlane.xlu1 %8437  ;;  %11574 = vrsqrt.f32 %v8441_v41  ;;  %p11955_p6 = pnand %p11954_p5, %p11948_p2 }
 0xd69   :  { %v11567_v40 = vpop.eup %11566  ;;  %v8442_v21 = vmax.f32 %v8438_v31, 1e-24  ;;  %v9322_v31 = vld [vmem:[#allocation27] ss:$0 sm:$0xff] }
 0xd6a   :  { %v8479_v37 = vadd.f32 %v8476_v52, %v8475_v56  ;;  %v8473_v7 = vmul.f32 %v11567_v40, %v13627_v29 }
 0xd6b   :  { %11576 = vrsqrt.f32 %v8442_v21 }
 0xd6c   :  { %v8480_v36 = vrot.slane %v8479_v37, 4  ;;  %v8477_v12 = vmul.f32 %v8473_v7, %v8338_v13 }
 0xd6d   :  { %v11569_v28 = vpop.eup %11568 }
 0xd6e   :  { %v8474_v20 = vmul.f32 %v11569_v28, %v13631_v3  ;;  %v8481_v44 = vadd.f32 %v8480_v36, %v8479_v37  ;;  %v11571_v24 = vpop.eup %11570 }
 0xd6f   :  { %v8447_v14 = vmul.f32 %v11571_v24, %v13623_v5 }
 0xd70   :  { %v8478_v22 = vmul.f32 %v8474_v20, %v8342_v60  ;;  %v8482_v54 = vrot.slane %v8481_v44, 2 }
 0xd71   :  { %v11573_v29 = vpop.eup %11572 }
 0xd72   :  { %v8486_v55 = vadd.f32 %v8478_v22, %v8477_v12  ;;  %v8483_v39 = vadd.f32 %v8482_v54, %v8481_v44  ;;  %v8448_v35 = vmul.f32 %v11573_v29, %v13637_v1  ;;  %v11575_v10 = vpop.eup %11574 }
 0xd73   :  { %v8449_v6 = vmul.f32 %v11575_v10, %v13629_v61 }
 0xd74   :  { %v8487_v30 = vrot.slane %v8486_v55, 4  ;;  %v8484_v58 = vrot.slane %v8483_v39, 1 }
 0xd75   :  { %v11577_v53 = vpop.eup %11576 }
 0xd76   :  { %v8488_v18 = vadd.f32 %v8487_v30, %v8486_v55  ;;  %v8485_v8 = vadd.f32 %v8484_v58, %v8483_v39  ;;  %v8450_v49 = vmul.f32 %v11577_v53, %v13643_v32 }
 0xd78   :  { %v8489_v15 = vrot.slane %v8488_v18, 2  ;;  %v8493_v3 = vmul.f32 %v8485_v8, %v8447_v14  ;;  %v8494_v2 = vmul.f32 %v8485_v8, %v8448_v35 }
 0xd7a   :  { %v8490_v63 = vadd.f32 %v8489_v15, %v8488_v18  ;;  %v8513_v48 = vpack.c.bf16 %v8494_v2, %v8493_v3 }
 0xd7c   :  { %v8491_v47 = vrot.slane %v8490_v63, 1  ;;  %10062 = vmatprep.mubr.bf16.mxu0 %v8513_v48 }
 0xd7e   :  { %v8492_v25 = vadd.f32 %v8491_v47, %v8490_v63 }
 0xd80   :  { %v8495_v46 = vmul.f32 %v8492_v25, %v8449_v6  ;;  %v8496_v33 = vmul.f32 %v8492_v25, %v8450_v49 }
 0xd82   :  { %v8514_v5 = vpack.c.bf16 %v8496_v33, %v8495_v46 }
 0xd84   :  { %10063 = vmatmul.mubr.bf16.vlgmr.msra.gmra.mrb[12].mxu0 %v8514_v5 }
 0xd90   :  { %v8386_v1 = vpop.xlane.xlu0 %8385 }
 0xd91   :  { %v8395_v27 = vadd.f32 %v8394_v62, %v8386_v1 }
 0xd92   :  { %v8388_v19 = vpop.xlane.xlu1 %8387 }
 0xd93   :  { %v8396_v57 = vadd.f32 %v8394_v62, %v8388_v19  ;;  %v9318_v61 = vmul.f32 -1.442695, %v8395_v27 }
 0xd95   :  { %v9319_v32 = vmul.f32 -1.442695, %v8396_v57 }
 0xd98   :  { %v8390_v59 = vpop.xlane.xlu0 %8389 }
 0xd99   :  { %v8397_v43 = vadd.f32 %v8394_v62, %v8390_v59 }
 0xd9a   :  { %v8392_v38 = vpop.xlane.xlu1 %8391 }
 0xd9b   :  { %v8398_v51 = vadd.f32 %v8394_v62, %v8392_v38  ;;  %v9320_v42 = vmul.f32 -1.442695, %v8397_v43 }
 0xd9d   :  { %v9321_v45 = vmul.f32 -1.442695, %v8398_v51  ;;  %11578 = vpow2.f32 %v9320_v42 }
 0xd9e   :  { %11580 = vpow2.f32 %v9318_v61 }
 0xd9f   :  { %11582 = vpow2.f32 %v9321_v45 }
 0xda0   :  { %11584 = vpow2.f32 %v9319_v32 }
 0xda7   :  { %v11579_v50 = vpop.eup %11578 }
 0xda8   :  { %v11581_v9 = vpop.eup %11580  ;;  %v8413_v4 = vadd.f32 1.0, %v11579_v50 }
 0xda9   :  { %v11583_v26 = vpop.eup %11582  ;;  %v8411_v56 = vadd.f32 1.0, %v11581_v9 }
 0xdaa   :  { %v11585_v0 = vpop.eup %11584  ;;  %v8414_v52 = vadd.f32 1.0, %v11583_v26  ;;  %11586 = vrcp.f32 %v8413_v4 }
 0xdab   :  { %v8412_v40 = vadd.f32 1.0, %v11585_v0  ;;  %11588 = vrcp.f32 %v8411_v56 }
 0xdac   :  { %11590 = vrcp.f32 %v8414_v52 }
 0xdad   :  { %11592 = vrcp.f32 %v8412_v40 }
 0xdb4   :  { %v11587_v11 = vpop.eup %11586 }
 0xdb5   :  { %v11589_v37 = vpop.eup %11588  ;;  %v8425_v28 = vmul.f32 %v11587_v11, %v13601_v17 }
 0xdb6   :  { %v11591_v7 = vpop.eup %11590  ;;  %v8423_v60 = vmul.f32 %v11589_v37, %v13594_v16 }
 0xdb7   :  { %v11593_v36 = vpop.eup %11592  ;;  %v8426_v22 = vmul.f32 %v11591_v7, %v13603_v34 }
 0xdb8   :  { %v8424_v39 = vmul.f32 %v11593_v36, %v13596_v23 }
 0xe57   :  { %v10064_v41 = vpop.f32.mrb[12].mxu0 }
 0xe58   :  { %v8613_v21 = vadd.f32 %v10064_v41, %v9322_v31  ;;  %v8604_v13 = vpop.f32.mrb[13].mxu0 }
 0xe59   :  { %v8605_v20 = vadd.f32 %v9322_v31, %v8604_v13  ;;  %v10065_v44 = vpop.f32.mrb[14].mxu0 }
 0xe5a   :  { %v8621_v12 = vadd.f32 %v8613_v21, %v8425_v28  ;;  %v8616_v54 = vadd.f32 %v10065_v44, %v9322_v31  ;;  %v8607_v24 = vpop.f32.mrb[15].mxu0 }
 0xe5b   :  { %v8619_v55 = vadd.f32 %v8605_v20, %v8423_v60  ;;  %v8608_v29 = vadd.f32 %v9322_v31, %v8607_v24 }
 0xe5c   :  { %8625 = vst [vmem:[#allocation29 + $0x10] sm:$0xff] %v8621_v12  ;;  %v8622_v30 = vadd.f32 %v8616_v54, %v8426_v22 }
 0xe5d   :  { %8623 = vst [vmem:[#allocation29] sm:$0xff] %v8619_v55  ;;  %v8620_v17 = vadd.f32 %v8608_v29, %v8424_v39 }
 0xe5e   :  { %8626 = vst [vmem:[#allocation29 + $0x18] sm:$0xff] %v8622_v30 }
 0xe5f   :  { %8624 = vst [vmem:[#allocation29 + $0x8] sm:$0xff] %v8620_v17 }
 0xe60   :  { %11958 = shalt.err (!%p11955_p6)
}
 0xe61   :  { %s11959_s12 = scalar_lea.hbm %s13717_s22, 512 }
 0xe62   :  { %p11960_p7 = scmp.ne.s32.totalorder %s13717_s22, %s11959_s12  ;;  %p11963_p8 = scmp.lt.u32.totalorder %s11959_s12, %s13717_s22 }
 0xe64   :  { %p11965_p9 = pnand %p11963_p8, %p11960_p7 }
 0xe66   :  { %11968 = shalt.err (!%p11965_p9)
}
 0xe67   :  { %8638 = dma.vmem_to_hbm [thread:$0]  %s8633_s2, 512, %s13717_s22, [#allocation5], %s13746_s30, %s13746_s30, %s11992_s27  }
 0xe68   :  { %11987 = dma.done.wait [#allocation5], 512  }
 0xe69   :  { %11988 = vsyncadd [#allocation5], 4294966784 }
 0xe6a   :  { %8642 = vsyncpa [#allocation4], 1 }
 0xe6b   :  { %8643 = vsyncpa [#allocation7], 1 }
 0xe6c   :  { %8644 = vsyncpa [#allocation10], 1 }
 0xe6d   :  { %8645 = vsyncpa [#allocation13], 1 }
 0xe6e   :  { %8646 = vsyncpa [#allocation16], 1 }
 0xe6f   :  { %8647 = vsyncpa [#allocation19], 1 }
 0xe70   :  { %8648 = vsyncpa [#allocation22], 1 }
 0xe71   :  { %8649 = vsyncpa [#allocation25], 1 }
 0xe72   :  { %8650 = vsyncpa [#allocation28], 1 }
 0xe73   :  { %8651 = vsyncpa [#allocation5], 1 }

</bundles_post_ra>
